<compile_context>
chip_gen: v6e
topology: v6e:2x2x1
jax: 0.10.0
libtpu: 0.0.40
codegen_flags: <defaults>
</compile_context>

<pallas_src>
import functools

import jax
import jax.numpy as jnp
from jax.experimental import pallas as pl
from jax.experimental.pallas import tpu as pltpu


def _round_up(x, m):
    return (x + m - 1) // m * m


@functools.lru_cache(maxsize=None)
def _tensorcores_per_chip():
    # v7x exposes 2 TensorCores per chip ("parallel" grid axes are sharded across
    # them); v5e/v6e have 1, where splitting a single-block layer is a pure serial
    # loop (extra grid-step overhead, A re-streamed).  Best-effort detection with
    # a conservative single-core default.
    try:
        kind = jax.devices()[0].device_kind.lower()
    except Exception:
        return 1
    return 2 if "7" in kind else 1


# ----------------------------------------------------------------------------
# Pallas kernel: full-K matmul with fused per-channel bias + LeakyReLU epilogue
# ----------------------------------------------------------------------------
def _matmul_fused_kernel(a_ref, b_ref, bias_ref, o_ref, *, leaky,
                         negative_slope=0.2):
    # Single dot over the whole K dimension -> f32 accumulation on the MXU.
    acc = jnp.dot(a_ref[...], b_ref[...], preferred_element_type=jnp.float32)
    y = acc + bias_ref[...]                       # f32 epilogue (BN scale is in B)
    if leaky:
        y = jnp.maximum(y, negative_slope * y)    # valid for slope < 1
    o_ref[...] = y.astype(o_ref.dtype)            # bf16 store


def fused_matmul(a, b, bias, *, leaky=True):
    """bf16 out = leaky((a @ b) + bias), accumulated in f32 on the MXU.

    a:    (M, K) bf16 (im2col columns, (kh,kw,C)-ordered)
    b:    (K, N) bf16 (pre-packed weights, BN scale already folded in)
    bias: (1, N) f32
    """
    M, K = a.shape
    K2, N = b.shape
    assert K == K2

    # --- M tiling: biggest tile <= 256; no host-side padding needed here. ------
    tm = min(256, _round_up(M, 8))
    M_pad = _round_up(M, tm)

    # --- N tiling: full-N blocks by default (lane-dense stores, fewest grid
    #     steps).  Worst case B tile is 4096x512 bf16 = 4 MiB (x2 buffers),
    #     comfortably within scoped VMEM on v5e/v6e/v7x.  Only on v7x do we
    #     split an otherwise single-block layer so the 2nd TensorCore gets work.
    tn = N if N <= 512 else 256
    if (_tensorcores_per_chip() > 1
            and (M_pad // tm) * (N // tn) < 2
            and tn % 256 == 0):
        tn //= 2
    assert N % tn == 0, (N, tn)

    a = a.astype(jnp.bfloat16)
    if M_pad != M:
        a = jnp.pad(a, ((0, M_pad - M), (0, 0)))

    grid = (M_pad // tm, N // tn)
    kernel = functools.partial(_matmul_fused_kernel, leaky=leaky)

    cost = pl.CostEstimate(
        flops=2 * M_pad * K * N,
        transcendentals=0,
        bytes_accessed=2 * (M_pad * K + K * N + M_pad * N) + 4 * N,  # bf16 + f32 bias
    )

    out = pl.pallas_call(
        kernel,
        out_shape=jax.ShapeDtypeStruct((M_pad, N), jnp.bfloat16),
        grid_spec=pltpu.PrefetchScalarGridSpec(
            num_scalar_prefetch=0,
            grid=grid,
            in_specs=[
                pl.BlockSpec((tm, K), lambda i, j: (i, 0)),   # A: full-K row tile
                pl.BlockSpec((K, tn), lambda i, j: (0, j)),   # B: full-K col tile
                pl.BlockSpec((1, tn), lambda i, j: (0, j)),   # bias
            ],
            out_specs=pl.BlockSpec((tm, tn), lambda i, j: (i, j)),
        ),
        compiler_params=pltpu.CompilerParams(
            dimension_semantics=("parallel", "parallel"),
            vmem_limit_bytes=32 * 1024 * 1024,
        ),
        cost_estimate=cost,
    )(a, b, bias)

    if M_pad != M:
        out = out[:M]
    return out


# ----------------------------------------------------------------------------
# im2col in NHWC (channels-last columns -> lane-dense A tiles, no transposes)
# ----------------------------------------------------------------------------
def _im2col_nhwc(x, kh, kw, stride, pad):
    # x: (N, H, W, C) -> (N*Ho*Wo, kh*kw*C), columns ordered (kh, kw, C).
    # Runs in bf16 (x is bf16), so the column buffer round-trip is half the bytes.
    n, h, w, c = x.shape
    xp = jnp.pad(x, ((0, 0), (pad, pad), (pad, pad), (0, 0)))
    h_out = (h + 2 * pad - kh) // stride + 1
    w_out = (w + 2 * pad - kw) // stride + 1
    patches = []
    for i in range(kh):
        for j in range(kw):
            patches.append(
                xp[:, i:i + stride * h_out:stride, j:j + stride * w_out:stride, :])
    cols = jnp.stack(patches, axis=3)                 # (N, Ho, Wo, kh*kw, C)
    cols = cols.reshape(n * h_out * w_out, kh * kw * c)
    return cols, h_out, w_out


def conv2d_fused_nhwc(x, wmat, bias, stride, pad):
    # x: (N, H, W, Cin) NHWC bf16; wmat: (kh*kw*Cin, Cout) bf16 (scale folded in).
    n = x.shape[0]
    cols, h_out, w_out = _im2col_nhwc(x, 4, 4, stride, pad)
    out2d = fused_matmul(cols, wmat, bias, leaky=True)     # (N*Ho*Wo, Cout) bf16
    return out2d.reshape(n, h_out, w_out, -1)              # stays NHWC bf16


# ----------------------------------------------------------------------------
# Discriminator parameters (deterministic init, one-time weight preprocessing)
# ----------------------------------------------------------------------------
def init_params(key):
    eps = 1e-5
    chans = [(3, 64), (64, 128), (128, 256), (256, 512), (512, 1)]
    params = []
    for li, (cin, cout) in enumerate(chans):
        key, kw_, kg, kb, km, kv = jax.random.split(key, 6)
        w = 0.02 * jax.random.normal(kw_, (cout, cin, 4, 4), jnp.float32)
        # Pre-pack ONCE: (Cout,Cin,kh,kw) -> (kh,kw,Cin,Cout) -> (K,Cout), matching
        # the (kh, kw, C) ordering of the NHWC im2col columns.
        wmat = w.transpose(2, 3, 1, 0).reshape(4 * 4 * cin, cout)

        has_bn = li in (1, 2, 3)
        if has_bn:  # eval-mode BN: running stats folded into per-channel scale/bias
            gamma = 1.0 + 0.02 * jax.random.normal(kg, (cout,), jnp.float32)
            beta = 0.02 * jax.random.normal(kb, (cout,), jnp.float32)
            rmean = 0.05 * jax.random.normal(km, (cout,), jnp.float32)
            rvar = 1.0 + 0.1 * jax.random.uniform(kv, (cout,), jnp.float32)
            scale = gamma / jnp.sqrt(rvar + eps)
            bias = beta - rmean * scale
        else:
            scale = jnp.ones((cout,), jnp.float32)
            bias = jnp.zeros((cout,), jnp.float32)

        # Fold the BN scale into the pre-packed weights (in f32, once), then cast
        # to bf16 for the MXU fast path and halved weight DMA.
        wmat = (wmat * scale[None, :]).astype(jnp.bfloat16)
        params.append({"wmat": wmat, "bias": bias.reshape(1, cout)})
    return params


# ----------------------------------------------------------------------------
# Forward pass (NCHW in, scalar-per-image out, matching PyTorch semantics)
# ----------------------------------------------------------------------------
def discriminator_forward(x, params):
    # One layout + dtype conversion at the module boundary: NCHW f32 -> NHWC bf16.
    h = x.transpose(0, 2, 3, 1).astype(jnp.bfloat16)

    for li in range(4):
        p = params[li]
        h = conv2d_fused_nhwc(h, p["wmat"], p["bias"], stride=2, pad=1)

    # Final Conv2d(512, 1, 4, 1, 0) on the 4x4 map: for pad=0/stride=1 the
    # (kh,kw,C)-ordered im2col of a 4x4 map IS the NHWC flatten, so this is a
    # single (B, 8192) x (8192, 1) dot -> plain bf16 dot + sigmoid (no Pallas).
    n = h.shape[0]
    p = params[4]
    logits = jnp.dot(h.reshape(n, -1), p["wmat"],
                     preferred_element_type=jnp.float32)   # (B, 1) f32
    out = jax.nn.sigmoid(logits)
    # .view(-1, 1).squeeze(1)
    return out.reshape(-1, 1).squeeze(1)


if __name__ == "__main__":
    key = jax.random.PRNGKey(0)
    kx, kp = jax.random.split(key)
    # DCGAN discriminator expects 64x64 RGB inputs (so the final 4x4 valid conv
    # yields a 1x1 map).
    x = jax.random.normal(kx, (2, 3, 64, 64), jnp.float32)
    params = init_params(kp)

    fwd = jax.jit(discriminator_forward)
    out = jax.block_until_ready(fwd(x, params))

    assert out.shape == (2,), out.shape
    assert bool(jnp.all(jnp.isfinite(out)))
    assert bool(jnp.all((out >= 0) & (out <= 1)))
    print("KERNEL_OK")
</pallas_src>

<mosaic_0001>
module attributes {stable_mosaic.version = 11 : i64} {
  func.func @_matmul_fused_kernel(%arg0: i32, %arg1: i32, %arg2: memref<256x48xbf16, #tpu.memory_space<vmem>>, %arg3: memref<48x64xbf16, #tpu.memory_space<vmem>>, %arg4: memref<1x64xf32, #tpu.memory_space<vmem>>, %arg5: memref<256x64xbf16, #tpu.memory_space<vmem>>) attributes {dimension_semantics = [#tpu.dimension_semantics<parallel>, #tpu.dimension_semantics<parallel>], iteration_bounds = array<i64: 8, 1>, scalar_prefetch = 0 : i64, scratch_operands = 0 : i64, tpu.core_type = #tpu.core_type<tc>, window_params = [{transform_indices = @transform_0, window_bounds = array<i64: 256, 48>}, {transform_indices = @transform_1, window_bounds = array<i64: 48, 64>}, {transform_indices = @transform_2, window_bounds = array<i64: 1, 64>}, {transform_indices = @transform_3, window_bounds = array<i64: 256, 64>}]} {
    %c0 = arith.constant 0 : index
    %c0_0 = arith.constant 0 : index
    %0 = vector.load %arg2[%c0, %c0_0] : memref<256x48xbf16, #tpu.memory_space<vmem>>, vector<256x48xbf16>
    %c0_1 = arith.constant 0 : index
    %c0_2 = arith.constant 0 : index
    %1 = vector.load %arg3[%c0_1, %c0_2] : memref<48x64xbf16, #tpu.memory_space<vmem>>, vector<48x64xbf16>
    %cst = arith.constant dense<0.000000e+00> : vector<256x64xf32>
    %2 = tpu.matmul %0, %1, %cst {dimension_numbers = #tpu.dot_dimension_numbers<[1], [0], [0], [1], [0, 0, 1, 1], [], []>} : vector<256x48xbf16>, vector<48x64xbf16>, vector<256x64xf32> -> vector<256x64xf32>
    %c0_3 = arith.constant 0 : index
    %c0_4 = arith.constant 0 : index
    %3 = vector.load %arg4[%c0_3, %c0_4] : memref<1x64xf32, #tpu.memory_space<vmem>>, vector<1x64xf32>
    %4 = vector.broadcast %3 : vector<1x64xf32> to vector<256x64xf32>
    %5 = arith.addf %2, %4 : vector<256x64xf32>
    %cst_5 = arith.constant 2.000000e-01 : f32
    %6 = vector.broadcast %cst_5 : f32 to vector<256x64xf32>
    %7 = arith.mulf %6, %5 : vector<256x64xf32>
    %8 = arith.maximumf %5, %7 : vector<256x64xf32>
    %9 = arith.truncf %8 : vector<256x64xf32> to vector<256x64xbf16>
    %c0_6 = arith.constant 0 : index
    %c0_7 = arith.constant 0 : index
    %10 = vector.load %arg5[%c0_6, %c0_7] : memref<256x64xbf16, #tpu.memory_space<vmem>>, vector<256x64xbf16>
    tpu.vector_store %arg5[%c0_6, %c0_7], %9 {strides = array<i32>} : memref<256x64xbf16, #tpu.memory_space<vmem>>, vector<256x64xbf16>,
    return
  }
  func.func @transform_0(%arg0: i32, %arg1: i32) -> (i32, i32) {
    %c0_i32 = arith.constant 0 : i32
    %c0_i32_0 = arith.constant 0 : i32
    return %arg0, %c0_i32 : i32, i32
  }
  func.func @transform_1(%arg0: i32, %arg1: i32) -> (i32, i32) {
    %c0_i32 = arith.constant 0 : i32
    %c0_i32_0 = arith.constant 0 : i32
    return %c0_i32, %arg1 : i32, i32
  }
  func.func @transform_2(%arg0: i32, %arg1: i32) -> (i32, i32) {
    %c0_i32 = arith.constant 0 : i32
    %c0_i32_0 = arith.constant 0 : i32
    return %c0_i32, %arg1 : i32, i32
  }
  func.func @transform_3(%arg0: i32, %arg1: i32) -> (i32, i32) {
    %c0_i32 = arith.constant 0 : i32
    return %arg0, %arg1 : i32, i32
  }
}

module attributes {stable_mosaic.version = 11 : i64} {
  func.func @_matmul_fused_kernel(%arg0: i32, %arg1: i32, %arg2: memref<256x1024xbf16, #tpu.memory_space<vmem>>, %arg3: memref<1024x128xbf16, #tpu.memory_space<vmem>>, %arg4: memref<1x128xf32, #tpu.memory_space<vmem>>, %arg5: memref<256x128xbf16, #tpu.memory_space<vmem>>) attributes {dimension_semantics = [#tpu.dimension_semantics<parallel>, #tpu.dimension_semantics<parallel>], iteration_bounds = array<i64: 2, 1>, scalar_prefetch = 0 : i64, scratch_operands = 0 : i64, tpu.core_type = #tpu.core_type<tc>, window_params = [{transform_indices = @transform_0, window_bounds = array<i64: 256, 1024>}, {transform_indices = @transform_1, window_bounds = array<i64: 1024, 128>}, {transform_indices = @transform_2, window_bounds = array<i64: 1, 128>}, {transform_indices = @transform_3, window_bounds = array<i64: 256, 128>}]} {
    %c0 = arith.constant 0 : index
    %c0_0 = arith.constant 0 : index
    %0 = vector.load %arg2[%c0, %c0_0] : memref<256x1024xbf16, #tpu.memory_space<vmem>>, vector<256x1024xbf16>
    %c0_1 = arith.constant 0 : index
    %c0_2 = arith.constant 0 : index
    %1 = vector.load %arg3[%c0_1, %c0_2] : memref<1024x128xbf16, #tpu.memory_space<vmem>>, vector<1024x128xbf16>
    %cst = arith.constant dense<0.000000e+00> : vector<256x128xf32>
    %2 = tpu.matmul %0, %1, %cst {dimension_numbers = #tpu.dot_dimension_numbers<[1], [0], [0], [1], [0, 0, 1, 1], [], []>} : vector<256x1024xbf16>, vector<1024x128xbf16>, vector<256x128xf32> -> vector<256x128xf32>
    %c0_3 = arith.constant 0 : index
    %c0_4 = arith.constant 0 : index
    %3 = vector.load %arg4[%c0_3, %c0_4] : memref<1x128xf32, #tpu.memory_space<vmem>>, vector<1x128xf32>
    %4 = vector.broadcast %3 : vector<1x128xf32> to vector<256x128xf32>
    %5 = arith.addf %2, %4 : vector<256x128xf32>
    %cst_5 = arith.constant 2.000000e-01 : f32
    %6 = vector.broadcast %cst_5 : f32 to vector<256x128xf32>
    %7 = arith.mulf %6, %5 : vector<256x128xf32>
    %8 = arith.maximumf %5, %7 : vector<256x128xf32>
    %9 = arith.truncf %8 : vector<256x128xf32> to vector<256x128xbf16>
    %c0_6 = arith.constant 0 : index
    %c0_7 = arith.constant 0 : index
    %10 = vector.load %arg5[%c0_6, %c0_7] : memref<256x128xbf16, #tpu.memory_space<vmem>>, vector<256x128xbf16>
    tpu.vector_store %arg5[%c0_6, %c0_7], %9 {strides = array<i32>} : memref<256x128xbf16, #tpu.memory_space<vmem>>, vector<256x128xbf16>,
    return
  }
  func.func @transform_0(%arg0: i32, %arg1: i32) -> (i32, i32) {
    %c0_i32 = arith.constant 0 : i32
    %c0_i32_0 = arith.constant 0 : i32
    return %arg0, %c0_i32 : i32, i32
  }
  func.func @transform_1(%arg0: i32, %arg1: i32) -> (i32, i32) {
    %c0_i32 = arith.constant 0 : i32
    %c0_i32_0 = arith.constant 0 : i32
    return %c0_i32, %arg1 : i32, i32
  }
  func.func @transform_2(%arg0: i32, %arg1: i32) -> (i32, i32) {
    %c0_i32 = arith.constant 0 : i32
    %c0_i32_0 = arith.constant 0 : i32
    return %c0_i32, %arg1 : i32, i32
  }
  func.func @transform_3(%arg0: i32, %arg1: i32) -> (i32, i32) {
    %c0_i32 = arith.constant 0 : i32
    return %arg0, %arg1 : i32, i32
  }
}

module attributes {stable_mosaic.version = 11 : i64} {
  func.func @_matmul_fused_kernel(%arg0: i32, %arg1: i32, %arg2: memref<128x2048xbf16, #tpu.memory_space<vmem>>, %arg3: memref<2048x256xbf16, #tpu.memory_space<vmem>>, %arg4: memref<1x256xf32, #tpu.memory_space<vmem>>, %arg5: memref<128x256xbf16, #tpu.memory_space<vmem>>) attributes {dimension_semantics = [#tpu.dimension_semantics<parallel>, #tpu.dimension_semantics<parallel>], iteration_bounds = array<i64: 1, 1>, scalar_prefetch = 0 : i64, scratch_operands = 0 : i64, tpu.core_type = #tpu.core_type<tc>, window_params = [{transform_indices = @transform_0, window_bounds = array<i64: 128, 2048>}, {transform_indices = @transform_1, window_bounds = array<i64: 2048, 256>}, {transform_indices = @transform_2, window_bounds = array<i64: 1, 256>}, {transform_indices = @transform_3, window_bounds = array<i64: 128, 256>}]} {
    %c0 = arith.constant 0 : index
    %c0_0 = arith.constant 0 : index
    %0 = vector.load %arg2[%c0, %c0_0] : memref<128x2048xbf16, #tpu.memory_space<vmem>>, vector<128x2048xbf16>
    %c0_1 = arith.constant 0 : index
    %c0_2 = arith.constant 0 : index
    %1 = vector.load %arg3[%c0_1, %c0_2] : memref<2048x256xbf16, #tpu.memory_space<vmem>>, vector<2048x256xbf16>
    %cst = arith.constant dense<0.000000e+00> : vector<128x256xf32>
    %2 = tpu.matmul %0, %1, %cst {dimension_numbers = #tpu.dot_dimension_numbers<[1], [0], [0], [1], [0, 0, 1, 1], [], []>} : vector<128x2048xbf16>, vector<2048x256xbf16>, vector<128x256xf32> -> vector<128x256xf32>
    %c0_3 = arith.constant 0 : index
    %c0_4 = arith.constant 0 : index
    %3 = vector.load %arg4[%c0_3, %c0_4] : memref<1x256xf32, #tpu.memory_space<vmem>>, vector<1x256xf32>
    %4 = vector.broadcast %3 : vector<1x256xf32> to vector<128x256xf32>
    %5 = arith.addf %2, %4 : vector<128x256xf32>
    %cst_5 = arith.constant 2.000000e-01 : f32
    %6 = vector.broadcast %cst_5 : f32 to vector<128x256xf32>
    %7 = arith.mulf %6, %5 : vector<128x256xf32>
    %8 = arith.maximumf %5, %7 : vector<128x256xf32>
    %9 = arith.truncf %8 : vector<128x256xf32> to vector<128x256xbf16>
    %c0_6 = arith.constant 0 : index
    %c0_7 = arith.constant 0 : index
    %10 = vector.load %arg5[%c0_6, %c0_7] : memref<128x256xbf16, #tpu.memory_space<vmem>>, vector<128x256xbf16>
    tpu.vector_store %arg5[%c0_6, %c0_7], %9 {strides = array<i32>} : memref<128x256xbf16, #tpu.memory_space<vmem>>, vector<128x256xbf16>,
    return
  }
  func.func @transform_0(%arg0: i32, %arg1: i32) -> (i32, i32) {
    %c0_i32 = arith.constant 0 : i32
    %c0_i32_0 = arith.constant 0 : i32
    return %arg0, %c0_i32 : i32, i32
  }
  func.func @transform_1(%arg0: i32, %arg1: i32) -> (i32, i32) {
    %c0_i32 = arith.constant 0 : i32
    %c0_i32_0 = arith.constant 0 : i32
    return %c0_i32, %arg1 : i32, i32
  }
  func.func @transform_2(%arg0: i32, %arg1: i32) -> (i32, i32) {
    %c0_i32 = arith.constant 0 : i32
    %c0_i32_0 = arith.constant 0 : i32
    return %c0_i32, %arg1 : i32, i32
  }
  func.func @transform_3(%arg0: i32, %arg1: i32) -> (i32, i32) {
    %c0_i32 = arith.constant 0 : i32
    return %arg0, %arg1 : i32, i32
  }
}

module attributes {stable_mosaic.version = 11 : i64} {
  func.func @_matmul_fused_kernel(%arg0: i32, %arg1: i32, %arg2: memref<32x4096xbf16, #tpu.memory_space<vmem>>, %arg3: memref<4096x512xbf16, #tpu.memory_space<vmem>>, %arg4: memref<1x512xf32, #tpu.memory_space<vmem>>, %arg5: memref<32x512xbf16, #tpu.memory_space<vmem>>) attributes {dimension_semantics = [#tpu.dimension_semantics<parallel>, #tpu.dimension_semantics<parallel>], iteration_bounds = array<i64: 1, 1>, scalar_prefetch = 0 : i64, scratch_operands = 0 : i64, tpu.core_type = #tpu.core_type<tc>, window_params = [{transform_indices = @transform_0, window_bounds = array<i64: 32, 4096>}, {transform_indices = @transform_1, window_bounds = array<i64: 4096, 512>}, {transform_indices = @transform_2, window_bounds = array<i64: 1, 512>}, {transform_indices = @transform_3, window_bounds = array<i64: 32, 512>}]} {
    %c0 = arith.constant 0 : index
    %c0_0 = arith.constant 0 : index
    %0 = vector.load %arg2[%c0, %c0_0] : memref<32x4096xbf16, #tpu.memory_space<vmem>>, vector<32x4096xbf16>
    %c0_1 = arith.constant 0 : index
    %c0_2 = arith.constant 0 : index
    %1 = vector.load %arg3[%c0_1, %c0_2] : memref<4096x512xbf16, #tpu.memory_space<vmem>>, vector<4096x512xbf16>
    %cst = arith.constant dense<0.000000e+00> : vector<32x512xf32>
    %2 = tpu.matmul %0, %1, %cst {dimension_numbers = #tpu.dot_dimension_numbers<[1], [0], [0], [1], [0, 0, 1, 1], [], []>} : vector<32x4096xbf16>, vector<4096x512xbf16>, vector<32x512xf32> -> vector<32x512xf32>
    %c0_3 = arith.constant 0 : index
    %c0_4 = arith.constant 0 : index
    %3 = vector.load %arg4[%c0_3, %c0_4] : memref<1x512xf32, #tpu.memory_space<vmem>>, vector<1x512xf32>
    %4 = vector.broadcast %3 : vector<1x512xf32> to vector<32x512xf32>
    %5 = arith.addf %2, %4 : vector<32x512xf32>
    %cst_5 = arith.constant 2.000000e-01 : f32
    %6 = vector.broadcast %cst_5 : f32 to vector<32x512xf32>
    %7 = arith.mulf %6, %5 : vector<32x512xf32>
    %8 = arith.maximumf %5, %7 : vector<32x512xf32>
    %9 = arith.truncf %8 : vector<32x512xf32> to vector<32x512xbf16>
    %c0_6 = arith.constant 0 : index
    %c0_7 = arith.constant 0 : index
    %10 = vector.load %arg5[%c0_6, %c0_7] : memref<32x512xbf16, #tpu.memory_space<vmem>>, vector<32x512xbf16>
    tpu.vector_store %arg5[%c0_6, %c0_7], %9 {strides = array<i32>} : memref<32x512xbf16, #tpu.memory_space<vmem>>, vector<32x512xbf16>,
    return
  }
  func.func @transform_0(%arg0: i32, %arg1: i32) -> (i32, i32) {
    %c0_i32 = arith.constant 0 : i32
    %c0_i32_0 = arith.constant 0 : i32
    return %arg0, %c0_i32 : i32, i32
  }
  func.func @transform_1(%arg0: i32, %arg1: i32) -> (i32, i32) {
    %c0_i32 = arith.constant 0 : i32
    %c0_i32_0 = arith.constant 0 : i32
    return %c0_i32, %arg1 : i32, i32
  }
  func.func @transform_2(%arg0: i32, %arg1: i32) -> (i32, i32) {
    %c0_i32 = arith.constant 0 : i32
    %c0_i32_0 = arith.constant 0 : i32
    return %c0_i32, %arg1 : i32, i32
  }
  func.func @transform_3(%arg0: i32, %arg1: i32) -> (i32, i32) {
    %c0_i32 = arith.constant 0 : i32
    return %arg0, %arg1 : i32, i32
  }
}

</mosaic_0001>

<bundles_post_ra>
// kernel: discriminator_forward.4
= control target key start
LH: loop header
LB: loop body
LE: loop exit
PB: predicated region body
PF: predicated region fallthrough
CT: control target
= control target key end

     0   :  { %s1169_s12 = smov 0   ;;  %s1171_s13 = smov 0   ;;  %s1355_s0 = inlined_call_operand.vmem [shape: bf16[2048,48], index: 0, kind: input, shape index: {}]   ;;  %s1356_s1 = inlined_call_operand.vmem [shape: bf16[48,64], index: 1, kind: input, shape index: {}]   ;;  %s1357_s2 = inlined_call_operand.vmem [shape: f32[1,64], index: 2, kind: input, shape index: {}]   ;;  %s1358_s3 = inlined_call_operand.vmem [shape: bf16[2048,64], index: 3, kind: output, shape index: {}]  }
   0x1   :  { %s1173_s14 = smov 0  }
   0x2 LB: > { %s25_s15 = sadd.s32 1, %s1143_s13  ;;  %p912_p0 = scmp.ge.s32.totalorder %s1147_s14, 1  ;;  %s1147_s14 = sphi %s1173_s14, %s13_s14   ;;  %s1143_s13 = sphi %s1171_s13, %s1360_s13   ;;  %s1139_s12 = sphi %s1169_s12, %s1359_s12  }
   0x3   : > { %p27_p1 = scmp.ge.s32.totalorder %s25_s15, 8  ;;  %p169_p2 = scmp.lt.s32.totalorder %s1147_s14, 9 }
   0x5   : > { %s1362_s15 = smov (%p27_p1, %s25_s15), 0  ;;  %p170_p3 = pnand %p912_p0, %p169_p2 }
   0x6   : > { %s913_s18 = sshll.u32 (!%p170_p3), %s1139_s12, 5 }
   0x7   : > { %173 = sbr.rel (%p170_p3) target bundleno = 259 (0x103), region = 32  ;;  %p204_p4 = scmp.lt.s32.totalorder (!%p170_p3), %s913_s18, 255 }
   0xc   : > { %v1106_v0 = vld [vmem:[%s1356_s1 + $0x10] sm:$0xff]   ;;  %v1107_v1 = vld [vmem:[%s1356_s1 + $0x8] sm:$0xff]   ;;  %s1364_s18 = smov (!%p204_p4, %s913_s18), 255  ;;  %v1108_v2 = vld [vmem:[%s1356_s1] sm:$0xff]   ;;  %vm369_vm0 = vcmask 392192   ;;  %vm771_vm1 = vcmask 519168  }
   0xd   : > { %1038 = vmatprep.subr.bf16.mxu0 %v1106_v0  ;;  %1076 = vmatprep.subr.bf16.mxu1 %v1106_v0  ;;  %s914_s23 = sshll.u32 %s1364_s18, 2  ;;  %v1241_v19 = vld [vmem:[%s1357_s2] ss:$0 sm:$0xff] }
   0xe   : > { %1039 = vmatpush3.bf16.msra.mxu0 %v1106_v0  ;;  %1079 = vmatpush3.bf16.msra.mxu1 %v1106_v0  ;;  %s1204_s26 = scalar_lea.vmem %s1355_s0, %s914_s23  ;;  %s1252_s4 = scalar_lea.vmem %s1358_s3, %s914_s23 }
   0xf   : > { %1040 = vmatprep.subr.bf16.mxu0 %v1107_v1  ;;  %1077 = vmatprep.subr.bf16.mxu1 %v1107_v1  ;;  %v1109_v3 = vld [vmem:[%s1204_s26] sm:$0xff]   ;;  %v1111_v5 = vld [vmem:[%s1204_s26 + $0x8] sm:$0xff]   ;;  %v1113_v7 = vld [vmem:[%s1204_s26 + $0x10] sm:$0xff]  }
  0x10   : > { %v1110_v4 = vld [vmem:[%s1204_s26 + $0x40] sm:$0xff]   ;;  %1044 = vmatprep.mubr.msk.bf16.mxu0 %vm369_vm0, %v1109_v3  ;;  %v1112_v6 = vld [vmem:[%s1204_s26 + $0x48] sm:$0xff]   ;;  %v1114_v8 = vld [vmem:[%s1204_s26 + $0x50] sm:$0xff]  }
  0x11   : > { %1060 = vmatprep.mubr.msk.bf16.mxu1 %vm369_vm0, %v1110_v4  ;;  %v1115_v9 = vld [vmem:[%s1204_s26 + $0x18] sm:$0xff]   ;;  %v1117_v11 = vld [vmem:[%s1204_s26 + $0x20] sm:$0xff]   ;;  %v1119_v13 = vld [vmem:[%s1204_s26 + $0x28] sm:$0xff]  }
  0x12   : > { %1041 = vmatpush3.bf16.msra.mxu0 %v1107_v1  ;;  %1080 = vmatpush3.bf16.msra.mxu1 %v1107_v1  ;;  %v1116_v10 = vld [vmem:[%s1204_s26 + $0x58] sm:$0xff]   ;;  %v1118_v12 = vld [vmem:[%s1204_s26 + $0x60] sm:$0xff]   ;;  %v1120_v14 = vld [vmem:[%s1204_s26 + $0x68] sm:$0xff]  }
  0x13   : > { %1042 = vmatprep.subr.bf16.mxu0 %v1108_v2  ;;  %1078 = vmatprep.subr.bf16.mxu1 %v1108_v2  ;;  %v1121_v15 = vld [vmem:[%s1204_s26 + $0x30] sm:$0xff]   ;;  %v1123_v17 = vld [vmem:[%s1204_s26 + $0x38] sm:$0xff]  }
  0x14   : > { %v1122_v16 = vld [vmem:[%s1204_s26 + $0x70] sm:$0xff]   ;;  %v1124_v18 = vld [vmem:[%s1204_s26 + $0x78] sm:$0xff]  }
  0x16   : > { %1043 = vmatpush3.bf16.msra.mxu0 %v1108_v2  ;;  %1081 = vmatpush3.bf16.msra.mxu1 %v1108_v2 }
  0x19   : > { %1045 = vmatmul.mubr.msk.bf16.vlgmr.msra.gmra.mxu0 %vm369_vm0, %v1111_v5  ;;  %1061 = vmatmul.mubr.msk.bf16.vlgmr.msra.gmra.mxu1 %vm369_vm0, %v1112_v6 }
  0x1a   : > { %1048 = vmatprep.mubr.msk.bf16.mxu0 %vm369_vm0, %v1113_v7  ;;  %1064 = vmatprep.mubr.msk.bf16.mxu1 %vm369_vm0, %v1114_v8 }
  0x21   : > { %1049 = vmatmul.mubr.msk.bf16.gmra.mxu0 %vm369_vm0, %v1115_v9  ;;  %1065 = vmatmul.mubr.msk.bf16.gmra.mxu1 %vm369_vm0, %v1116_v10 }
  0x22   : > { %1052 = vmatprep.mubr.msk.bf16.mxu0 %vm369_vm0, %v1117_v11  ;;  %1068 = vmatprep.mubr.msk.bf16.mxu1 %vm369_vm0, %v1118_v12 }
  0x29   : > { %1053 = vmatmul.mubr.msk.bf16.gmra.mxu0 %vm369_vm0, %v1119_v13  ;;  %1069 = vmatmul.mubr.msk.bf16.gmra.mxu1 %vm369_vm0, %v1120_v14 }
  0x2a   : > { %1056 = vmatprep.mubr.msk.bf16.mxu0 %vm369_vm0, %v1121_v15  ;;  %1072 = vmatprep.mubr.msk.bf16.mxu1 %vm369_vm0, %v1122_v16 }
  0x31   : > { %1057 = vmatmul.mubr.msk.bf16.gmra.mxu0 %vm369_vm0, %v1123_v17  ;;  %1073 = vmatmul.mubr.msk.bf16.gmra.mxu1 %vm369_vm0, %v1124_v18 }
  0xd9   : > { %v1046_v20 = vpop.f32.mrf.mxu0  ;;  %v1062_v21 = vpop.f32.mrf.mxu1 }
  0xda   : > { %v461_v22 = vadd.f32 %v1046_v20, %v1241_v19  ;;  %v525_v23 = vadd.f32 %v1062_v21, %v1241_v19 }
  0xdb   : > { %v452_v24 = vpop.f32.mrf.mxu0  ;;  %v516_v25 = vpop.f32.mrf.mxu1 }
  0xdc   : > { %v581_v26 = vmul.f32 0.2, %v461_v22  ;;  %v597_v27 = vmul.f32 0.2, %v525_v23  ;;  %v453_v28 = vadd.f32 %v1241_v19, %v452_v24  ;;  %v517_v29 = vadd.f32 %v1241_v19, %v516_v25 }
  0xdd   : > { %v1047_v30 = vpop.f32.mrf.mxu0  ;;  %v1063_v31 = vpop.f32.mrf.mxu1 }
  0xde   : > { %v613_v32 = vmax.f32 %v461_v22, %v581_v26  ;;  %v629_v33 = vmax.f32 %v525_v23, %v597_v27  ;;  %v579_v34 = vmul.f32 0.2, %v453_v28  ;;  %v595_v35 = vmul.f32 0.2, %v517_v29 }
  0xdf   : > { %v464_v36 = vadd.f32 %v1047_v30, %v1241_v19  ;;  %v528_v37 = vadd.f32 %v1063_v31, %v1241_v19  ;;  %v455_v38 = vpop.f32.mrf.mxu0  ;;  %v519_v39 = vpop.f32.mrf.mxu1 }
  0xe0   : > { %v989_v40 = vpack.c.bf16 %v613_v32, %v613_v32  ;;  %v1005_v41 = vpack.c.bf16 %v629_v33, %v629_v33  ;;  %v611_v42 = vmax.f32 %v453_v28, %v579_v34  ;;  %v627_v43 = vmax.f32 %v517_v29, %v595_v35 }
  0xe1   : > { %v582_v44 = vmul.f32 0.2, %v464_v36  ;;  %v598_v45 = vmul.f32 0.2, %v528_v37  ;;  %v456_v46 = vadd.f32 %v1241_v19, %v455_v38  ;;  %v520_v47 = vadd.f32 %v1241_v19, %v519_v39  ;;  %v1050_v48 = vpop.f32.mrf.mxu0  ;;  %v1066_v49 = vpop.f32.mrf.mxu1 }
  0xe2   : > { %774 = vst.msk [vmem:[%s1252_s4 + $0x8] sm:$0xf] %vm771_vm1, %v989_v40  ;;  %790 = vst.msk [vmem:[%s1252_s4 + $0x48] sm:$0xf] %vm771_vm1, %v1005_v41  ;;  %v987_v50 = vpack.c.bf16 %v611_v42, %v611_v42  ;;  %v1003_v51 = vpack.c.bf16 %v627_v43, %v627_v43  ;;  %v477_v52 = vadd.f32 %v1050_v48, %v1241_v19 }
  0xe3   : > { %v541_v53 = vadd.f32 %v1066_v49, %v1241_v19  ;;  %v614_v54 = vmax.f32 %v464_v36, %v582_v44  ;;  %v630_v55 = vmax.f32 %v528_v37, %v598_v45  ;;  %v580_v56 = vmul.f32 0.2, %v456_v46  ;;  %v468_v58 = vpop.f32.mrf.mxu0  ;;  %v532_v59 = vpop.f32.mrf.mxu1 }
  0xe4   : > { %v596_v57 = vmul.f32 0.2, %v520_v47  ;;  %772 = vst.msk [vmem:[%s1252_s4] sm:$0xf] %vm771_vm1, %v987_v50  ;;  %788 = vst.msk [vmem:[%s1252_s4 + $0x40] sm:$0xf] %vm771_vm1, %v1003_v51  ;;  %v469_v62 = vadd.f32 %v1241_v19, %v468_v58  ;;  %v533_v63 = vadd.f32 %v1241_v19, %v532_v59 }
  0xe5   : > { %v585_v60 = vmul.f32 0.2, %v477_v52  ;;  %v601_v61 = vmul.f32 0.2, %v541_v53  ;;  %v990_v0 = vpack.c.bf16 %v614_v54, %v614_v54  ;;  %v1006_v1 = vpack.c.bf16 %v630_v55, %v630_v55  ;;  %v1051_v4 = vpop.f32.mrf.mxu0  ;;  %v1067_v5 = vpop.f32.mrf.mxu1 }
  0xe6   : > { %v612_v2 = vmax.f32 %v456_v46, %v580_v56  ;;  %v628_v3 = vmax.f32 %v520_v47, %v596_v57  ;;  %v583_v8 = vmul.f32 0.2, %v469_v62  ;;  %v599_v9 = vmul.f32 0.2, %v533_v63 }
  0xe7   : > { %v617_v6 = vmax.f32 %v477_v52, %v585_v60  ;;  %v633_v7 = vmax.f32 %v541_v53, %v601_v61  ;;  %775 = vst.msk [vmem:[%s1252_s4 + $0xc] sm:$0xf] %vm771_vm1, %v990_v0  ;;  %791 = vst.msk [vmem:[%s1252_s4 + $0x4c] sm:$0xf] %vm771_vm1, %v1006_v1  ;;  %v480_v12 = vadd.f32 %v1051_v4, %v1241_v19  ;;  %v471_v14 = vpop.f32.mrf.mxu0  ;;  %v535_v15 = vpop.f32.mrf.mxu1 }
  0xe8   : > { %v988_v10 = vpack.c.bf16 %v612_v2, %v612_v2  ;;  %v1004_v11 = vpack.c.bf16 %v628_v3, %v628_v3  ;;  %v544_v13 = vadd.f32 %v1067_v5, %v1241_v19  ;;  %v615_v18 = vmax.f32 %v469_v62, %v583_v8 }
  0xe9   : > { %v993_v16 = vpack.c.bf16 %v617_v6, %v617_v6  ;;  %v1009_v17 = vpack.c.bf16 %v633_v7, %v633_v7  ;;  %v631_v20 = vmax.f32 %v533_v63, %v599_v9  ;;  %v586_v21 = vmul.f32 0.2, %v480_v12  ;;  %v1054_v25 = vpop.f32.mrf.mxu0  ;;  %v1070_v26 = vpop.f32.mrf.mxu1 }
  0xea   : > { %773 = vst.msk [vmem:[%s1252_s4 + $0x4] sm:$0xf] %vm771_vm1, %v988_v10  ;;  %789 = vst.msk [vmem:[%s1252_s4 + $0x44] sm:$0xf] %vm771_vm1, %v1004_v11  ;;  %v602_v22 = vmul.f32 0.2, %v544_v13  ;;  %v472_v23 = vadd.f32 %v1241_v19, %v471_v14  ;;  %v536_v24 = vadd.f32 %v1241_v19, %v535_v15  ;;  %v991_v27 = vpack.c.bf16 %v615_v18, %v615_v18 }
  0xeb   : > { %778 = vst.msk [vmem:[%s1252_s4 + $0x18] sm:$0xf] %vm771_vm1, %v993_v16  ;;  %794 = vst.msk [vmem:[%s1252_s4 + $0x58] sm:$0xf] %vm771_vm1, %v1009_v17  ;;  %v1007_v28 = vpack.c.bf16 %v631_v20, %v631_v20  ;;  %v493_v29 = vadd.f32 %v1054_v25, %v1241_v19  ;;  %v557_v30 = vadd.f32 %v1070_v26, %v1241_v19  ;;  %v484_v35 = vpop.f32.mrf.mxu0  ;;  %v548_v36 = vpop.f32.mrf.mxu1 }
  0xec   : > { %v618_v31 = vmax.f32 %v480_v12, %v586_v21  ;;  %v634_v32 = vmax.f32 %v544_v13, %v602_v22  ;;  %v584_v33 = vmul.f32 0.2, %v472_v23  ;;  %v600_v34 = vmul.f32 0.2, %v536_v24  ;;  %776 = vst.msk [vmem:[%s1252_s4 + $0x10] sm:$0xf] %vm771_vm1, %v991_v27 }
  0xed   : > { %792 = vst.msk [vmem:[%s1252_s4 + $0x50] sm:$0xf] %vm771_vm1, %v1007_v28  ;;  %v589_v37 = vmul.f32 0.2, %v493_v29  ;;  %v605_v38 = vmul.f32 0.2, %v557_v30  ;;  %v485_v39 = vadd.f32 %v1241_v19, %v484_v35  ;;  %v549_v40 = vadd.f32 %v1241_v19, %v548_v36  ;;  %v1055_v45 = vpop.f32.mrf.mxu0  ;;  %v1071_v46 = vpop.f32.mrf.mxu1 }
  0xee   : > { %v994_v41 = vpack.c.bf16 %v618_v31, %v618_v31  ;;  %v1010_v42 = vpack.c.bf16 %v634_v32, %v634_v32  ;;  %v616_v43 = vmax.f32 %v472_v23, %v584_v33  ;;  %v632_v44 = vmax.f32 %v536_v24, %v600_v34 }
  0xef   : > { %v621_v47 = vmax.f32 %v493_v29, %v589_v37  ;;  %v637_v48 = vmax.f32 %v557_v30, %v605_v38  ;;  %v587_v49 = vmul.f32 0.2, %v485_v39  ;;  %v603_v50 = vmul.f32 0.2, %v549_v40  ;;  %v487_v55 = vpop.f32.mrf.mxu0  ;;  %v551_v56 = vpop.f32.mrf.mxu1 }
  0xf0   : > { %779 = vst.msk [vmem:[%s1252_s4 + $0x1c] sm:$0xf] %vm771_vm1, %v994_v41  ;;  %795 = vst.msk [vmem:[%s1252_s4 + $0x5c] sm:$0xf] %vm771_vm1, %v1010_v42  ;;  %v992_v51 = vpack.c.bf16 %v616_v43, %v616_v43  ;;  %v1008_v52 = vpack.c.bf16 %v632_v44, %v632_v44  ;;  %v496_v53 = vadd.f32 %v1055_v45, %v1241_v19 }
  0xf1   : > { %v560_v54 = vadd.f32 %v1071_v46, %v1241_v19  ;;  %v997_v57 = vpack.c.bf16 %v621_v47, %v621_v47  ;;  %v1013_v58 = vpack.c.bf16 %v637_v48, %v637_v48  ;;  %v619_v59 = vmax.f32 %v485_v39, %v587_v49  ;;  %v1058_v1 = vpop.f32.mrf.mxu0  ;;  %v1074_v2 = vpop.f32.mrf.mxu1 }
  0xf2   : > { %v635_v60 = vmax.f32 %v549_v40, %v603_v50  ;;  %777 = vst.msk [vmem:[%s1252_s4 + $0x14] sm:$0xf] %vm771_vm1, %v992_v51  ;;  %793 = vst.msk [vmem:[%s1252_s4 + $0x54] sm:$0xf] %vm771_vm1, %v1008_v52  ;;  %v590_v61 = vmul.f32 0.2, %v496_v53  ;;  %v488_v63 = vadd.f32 %v1241_v19, %v487_v55  ;;  %v552_v0 = vadd.f32 %v1241_v19, %v551_v56 }
  0xf3   : > { %v606_v62 = vmul.f32 0.2, %v560_v54  ;;  %782 = vst.msk [vmem:[%s1252_s4 + $0x28] sm:$0xf] %vm771_vm1, %v997_v57  ;;  %798 = vst.msk [vmem:[%s1252_s4 + $0x68] sm:$0xf] %vm771_vm1, %v1013_v58  ;;  %v995_v3 = vpack.c.bf16 %v619_v59, %v619_v59  ;;  %v509_v5 = vadd.f32 %v1058_v1, %v1241_v19  ;;  %v573_v6 = vadd.f32 %v1074_v2, %v1241_v19  ;;  %v500_v11 = vpop.f32.mrf.mxu0  ;;  %v564_v12 = vpop.f32.mrf.mxu1 }
  0xf4   : > { %v1011_v4 = vpack.c.bf16 %v635_v60, %v635_v60  ;;  %v622_v7 = vmax.f32 %v496_v53, %v590_v61  ;;  %v588_v9 = vmul.f32 0.2, %v488_v63  ;;  %v604_v10 = vmul.f32 0.2, %v552_v0 }
  0xf5   : > { %v638_v8 = vmax.f32 %v560_v54, %v606_v62  ;;  %780 = vst.msk [vmem:[%s1252_s4 + $0x20] sm:$0xf] %vm771_vm1, %v995_v3  ;;  %v593_v13 = vmul.f32 0.2, %v509_v5  ;;  %v609_v14 = vmul.f32 0.2, %v573_v6  ;;  %v501_v15 = vadd.f32 %v1241_v19, %v500_v11  ;;  %v1059_v22 = vpop.f32.mrf.mxu0  ;;  %v1075_v23 = vpop.f32.mrf.mxu1 }
  0xf6   : > { %796 = vst.msk [vmem:[%s1252_s4 + $0x60] sm:$0xf] %vm771_vm1, %v1011_v4  ;;  %v565_v16 = vadd.f32 %v1241_v19, %v564_v12  ;;  %v998_v17 = vpack.c.bf16 %v622_v7, %v622_v7  ;;  %v620_v20 = vmax.f32 %v488_v63, %v588_v9  ;;  %v636_v21 = vmax.f32 %v552_v0, %v604_v10 }
  0xf7   : > { %v1014_v18 = vpack.c.bf16 %v638_v8, %v638_v8  ;;  %v625_v24 = vmax.f32 %v509_v5, %v593_v13  ;;  %v641_v25 = vmax.f32 %v573_v6, %v609_v14  ;;  %v591_v26 = vmul.f32 0.2, %v501_v15  ;;  %v503_v32 = vpop.f32.mrf.mxu0  ;;  %v567_v33 = vpop.f32.mrf.mxu1 }
  0xf8   : > { %v607_v27 = vmul.f32 0.2, %v565_v16  ;;  %783 = vst.msk [vmem:[%s1252_s4 + $0x2c] sm:$0xf] %vm771_vm1, %v998_v17  ;;  %v996_v28 = vpack.c.bf16 %v620_v20, %v620_v20  ;;  %v1012_v29 = vpack.c.bf16 %v636_v21, %v636_v21  ;;  %v512_v30 = vadd.f32 %v1059_v22, %v1241_v19 }
  0xf9   : > { %799 = vst.msk [vmem:[%s1252_s4 + $0x6c] sm:$0xf] %vm771_vm1, %v1014_v18  ;;  %v576_v31 = vadd.f32 %v1075_v23, %v1241_v19  ;;  %v1001_v34 = vpack.c.bf16 %v625_v24, %v625_v24  ;;  %v1017_v35 = vpack.c.bf16 %v641_v25, %v641_v25  ;;  %v623_v36 = vmax.f32 %v501_v15, %v591_v26 }
  0xfa   : > { %v639_v37 = vmax.f32 %v565_v16, %v607_v27  ;;  %781 = vst.msk [vmem:[%s1252_s4 + $0x24] sm:$0xf] %vm771_vm1, %v996_v28  ;;  %797 = vst.msk [vmem:[%s1252_s4 + $0x64] sm:$0xf] %vm771_vm1, %v1012_v29  ;;  %v594_v38 = vmul.f32 0.2, %v512_v30  ;;  %v504_v40 = vadd.f32 %v1241_v19, %v503_v32  ;;  %v568_v41 = vadd.f32 %v1241_v19, %v567_v33 }
  0xfb   : > { %v610_v39 = vmul.f32 0.2, %v576_v31  ;;  %786 = vst.msk [vmem:[%s1252_s4 + $0x38] sm:$0xf] %vm771_vm1, %v1001_v34  ;;  %802 = vst.msk [vmem:[%s1252_s4 + $0x78] sm:$0xf] %vm771_vm1, %v1017_v35  ;;  %v999_v42 = vpack.c.bf16 %v623_v36, %v623_v36 }
  0xfc   : > { %v1015_v43 = vpack.c.bf16 %v639_v37, %v639_v37  ;;  %v626_v44 = vmax.f32 %v512_v30, %v594_v38  ;;  %v592_v46 = vmul.f32 0.2, %v504_v40  ;;  %v608_v47 = vmul.f32 0.2, %v568_v41 }
  0xfd   : > { %v642_v45 = vmax.f32 %v576_v31, %v610_v39  ;;  %784 = vst.msk [vmem:[%s1252_s4 + $0x30] sm:$0xf] %vm771_vm1, %v999_v42 }
  0xfe   : > { %800 = vst.msk [vmem:[%s1252_s4 + $0x70] sm:$0xf] %vm771_vm1, %v1015_v43  ;;  %v1002_v48 = vpack.c.bf16 %v626_v44, %v626_v44  ;;  %v624_v19 = vmax.f32 %v504_v40, %v592_v46  ;;  %v640_v50 = vmax.f32 %v568_v41, %v608_v47 }
  0xff   : > { %v1018_v49 = vpack.c.bf16 %v642_v45, %v642_v45 }
 0x100   : > { %787 = vst.msk [vmem:[%s1252_s4 + $0x3c] sm:$0xf] %vm771_vm1, %v1002_v48  ;;  %v1000_v51 = vpack.c.bf16 %v624_v19, %v624_v19  ;;  %v1016_v52 = vpack.c.bf16 %v640_v50, %v640_v50 }
 0x101   : > { %803 = vst.msk [vmem:[%s1252_s4 + $0x7c] sm:$0xf] %vm771_vm1, %v1018_v49 }
 0x102   : > { %785 = vst.msk [vmem:[%s1252_s4 + $0x34] sm:$0xf] %vm771_vm1, %v1000_v51  ;;  %801 = vst.msk [vmem:[%s1252_s4 + $0x74] sm:$0xf] %vm771_vm1, %v1016_v52 }
 0x103 PF: > { %s13_s14 = sadd.s32 1, %s1147_s14   ;;  %s1359_s12 = smov %s1143_s13 }
 0x104   : > { %p10_p5 = scmp.ge.s32.totalorder %s13_s14, 10   ;;  %s1360_s13 = smov %s1362_s15 }
 0x106   :  { %12 = sbr.rel (!%p10_p5) target bundleno = 2 (0x2), region = 68 }

// kernel: discriminator_forward.5
= control target key start
LH: loop header
LB: loop body
LE: loop exit
PB: predicated region body
PF: predicated region fallthrough
CT: control target
= control target key end

     0   :  { %s3433_s12 = smov 0   ;;  %s3435_s13 = smov 0   ;;  %s3946_s0 = inlined_call_operand.vmem [shape: bf16[512,1024], index: 0, kind: input, shape index: {}]   ;;  %s3947_s1 = inlined_call_operand.vmem [shape: bf16[1024,128], index: 1, kind: input, shape index: {}]   ;;  %s3948_s2 = inlined_call_operand.vmem [shape: f32[1,128], index: 2, kind: input, shape index: {}]   ;;  %s3949_s3 = inlined_call_operand.vmem [shape: bf16[512,128], index: 3, kind: output, shape index: {}]  }
   0x1   :  { %s3437_s14 = smov 0  }
   0x2 LB: > { %s25_s15 = sadd.s32 1, %s3407_s13  ;;  %p2492_p0 = scmp.ge.s32.totalorder %s3411_s14, 1  ;;  %s3411_s14 = sphi %s3437_s14, %s13_s14   ;;  %s3407_s13 = sphi %s3435_s13, %s3951_s13   ;;  %s3403_s12 = sphi %s3433_s12, %s3950_s12  }
   0x3   : > { %p27_p1 = scmp.ge.s32.totalorder %s25_s15, 2  ;;  %p170_p2 = scmp.lt.s32.totalorder %s3411_s14, 3 }
   0x5   : > { %s3953_s15 = smov (%p27_p1, %s25_s15), 0  ;;  %p171_p3 = pnand %p2492_p0, %p170_p2 }
   0x6   : > { %s2493_s25 = sshll.u32 (!%p171_p3), %s3403_s12, 5 }
   0x7   : > { %174 = sbr.rel (%p171_p3) target bundleno = 506 (0x1fa), region = 32  ;;  %p206_p4 = scmp.lt.s32.totalorder (!%p171_p3), %s2493_s25, 63 }
   0xc   : > { %v3325_v0 = vld [vmem:[%s3947_s1 + $0x78] sm:$0xff]   ;;  %v3329_v4 = vld [vmem:[%s3947_s1 + $0x70] sm:$0xff]   ;;  %v3333_v8 = vld [vmem:[%s3947_s1 + $0x68] sm:$0xff]   ;;  %s3955_s25 = smov (!%p206_p4, %s2493_s25), 63 }
   0xd   : > { %v3326_v1 = vld [vmem:[%s3947_s1 + $0xf8] sm:$0xff]   ;;  %2853 = vmatprep.subr.bf16.mxu0 %v3325_v0  ;;  %v3330_v5 = vld [vmem:[%s3947_s1 + $0xf0] sm:$0xff]   ;;  %v3334_v9 = vld [vmem:[%s3947_s1 + $0xe8] sm:$0xff]   ;;  %s2725_s24 = sshll.u32 %s3955_s25, 5 }
   0xe   : > { %v3327_v2 = vld [vmem:[%s3947_s1 + $0x38] sm:$0xff]   ;;  %2965 = vmatprep.subr.bf16.mxu1 %v3326_v1  ;;  %v3331_v6 = vld [vmem:[%s3947_s1 + $0x30] sm:$0xff]   ;;  %v3335_v10 = vld [vmem:[%s3947_s1 + $0x28] sm:$0xff]   ;;  %s3550_s12 = scalar_lea.vmem %s3946_s0, %s2725_s24 }
   0xf   : > { %v3328_v3 = vld [vmem:[%s3947_s1 + $0xb8] sm:$0xff]   ;;  %2854 = vmatpush3.bf16.msra.mxu0 %v3327_v2  ;;  %v3332_v7 = vld [vmem:[%s3947_s1 + $0xb0] sm:$0xff]   ;;  %v3336_v11 = vld [vmem:[%s3947_s1 + $0xa8] sm:$0xff]  }
  0x10   : > { %2966 = vmatpush3.bf16.msra.mxu1 %v3328_v3  ;;  %2855 = vmatprep.subr.bf16.mxu0 %v3329_v4  ;;  %v3337_v12 = vld [vmem:[%s3947_s1 + $0x60] sm:$0xff]   ;;  %v3341_v16 = vld [vmem:[%s3947_s1 + $0x58] sm:$0xff]   ;;  %v3345_v20 = vld [vmem:[%s3947_s1 + $0x50] sm:$0xff]  }
  0x11   : > { %2967 = vmatprep.subr.bf16.mxu1 %v3330_v5  ;;  %v3338_v13 = vld [vmem:[%s3947_s1 + $0xe0] sm:$0xff]   ;;  %v3342_v17 = vld [vmem:[%s3947_s1 + $0xd8] sm:$0xff]   ;;  %v3346_v21 = vld [vmem:[%s3947_s1 + $0xd0] sm:$0xff]  }
  0x12   : > { %v3339_v14 = vld [vmem:[%s3947_s1 + $0x20] sm:$0xff]   ;;  %v3343_v18 = vld [vmem:[%s3947_s1 + $0x18] sm:$0xff]   ;;  %v3347_v22 = vld [vmem:[%s3947_s1 + $0x10] sm:$0xff]  }
  0x13   : > { %2856 = vmatpush3.bf16.msra.mxu0 %v3331_v6  ;;  %v3340_v15 = vld [vmem:[%s3947_s1 + $0xa0] sm:$0xff]   ;;  %v3344_v19 = vld [vmem:[%s3947_s1 + $0x98] sm:$0xff]   ;;  %v3348_v23 = vld [vmem:[%s3947_s1 + $0x90] sm:$0xff]  }
  0x14   : > { %2968 = vmatpush3.bf16.msra.mxu1 %v3332_v7  ;;  %2857 = vmatprep.subr.bf16.mxu0 %v3333_v8  ;;  %v3349_v24 = vld [vmem:[%s3947_s1 + $0x48] sm:$0xff]   ;;  %v3353_v28 = vld [vmem:[%s3947_s1 + $0x40] sm:$0xff]   ;;  %v3357_v40 = vld [vmem:[%s3947_s1 + $0x178] sm:$0xff]  }
  0x15   : > { %2969 = vmatprep.subr.bf16.mxu1 %v3334_v9  ;;  %v3350_v25 = vld [vmem:[%s3947_s1 + $0xc8] sm:$0xff]   ;;  %v3354_v29 = vld [vmem:[%s3947_s1 + $0xc0] sm:$0xff]   ;;  %v3358_v41 = vld [vmem:[%s3947_s1 + $0x138] sm:$0xff]  }
  0x16   : > { %v3351_v26 = vld [vmem:[%s3947_s1 + $0x8] sm:$0xff]   ;;  %v3355_v30 = vld [vmem:[%s3947_s1] sm:$0xff]   ;;  %v3359_v42 = vld [vmem:[%s3947_s1 + $0x1f8] sm:$0xff]  }
  0x17   : > { %2858 = vmatpush3.bf16.msra.mxu0 %v3335_v10  ;;  %v3352_v27 = vld [vmem:[%s3947_s1 + $0x88] sm:$0xff]   ;;  %v3356_v31 = vld [vmem:[%s3947_s1 + $0x80] sm:$0xff]   ;;  %v3360_v43 = vld [vmem:[%s3947_s1 + $0x1b8] sm:$0xff]  }
  0x18   : > { %2970 = vmatpush3.bf16.msra.mxu1 %v3336_v11  ;;  %2859 = vmatprep.subr.bf16.mxu0 %v3337_v12  ;;  %v229_v32 = vld [vmem:[%s3550_s12] sm:$0xff]  ;;  %v230_v34 = vld [vmem:[%s3550_s12 + $0x8] sm:$0xff]  ;;  %v3361_v55 = vld [vmem:[%s3947_s1 + $0x170] sm:$0xff]  }
  0x19   : > { %2971 = vmatprep.subr.bf16.mxu1 %v3338_v13  ;;  %v233_v33 = vld [vmem:[%s3550_s12 + $0x20] sm:$0xff]  ;;  %v234_v37 = vld [vmem:[%s3550_s12 + $0x28] sm:$0xff]  ;;  %v3362_v58 = vld [vmem:[%s3947_s1 + $0x130] sm:$0xff]  }
  0x1a   : > { %v2499_v35 = vcombine.low %v229_v32, %v233_v33  ;;  %v2500_v36 = vcombine.high %v229_v32, %v233_v33  ;;  %v2501_v38 = vcombine.low %v230_v34, %v234_v37  ;;  %v2502_v39 = vcombine.high %v230_v34, %v234_v37  ;;  %v237_v44 = vld [vmem:[%s3550_s12 + $0x40] sm:$0xff]  ;;  %v238_v47 = vld [vmem:[%s3550_s12 + $0x48] sm:$0xff]  ;;  %v3363_v60 = vld [vmem:[%s3947_s1 + $0x1f0] sm:$0xff]  }
  0x1b   : > { %2860 = vmatpush3.bf16.msra.mxu0 %v3339_v14  ;;  %v241_v45 = vld [vmem:[%s3550_s12 + $0x60] sm:$0xff]  ;;  %v242_v48 = vld [vmem:[%s3550_s12 + $0x68] sm:$0xff]  ;;  %v3364_v61 = vld [vmem:[%s3947_s1 + $0x1b0] sm:$0xff]  }
  0x1c   : > { %2972 = vmatpush3.bf16.msra.mxu1 %v3340_v15  ;;  %2861 = vmatprep.subr.bf16.mxu0 %v3341_v16  ;;  %v2508_v46 = vcombine.high %v237_v44, %v241_v45  ;;  %v245_v49 = vld [vmem:[%s3550_s12 + $0x80] sm:$0xff]  ;;  %v2510_v50 = vcombine.high %v238_v47, %v242_v48  ;;  %v246_v52 = vld [vmem:[%s3550_s12 + $0x88] sm:$0xff]  ;;  %v2507_v54 = vcombine.low %v237_v44, %v241_v45  ;;  %v3377_v34 = vld [vmem:[%s3947_s1 + $0x150] sm:$0xff]  }
  0x1d   : > { %2973 = vmatprep.subr.bf16.mxu1 %v3342_v17  ;;  %1548 = vmatprep.mubr.bf16.mxu0 %v2500_v36  ;;  %v249_v51 = vld [vmem:[%s3550_s12 + $0xa0] sm:$0xff]  ;;  %v250_v53 = vld [vmem:[%s3550_s12 + $0xa8] sm:$0xff]  ;;  %v2509_v56 = vcombine.low %v238_v47, %v242_v48  ;;  %v3378_v36 = vld [vmem:[%s3947_s1 + $0x110] sm:$0xff]  }
  0x1e   : > { %1709 = vmatprep.mubr.bf16.mxu1 %v2502_v39  ;;  %v2516_v57 = vcombine.high %v245_v49, %v249_v51  ;;  %v2518_v59 = vcombine.high %v246_v52, %v250_v53  ;;  %v253_v62 = vld [vmem:[%s3550_s12 + $0xc0] sm:$0xff]  ;;  %v254_v0 = vld [vmem:[%s3550_s12 + $0xc8] sm:$0xff]  ;;  %v2515_v3 = vcombine.low %v245_v49, %v249_v51  ;;  %v2517_v5 = vcombine.low %v246_v52, %v250_v53  ;;  %v3379_v37 = vld [vmem:[%s3947_s1 + $0x1d0] sm:$0xff]  }
  0x1f   : > { %2862 = vmatpush3.bf16.msra.mxu0 %v3343_v18  ;;  %v257_v63 = vld [vmem:[%s3550_s12 + $0xe0] sm:$0xff]  ;;  %v258_v1 = vld [vmem:[%s3550_s12 + $0xe8] sm:$0xff]  ;;  %v3380_v39 = vld [vmem:[%s3947_s1 + $0x190] sm:$0xff]  }
  0x20   : > { %2974 = vmatpush3.bf16.msra.mxu1 %v3344_v19  ;;  %2863 = vmatprep.subr.bf16.mxu0 %v3345_v20  ;;  %v3365_v2 = vld [vmem:[%s3947_s1 + $0x168] sm:$0xff]   ;;  %v2524_v6 = vcombine.high %v253_v62, %v257_v63  ;;  %v2526_v8 = vcombine.high %v254_v0, %v258_v1  ;;  %v261_v10 = vld [vmem:[%s3550_s12 + $0x100] sm:$0xff]  ;;  %v2523_v16 = vcombine.low %v253_v62, %v257_v63 }
  0x21   : > { %2975 = vmatprep.subr.bf16.mxu1 %v3346_v21  ;;  %v3366_v4 = vld [vmem:[%s3947_s1 + $0x128] sm:$0xff]   ;;  %v265_v11 = vld [vmem:[%s3550_s12 + $0x120] sm:$0xff]  ;;  %v2525_v18 = vcombine.low %v254_v0, %v258_v1 }
  0x22   : > { %v3367_v7 = vld [vmem:[%s3947_s1 + $0x1e8] sm:$0xff]   ;;  %v3369_v14 = vld [vmem:[%s3947_s1 + $0x160] sm:$0xff]   ;;  %v2532_v19 = vcombine.high %v261_v10, %v265_v11 }
  0x23   : > { %2864 = vmatpush3.bf16.msra.mxu0 %v3347_v22  ;;  %v3368_v9 = vld [vmem:[%s3947_s1 + $0x1a8] sm:$0xff]   ;;  %v3370_v15 = vld [vmem:[%s3947_s1 + $0x120] sm:$0xff]  }
  0x24   : > { %2976 = vmatpush3.bf16.msra.mxu1 %v3348_v23  ;;  %2865 = vmatprep.subr.bf16.mxu0 %v3349_v24  ;;  %v262_v12 = vld [vmem:[%s3550_s12 + $0x108] sm:$0xff]  ;;  %v3371_v17 = vld [vmem:[%s3947_s1 + $0x1e0] sm:$0xff]   ;;  %v3373_v24 = vld [vmem:[%s3947_s1 + $0x158] sm:$0xff]  }
  0x25   : > { %2977 = vmatprep.subr.bf16.mxu1 %v3350_v25  ;;  %v266_v13 = vld [vmem:[%s3550_s12 + $0x128] sm:$0xff]  ;;  %v3372_v20 = vld [vmem:[%s3947_s1 + $0x1a0] sm:$0xff]  }
  0x26   : > { %v2534_v21 = vcombine.high %v262_v12, %v266_v13  ;;  %v269_v22 = vld [vmem:[%s3550_s12 + $0x140] sm:$0xff]  ;;  %v270_v25 = vld [vmem:[%s3550_s12 + $0x148] sm:$0xff] }
  0x27   : > { %2866 = vmatpush3.bf16.msra.mxu0 %v3351_v26  ;;  %v273_v23 = vld [vmem:[%s3550_s12 + $0x160] sm:$0xff]  ;;  %v274_v26 = vld [vmem:[%s3550_s12 + $0x168] sm:$0xff] }
  0x28   : > { %2978 = vmatpush3.bf16.msra.mxu1 %v3352_v27  ;;  %2867 = vmatprep.subr.bf16.mxu0 %v3353_v28  ;;  %v3374_v27 = vld [vmem:[%s3947_s1 + $0x118] sm:$0xff]   ;;  %v2540_v32 = vcombine.high %v269_v22, %v273_v23  ;;  %v2542_v33 = vcombine.high %v270_v25, %v274_v26  ;;  %v3382_v47 = vld [vmem:[%s3947_s1 + $0x108] sm:$0xff]   ;;  %v289_v51 = vld [vmem:[%s3550_s12 + $0x1e0] sm:$0xff] }
  0x29   : > { %2979 = vmatprep.subr.bf16.mxu1 %v3354_v29  ;;  %v3375_v28 = vld [vmem:[%s3947_s1 + $0x1d8] sm:$0xff]   ;;  %v3383_v48 = vld [vmem:[%s3947_s1 + $0x1c8] sm:$0xff]   ;;  %v293_v62 = vld [vmem:[%s3550_s12 + $0x200] sm:$0xff] }
  0x2a   : > { %v3376_v29 = vld [vmem:[%s3947_s1 + $0x198] sm:$0xff]   ;;  %v3384_v49 = vld [vmem:[%s3947_s1 + $0x188] sm:$0xff]   ;;  %v297_v63 = vld [vmem:[%s3550_s12 + $0x220] sm:$0xff] }
  0x2b   : > { %2868 = vmatpush3.bf16.msra.mxu0 %v3355_v30  ;;  %v2531_v30 = vcombine.low %v261_v10, %v265_v11  ;;  %v286_v52 = vld [vmem:[%s3550_s12 + $0x1c8] sm:$0xff]  ;;  %v2563_v10 = vcombine.low %v293_v62, %v297_v63 }
  0x2c   : > { %2980 = vmatpush3.bf16.msra.mxu1 %v3356_v31  ;;  %3077 = vmatprep.subr.bf16.mxu0 %v3357_v40  ;;  %v2533_v31 = vcombine.low %v262_v12, %v266_v13  ;;  %v278_v40 = vld [vmem:[%s3550_s12 + $0x188] sm:$0xff] }
  0x2d   : > { %3189 = vmatprep.subr.bf16.mxu1 %v3359_v42  ;;  %v2539_v42 = vcombine.low %v269_v22, %v273_v23  ;;  %v290_v53 = vld [vmem:[%s3550_s12 + $0x1e8] sm:$0xff]  ;;  %v317_v22 = vld [vmem:[%s3550_s12 + $0x2c0] sm:$0xff] }
  0x2e   : > { %1549 = vmatmul.mubr.bf16.vlgmr.msra.gmra.mxu0 %v2499_v35  ;;  %v277_v35 = vld [vmem:[%s3550_s12 + $0x180] sm:$0xff]  ;;  %v294_v0 = vld [vmem:[%s3550_s12 + $0x208] sm:$0xff] }
  0x2f   : > { %1710 = vmatmul.mubr.bf16.vlgmr.msra.gmra.mxu1 %v2501_v38  ;;  %3078 = vmatpush3.bf16.msra.mxu0 %v3358_v41  ;;  %v281_v38 = vld [vmem:[%s3550_s12 + $0x1a0] sm:$0xff]  ;;  %v282_v41 = vld [vmem:[%s3550_s12 + $0x1a8] sm:$0xff] }
  0x30   : > { %3190 = vmatpush3.bf16.msra.mxu1 %v3360_v43  ;;  %1556 = vmatprep.mubr.bf16.mxu0 %v2508_v46  ;;  %v2541_v43 = vcombine.low %v270_v25, %v274_v26  ;;  %v2548_v44 = vcombine.high %v277_v35, %v281_v38  ;;  %v2550_v45 = vcombine.high %v278_v40, %v282_v41  ;;  %v3381_v46 = vld [vmem:[%s3947_s1 + $0x148] sm:$0xff]   ;;  %v321_v23 = vld [vmem:[%s3550_s12 + $0x2e0] sm:$0xff] }
  0x31   : > { %1717 = vmatprep.mubr.bf16.mxu1 %v2510_v50  ;;  %3079 = vmatprep.subr.bf16.mxu0 %v3361_v55  ;;  %v285_v50 = vld [vmem:[%s3550_s12 + $0x1c0] sm:$0xff]  ;;  %v298_v1 = vld [vmem:[%s3550_s12 + $0x228] sm:$0xff] }
  0x32   : > { %3191 = vmatprep.subr.bf16.mxu1 %v3363_v60  ;;  %v3385_v55 = vld [vmem:[%s3947_s1 + $0x140] sm:$0xff]   ;;  %v2565_v11 = vcombine.low %v294_v0, %v298_v1  ;;  %v322_v25 = vld [vmem:[%s3550_s12 + $0x2e8] sm:$0xff] }
  0x33   : > { %3080 = vmatpush3.bf16.msra.mxu0 %v3362_v58  ;;  %v3386_v58 = vld [vmem:[%s3947_s1 + $0x100] sm:$0xff]  }
  0x34   : > { %3192 = vmatpush3.bf16.msra.mxu1 %v3364_v61  ;;  %3081 = vmatprep.subr.bf16.mxu0 %v3365_v2  ;;  %v3387_v60 = vld [vmem:[%s3947_s1 + $0x1c0] sm:$0xff]   ;;  %v2555_v2 = vcombine.low %v285_v50, %v289_v51 }
  0x35   : > { %3193 = vmatprep.subr.bf16.mxu1 %v3367_v7  ;;  %v3388_v61 = vld [vmem:[%s3947_s1 + $0x180] sm:$0xff]  }
  0x36   : > { %1557 = vmatmul.mubr.bf16.gmra.mxu0 %v2507_v54  ;;  %v2547_v54 = vcombine.low %v277_v35, %v281_v38  ;;  %v305_v7 = vld [vmem:[%s3550_s12 + $0x260] sm:$0xff] }
  0x37   : > { %1718 = vmatmul.mubr.bf16.gmra.mxu1 %v2509_v56  ;;  %1564 = vmatprep.mubr.bf16.mxu0 %v2516_v57  ;;  %v2549_v56 = vcombine.low %v278_v40, %v282_v41  ;;  %v2556_v57 = vcombine.high %v285_v50, %v289_v51  ;;  %v333_v38 = vld [vmem:[%s3550_s12 + $0x340] sm:$0xff]  ;;  %v334_v40 = vld [vmem:[%s3550_s12 + $0x348] sm:$0xff] }
  0x38   : > { %1725 = vmatprep.mubr.bf16.mxu1 %v2518_v59  ;;  %3082 = vmatpush3.bf16.msra.mxu0 %v3366_v4  ;;  %v2558_v59 = vcombine.high %v286_v52, %v290_v53  ;;  %v2564_v4 = vcombine.high %v293_v62, %v297_v63  ;;  %v338_v41 = vld [vmem:[%s3550_s12 + $0x368] sm:$0xff]  ;;  %v231_v62 = vld [vmem:[%s3550_s12 + $0x10] sm:$0xff] }
  0x39   : > { %3194 = vmatpush3.bf16.msra.mxu1 %v3368_v9  ;;  %3083 = vmatprep.subr.bf16.mxu0 %v3369_v14  ;;  %v306_v9 = vld [vmem:[%s3550_s12 + $0x268] sm:$0xff]  ;;  %v309_v14 = vld [vmem:[%s3550_s12 + $0x280] sm:$0xff]  ;;  %v2605_v51 = vcombine.low %v334_v40, %v338_v41  ;;  %v235_v63 = vld [vmem:[%s3550_s12 + $0x30] sm:$0xff] }
  0x3a   : > { %3195 = vmatprep.subr.bf16.mxu1 %v3371_v17  ;;  %v314_v17 = vld [vmem:[%s3550_s12 + $0x2a8] sm:$0xff] }
  0x3c   : > { %3084 = vmatpush3.bf16.msra.mxu0 %v3370_v15  ;;  %v313_v15 = vld [vmem:[%s3550_s12 + $0x2a0] sm:$0xff] }
  0x3d   : > { %3196 = vmatpush3.bf16.msra.mxu1 %v3372_v20  ;;  %3085 = vmatprep.subr.bf16.mxu0 %v3373_v24  ;;  %v2580_v20 = vcombine.high %v309_v14, %v313_v15  ;;  %v318_v24 = vld [vmem:[%s3550_s12 + $0x2c8] sm:$0xff]  ;;  %v2579_v26 = vcombine.low %v309_v14, %v313_v15  ;;  %v247_v14 = vld [vmem:[%s3550_s12 + $0x90] sm:$0xff] }
  0x3e   : > { %1565 = vmatmul.mubr.bf16.gmra.mxu0 %v2515_v3  ;;  %3197 = vmatprep.subr.bf16.mxu1 %v3375_v28  ;;  %v2557_v3 = vcombine.low %v286_v52, %v290_v53  ;;  %v2588_v28 = vcombine.high %v317_v22, %v321_v23  ;;  %v2589_v35 = vcombine.low %v318_v24, %v322_v25  ;;  %v251_v15 = vld [vmem:[%s3550_s12 + $0xb0] sm:$0xff] }
  0x3f   : > { %1726 = vmatmul.mubr.bf16.gmra.mxu1 %v2517_v5  ;;  %1572 = vmatprep.mubr.bf16.mxu0 %v2524_v6  ;;  %v2566_v5 = vcombine.high %v294_v0, %v298_v1  ;;  %v301_v6 = vld [vmem:[%s3550_s12 + $0x240] sm:$0xff]  ;;  %v232_v0 = vld [vmem:[%s3550_s12 + $0x18] sm:$0xff] }
  0x40   : > { %1733 = vmatprep.mubr.bf16.mxu1 %v2526_v8  ;;  %3086 = vmatpush3.bf16.msra.mxu0 %v3374_v27  ;;  %v302_v8 = vld [vmem:[%s3550_s12 + $0x248] sm:$0xff]  ;;  %v2572_v12 = vcombine.high %v301_v6, %v305_v7  ;;  %v236_v1 = vld [vmem:[%s3550_s12 + $0x38] sm:$0xff] }
  0x41   : > { %3198 = vmatpush3.bf16.msra.mxu1 %v3376_v29  ;;  %3087 = vmatprep.subr.bf16.mxu0 %v3377_v34  ;;  %v2574_v13 = vcombine.high %v302_v8, %v306_v9  ;;  %v2590_v29 = vcombine.high %v318_v24, %v322_v25  ;;  %v2587_v34 = vcombine.low %v317_v22, %v321_v23  ;;  %v255_v22 = vld [vmem:[%s3550_s12 + $0xd0] sm:$0xff]  ;;  %v256_v24 = vld [vmem:[%s3550_s12 + $0xd8] sm:$0xff] }
  0x42   : > { %3199 = vmatprep.subr.bf16.mxu1 %v3379_v37  ;;  %v259_v23 = vld [vmem:[%s3550_s12 + $0xf0] sm:$0xff]  ;;  %v260_v25 = vld [vmem:[%s3550_s12 + $0xf8] sm:$0xff] }
  0x44   : > { %3088 = vmatpush3.bf16.msra.mxu0 %v3378_v36 }
  0x45   : > { %3200 = vmatpush3.bf16.msra.mxu1 %v3380_v39  ;;  %3089 = vmatprep.subr.bf16.mxu0 %v3381_v46  ;;  %v337_v39 = vld [vmem:[%s3550_s12 + $0x360] sm:$0xff] }
  0x46   : > { %1573 = vmatmul.mubr.bf16.gmra.mxu0 %v2523_v16  ;;  %3201 = vmatprep.subr.bf16.mxu1 %v3383_v48  ;;  %v310_v16 = vld [vmem:[%s3550_s12 + $0x288] sm:$0xff]  ;;  %v341_v46 = vld [vmem:[%s3550_s12 + $0x380] sm:$0xff]  ;;  %v2603_v50 = vcombine.low %v333_v38, %v337_v39 }
  0x47   : > { %1734 = vmatmul.mubr.bf16.gmra.mxu1 %v2525_v18  ;;  %1580 = vmatprep.mubr.bf16.mxu0 %v2532_v19  ;;  %v2571_v18 = vcombine.low %v301_v6, %v305_v7  ;;  %v2573_v19 = vcombine.low %v302_v8, %v306_v9  ;;  %v2581_v27 = vcombine.low %v310_v16, %v314_v17  ;;  %v342_v48 = vld [vmem:[%s3550_s12 + $0x388] sm:$0xff]  ;;  %v239_v6 = vld [vmem:[%s3550_s12 + $0x50] sm:$0xff]  ;;  %v240_v8 = vld [vmem:[%s3550_s12 + $0x58] sm:$0xff] }
  0x48   : > { %1741 = vmatprep.mubr.bf16.mxu1 %v2534_v21  ;;  %3090 = vmatpush3.bf16.msra.mxu0 %v3382_v47  ;;  %v2582_v21 = vcombine.high %v310_v16, %v314_v17  ;;  %v345_v47 = vld [vmem:[%s3550_s12 + $0x3a0] sm:$0xff]  ;;  %v243_v7 = vld [vmem:[%s3550_s12 + $0x70] sm:$0xff]  ;;  %v244_v9 = vld [vmem:[%s3550_s12 + $0x78] sm:$0xff] }
  0x49   : > { %3202 = vmatpush3.bf16.msra.mxu1 %v3384_v49  ;;  %3091 = vmatprep.subr.bf16.mxu0 %v3385_v55  ;;  %v346_v49 = vld [vmem:[%s3550_s12 + $0x3a8] sm:$0xff]  ;;  %v2612_v52 = vcombine.high %v341_v46, %v345_v47  ;;  %v353_v55 = vld [vmem:[%s3550_s12 + $0x3e0] sm:$0xff]  ;;  %v248_v16 = vld [vmem:[%s3550_s12 + $0x98] sm:$0xff] }
  0x4a   : > { %3203 = vmatprep.subr.bf16.mxu1 %v3387_v60  ;;  %v2614_v53 = vcombine.high %v342_v48, %v346_v49  ;;  %v252_v17 = vld [vmem:[%s3550_s12 + $0xb8] sm:$0xff] }
  0x4c   : > { %3092 = vmatpush3.bf16.msra.mxu0 %v3386_v58  ;;  %v2611_v58 = vcombine.low %v341_v46, %v345_v47  ;;  %v279_v46 = vld [vmem:[%s3550_s12 + $0x190] sm:$0xff] }
  0x4d   : > { %3204 = vmatpush3.bf16.msra.mxu1 %v3388_v61  ;;  %v283_v47 = vld [vmem:[%s3550_s12 + $0x1b0] sm:$0xff] }
  0x4e   : > { %1581 = vmatmul.mubr.bf16.gmra.mxu0 %v2531_v30  ;;  %v325_v30 = vld [vmem:[%s3550_s12 + $0x300] sm:$0xff] }
  0x4f   : > { %1742 = vmatmul.mubr.bf16.gmra.mxu1 %v2533_v31  ;;  %1588 = vmatprep.mubr.bf16.mxu0 %v2540_v32  ;;  %v329_v31 = vld [vmem:[%s3550_s12 + $0x320] sm:$0xff]  ;;  %v326_v32 = vld [vmem:[%s3550_s12 + $0x308] sm:$0xff] }
  0x50   : > { %1749 = vmatprep.mubr.bf16.mxu1 %v2542_v33  ;;  %v330_v33 = vld [vmem:[%s3550_s12 + $0x328] sm:$0xff]  ;;  %v2596_v36 = vcombine.high %v325_v30, %v329_v31 }
  0x51   : > { %v2598_v37 = vcombine.high %v326_v32, %v330_v33 }
  0x56   : > { %1589 = vmatmul.mubr.bf16.gmra.mxu0 %v2539_v42  ;;  %v2595_v42 = vcombine.low %v325_v30, %v329_v31  ;;  %v263_v30 = vld [vmem:[%s3550_s12 + $0x110] sm:$0xff] }
  0x57   : > { %1750 = vmatmul.mubr.bf16.gmra.mxu1 %v2541_v43  ;;  %1596 = vmatprep.mubr.bf16.mxu0 %v2548_v44  ;;  %v2597_v43 = vcombine.low %v326_v32, %v330_v33  ;;  %v2604_v44 = vcombine.high %v333_v38, %v337_v39  ;;  %v267_v31 = vld [vmem:[%s3550_s12 + $0x130] sm:$0xff]  ;;  %v264_v32 = vld [vmem:[%s3550_s12 + $0x118] sm:$0xff] }
  0x58   : > { %1757 = vmatprep.mubr.bf16.mxu1 %v2550_v45  ;;  %v2606_v45 = vcombine.high %v334_v40, %v338_v41  ;;  %v268_v33 = vld [vmem:[%s3550_s12 + $0x138] sm:$0xff]  ;;  %v271_v38 = vld [vmem:[%s3550_s12 + $0x150] sm:$0xff] }
  0x59   : > { %v275_v39 = vld [vmem:[%s3550_s12 + $0x170] sm:$0xff]  ;;  %v272_v40 = vld [vmem:[%s3550_s12 + $0x158] sm:$0xff] }
  0x5a   : > { %v276_v41 = vld [vmem:[%s3550_s12 + $0x178] sm:$0xff] }
  0x5e   : > { %1597 = vmatmul.mubr.bf16.gmra.mxu0 %v2547_v54  ;;  %v349_v54 = vld [vmem:[%s3550_s12 + $0x3c0] sm:$0xff] }
  0x5f   : > { %1758 = vmatmul.mubr.bf16.gmra.mxu1 %v2549_v56  ;;  %1604 = vmatprep.mubr.bf16.mxu0 %v2556_v57  ;;  %v350_v56 = vld [vmem:[%s3550_s12 + $0x3c8] sm:$0xff]  ;;  %v2620_v60 = vcombine.high %v349_v54, %v353_v55 }
  0x60   : > { %1765 = vmatprep.mubr.bf16.mxu1 %v2558_v59  ;;  %v354_v57 = vld [vmem:[%s3550_s12 + $0x3e8] sm:$0xff]  ;;  %v2613_v59 = vcombine.low %v342_v48, %v346_v49  ;;  %v280_v48 = vld [vmem:[%s3550_s12 + $0x198] sm:$0xff] }
  0x61   : > { %v2622_v61 = vcombine.high %v350_v56, %v354_v57  ;;  %v284_v49 = vld [vmem:[%s3550_s12 + $0x1b8] sm:$0xff] }
  0x66   : > { %1605 = vmatmul.mubr.bf16.gmra.mxu0 %v2555_v2  ;;  %v2619_v2 = vcombine.low %v349_v54, %v353_v55  ;;  %v287_v54 = vld [vmem:[%s3550_s12 + $0x1d0] sm:$0xff] }
  0x67   : > { %1766 = vmatmul.mubr.bf16.gmra.mxu1 %v2557_v3  ;;  %1612 = vmatprep.mubr.bf16.mxu0 %v2564_v4  ;;  %v2621_v3 = vcombine.low %v350_v56, %v354_v57  ;;  %v2504_v4 = vcombine.high %v231_v62, %v235_v63  ;;  %v291_v55 = vld [vmem:[%s3550_s12 + $0x1f0] sm:$0xff]  ;;  %v288_v56 = vld [vmem:[%s3550_s12 + $0x1d8] sm:$0xff] }
  0x68   : > { %1773 = vmatprep.mubr.bf16.mxu1 %v2566_v5  ;;  %v2506_v5 = vcombine.high %v232_v0, %v236_v1  ;;  %v292_v57 = vld [vmem:[%s3550_s12 + $0x1f8] sm:$0xff] }
  0x6e   : > { %1613 = vmatmul.mubr.bf16.gmra.mxu0 %v2563_v10  ;;  %v2503_v10 = vcombine.low %v231_v62, %v235_v63  ;;  %v295_v62 = vld [vmem:[%s3550_s12 + $0x210] sm:$0xff] }
  0x6f   : > { %1774 = vmatmul.mubr.bf16.gmra.mxu1 %v2565_v11  ;;  %1620 = vmatprep.mubr.bf16.mxu0 %v2572_v12  ;;  %v2505_v11 = vcombine.low %v232_v0, %v236_v1  ;;  %v2512_v12 = vcombine.high %v239_v6, %v243_v7  ;;  %v299_v63 = vld [vmem:[%s3550_s12 + $0x230] sm:$0xff]  ;;  %v296_v0 = vld [vmem:[%s3550_s12 + $0x218] sm:$0xff] }
  0x70   : > { %1781 = vmatprep.mubr.bf16.mxu1 %v2574_v13  ;;  %v2514_v13 = vcombine.high %v240_v8, %v244_v9  ;;  %v300_v1 = vld [vmem:[%s3550_s12 + $0x238] sm:$0xff] }
  0x76   : > { %1621 = vmatmul.mubr.bf16.gmra.mxu0 %v2571_v18  ;;  %v2511_v18 = vcombine.low %v239_v6, %v243_v7  ;;  %v303_v6 = vld [vmem:[%s3550_s12 + $0x250] sm:$0xff] }
  0x77   : > { %1782 = vmatmul.mubr.bf16.gmra.mxu1 %v2573_v19  ;;  %1628 = vmatprep.mubr.bf16.mxu0 %v2580_v20  ;;  %v2513_v19 = vcombine.low %v240_v8, %v244_v9  ;;  %v2520_v20 = vcombine.high %v247_v14, %v251_v15  ;;  %v307_v7 = vld [vmem:[%s3550_s12 + $0x270] sm:$0xff]  ;;  %v304_v8 = vld [vmem:[%s3550_s12 + $0x258] sm:$0xff] }
  0x78   : > { %1789 = vmatprep.mubr.bf16.mxu1 %v2582_v21  ;;  %v2522_v21 = vcombine.high %v248_v16, %v252_v17  ;;  %v308_v9 = vld [vmem:[%s3550_s12 + $0x278] sm:$0xff] }
  0x7e   : > { %1629 = vmatmul.mubr.bf16.gmra.mxu0 %v2579_v26  ;;  %v2519_v26 = vcombine.low %v247_v14, %v251_v15 }
  0x7f   : > { %1790 = vmatmul.mubr.bf16.gmra.mxu1 %v2581_v27  ;;  %1636 = vmatprep.mubr.bf16.mxu0 %v2588_v28  ;;  %v2521_v27 = vcombine.low %v248_v16, %v252_v17  ;;  %v2528_v28 = vcombine.high %v255_v22, %v259_v23  ;;  %v3761_v16 = vld [vmem:[%s3948_s2] ss:$0 sm:$0xff] }
  0x80   : > { %1797 = vmatprep.mubr.bf16.mxu1 %v2590_v29  ;;  %v2530_v29 = vcombine.high %v256_v24, %v260_v25 }
  0x86   : > { %1637 = vmatmul.mubr.bf16.gmra.mxu0 %v2587_v34  ;;  %v2527_v34 = vcombine.low %v255_v22, %v259_v23  ;;  %v312_v22 = vld [vmem:[%s3550_s12 + $0x298] sm:$0xff] }
  0x87   : > { %1798 = vmatmul.mubr.bf16.gmra.mxu1 %v2589_v35  ;;  %1644 = vmatprep.mubr.bf16.mxu0 %v2596_v36  ;;  %v2529_v35 = vcombine.low %v256_v24, %v260_v25  ;;  %v2536_v36 = vcombine.high %v263_v30, %v267_v31  ;;  %v316_v23 = vld [vmem:[%s3550_s12 + $0x2b8] sm:$0xff] }
  0x88   : > { %1805 = vmatprep.mubr.bf16.mxu1 %v2598_v37  ;;  %v2538_v37 = vcombine.high %v264_v32, %v268_v33 }
  0x8e   : > { %1645 = vmatmul.mubr.bf16.gmra.mxu0 %v2595_v42  ;;  %v2535_v42 = vcombine.low %v263_v30, %v267_v31 }
  0x8f   : > { %1806 = vmatmul.mubr.bf16.gmra.mxu1 %v2597_v43  ;;  %1652 = vmatprep.mubr.bf16.mxu0 %v2604_v44  ;;  %v2537_v43 = vcombine.low %v264_v32, %v268_v33  ;;  %v2544_v44 = vcombine.high %v271_v38, %v275_v39  ;;  %v2586_v32 = vcombine.high %v312_v22, %v316_v23 }
  0x90   : > { %1813 = vmatprep.mubr.bf16.mxu1 %v2606_v45  ;;  %v2546_v45 = vcombine.high %v272_v40, %v276_v41 }
  0x96   : > { %1653 = vmatmul.mubr.bf16.gmra.mxu0 %v2603_v50  ;;  %v2543_v50 = vcombine.low %v271_v38, %v275_v39 }
  0x97   : > { %1814 = vmatmul.mubr.bf16.gmra.mxu1 %v2605_v51  ;;  %1660 = vmatprep.mubr.bf16.mxu0 %v2612_v52  ;;  %v2545_v51 = vcombine.low %v272_v40, %v276_v41  ;;  %v2552_v52 = vcombine.high %v279_v46, %v283_v47  ;;  %v319_v41 = vld [vmem:[%s3550_s12 + $0x2d0] sm:$0xff] }
  0x98   : > { %1821 = vmatprep.mubr.bf16.mxu1 %v2614_v53  ;;  %v2554_v53 = vcombine.high %v280_v48, %v284_v49 }
  0x9e   : > { %1661 = vmatmul.mubr.bf16.gmra.mxu0 %v2611_v58  ;;  %v2551_v58 = vcombine.low %v279_v46, %v283_v47  ;;  %v320_v46 = vld [vmem:[%s3550_s12 + $0x2d8] sm:$0xff] }
  0x9f   : > { %1822 = vmatmul.mubr.bf16.gmra.mxu1 %v2613_v59  ;;  %1668 = vmatprep.mubr.bf16.mxu0 %v2620_v60  ;;  %v2553_v59 = vcombine.low %v280_v48, %v284_v49  ;;  %v2560_v60 = vcombine.high %v287_v54, %v291_v55  ;;  %v324_v47 = vld [vmem:[%s3550_s12 + $0x2f8] sm:$0xff] }
  0xa0   : > { %1829 = vmatprep.mubr.bf16.mxu1 %v2622_v61  ;;  %v2562_v61 = vcombine.high %v288_v56, %v292_v57 }
  0xa6   : > { %1669 = vmatmul.mubr.bf16.gmra.mxu0 %v2619_v2  ;;  %v2559_v2 = vcombine.low %v287_v54, %v291_v55 }
  0xa7   : > { %1830 = vmatmul.mubr.bf16.gmra.mxu1 %v2621_v3  ;;  %1870 = vmatprep.mubr.bf16.mxu0 %v2504_v4  ;;  %v2561_v3 = vcombine.low %v288_v56, %v292_v57  ;;  %v2568_v4 = vcombine.high %v295_v62, %v299_v63  ;;  %v2594_v56 = vcombine.high %v320_v46, %v324_v47 }
  0xa8   : > { %2031 = vmatprep.mubr.bf16.mxu1 %v2506_v5  ;;  %v2570_v5 = vcombine.high %v296_v0, %v300_v1 }
  0xae   : > { %1871 = vmatmul.mubr.bf16.vlgmr.msra.gmra.mxu0 %v2503_v10  ;;  %v2567_v10 = vcombine.low %v295_v62, %v299_v63 }
  0xaf   : > { %2032 = vmatmul.mubr.bf16.vlgmr.msra.gmra.mxu1 %v2505_v11  ;;  %1878 = vmatprep.mubr.bf16.mxu0 %v2512_v12  ;;  %v2569_v11 = vcombine.low %v296_v0, %v300_v1  ;;  %v2576_v12 = vcombine.high %v303_v6, %v307_v7  ;;  %v327_v1 = vld [vmem:[%s3550_s12 + $0x310] sm:$0xff] }
  0xb0   : > { %2039 = vmatprep.mubr.bf16.mxu1 %v2514_v13  ;;  %v2578_v13 = vcombine.high %v304_v8, %v308_v9 }
  0xb6   : > { %1879 = vmatmul.mubr.bf16.gmra.mxu0 %v2511_v18  ;;  %v311_v18 = vld [vmem:[%s3550_s12 + $0x290] sm:$0xff] }
  0xb7   : > { %2040 = vmatmul.mubr.bf16.gmra.mxu1 %v2513_v19  ;;  %1886 = vmatprep.mubr.bf16.mxu0 %v2520_v20  ;;  %v315_v19 = vld [vmem:[%s3550_s12 + $0x2b0] sm:$0xff] }
  0xb8   : > { %2047 = vmatprep.mubr.bf16.mxu1 %v2522_v21  ;;  %v2584_v30 = vcombine.high %v311_v18, %v315_v19 }
  0xbe   : > { %1887 = vmatmul.mubr.bf16.gmra.mxu0 %v2519_v26  ;;  %v2575_v26 = vcombine.low %v303_v6, %v307_v7  ;;  %v328_v6 = vld [vmem:[%s3550_s12 + $0x318] sm:$0xff] }
  0xbf   : > { %2048 = vmatmul.mubr.bf16.gmra.mxu1 %v2521_v27  ;;  %1894 = vmatprep.mubr.bf16.mxu0 %v2528_v28  ;;  %v332_v7 = vld [vmem:[%s3550_s12 + $0x338] sm:$0xff] }
  0xc0   : > { %2055 = vmatprep.mubr.bf16.mxu1 %v2530_v29  ;;  %v2577_v29 = vcombine.low %v304_v8, %v308_v9 }
  0xc6   : > { %1895 = vmatmul.mubr.bf16.gmra.mxu0 %v2527_v34 }
  0xc7   : > { %2056 = vmatmul.mubr.bf16.gmra.mxu1 %v2529_v35  ;;  %1902 = vmatprep.mubr.bf16.mxu0 %v2536_v36 }
  0xc8   : > { %2063 = vmatprep.mubr.bf16.mxu1 %v2538_v37 }
  0xce   : > { %1903 = vmatmul.mubr.bf16.gmra.mxu0 %v2535_v42  ;;  %v323_v42 = vld [vmem:[%s3550_s12 + $0x2f0] sm:$0xff] }
  0xcf   : > { %2064 = vmatmul.mubr.bf16.gmra.mxu1 %v2537_v43  ;;  %1910 = vmatprep.mubr.bf16.mxu0 %v2544_v44  ;;  %v2592_v54 = vcombine.high %v319_v41, %v323_v42 }
  0xd0   : > { %2071 = vmatprep.mubr.bf16.mxu1 %v2546_v45 }
  0xd6   : > { %1911 = vmatmul.mubr.bf16.gmra.mxu0 %v2543_v50  ;;  %v2583_v50 = vcombine.low %v311_v18, %v315_v19 }
  0xd7   : > { %2072 = vmatmul.mubr.bf16.gmra.mxu1 %v2545_v51  ;;  %1918 = vmatprep.mubr.bf16.mxu0 %v2552_v52 }
  0xd8   : > { %2079 = vmatprep.mubr.bf16.mxu1 %v2554_v53  ;;  %v2585_v53 = vcombine.low %v312_v22, %v316_v23 }
  0xde   : > { %1919 = vmatmul.mubr.bf16.gmra.mxu0 %v2551_v58 }
  0xdf   : > { %2080 = vmatmul.mubr.bf16.gmra.mxu1 %v2553_v59  ;;  %1926 = vmatprep.mubr.bf16.mxu0 %v2560_v60 }
  0xe0   : > { %2087 = vmatprep.mubr.bf16.mxu1 %v2562_v61 }
  0xe6   : > { %1927 = vmatmul.mubr.bf16.gmra.mxu0 %v2559_v2  ;;  %v331_v2 = vld [vmem:[%s3550_s12 + $0x330] sm:$0xff] }
  0xe7   : > { %2088 = vmatmul.mubr.bf16.gmra.mxu1 %v2561_v3  ;;  %1934 = vmatprep.mubr.bf16.mxu0 %v2568_v4 }
  0xe8   : > { %2095 = vmatprep.mubr.bf16.mxu1 %v2570_v5 }
  0xee   : > { %v2869_v14 = vpop.f32.mrf.mxu0  ;;  %1935 = vmatmul.mubr.bf16.gmra.mxu0 %v2567_v10  ;;  %v2591_v10 = vcombine.low %v319_v41, %v323_v42 }
  0xef   : > { %v2981_v15 = vpop.f32.mrf.mxu1  ;;  %2096 = vmatmul.mubr.bf16.gmra.mxu1 %v2569_v11  ;;  %1942 = vmatprep.mubr.bf16.mxu0 %v2576_v12 }
  0xf0   : > { %v2870_v17 = vpop.f32.mrf.mxu0  ;;  %2103 = vmatprep.mubr.bf16.mxu1 %v2578_v13  ;;  %v2593_v13 = vcombine.low %v320_v46, %v324_v47 }
  0xf1   : > { %v2871_v20 = vadd.f32 %v2870_v17, %v2869_v14  ;;  %v2982_v21 = vpop.f32.mrf.mxu1  ;;  %v2600_v14 = vcombine.high %v327_v1, %v331_v2  ;;  %v2602_v17 = vcombine.high %v328_v6, %v332_v7 }
  0xf2   : > { %v2983_v24 = vadd.f32 %v2982_v21, %v2981_v15  ;;  %v2872_v25 = vpop.f32.mrf.mxu0 }
  0xf3   : > { %v1551_v27 = vadd.f32 %v2871_v20, %v3761_v16  ;;  %v2984_v28 = vpop.f32.mrf.mxu1 }
  0xf4   : > { %v2873_v31 = vpop.f32.mrf.mxu0 }
  0xf5   : > { %v3768_v33 = vadd.f32 %v2983_v24, %v1551_v27  ;;  %v2874_v34 = vadd.f32 %v2873_v31, %v2872_v25  ;;  %v2985_v35 = vpop.f32.mrf.mxu1  ;;  %v339_v27 = vld [vmem:[%s3550_s12 + $0x370] sm:$0xff]  ;;  %v336_v31 = vld [vmem:[%s3550_s12 + $0x358] sm:$0xff] }
  0xf6   : > { %v2986_v36 = vadd.f32 %v2985_v35, %v2984_v28  ;;  %v2875_v37 = vpop.f32.mrf.mxu0  ;;  %1943 = vmatmul.mubr.bf16.gmra.mxu0 %v2575_v26  ;;  %v335_v26 = vld [vmem:[%s3550_s12 + $0x350] sm:$0xff] }
  0xf7   : > { %v1554_v38 = vadd.f32 %v2874_v34, %v3761_v16  ;;  %v2987_v39 = vpop.f32.mrf.mxu1  ;;  %2104 = vmatmul.mubr.bf16.gmra.mxu1 %v2577_v29  ;;  %1950 = vmatprep.mubr.bf16.mxu0 %v2584_v30 }
  0xf8   : > { %v2876_v40 = vpop.f32.mrf.mxu0  ;;  %2111 = vmatprep.mubr.bf16.mxu1 %v2586_v32  ;;  %v340_v32 = vld [vmem:[%s3550_s12 + $0x378] sm:$0xff] }
  0xf9   : > { %v3773_v43 = vadd.f32 %v2986_v36, %v1554_v38  ;;  %v2877_v44 = vadd.f32 %v2876_v40, %v2875_v37  ;;  %v2988_v45 = vpop.f32.mrf.mxu1  ;;  %v2599_v36 = vcombine.low %v327_v1, %v331_v2  ;;  %v2608_v40 = vcombine.high %v335_v26, %v339_v27 }
  0xfa   : > { %v2989_v48 = vadd.f32 %v2988_v45, %v2987_v39  ;;  %v2878_v49 = vpop.f32.mrf.mxu0  ;;  %v2601_v39 = vcombine.low %v328_v6, %v332_v7  ;;  %v2610_v42 = vcombine.high %v336_v31, %v340_v32  ;;  %v2609_v1 = vcombine.low %v336_v31, %v340_v32 }
  0xfb   : > { %v1559_v51 = vadd.f32 %v2877_v44, %v3761_v16  ;;  %v2990_v52 = vpop.f32.mrf.mxu1 }
  0xfc   : > { %v2879_v55 = vpop.f32.mrf.mxu0 }
  0xfd   : > { %v3778_v57 = vadd.f32 %v2989_v48, %v1559_v51  ;;  %v2880_v58 = vadd.f32 %v2879_v55, %v2878_v49  ;;  %v2991_v59 = vpop.f32.mrf.mxu1 }
  0xfe   : > { %v2992_v60 = vadd.f32 %v2991_v59, %v2990_v52  ;;  %v2881_v61 = vpop.f32.mrf.mxu0  ;;  %1951 = vmatmul.mubr.bf16.gmra.mxu0 %v2583_v50  ;;  %v343_v52 = vld [vmem:[%s3550_s12 + $0x390] sm:$0xff]  ;;  %v348_v59 = vld [vmem:[%s3550_s12 + $0x3b8] sm:$0xff] }
  0xff   : > { %v1562_v62 = vadd.f32 %v2880_v58, %v3761_v16  ;;  %v2993_v63 = vpop.f32.mrf.mxu1  ;;  %2112 = vmatmul.mubr.bf16.gmra.mxu1 %v2585_v53  ;;  %1958 = vmatprep.mubr.bf16.mxu0 %v2592_v54  ;;  %v347_v53 = vld [vmem:[%s3550_s12 + $0x3b0] sm:$0xff]  ;;  %v344_v58 = vld [vmem:[%s3550_s12 + $0x398] sm:$0xff] }
 0x100   : > { %v2882_v0 = vpop.f32.mrf.mxu0  ;;  %2119 = vmatprep.mubr.bf16.mxu1 %v2594_v56  ;;  %v2616_v2 = vcombine.high %v343_v52, %v347_v53 }
 0x101   : > { %v3783_v3 = vadd.f32 %v2992_v60, %v1562_v62  ;;  %v2883_v4 = vadd.f32 %v2882_v0, %v2881_v61  ;;  %v2994_v5 = vpop.f32.mrf.mxu1  ;;  %v2607_v62 = vcombine.low %v335_v26, %v339_v27 }
 0x102   : > { %v2995_v8 = vadd.f32 %v2994_v5, %v2993_v63  ;;  %v2884_v9 = vpop.f32.mrf.mxu0  ;;  %v2618_v5 = vcombine.high %v344_v58, %v348_v59 }
 0x103   : > { %v1567_v11 = vadd.f32 %v2883_v4, %v3761_v16  ;;  %v2996_v12 = vpop.f32.mrf.mxu1 }
 0x104   : > { %v2885_v15 = vpop.f32.mrf.mxu0 }
 0x105   : > { %v3788_v18 = vadd.f32 %v2995_v8, %v1567_v11  ;;  %v2886_v19 = vadd.f32 %v2885_v15, %v2884_v9  ;;  %v2997_v20 = vpop.f32.mrf.mxu1  ;;  %v355_v15 = vld [vmem:[%s3550_s12 + $0x3f0] sm:$0xff] }
 0x106   : > { %v2998_v21 = vadd.f32 %v2997_v20, %v2996_v12  ;;  %v2887_v22 = vpop.f32.mrf.mxu0  ;;  %1959 = vmatmul.mubr.bf16.gmra.mxu0 %v2591_v10 }
 0x107   : > { %v1570_v23 = vadd.f32 %v2886_v19, %v3761_v16  ;;  %v2999_v24 = vpop.f32.mrf.mxu1  ;;  %2120 = vmatmul.mubr.bf16.gmra.mxu1 %v2593_v13  ;;  %1966 = vmatprep.mubr.bf16.mxu0 %v2600_v14  ;;  %v351_v14 = vld [vmem:[%s3550_s12 + $0x3d0] sm:$0xff] }
 0x108   : > { %v2888_v25 = vpop.f32.mrf.mxu0  ;;  %2127 = vmatprep.mubr.bf16.mxu1 %v2602_v17 }
 0x109   : > { %v3793_v28 = vadd.f32 %v2998_v21, %v1570_v23  ;;  %v2889_v29 = vadd.f32 %v2888_v25, %v2887_v22  ;;  %v3000_v30 = vpop.f32.mrf.mxu1  ;;  %v352_v21 = vld [vmem:[%s3550_s12 + $0x3d8] sm:$0xff]  ;;  %v2615_v25 = vcombine.low %v343_v52, %v347_v53 }
 0x10a   : > { %v3001_v34 = vadd.f32 %v3000_v30, %v2999_v24  ;;  %v2890_v35 = vpop.f32.mrf.mxu0  ;;  %v356_v22 = vld [vmem:[%s3550_s12 + $0x3f8] sm:$0xff]  ;;  %v2624_v30 = vcombine.high %v351_v14, %v355_v15  ;;  %s2497_s12 = sshll.u32 %s3955_s25, 2 }
 0x10b   : > { %v1575_v37 = vadd.f32 %v2889_v29, %v3761_v16  ;;  %v3002_v38 = vpop.f32.mrf.mxu1  ;;  %v2617_v29 = vcombine.low %v344_v58, %v348_v59  ;;  %v2626_v32 = vcombine.high %v352_v21, %v356_v22  ;;  %v2625_v52 = vcombine.low %v352_v21, %v356_v22  ;;  %s3890_s17 = scalar_lea.vmem %s3949_s3, %s2497_s12 }
 0x10c   : > { %v2891_v41 = vpop.f32.mrf.mxu0 }
 0x10d   : > { %v3798_v44 = vadd.f32 %v3001_v34, %v1575_v37  ;;  %v2892_v45 = vadd.f32 %v2891_v41, %v2890_v35  ;;  %v3003_v46 = vpop.f32.mrf.mxu1 }
 0x10e   : > { %v3004_v47 = vadd.f32 %v3003_v46, %v3002_v38  ;;  %v2893_v48 = vpop.f32.mrf.mxu0  ;;  %1967 = vmatmul.mubr.bf16.gmra.mxu0 %v2599_v36 }
 0x10f   : > { %v1578_v49 = vadd.f32 %v2892_v45, %v3761_v16  ;;  %v3005_v50 = vpop.f32.mrf.mxu1  ;;  %2128 = vmatmul.mubr.bf16.gmra.mxu1 %v2601_v39  ;;  %1974 = vmatprep.mubr.bf16.mxu0 %v2608_v40 }
 0x110   : > { %v2894_v51 = vpop.f32.mrf.mxu0  ;;  %2135 = vmatprep.mubr.bf16.mxu1 %v2610_v42 }
 0x111   : > { %v3803_v54 = vadd.f32 %v3004_v47, %v1578_v49  ;;  %v2895_v55 = vadd.f32 %v2894_v51, %v2893_v48  ;;  %v3006_v56 = vpop.f32.mrf.mxu1  ;;  %v2623_v49 = vcombine.low %v351_v14, %v355_v15 }
 0x112   : > { %v3007_v60 = vadd.f32 %v3006_v56, %v3005_v50  ;;  %v2896_v61 = vpop.f32.mrf.mxu0 }
 0x113   : > { %v1583_v63 = vadd.f32 %v2895_v55, %v3761_v16  ;;  %v3008_v0 = vpop.f32.mrf.mxu1 }
 0x114   : > { %v2897_v4 = vpop.f32.mrf.mxu0 }
 0x115   : > { %v3808_v6 = vadd.f32 %v3007_v60, %v1583_v63  ;;  %v2898_v7 = vadd.f32 %v2897_v4, %v2896_v61  ;;  %v3009_v8 = vpop.f32.mrf.mxu1 }
 0x116   : > { %v3010_v9 = vadd.f32 %v3009_v8, %v3008_v0  ;;  %v2899_v10 = vpop.f32.mrf.mxu0  ;;  %1975 = vmatmul.mubr.bf16.gmra.mxu0 %v2607_v62 }
 0x117   : > { %v1586_v11 = vadd.f32 %v2898_v7, %v3761_v16  ;;  %v3011_v12 = vpop.f32.mrf.mxu1  ;;  %2136 = vmatmul.mubr.bf16.gmra.mxu1 %v2609_v1  ;;  %1982 = vmatprep.mubr.bf16.mxu0 %v2616_v2 }
 0x118   : > { %v2900_v13 = vpop.f32.mrf.mxu0  ;;  %2143 = vmatprep.mubr.bf16.mxu1 %v2618_v5 }
 0x119   : > { %v3813_v17 = vadd.f32 %v3010_v9, %v1586_v11  ;;  %v2901_v19 = vadd.f32 %v2900_v13, %v2899_v10  ;;  %v3012_v20 = vpop.f32.mrf.mxu1 }
 0x11a   : > { %v3013_v23 = vadd.f32 %v3012_v20, %v3011_v12  ;;  %v2902_v24 = vpop.f32.mrf.mxu0 }
 0x11b   : > { %v1591_v26 = vadd.f32 %v2901_v19, %v3761_v16  ;;  %v3014_v27 = vpop.f32.mrf.mxu1 }
 0x11c   : > { %v2903_v31 = vpop.f32.mrf.mxu0 }
 0x11d   : > { %v3818_v34 = vadd.f32 %v3013_v23, %v1591_v26  ;;  %v2904_v35 = vadd.f32 %v2903_v31, %v2902_v24  ;;  %v3015_v36 = vpop.f32.mrf.mxu1 }
 0x11e   : > { %v3016_v37 = vadd.f32 %v3015_v36, %v3014_v27  ;;  %v2905_v38 = vpop.f32.mrf.mxu0  ;;  %1983 = vmatmul.mubr.bf16.gmra.mxu0 %v2615_v25 }
 0x11f   : > { %v1594_v39 = vadd.f32 %v2904_v35, %v3761_v16  ;;  %v3017_v40 = vpop.f32.mrf.mxu1  ;;  %2144 = vmatmul.mubr.bf16.gmra.mxu1 %v2617_v29  ;;  %1990 = vmatprep.mubr.bf16.mxu0 %v2624_v30 }
 0x120   : > { %v2906_v41 = vpop.f32.mrf.mxu0  ;;  %2151 = vmatprep.mubr.bf16.mxu1 %v2626_v32 }
 0x121   : > { %v3821_v42 = vadd.f32 %v3016_v37, %v1594_v39  ;;  %v2907_v45 = vadd.f32 %v2906_v41, %v2905_v38  ;;  %v3018_v46 = vpop.f32.mrf.mxu1 }
 0x122   : > { %v3019_v47 = vadd.f32 %v3018_v46, %v3017_v40  ;;  %v2908_v48 = vpop.f32.mrf.mxu0 }
 0x123   : > { %v1599_v50 = vadd.f32 %v2907_v45, %v3761_v16  ;;  %v3020_v51 = vpop.f32.mrf.mxu1 }
 0x124   : > { %v2909_v53 = vpop.f32.mrf.mxu0 }
 0x125   : > { %v3824_v55 = vadd.f32 %v3019_v47, %v1599_v50  ;;  %v2910_v56 = vadd.f32 %v2909_v53, %v2908_v48  ;;  %v3021_v58 = vpop.f32.mrf.mxu1 }
 0x126   : > { %v3022_v59 = vadd.f32 %v3021_v58, %v3020_v51  ;;  %v2911_v60 = vpop.f32.mrf.mxu0  ;;  %1991 = vmatmul.mubr.bf16.gmra.mxu0 %v2623_v49 }
 0x127   : > { %v1602_v61 = vadd.f32 %v2910_v56, %v3761_v16  ;;  %v3023_v62 = vpop.f32.mrf.mxu1  ;;  %2152 = vmatmul.mubr.bf16.gmra.mxu1 %v2625_v52 }
 0x128   : > { %v2912_v63 = vpop.f32.mrf.mxu0 }
 0x129   : > { %v3827_v0 = vadd.f32 %v3022_v59, %v1602_v61  ;;  %v2913_v1 = vadd.f32 %v2912_v63, %v2911_v60  ;;  %v3024_v2 = vpop.f32.mrf.mxu1 }
 0x12a   : > { %v3025_v4 = vadd.f32 %v3024_v2, %v3023_v62  ;;  %v2914_v5 = vpop.f32.mrf.mxu0 }
 0x12b   : > { %v1607_v7 = vadd.f32 %v2913_v1, %v3761_v16  ;;  %v3026_v8 = vpop.f32.mrf.mxu1 }
 0x12c   : > { %v2915_v9 = vpop.f32.mrf.mxu0 }
 0x12d   : > { %v3830_v10 = vadd.f32 %v3025_v4, %v1607_v7  ;;  %v2916_v11 = vadd.f32 %v2915_v9, %v2914_v5  ;;  %v3027_v12 = vpop.f32.mrf.mxu1 }
 0x12e   : > { %v3028_v13 = vadd.f32 %v3027_v12, %v3026_v8  ;;  %v2917_v14 = vpop.f32.mrf.mxu0 }
 0x12f   : > { %v1610_v15 = vadd.f32 %v2916_v11, %v3761_v16  ;;  %v3029_v19 = vpop.f32.mrf.mxu1 }
 0x130   : > { %v2918_v20 = vpop.f32.mrf.mxu0 }
 0x131   : > { %v3833_v21 = vadd.f32 %v3028_v13, %v1610_v15  ;;  %v2919_v22 = vadd.f32 %v2918_v20, %v2917_v14  ;;  %v3030_v23 = vpop.f32.mrf.mxu1 }
 0x132   : > { %v3031_v24 = vadd.f32 %v3030_v23, %v3029_v19  ;;  %v2920_v25 = vpop.f32.mrf.mxu0 }
 0x133   : > { %v1615_v26 = vadd.f32 %v2919_v22, %v3761_v16  ;;  %v3032_v27 = vpop.f32.mrf.mxu1 }
 0x134   : > { %v2921_v29 = vpop.f32.mrf.mxu0 }
 0x135   : > { %v3836_v30 = vadd.f32 %v3031_v24, %v1615_v26  ;;  %v2922_v31 = vadd.f32 %v2921_v29, %v2920_v25  ;;  %v3033_v32 = vpop.f32.mrf.mxu1 }
 0x136   : > { %v3034_v35 = vadd.f32 %v3033_v32, %v3032_v27  ;;  %v2923_v36 = vpop.f32.mrf.mxu0 }
 0x137   : > { %v1618_v37 = vadd.f32 %v2922_v31, %v3761_v16  ;;  %v3035_v38 = vpop.f32.mrf.mxu1 }
 0x138   : > { %v2924_v39 = vpop.f32.mrf.mxu0 }
 0x139   : > { %v3839_v40 = vadd.f32 %v3034_v35, %v1618_v37  ;;  %v2925_v41 = vadd.f32 %v2924_v39, %v2923_v36  ;;  %v3036_v45 = vpop.f32.mrf.mxu1 }
 0x13a   : > { %v3037_v46 = vadd.f32 %v3036_v45, %v3035_v38  ;;  %v2926_v47 = vpop.f32.mrf.mxu0 }
 0x13b   : > { %v1623_v48 = vadd.f32 %v2925_v41, %v3761_v16  ;;  %v3038_v49 = vpop.f32.mrf.mxu1 }
 0x13c   : > { %v2927_v50 = vpop.f32.mrf.mxu0 }
 0x13d   : > { %v3842_v51 = vadd.f32 %v3037_v46, %v1623_v48  ;;  %v2928_v52 = vadd.f32 %v2927_v50, %v2926_v47  ;;  %v3039_v53 = vpop.f32.mrf.mxu1 }
 0x13e   : > { %v3040_v56 = vadd.f32 %v3039_v53, %v3038_v49  ;;  %v2929_v58 = vpop.f32.mrf.mxu0 }
 0x13f   : > { %v1626_v59 = vadd.f32 %v2928_v52, %v3761_v16  ;;  %v3041_v60 = vpop.f32.mrf.mxu1 }
 0x140   : > { %v2930_v61 = vpop.f32.mrf.mxu0 }
 0x141   : > { %v3845_v62 = vadd.f32 %v3040_v56, %v1626_v59  ;;  %v2931_v63 = vadd.f32 %v2930_v61, %v2929_v58  ;;  %v3042_v1 = vpop.f32.mrf.mxu1 }
 0x142   : > { %v3043_v2 = vadd.f32 %v3042_v1, %v3041_v60  ;;  %v2932_v4 = vpop.f32.mrf.mxu0 }
 0x143   : > { %v1631_v5 = vadd.f32 %v2931_v63, %v3761_v16  ;;  %v3044_v7 = vpop.f32.mrf.mxu1 }
 0x144   : > { %v2933_v8 = vpop.f32.mrf.mxu0 }
 0x145   : > { %v3848_v9 = vadd.f32 %v3043_v2, %v1631_v5  ;;  %v2934_v11 = vadd.f32 %v2933_v8, %v2932_v4  ;;  %v3045_v12 = vpop.f32.mrf.mxu1 }
 0x146   : > { %v3046_v13 = vadd.f32 %v3045_v12, %v3044_v7  ;;  %v2935_v14 = vpop.f32.mrf.mxu0 }
 0x147   : > { %v1634_v15 = vadd.f32 %v2934_v11, %v3761_v16  ;;  %v3047_v19 = vpop.f32.mrf.mxu1 }
 0x148   : > { %v2936_v20 = vpop.f32.mrf.mxu0 }
 0x149   : > { %v3851_v22 = vadd.f32 %v3046_v13, %v1634_v15  ;;  %v2937_v23 = vadd.f32 %v2936_v20, %v2935_v14  ;;  %v3048_v24 = vpop.f32.mrf.mxu1 }
 0x14a   : > { %v3049_v25 = vadd.f32 %v3048_v24, %v3047_v19  ;;  %v2938_v26 = vpop.f32.mrf.mxu0 }
 0x14b   : > { %v1639_v27 = vadd.f32 %v2937_v23, %v3761_v16  ;;  %v3050_v29 = vpop.f32.mrf.mxu1 }
 0x14c   : > { %v2939_v31 = vpop.f32.mrf.mxu0 }
 0x14d   : > { %v3854_v32 = vadd.f32 %v3049_v25, %v1639_v27  ;;  %v2940_v35 = vadd.f32 %v2939_v31, %v2938_v26  ;;  %v3051_v36 = vpop.f32.mrf.mxu1 }
 0x14e   : > { %v3052_v37 = vadd.f32 %v3051_v36, %v3050_v29  ;;  %v2941_v38 = vpop.f32.mrf.mxu0 }
 0x14f   : > { %v1642_v39 = vadd.f32 %v2940_v35, %v3761_v16  ;;  %v3053_v41 = vpop.f32.mrf.mxu1 }
 0x150   : > { %v2942_v45 = vpop.f32.mrf.mxu0 }
 0x151   : > { %v3857_v46 = vadd.f32 %v3052_v37, %v1642_v39  ;;  %v2943_v47 = vadd.f32 %v2942_v45, %v2941_v38  ;;  %v3054_v48 = vpop.f32.mrf.mxu1 }
 0x152   : > { %v3055_v49 = vadd.f32 %v3054_v48, %v3053_v41  ;;  %v2944_v50 = vpop.f32.mrf.mxu0 }
 0x153   : > { %v1647_v52 = vadd.f32 %v2943_v47, %v3761_v16  ;;  %v3056_v53 = vpop.f32.mrf.mxu1 }
 0x154   : > { %v2945_v56 = vpop.f32.mrf.mxu0 }
 0x155   : > { %v3860_v58 = vadd.f32 %v3055_v49, %v1647_v52  ;;  %v2946_v59 = vadd.f32 %v2945_v56, %v2944_v50  ;;  %v3057_v60 = vpop.f32.mrf.mxu1 }
 0x156   : > { %v3058_v61 = vadd.f32 %v3057_v60, %v3056_v53  ;;  %v2947_v63 = vpop.f32.mrf.mxu0 }
 0x157   : > { %v1650_v1 = vadd.f32 %v2946_v59, %v3761_v16  ;;  %v3059_v2 = vpop.f32.mrf.mxu1 }
 0x158   : > { %v2948_v4 = vpop.f32.mrf.mxu0 }
 0x159   : > { %v3863_v5 = vadd.f32 %v3058_v61, %v1650_v1  ;;  %v2949_v7 = vadd.f32 %v2948_v4, %v2947_v63  ;;  %v3060_v8 = vpop.f32.mrf.mxu1 }
 0x15a   : > { %v3061_v11 = vadd.f32 %v3060_v8, %v3059_v2  ;;  %v2950_v12 = vpop.f32.mrf.mxu0 }
 0x15b   : > { %v1655_v13 = vadd.f32 %v2949_v7, %v3761_v16  ;;  %v3062_v14 = vpop.f32.mrf.mxu1 }
 0x15c   : > { %v2951_v15 = vpop.f32.mrf.mxu0 }
 0x15d   : > { %v3866_v19 = vadd.f32 %v3061_v11, %v1655_v13  ;;  %v2952_v20 = vadd.f32 %v2951_v15, %v2950_v12  ;;  %v3063_v23 = vpop.f32.mrf.mxu1 }
 0x15e   : > { %v3064_v24 = vadd.f32 %v3063_v23, %v3062_v14  ;;  %v2953_v25 = vpop.f32.mrf.mxu0 }
 0x15f   : > { %v1658_v26 = vadd.f32 %v2952_v20, %v3761_v16  ;;  %v3065_v27 = vpop.f32.mrf.mxu1 }
 0x160   : > { %v2954_v29 = vpop.f32.mrf.mxu0 }
 0x161   : > { %v3869_v31 = vadd.f32 %v3064_v24, %v1658_v26  ;;  %v2955_v35 = vadd.f32 %v2954_v29, %v2953_v25  ;;  %v3066_v36 = vpop.f32.mrf.mxu1 }
 0x162   : > { %v3067_v37 = vadd.f32 %v3066_v36, %v3065_v27  ;;  %v2956_v38 = vpop.f32.mrf.mxu0 }
 0x163   : > { %v1663_v39 = vadd.f32 %v2955_v35, %v3761_v16  ;;  %v3068_v41 = vpop.f32.mrf.mxu1 }
 0x164   : > { %v2957_v45 = vpop.f32.mrf.mxu0 }
 0x165   : > { %v3872_v47 = vadd.f32 %v3067_v37, %v1663_v39  ;;  %v2958_v48 = vadd.f32 %v2957_v45, %v2956_v38  ;;  %v3069_v49 = vpop.f32.mrf.mxu1 }
 0x166   : > { %v3070_v50 = vadd.f32 %v3069_v49, %v3068_v41  ;;  %v2959_v52 = vpop.f32.mrf.mxu0 }
 0x167   : > { %v1666_v53 = vadd.f32 %v2958_v48, %v3761_v16  ;;  %v3071_v56 = vpop.f32.mrf.mxu1 }
 0x168   : > { %v2960_v59 = vpop.f32.mrf.mxu0 }
 0x169   : > { %v3875_v60 = vadd.f32 %v3070_v50, %v1666_v53  ;;  %v2961_v61 = vadd.f32 %v2960_v59, %v2959_v52  ;;  %v3072_v63 = vpop.f32.mrf.mxu1 }
 0x16a   : > { %v3073_v1 = vadd.f32 %v3072_v63, %v3071_v56  ;;  %v2962_v2 = vpop.f32.mrf.mxu0 }
 0x16b   : > { %v1671_v4 = vadd.f32 %v2961_v61, %v3761_v16  ;;  %v3074_v7 = vpop.f32.mrf.mxu1 }
 0x16c   : > { %v2963_v8 = vpop.f32.mrf.mxu0 }
 0x16d   : > { %v3878_v11 = vadd.f32 %v3073_v1, %v1671_v4  ;;  %v2964_v12 = vadd.f32 %v2963_v8, %v2962_v2  ;;  %v3075_v13 = vpop.f32.mrf.mxu1 }
 0x16e   : > { %v3076_v14 = vadd.f32 %v3075_v13, %v3074_v7  ;;  %v3093_v15 = vpop.f32.mrf.mxu0 }
 0x16f   : > { %v1674_v20 = vadd.f32 %v2964_v12, %v3761_v16  ;;  %v3205_v23 = vpop.f32.mrf.mxu1 }
 0x170   : > { %v3094_v24 = vpop.f32.mrf.mxu0 }
 0x171   : > { %v3881_v25 = vadd.f32 %v3076_v14, %v1674_v20  ;;  %v3095_v26 = vadd.f32 %v3094_v24, %v3093_v15  ;;  %v3206_v27 = vpop.f32.mrf.mxu1 }
 0x172   : > { %v3096_v29 = vpop.f32.mrf.mxu0  ;;  %v3207_v36 = vadd.f32 %v3206_v27, %v3205_v23 }
 0x173   : > { %v1873_v35 = vadd.f32 %v3095_v26, %v3768_v33  ;;  %v3208_v37 = vpop.f32.mrf.mxu1 }
 0x174   : > { %v3097_v38 = vpop.f32.mrf.mxu0 }
 0x175   : > { %v2034_v39 = vadd.f32 %v3207_v36, %v1873_v35  ;;  %v3098_v41 = vadd.f32 %v3097_v38, %v3096_v29  ;;  %v3209_v45 = vpop.f32.mrf.mxu1 }
 0x176   : > { %v3099_v48 = vpop.f32.mrf.mxu0  ;;  %v3210_v16 = vadd.f32 %v3209_v45, %v3208_v37 }
 0x177   : > { %v1876_v49 = vadd.f32 %v3098_v41, %v3773_v43  ;;  %v3211_v50 = vpop.f32.mrf.mxu1  ;;  %v2160_v53 = vmul.f32 0.2, %v2034_v39 }
 0x178   : > { %v3100_v52 = vpop.f32.mrf.mxu0 }
 0x179   : > { %v2037_v56 = vadd.f32 %v3210_v16, %v1876_v49  ;;  %v3101_v59 = vadd.f32 %v3100_v52, %v3099_v48  ;;  %v3212_v61 = vpop.f32.mrf.mxu1  ;;  %v2192_v8 = vmax.f32 %v2034_v39, %v2160_v53 }
 0x17a   : > { %v3102_v63 = vpop.f32.mrf.mxu0  ;;  %v3213_v2 = vadd.f32 %v3212_v61, %v3211_v50 }
 0x17b   : > { %v2161_v33 = vmul.f32 0.2, %v2037_v56  ;;  %v1881_v1 = vadd.f32 %v3101_v59, %v3778_v57  ;;  %v3214_v4 = vpop.f32.mrf.mxu1 }
 0x17c   : > { %v3103_v7 = vpop.f32.mrf.mxu0 }
 0x17d   : > { %v2193_v12 = vmax.f32 %v2037_v56, %v2161_v33  ;;  %v2042_v13 = vadd.f32 %v3213_v2, %v1881_v1  ;;  %v3104_v14 = vadd.f32 %v3103_v7, %v3102_v63  ;;  %v3215_v43 = vpop.f32.mrf.mxu1 }
 0x17e   : > { %v3105_v15 = vpop.f32.mrf.mxu0  ;;  %v3216_v24 = vadd.f32 %v3215_v43, %v3214_v4 }
 0x17f   : > { %v2761_v20 = vpack.c.bf16 %v2193_v12, %v2192_v8  ;;  %v1884_v23 = vadd.f32 %v3104_v14, %v3783_v3  ;;  %v3217_v57 = vpop.f32.mrf.mxu1  ;;  %v2162_v27 = vmul.f32 0.2, %v2042_v13 }
 0x180   : > { %v3106_v26 = vpop.f32.mrf.mxu0 }
 0x181   : > { %2762 = vst [vmem:[%s3890_s17] sm:$0xff] %v2761_v20   ;;  %v2045_v29 = vadd.f32 %v3216_v24, %v1884_v23  ;;  %v3107_v35 = vadd.f32 %v3106_v26, %v3105_v15  ;;  %v3218_v36 = vpop.f32.mrf.mxu1  ;;  %v2194_v49 = vmax.f32 %v2042_v13, %v2162_v27 }
 0x182   : > { %v3108_v37 = vpop.f32.mrf.mxu0  ;;  %v3219_v41 = vadd.f32 %v3218_v36, %v3217_v57 }
 0x183   : > { %v2163_v38 = vmul.f32 0.2, %v2045_v29  ;;  %v1889_v39 = vadd.f32 %v3107_v35, %v3788_v18  ;;  %v3220_v45 = vpop.f32.mrf.mxu1 }
 0x184   : > { %v3109_v48 = vpop.f32.mrf.mxu0 }
 0x185   : > { %v2195_v16 = vmax.f32 %v2045_v29, %v2163_v38  ;;  %v2050_v50 = vadd.f32 %v3219_v41, %v1889_v39  ;;  %v3110_v3 = vadd.f32 %v3109_v48, %v3108_v37  ;;  %v3221_v52 = vpop.f32.mrf.mxu1 }
 0x186   : > { %v3111_v53 = vpop.f32.mrf.mxu0  ;;  %v3222_v61 = vadd.f32 %v3221_v52, %v3220_v45 }
 0x187   : > { %v2766_v56 = vpack.c.bf16 %v2195_v16, %v2194_v49  ;;  %v1892_v59 = vadd.f32 %v3110_v3, %v3793_v28  ;;  %v3223_v63 = vpop.f32.mrf.mxu1  ;;  %v2164_v1 = vmul.f32 0.2, %v2050_v50 }
 0x188   : > { %v3112_v33 = vpop.f32.mrf.mxu0 }
 0x189   : > { %2838 = vst [vmem:[%s3890_s17 + $0x8] sm:$0xff] %v2766_v56   ;;  %v2053_v2 = vadd.f32 %v3222_v61, %v1892_v59  ;;  %v3113_v4 = vadd.f32 %v3112_v33, %v3111_v53  ;;  %v3224_v18 = vpop.f32.mrf.mxu1  ;;  %v2196_v15 = vmax.f32 %v2050_v50, %v2164_v1 }
 0x18a   : > { %v3114_v7 = vpop.f32.mrf.mxu0  ;;  %v3225_v13 = vadd.f32 %v3224_v18, %v3223_v63 }
 0x18b   : > { %v2165_v8 = vmul.f32 0.2, %v2053_v2  ;;  %v1897_v12 = vadd.f32 %v3113_v4, %v3798_v44  ;;  %v3226_v14 = vpop.f32.mrf.mxu1 }
 0x18c   : > { %v3115_v43 = vpop.f32.mrf.mxu0 }
 0x18d   : > { %v2197_v20 = vmax.f32 %v2053_v2, %v2165_v8  ;;  %v2058_v23 = vadd.f32 %v3225_v13, %v1897_v12  ;;  %v3116_v28 = vadd.f32 %v3115_v43, %v3114_v7  ;;  %v3227_v24 = vpop.f32.mrf.mxu1 }
 0x18e   : > { %v3117_v57 = vpop.f32.mrf.mxu0  ;;  %v3228_v29 = vadd.f32 %v3227_v24, %v3226_v14 }
 0x18f   : > { %v2771_v26 = vpack.c.bf16 %v2197_v20, %v2196_v15  ;;  %v1900_v27 = vadd.f32 %v3116_v28, %v3803_v54  ;;  %v3229_v35 = vpop.f32.mrf.mxu1  ;;  %v2166_v37 = vmul.f32 0.2, %v2058_v23 }
 0x190   : > { %v3118_v36 = vpop.f32.mrf.mxu0 }
 0x191   : > { %2839 = vst [vmem:[%s3890_s17 + $0x10] sm:$0xff] %v2771_v26   ;;  %v2061_v38 = vadd.f32 %v3228_v29, %v1900_v27  ;;  %v3119_v39 = vadd.f32 %v3118_v36, %v3117_v57  ;;  %v3230_v44 = vpop.f32.mrf.mxu1  ;;  %v2198_v3 = vmax.f32 %v2058_v23, %v2166_v37 }
 0x192   : > { %v3120_v41 = vpop.f32.mrf.mxu0  ;;  %v3231_v49 = vadd.f32 %v3230_v44, %v3229_v35 }
 0x193   : > { %v2167_v45 = vmul.f32 0.2, %v2061_v38  ;;  %v1905_v48 = vadd.f32 %v3119_v39, %v3808_v6  ;;  %v3232_v16 = vpop.f32.mrf.mxu1 }
 0x194   : > { %v3121_v50 = vpop.f32.mrf.mxu0 }
 0x195   : > { %v2199_v52 = vmax.f32 %v2061_v38, %v2167_v45  ;;  %v2066_v53 = vadd.f32 %v3231_v49, %v1905_v48  ;;  %v3122_v54 = vadd.f32 %v3121_v50, %v3120_v41  ;;  %v3233_v56 = vpop.f32.mrf.mxu1 }
 0x196   : > { %v3123_v59 = vpop.f32.mrf.mxu0  ;;  %v3234_v33 = vadd.f32 %v3233_v56, %v3232_v16 }
 0x197   : > { %v2776_v61 = vpack.c.bf16 %v2199_v52, %v2198_v3  ;;  %v1908_v63 = vadd.f32 %v3122_v54, %v3813_v17  ;;  %v3235_v1 = vpop.f32.mrf.mxu1  ;;  %v2168_v4 = vmul.f32 0.2, %v2066_v53 }
 0x198   : > { %v3124_v2 = vpop.f32.mrf.mxu0 }
 0x199   : > { %2840 = vst [vmem:[%s3890_s17 + $0x18] sm:$0xff] %v2776_v61   ;;  %v2069_v18 = vadd.f32 %v3234_v33, %v1908_v63  ;;  %v3125_v7 = vadd.f32 %v3124_v2, %v3123_v59  ;;  %v3236_v6 = vpop.f32.mrf.mxu1  ;;  %v2200_v20 = vmax.f32 %v2066_v53, %v2168_v4 }
 0x19a   : > { %v3126_v8 = vpop.f32.mrf.mxu0  ;;  %v3237_v14 = vadd.f32 %v3236_v6, %v3235_v1 }
 0x19b   : > { %v2169_v12 = vmul.f32 0.2, %v2069_v18  ;;  %v1913_v13 = vadd.f32 %v3125_v7, %v3818_v34  ;;  %v3238_v43 = vpop.f32.mrf.mxu1 }
 0x19c   : > { %v3127_v15 = vpop.f32.mrf.mxu0 }
 0x19d   : > { %v2201_v23 = vmax.f32 %v2069_v18, %v2169_v12  ;;  %v2074_v28 = vadd.f32 %v3237_v14, %v1913_v13  ;;  %v3128_v17 = vadd.f32 %v3127_v15, %v3126_v8  ;;  %v3239_v24 = vpop.f32.mrf.mxu1 }
 0x19e   : > { %v3129_v57 = vpop.f32.mrf.mxu0  ;;  %v3240_v29 = vadd.f32 %v3239_v24, %v3238_v43 }
 0x19f   : > { %v2781_v26 = vpack.c.bf16 %v2201_v23, %v2200_v20  ;;  %v1916_v27 = vadd.f32 %v3128_v17, %v3821_v42  ;;  %v3241_v35 = vpop.f32.mrf.mxu1  ;;  %v2170_v37 = vmul.f32 0.2, %v2074_v28 }
 0x1a0   : > { %v3130_v36 = vpop.f32.mrf.mxu0 }
 0x1a1   : > { %2841 = vst [vmem:[%s3890_s17 + $0x20] sm:$0xff] %v2781_v26   ;;  %v2077_v38 = vadd.f32 %v3240_v29, %v1916_v27  ;;  %v3131_v39 = vadd.f32 %v3130_v36, %v3129_v57  ;;  %v3242_v34 = vpop.f32.mrf.mxu1  ;;  %v2202_v50 = vmax.f32 %v2074_v28, %v2170_v37 }
 0x1a2   : > { %v3132_v44 = vpop.f32.mrf.mxu0  ;;  %v3243_v48 = vadd.f32 %v3242_v34, %v3241_v35 }
 0x1a3   : > { %v2171_v41 = vmul.f32 0.2, %v2077_v38  ;;  %v1921_v45 = vadd.f32 %v3131_v39, %v3824_v55  ;;  %v3244_v49 = vpop.f32.mrf.mxu1 }
 0x1a4   : > { %v3133_v16 = vpop.f32.mrf.mxu0 }
 0x1a5   : > { %v2203_v3 = vmax.f32 %v2077_v38, %v2171_v41  ;;  %v2082_v52 = vadd.f32 %v3243_v48, %v1921_v45  ;;  %v3134_v42 = vadd.f32 %v3133_v16, %v3132_v44  ;;  %v3245_v53 = vpop.f32.mrf.mxu1 }
 0x1a6   : > { %v3135_v54 = vpop.f32.mrf.mxu0  ;;  %v3246_v61 = vadd.f32 %v3245_v53, %v3244_v49 }
 0x1a7   : > { %v2786_v56 = vpack.c.bf16 %v2203_v3, %v2202_v50  ;;  %v1924_v59 = vadd.f32 %v3134_v42, %v3827_v0  ;;  %v3247_v63 = vpop.f32.mrf.mxu1  ;;  %v2172_v1 = vmul.f32 0.2, %v2082_v52 }
 0x1a8   : > { %v3136_v33 = vpop.f32.mrf.mxu0 }
 0x1a9   : > { %2842 = vst [vmem:[%s3890_s17 + $0x28] sm:$0xff] %v2786_v56   ;;  %v2085_v2 = vadd.f32 %v3246_v61, %v1924_v59  ;;  %v3137_v4 = vadd.f32 %v3136_v33, %v3135_v54  ;;  %v3248_v55 = vpop.f32.mrf.mxu1  ;;  %v2204_v14 = vmax.f32 %v2082_v52, %v2172_v1 }
 0x1aa   : > { %v3138_v18 = vpop.f32.mrf.mxu0  ;;  %v3249_v8 = vadd.f32 %v3248_v55, %v3247_v63 }
 0x1ab   : > { %v2173_v7 = vmul.f32 0.2, %v2085_v2  ;;  %v1929_v6 = vadd.f32 %v3137_v4, %v3830_v10  ;;  %v3250_v12 = vpop.f32.mrf.mxu1 }
 0x1ac   : > { %v3139_v13 = vpop.f32.mrf.mxu0 }
 0x1ad   : > { %v2205_v43 = vmax.f32 %v2085_v2, %v2173_v7  ;;  %v2090_v15 = vadd.f32 %v3249_v8, %v1929_v6  ;;  %v3140_v0 = vadd.f32 %v3139_v13, %v3138_v18  ;;  %v3251_v20 = vpop.f32.mrf.mxu1 }
 0x1ae   : > { %v3141_v23 = vpop.f32.mrf.mxu0  ;;  %v3252_v24 = vadd.f32 %v3251_v20, %v3250_v12 }
 0x1af   : > { %v2791_v28 = vpack.c.bf16 %v2205_v43, %v2204_v14  ;;  %v1932_v17 = vadd.f32 %v3140_v0, %v3833_v21  ;;  %v3253_v57 = vpop.f32.mrf.mxu1  ;;  %v2174_v27 = vmul.f32 0.2, %v2090_v15 }
 0x1b0   : > { %v3142_v26 = vpop.f32.mrf.mxu0 }
 0x1b1   : > { %2843 = vst [vmem:[%s3890_s17 + $0x30] sm:$0xff] %v2791_v28   ;;  %v2093_v29 = vadd.f32 %v3252_v24, %v1932_v17  ;;  %v3143_v35 = vadd.f32 %v3142_v26, %v3141_v23  ;;  %v3254_v10 = vpop.f32.mrf.mxu1  ;;  %v2206_v41 = vmax.f32 %v2090_v15, %v2174_v27 }
 0x1b2   : > { %v3144_v36 = vpop.f32.mrf.mxu0  ;;  %v3255_v39 = vadd.f32 %v3254_v10, %v3253_v57 }
 0x1b3   : > { %v2175_v37 = vmul.f32 0.2, %v2093_v29  ;;  %v1937_v38 = vadd.f32 %v3143_v35, %v3836_v30  ;;  %v3256_v34 = vpop.f32.mrf.mxu1 }
 0x1b4   : > { %v3145_v44 = vpop.f32.mrf.mxu0 }
 0x1b5   : > { %v2207_v45 = vmax.f32 %v2093_v29, %v2175_v37  ;;  %v2098_v48 = vadd.f32 %v3255_v39, %v1937_v38  ;;  %v3146_v21 = vadd.f32 %v3145_v44, %v3144_v36  ;;  %v3257_v49 = vpop.f32.mrf.mxu1 }
 0x1b6   : > { %v3147_v16 = vpop.f32.mrf.mxu0  ;;  %v3258_v52 = vadd.f32 %v3257_v49, %v3256_v34 }
 0x1b7   : > { %v2796_v50 = vpack.c.bf16 %v2207_v45, %v2206_v41  ;;  %v1940_v3 = vadd.f32 %v3146_v21, %v3839_v40  ;;  %v3259_v42 = vpop.f32.mrf.mxu1  ;;  %v2176_v54 = vmul.f32 0.2, %v2098_v48 }
 0x1b8   : > { %v3148_v53 = vpop.f32.mrf.mxu0 }
 0x1b9   : > { %2844 = vst [vmem:[%s3890_s17 + $0x38] sm:$0xff] %v2796_v50   ;;  %v2101_v56 = vadd.f32 %v3258_v52, %v1940_v3  ;;  %v3149_v59 = vadd.f32 %v3148_v53, %v3147_v16  ;;  %v3260_v30 = vpop.f32.mrf.mxu1  ;;  %v2208_v55 = vmax.f32 %v2098_v48, %v2176_v54 }
 0x1ba   : > { %v3150_v61 = vpop.f32.mrf.mxu0  ;;  %v3261_v1 = vadd.f32 %v3260_v30, %v3259_v42 }
 0x1bb   : > { %v2177_v63 = vmul.f32 0.2, %v2101_v56  ;;  %v1945_v33 = vadd.f32 %v3149_v59, %v3842_v51  ;;  %v3262_v2 = vpop.f32.mrf.mxu1 }
 0x1bc   : > { %v3151_v4 = vpop.f32.mrf.mxu0 }
 0x1bd   : > { %v2209_v18 = vmax.f32 %v2101_v56, %v2177_v63  ;;  %v2106_v7 = vadd.f32 %v3261_v1, %v1945_v33  ;;  %v3152_v40 = vadd.f32 %v3151_v4, %v3150_v61  ;;  %v3263_v6 = vpop.f32.mrf.mxu1 }
 0x1be   : > { %v3153_v8 = vpop.f32.mrf.mxu0  ;;  %v3264_v14 = vadd.f32 %v3263_v6, %v3262_v2 }
 0x1bf   : > { %v2801_v12 = vpack.c.bf16 %v2209_v18, %v2208_v55  ;;  %v1948_v13 = vadd.f32 %v3152_v40, %v3845_v62  ;;  %v3265_v43 = vpop.f32.mrf.mxu1  ;;  %v2178_v0 = vmul.f32 0.2, %v2106_v7 }
 0x1c0   : > { %v3154_v15 = vpop.f32.mrf.mxu0 }
 0x1c1   : > { %2845 = vst [vmem:[%s3890_s17 + $0x40] sm:$0xff] %v2801_v12   ;;  %v2109_v20 = vadd.f32 %v3264_v14, %v1948_v13  ;;  %v3155_v23 = vadd.f32 %v3154_v15, %v3153_v8  ;;  %v3266_v51 = vpop.f32.mrf.mxu1  ;;  %v2210_v29 = vmax.f32 %v2106_v7, %v2178_v0 }
 0x1c2   : > { %v3156_v28 = vpop.f32.mrf.mxu0  ;;  %v3267_v57 = vadd.f32 %v3266_v51, %v3265_v43 }
 0x1c3   : > { %v2179_v17 = vmul.f32 0.2, %v2109_v20  ;;  %v1953_v24 = vadd.f32 %v3155_v23, %v3848_v9  ;;  %v3268_v26 = vpop.f32.mrf.mxu1 }
 0x1c4   : > { %v3157_v27 = vpop.f32.mrf.mxu0 }
 0x1c5   : > { %v2211_v35 = vmax.f32 %v2109_v20, %v2179_v17  ;;  %v2114_v10 = vadd.f32 %v3267_v57, %v1953_v24  ;;  %v3158_v62 = vadd.f32 %v3157_v27, %v3156_v28  ;;  %v3269_v36 = vpop.f32.mrf.mxu1 }
 0x1c6   : > { %v3159_v37 = vpop.f32.mrf.mxu0  ;;  %v3270_v34 = vadd.f32 %v3269_v36, %v3268_v26 }
 0x1c7   : > { %v2806_v38 = vpack.c.bf16 %v2211_v35, %v2210_v29  ;;  %v1956_v39 = vadd.f32 %v3158_v62, %v3851_v22  ;;  %v3271_v44 = vpop.f32.mrf.mxu1  ;;  %v2180_v45 = vmul.f32 0.2, %v2114_v10 }
 0x1c8   : > { %v3160_v41 = vpop.f32.mrf.mxu0 }
 0x1c9   : > { %2846 = vst [vmem:[%s3890_s17 + $0x48] sm:$0xff] %v2806_v38   ;;  %v2117_v48 = vadd.f32 %v3270_v34, %v1956_v39  ;;  %v3161_v21 = vadd.f32 %v3160_v41, %v3159_v37  ;;  %v3272_v9 = vpop.f32.mrf.mxu1  ;;  %v2212_v53 = vmax.f32 %v2114_v10, %v2180_v45 }
 0x1ca   : > { %v3162_v49 = vpop.f32.mrf.mxu0  ;;  %v3273_v3 = vadd.f32 %v3272_v9, %v3271_v44 }
 0x1cb   : > { %v2181_v16 = vmul.f32 0.2, %v2117_v48  ;;  %v1961_v50 = vadd.f32 %v3161_v21, %v3854_v32  ;;  %v3274_v52 = vpop.f32.mrf.mxu1 }
 0x1cc   : > { %v3163_v42 = vpop.f32.mrf.mxu0 }
 0x1cd   : > { %v2213_v54 = vmax.f32 %v2117_v48, %v2181_v16  ;;  %v2122_v56 = vadd.f32 %v3273_v3, %v1961_v50  ;;  %v3164_v22 = vadd.f32 %v3163_v42, %v3162_v49  ;;  %v3275_v59 = vpop.f32.mrf.mxu1 }
 0x1ce   : > { %v3165_v30 = vpop.f32.mrf.mxu0  ;;  %v3276_v33 = vadd.f32 %v3275_v59, %v3274_v52 }
 0x1cf   : > { %v2811_v61 = vpack.c.bf16 %v2213_v54, %v2212_v53  ;;  %v1964_v63 = vadd.f32 %v3164_v22, %v3857_v46  ;;  %v3277_v1 = vpop.f32.mrf.mxu1  ;;  %v2182_v4 = vmul.f32 0.2, %v2122_v56 }
 0x1d0   : > { %v3166_v2 = vpop.f32.mrf.mxu0 }
 0x1d1   : > { %2847 = vst [vmem:[%s3890_s17 + $0x50] sm:$0xff] %v2811_v61   ;;  %v2125_v55 = vadd.f32 %v3276_v33, %v1964_v63  ;;  %v3167_v18 = vadd.f32 %v3166_v2, %v3165_v30  ;;  %v3278_v32 = vpop.f32.mrf.mxu1  ;;  %v2214_v14 = vmax.f32 %v2122_v56, %v2182_v4 }
 0x1d2   : > { %v3168_v7 = vpop.f32.mrf.mxu0  ;;  %v3279_v8 = vadd.f32 %v3278_v32, %v3277_v1 }
 0x1d3   : > { %v2183_v40 = vmul.f32 0.2, %v2125_v55  ;;  %v1969_v6 = vadd.f32 %v3167_v18, %v3860_v58  ;;  %v3280_v12 = vpop.f32.mrf.mxu1 }
 0x1d4   : > { %v3169_v13 = vpop.f32.mrf.mxu0 }
 0x1d5   : > { %v2215_v43 = vmax.f32 %v2125_v55, %v2183_v40  ;;  %v2130_v15 = vadd.f32 %v3279_v8, %v1969_v6  ;;  %v3170_v46 = vadd.f32 %v3169_v13, %v3168_v7  ;;  %v3281_v0 = vpop.f32.mrf.mxu1 }
 0x1d6   : > { %v3171_v20 = vpop.f32.mrf.mxu0  ;;  %v3282_v28 = vadd.f32 %v3281_v0, %v3280_v12 }
 0x1d7   : > { %v2816_v23 = vpack.c.bf16 %v2215_v43, %v2214_v14  ;;  %v1972_v51 = vadd.f32 %v3170_v46, %v3863_v5  ;;  %v3283_v17 = vpop.f32.mrf.mxu1  ;;  %v2184_v57 = vmul.f32 0.2, %v2130_v15 }
 0x1d8   : > { %v3172_v24 = vpop.f32.mrf.mxu0 }
 0x1d9   : > { %2848 = vst [vmem:[%s3890_s17 + $0x58] sm:$0xff] %v2816_v23   ;;  %v2133_v26 = vadd.f32 %v3282_v28, %v1972_v51  ;;  %v3173_v27 = vadd.f32 %v3172_v24, %v3171_v20  ;;  %v3284_v58 = vpop.f32.mrf.mxu1  ;;  %v2216_v38 = vmax.f32 %v2130_v15, %v2184_v57 }
 0x1da   : > { %v3174_v29 = vpop.f32.mrf.mxu0  ;;  %v3285_v62 = vadd.f32 %v3284_v58, %v3283_v17 }
 0x1db   : > { %v2185_v35 = vmul.f32 0.2, %v2133_v26  ;;  %v1977_v10 = vadd.f32 %v3173_v27, %v3866_v19  ;;  %v3286_v36 = vpop.f32.mrf.mxu1 }
 0x1dc   : > { %v3175_v37 = vpop.f32.mrf.mxu0 }
 0x1dd   : > { %v2217_v39 = vmax.f32 %v2133_v26, %v2185_v35  ;;  %v2138_v34 = vadd.f32 %v3285_v62, %v1977_v10  ;;  %v3176_v5 = vadd.f32 %v3175_v37, %v3174_v29  ;;  %v3287_v44 = vpop.f32.mrf.mxu1 }
 0x1de   : > { %v3177_v41 = vpop.f32.mrf.mxu0  ;;  %v3288_v21 = vadd.f32 %v3287_v44, %v3286_v36 }
 0x1df   : > { %v2821_v45 = vpack.c.bf16 %v2217_v39, %v2216_v38  ;;  %v1980_v48 = vadd.f32 %v3176_v5, %v3869_v31  ;;  %v3289_v9 = vpop.f32.mrf.mxu1  ;;  %v2186_v16 = vmul.f32 0.2, %v2138_v34 }
 0x1e0   : > { %v3178_v49 = vpop.f32.mrf.mxu0 }
 0x1e1   : > { %2849 = vst [vmem:[%s3890_s17 + $0x60] sm:$0xff] %v2821_v45   ;;  %v2141_v50 = vadd.f32 %v3288_v21, %v1980_v48  ;;  %v3179_v3 = vadd.f32 %v3178_v49, %v3177_v41  ;;  %v3290_v19 = vpop.f32.mrf.mxu1  ;;  %v2218_v59 = vmax.f32 %v2138_v34, %v2186_v16 }
 0x1e2   : > { %v3180_v52 = vpop.f32.mrf.mxu0  ;;  %v3291_v54 = vadd.f32 %v3290_v19, %v3289_v9 }
 0x1e3   : > { %v2187_v42 = vmul.f32 0.2, %v2141_v50  ;;  %v1985_v53 = vadd.f32 %v3179_v3, %v3872_v47  ;;  %v3292_v56 = vpop.f32.mrf.mxu1 }
 0x1e4   : > { %v3181_v22 = vpop.f32.mrf.mxu0 }
 0x1e5   : > { %v2219_v30 = vmax.f32 %v2141_v50, %v2187_v42  ;;  %v2146_v61 = vadd.f32 %v3291_v54, %v1985_v53  ;;  %v3182_v31 = vadd.f32 %v3181_v22, %v3180_v52  ;;  %v3293_v63 = vpop.f32.mrf.mxu1 }
 0x1e6   : > { %v3183_v33 = vpop.f32.mrf.mxu0  ;;  %v3294_v4 = vadd.f32 %v3293_v63, %v3292_v56 }
 0x1e7   : > { %v2826_v1 = vpack.c.bf16 %v2219_v30, %v2218_v59  ;;  %v1988_v2 = vadd.f32 %v3182_v31, %v3875_v60  ;;  %v3295_v55 = vpop.f32.mrf.mxu1  ;;  %v2188_v32 = vmul.f32 0.2, %v2146_v61 }
 0x1e8   : > { %v3184_v18 = vpop.f32.mrf.mxu0 }
 0x1e9   : > { %2850 = vst [vmem:[%s3890_s17 + $0x68] sm:$0xff] %v2826_v1   ;;  %v2149_v7 = vadd.f32 %v3294_v4, %v1988_v2  ;;  %v3185_v40 = vadd.f32 %v3184_v18, %v3183_v33  ;;  %v3296_v47 = vpop.f32.mrf.mxu1  ;;  %v2220_v15 = vmax.f32 %v2146_v61, %v2188_v32 }
 0x1ea   : > { %v3186_v6 = vpop.f32.mrf.mxu0  ;;  %v3297_v13 = vadd.f32 %v3296_v47, %v3295_v55 }
 0x1eb   : > { %v2189_v8 = vmul.f32 0.2, %v2149_v7  ;;  %v1993_v12 = vadd.f32 %v3185_v40, %v3878_v11  ;;  %v3298_v14 = vpop.f32.mrf.mxu1 }
 0x1ec   : > { %v3187_v43 = vpop.f32.mrf.mxu0 }
 0x1ed   : > { %v2221_v46 = vmax.f32 %v2149_v7, %v2189_v8  ;;  %v2154_v60 = vadd.f32 %v3297_v13, %v1993_v12  ;;  %v3188_v0 = vadd.f32 %v3187_v43, %v3186_v6  ;;  %v3299_v20 = vpop.f32.mrf.mxu1 }
 0x1ee   : > { %v3300_v28 = vadd.f32 %v3299_v20, %v3298_v14 }
 0x1ef   : > { %v2831_v23 = vpack.c.bf16 %v2221_v46, %v2220_v15  ;;  %v1996_v51 = vadd.f32 %v3188_v0, %v3881_v25  ;;  %v2190_v17 = vmul.f32 0.2, %v2154_v60 }
 0x1f1   : > { %2851 = vst [vmem:[%s3890_s17 + $0x70] sm:$0xff] %v2831_v23   ;;  %v2157_v24 = vadd.f32 %v3300_v28, %v1996_v51  ;;  %v2222_v26 = vmax.f32 %v2154_v60, %v2190_v17 }
 0x1f3   : > { %v2191_v57 = vmul.f32 0.2, %v2157_v24 }
 0x1f5   : > { %v2223_v27 = vmax.f32 %v2157_v24, %v2191_v57 }
 0x1f7   : > { %v2836_v11 = vpack.c.bf16 %v2223_v27, %v2222_v26 }
 0x1f9   : > { %2852 = vst [vmem:[%s3890_s17 + $0x78] sm:$0xff] %v2836_v11  }
 0x1fa PF: > { %s13_s14 = sadd.s32 1, %s3411_s14   ;;  %s3950_s12 = smov %s3407_s13 }
 0x1fb   : > { %p10_p5 = scmp.ge.s32.totalorder %s13_s14, 4   ;;  %s3951_s13 = smov %s3953_s15 }
 0x1fd   :  { %12 = sbr.rel (!%p10_p5) target bundleno = 2 (0x2), region = 68 }

// kernel: discriminator_forward.6
= control target key start
LH: loop header
LB: loop body
LE: loop exit
PB: predicated region body
PF: predicated region fallthrough
CT: control target
= control target key end

     0   :  { %s5851_s1 = inlined_call_operand.vmem [shape: bf16[2048,256], index: 1, kind: input, shape index: {}]   ;;  %s5852_s0 = inlined_call_operand.vmem [shape: bf16[128,2048], index: 0, kind: input, shape index: {}]   ;;  %s5853_s2 = inlined_call_operand.vmem [shape: f32[1,256], index: 2, kind: input, shape index: {}]   ;;  %s5854_s3 = inlined_call_operand.vmem [shape: bf16[128,256], index: 3, kind: output, shape index: {}]  }
   0x1   :  { %v3830_v0 = vld [vmem:[%s5851_s1 + $0x74] ss:$8 sps:$4 sm:$0xff]   ;;  %v3834_v2 = vld [vmem:[%s5851_s1 + $0x70] ss:$8 sps:$4 sm:$0xff]   ;;  %v3836_v4 = vld [vmem:[%s5851_s1 + $0x64] ss:$8 sps:$4 sm:$0xff]  }
   0x2   :  { %v3832_v1 = vld [vmem:[%s5851_s1 + $0x174] ss:$8 sps:$4 sm:$0xff]   ;;  %2330 = vmatprep.subr.bf16.mxu0 %v3830_v0  ;;  %v3835_v3 = vld [vmem:[%s5851_s1 + $0x170] ss:$8 sps:$4 sm:$0xff]   ;;  %v3838_v5 = vld [vmem:[%s5851_s1 + $0x164] ss:$8 sps:$4 sm:$0xff]  }
   0x3   :  { %2443 = vmatprep.subr.bf16.mxu1 %v3832_v1  ;;  %2331 = vmatpush1.bf16.msra.mxu0 %v3834_v2  ;;  %v3840_v6 = vld [vmem:[%s5851_s1 + $0x60] ss:$8 sps:$4 sm:$0xff]   ;;  %v3842_v8 = vld [vmem:[%s5851_s1 + $0x54] ss:$8 sps:$4 sm:$0xff]   ;;  %v3846_v10 = vld [vmem:[%s5851_s1 + $0x50] ss:$8 sps:$4 sm:$0xff]  }
   0x4   :  { %2444 = vmatpush1.bf16.msra.mxu1 %v3835_v3  ;;  %2332 = vmatprep.subr.bf16.mxu0 %v3836_v4  ;;  %v3841_v7 = vld [vmem:[%s5851_s1 + $0x160] ss:$8 sps:$4 sm:$0xff]   ;;  %v3844_v9 = vld [vmem:[%s5851_s1 + $0x154] ss:$8 sps:$4 sm:$0xff]   ;;  %v3847_v11 = vld [vmem:[%s5851_s1 + $0x150] ss:$8 sps:$4 sm:$0xff]  }
   0x5   :  { %2445 = vmatprep.subr.bf16.mxu1 %v3838_v5  ;;  %v3848_v12 = vld [vmem:[%s5851_s1 + $0x44] ss:$8 sps:$4 sm:$0xff]   ;;  %v3852_v14 = vld [vmem:[%s5851_s1 + $0x40] ss:$8 sps:$4 sm:$0xff]   ;;  %v3854_v16 = vld [vmem:[%s5851_s1 + $0x34] ss:$8 sps:$4 sm:$0xff]  }
   0x6   :  { %v3850_v13 = vld [vmem:[%s5851_s1 + $0x144] ss:$8 sps:$4 sm:$0xff]   ;;  %v3853_v15 = vld [vmem:[%s5851_s1 + $0x140] ss:$8 sps:$4 sm:$0xff]   ;;  %v3856_v17 = vld [vmem:[%s5851_s1 + $0x134] ss:$8 sps:$4 sm:$0xff]  }
   0x7   :  { %2333 = vmatpush1.bf16.msra.mxu0 %v3840_v6  ;;  %v3858_v18 = vld [vmem:[%s5851_s1 + $0x30] ss:$8 sps:$4 sm:$0xff]   ;;  %v3860_v20 = vld [vmem:[%s5851_s1 + $0x24] ss:$8 sps:$4 sm:$0xff]   ;;  %v3864_v22 = vld [vmem:[%s5851_s1 + $0x20] ss:$8 sps:$4 sm:$0xff]  }
   0x8   :  { %2446 = vmatpush1.bf16.msra.mxu1 %v3841_v7  ;;  %2334 = vmatprep.subr.bf16.mxu0 %v3842_v8  ;;  %v3859_v19 = vld [vmem:[%s5851_s1 + $0x130] ss:$8 sps:$4 sm:$0xff]   ;;  %v3862_v21 = vld [vmem:[%s5851_s1 + $0x124] ss:$8 sps:$4 sm:$0xff]   ;;  %v3865_v23 = vld [vmem:[%s5851_s1 + $0x120] ss:$8 sps:$4 sm:$0xff]  }
   0x9   :  { %2447 = vmatprep.subr.bf16.mxu1 %v3844_v9  ;;  %v3866_v24 = vld [vmem:[%s5851_s1 + $0x14] ss:$8 sps:$4 sm:$0xff]   ;;  %v3870_v26 = vld [vmem:[%s5851_s1 + $0x10] ss:$8 sps:$4 sm:$0xff]   ;;  %v3872_v28 = vld [vmem:[%s5851_s1 + $0x4] ss:$8 sps:$4 sm:$0xff]  }
   0xa   :  { %v3868_v25 = vld [vmem:[%s5851_s1 + $0x114] ss:$8 sps:$4 sm:$0xff]   ;;  %v3871_v27 = vld [vmem:[%s5851_s1 + $0x110] ss:$8 sps:$4 sm:$0xff]   ;;  %v3874_v29 = vld [vmem:[%s5851_s1 + $0x104] ss:$8 sps:$4 sm:$0xff]  }
   0xb   :  { %2335 = vmatpush1.bf16.msra.mxu0 %v3846_v10  ;;  %v3876_v30 = vld [vmem:[%s5851_s1] ss:$8 sps:$4 sm:$0xff]   ;;  %v3878_v32 = vld [vmem:[%s5851_s1 + $0xf4] ss:$8 sps:$4 sm:$0xff]   ;;  %v3882_v34 = vld [vmem:[%s5851_s1 + $0xf0] ss:$8 sps:$4 sm:$0xff]  }
   0xc   :  { %2448 = vmatpush1.bf16.msra.mxu1 %v3847_v11  ;;  %2336 = vmatprep.subr.bf16.mxu0 %v3848_v12  ;;  %v3877_v31 = vld [vmem:[%s5851_s1 + $0x100] ss:$8 sps:$4 sm:$0xff]   ;;  %v3880_v33 = vld [vmem:[%s5851_s1 + $0x1f4] ss:$8 sps:$4 sm:$0xff]   ;;  %v3883_v35 = vld [vmem:[%s5851_s1 + $0x1f0] ss:$8 sps:$4 sm:$0xff]  }
   0xd   :  { %2449 = vmatprep.subr.bf16.mxu1 %v3850_v13  ;;  %v3884_v36 = vld [vmem:[%s5851_s1 + $0xe4] ss:$8 sps:$4 sm:$0xff]   ;;  %v3888_v38 = vld [vmem:[%s5851_s1 + $0xe0] ss:$8 sps:$4 sm:$0xff]   ;;  %v3890_v40 = vld [vmem:[%s5851_s1 + $0xd4] ss:$8 sps:$4 sm:$0xff]  }
   0xe   :  { %v3886_v37 = vld [vmem:[%s5851_s1 + $0x1e4] ss:$8 sps:$4 sm:$0xff]   ;;  %v3889_v39 = vld [vmem:[%s5851_s1 + $0x1e0] ss:$8 sps:$4 sm:$0xff]   ;;  %v3892_v41 = vld [vmem:[%s5851_s1 + $0x1d4] ss:$8 sps:$4 sm:$0xff]  }
   0xf   :  { %2337 = vmatpush1.bf16.msra.mxu0 %v3852_v14  ;;  %v3894_v42 = vld [vmem:[%s5851_s1 + $0xd0] ss:$8 sps:$4 sm:$0xff]   ;;  %v3896_v44 = vld [vmem:[%s5851_s1 + $0xc4] ss:$8 sps:$4 sm:$0xff]   ;;  %v3900_v46 = vld [vmem:[%s5851_s1 + $0xc0] ss:$8 sps:$4 sm:$0xff]  }
  0x10   :  { %2450 = vmatpush1.bf16.msra.mxu1 %v3853_v15  ;;  %2338 = vmatprep.subr.bf16.mxu0 %v3854_v16  ;;  %v3895_v43 = vld [vmem:[%s5851_s1 + $0x1d0] ss:$8 sps:$4 sm:$0xff]   ;;  %v3898_v45 = vld [vmem:[%s5851_s1 + $0x1c4] ss:$8 sps:$4 sm:$0xff]   ;;  %v3901_v47 = vld [vmem:[%s5851_s1 + $0x1c0] ss:$8 sps:$4 sm:$0xff]  }
  0x11   :  { %2451 = vmatprep.subr.bf16.mxu1 %v3856_v17  ;;  %v14_v48 = vld [vmem:[%s5852_s0] sm:$0xff]  ;;  %v15_v50 = vld [vmem:[%s5852_s0 + $0x8] sm:$0xff]  ;;  %v3902_v52 = vld [vmem:[%s5851_s1 + $0xb4] ss:$8 sps:$4 sm:$0xff]  }
  0x12   :  { %v22_v49 = vld [vmem:[%s5852_s0 + $0x40] sm:$0xff]  ;;  %v23_v51 = vld [vmem:[%s5852_s0 + $0x48] sm:$0xff]  ;;  %v3904_v54 = vld [vmem:[%s5851_s1 + $0x1b4] ss:$8 sps:$4 sm:$0xff]  }
  0x13   :  { %2339 = vmatpush1.bf16.msra.mxu0 %v3858_v18  ;;  %v3415_v53 = vcombine.high %v14_v48, %v22_v49  ;;  %v3417_v55 = vcombine.high %v15_v50, %v23_v51  ;;  %v3906_v56 = vld [vmem:[%s5851_s1 + $0xb0] ss:$8 sps:$4 sm:$0xff]   ;;  %v3908_v58 = vld [vmem:[%s5851_s1 + $0xa4] ss:$8 sps:$4 sm:$0xff]   ;;  %v3912_v60 = vld [vmem:[%s5851_s1 + $0xa0] ss:$8 sps:$4 sm:$0xff]   ;;  %v3414_v11 = vcombine.low %v14_v48, %v22_v49  ;;  %v3416_v12 = vcombine.low %v15_v50, %v23_v51 }
  0x14   :  { %2452 = vmatpush1.bf16.msra.mxu1 %v3859_v19  ;;  %2340 = vmatprep.subr.bf16.mxu0 %v3860_v20  ;;  %v3907_v57 = vld [vmem:[%s5851_s1 + $0x1b0] ss:$8 sps:$4 sm:$0xff]   ;;  %v3910_v59 = vld [vmem:[%s5851_s1 + $0x1a4] ss:$8 sps:$4 sm:$0xff]   ;;  %v3913_v61 = vld [vmem:[%s5851_s1 + $0x1a0] ss:$8 sps:$4 sm:$0xff]  }
  0x15   :  { %2453 = vmatprep.subr.bf16.mxu1 %v3862_v21  ;;  %2362 = vmatprep.mubr.bf16.mxu0 %v3415_v53  ;;  %v3914_v62 = vld [vmem:[%s5851_s1 + $0x94] ss:$8 sps:$4 sm:$0xff]   ;;  %v3918_v0 = vld [vmem:[%s5851_s1 + $0x90] ss:$8 sps:$4 sm:$0xff]   ;;  %v3920_v2 = vld [vmem:[%s5851_s1 + $0x84] ss:$8 sps:$4 sm:$0xff]  }
  0x16   :  { %2475 = vmatprep.mubr.bf16.mxu1 %v3417_v55  ;;  %v3916_v63 = vld [vmem:[%s5851_s1 + $0x194] ss:$8 sps:$4 sm:$0xff]   ;;  %v3919_v1 = vld [vmem:[%s5851_s1 + $0x190] ss:$8 sps:$4 sm:$0xff]   ;;  %v3922_v3 = vld [vmem:[%s5851_s1 + $0x184] ss:$8 sps:$4 sm:$0xff]  }
  0x17   :  { %2341 = vmatpush1.bf16.msra.mxu0 %v3864_v22  ;;  %v3924_v4 = vld [vmem:[%s5851_s1 + $0x80] ss:$8 sps:$4 sm:$0xff]   ;;  %v3928_v6 = vld [vmem:[%s5851_s1 + $0x274] ss:$8 sps:$4 sm:$0xff]   ;;  %v3926_v8 = vld [vmem:[%s5851_s1 + $0x270] ss:$8 sps:$4 sm:$0xff]  }
  0x18   :  { %2454 = vmatpush1.bf16.msra.mxu1 %v3865_v23  ;;  %2342 = vmatprep.subr.bf16.mxu0 %v3866_v24  ;;  %v3925_v5 = vld [vmem:[%s5851_s1 + $0x180] ss:$8 sps:$4 sm:$0xff]   ;;  %v3931_v7 = vld [vmem:[%s5851_s1 + $0x374] ss:$8 sps:$4 sm:$0xff]   ;;  %v3929_v9 = vld [vmem:[%s5851_s1 + $0x370] ss:$8 sps:$4 sm:$0xff]  }
  0x19   :  { %2455 = vmatprep.subr.bf16.mxu1 %v3868_v25  ;;  %v30_v10 = vld [vmem:[%s5852_s0 + $0x80] sm:$0xff]  ;;  %v31_v14 = vld [vmem:[%s5852_s0 + $0x88] sm:$0xff]  ;;  %v3940_v22 = vld [vmem:[%s5851_s1 + $0x254] ss:$8 sps:$4 sm:$0xff]  }
  0x1a   :  { %v38_v13 = vld [vmem:[%s5852_s0 + $0xc0] sm:$0xff]  ;;  %v39_v15 = vld [vmem:[%s5852_s0 + $0xc8] sm:$0xff]  ;;  %v3943_v23 = vld [vmem:[%s5851_s1 + $0x354] ss:$8 sps:$4 sm:$0xff]  }
  0x1b   :  { %2343 = vmatpush1.bf16.msra.mxu0 %v3870_v26  ;;  %v3934_v16 = vld [vmem:[%s5851_s1 + $0x264] ss:$8 sps:$4 sm:$0xff]   ;;  %v3431_v18 = vcombine.high %v30_v10, %v38_v13  ;;  %v3433_v19 = vcombine.high %v31_v14, %v39_v15  ;;  %v3932_v20 = vld [vmem:[%s5851_s1 + $0x260] ss:$8 sps:$4 sm:$0xff]   ;;  %v3938_v24 = vld [vmem:[%s5851_s1 + $0x250] ss:$8 sps:$4 sm:$0xff]  }
  0x1c   :  { %2456 = vmatpush1.bf16.msra.mxu1 %v3871_v27  ;;  %2344 = vmatprep.subr.bf16.mxu0 %v3872_v28  ;;  %v3937_v17 = vld [vmem:[%s5851_s1 + $0x364] ss:$8 sps:$4 sm:$0xff]   ;;  %v3935_v21 = vld [vmem:[%s5851_s1 + $0x360] ss:$8 sps:$4 sm:$0xff]   ;;  %v3941_v25 = vld [vmem:[%s5851_s1 + $0x350] ss:$8 sps:$4 sm:$0xff]   ;;  %v3430_v28 = vcombine.low %v30_v10, %v38_v13 }
  0x1d   :  { %2457 = vmatprep.subr.bf16.mxu1 %v3874_v29  ;;  %v46_v26 = vld [vmem:[%s5852_s0 + $0x100] sm:$0xff]  ;;  %v3432_v29 = vcombine.low %v31_v14, %v39_v15  ;;  %v3967_v55 = vld [vmem:[%s5851_s1 + $0x314] ss:$8 sps:$4 sm:$0xff]   ;;  %v103_v13 = vld [vmem:[%s5852_s0 + $0x2c8] sm:$0xff] }
  0x1e   :  { %v54_v27 = vld [vmem:[%s5852_s0 + $0x140] sm:$0xff]  ;;  %v3974_v14 = vld [vmem:[%s5851_s1 + $0x2f0] ss:$8 sps:$4 sm:$0xff]  }
  0x1f   :  { %2345 = vmatpush1.bf16.msra.mxu0 %v3876_v30  ;;  %v47_v30 = vld [vmem:[%s5852_s0 + $0x108] sm:$0xff]  ;;  %v3977_v15 = vld [vmem:[%s5851_s1 + $0x3f0] ss:$8 sps:$4 sm:$0xff]  }
  0x20   :  { %2458 = vmatpush1.bf16.msra.mxu1 %v3877_v31  ;;  %2346 = vmatprep.subr.bf16.mxu0 %v3878_v32  ;;  %v55_v31 = vld [vmem:[%s5852_s0 + $0x148] sm:$0xff] }
  0x21   :  { %2459 = vmatprep.subr.bf16.mxu1 %v3880_v33  ;;  %v3946_v32 = vld [vmem:[%s5851_s1 + $0x244] ss:$8 sps:$4 sm:$0xff]   ;;  %v3959_v53 = vld [vmem:[%s5851_s1 + $0x320] ss:$8 sps:$4 sm:$0xff]  }
  0x22   :  { %v3949_v33 = vld [vmem:[%s5851_s1 + $0x344] ss:$8 sps:$4 sm:$0xff]  }
  0x23   :  { %2347 = vmatpush2.bf16.msra.mxu0 %v3882_v34  ;;  %v3447_v34 = vcombine.high %v46_v26, %v54_v27  ;;  %v3958_v48 = vld [vmem:[%s5851_s1 + $0x224] ss:$8 sps:$4 sm:$0xff]  }
  0x24   :  { %2460 = vmatpush2.bf16.msra.mxu1 %v3883_v35  ;;  %2348 = vmatprep.subr.bf16.mxu0 %v3884_v36  ;;  %v3449_v35 = vcombine.high %v47_v30, %v55_v31  ;;  %v3944_v36 = vld [vmem:[%s5851_s1 + $0x240] ss:$8 sps:$4 sm:$0xff]   ;;  %v3961_v49 = vld [vmem:[%s5851_s1 + $0x324] ss:$8 sps:$4 sm:$0xff]  }
  0x25   :  { %2461 = vmatprep.subr.bf16.mxu1 %v3886_v37  ;;  %v3947_v37 = vld [vmem:[%s5851_s1 + $0x340] ss:$8 sps:$4 sm:$0xff]  }
  0x27   :  { %2349 = vmatpush2.bf16.msra.mxu0 %v3888_v38  ;;  %v3952_v38 = vld [vmem:[%s5851_s1 + $0x234] ss:$8 sps:$4 sm:$0xff]  }
  0x28   :  { %2462 = vmatpush2.bf16.msra.mxu1 %v3889_v39  ;;  %2350 = vmatprep.subr.bf16.mxu0 %v3890_v40  ;;  %v3955_v39 = vld [vmem:[%s5851_s1 + $0x334] ss:$8 sps:$4 sm:$0xff]   ;;  %v3950_v40 = vld [vmem:[%s5851_s1 + $0x230] ss:$8 sps:$4 sm:$0xff]  }
  0x29   :  { %2463 = vmatprep.subr.bf16.mxu1 %v3892_v41  ;;  %v3953_v41 = vld [vmem:[%s5851_s1 + $0x330] ss:$8 sps:$4 sm:$0xff]  }
  0x2b   :  { %2351 = vmatpush2.bf16.msra.mxu0 %v3894_v42  ;;  %v62_v42 = vld [vmem:[%s5852_s0 + $0x180] sm:$0xff] }
  0x2c   :  { %2464 = vmatpush2.bf16.msra.mxu1 %v3895_v43  ;;  %2352 = vmatprep.subr.bf16.mxu0 %v3896_v44  ;;  %v70_v43 = vld [vmem:[%s5852_s0 + $0x1c0] sm:$0xff]  ;;  %v3446_v44 = vcombine.low %v46_v26, %v54_v27 }
  0x2d   :  { %2465 = vmatprep.subr.bf16.mxu1 %v3898_v45  ;;  %v3448_v45 = vcombine.low %v47_v30, %v55_v31  ;;  %v3463_v50 = vcombine.high %v62_v42, %v70_v43  ;;  %v110_v26 = vld [vmem:[%s5852_s0 + $0x300] sm:$0xff]  ;;  %v111_v30 = vld [vmem:[%s5852_s0 + $0x308] sm:$0xff] }
  0x2e   :  { %v119_v31 = vld [vmem:[%s5852_s0 + $0x348] sm:$0xff] }
  0x2f   :  { %2353 = vmatpush2.bf16.msra.mxu0 %v3900_v46  ;;  %v63_v46 = vld [vmem:[%s5852_s0 + $0x188] sm:$0xff] }
  0x30   :  { %2466 = vmatpush2.bf16.msra.mxu1 %v3901_v47  ;;  %2354 = vmatprep.subr.bf16.mxu0 %v3902_v52  ;;  %v71_v47 = vld [vmem:[%s5852_s0 + $0x1c8] sm:$0xff] }
  0x31   :  { %2467 = vmatprep.subr.bf16.mxu1 %v3904_v54  ;;  %v3465_v51 = vcombine.high %v63_v46, %v71_v47  ;;  %v3956_v52 = vld [vmem:[%s5851_s1 + $0x220] ss:$8 sps:$4 sm:$0xff]   ;;  %v3964_v54 = vld [vmem:[%s5851_s1 + $0x214] ss:$8 sps:$4 sm:$0xff]  }
  0x33   :  { %2355 = vmatpush2.bf16.msra.mxu0 %v3906_v56  ;;  %v3962_v56 = vld [vmem:[%s5851_s1 + $0x210] ss:$8 sps:$4 sm:$0xff]  }
  0x34   :  { %2468 = vmatpush2.bf16.msra.mxu1 %v3907_v57  ;;  %2356 = vmatprep.subr.bf16.mxu0 %v3908_v58  ;;  %v78_v57 = vld [vmem:[%s5852_s0 + $0x200] sm:$0xff] }
  0x35   :  { %2469 = vmatprep.subr.bf16.mxu1 %v3910_v59  ;;  %v86_v58 = vld [vmem:[%s5852_s0 + $0x240] sm:$0xff]  ;;  %v3462_v59 = vcombine.low %v62_v42, %v70_v43 }
  0x36   :  { %v3478_v10 = vcombine.low %v78_v57, %v86_v58  ;;  %v126_v42 = vld [vmem:[%s5852_s0 + $0x380] sm:$0xff] }
  0x37   :  { %2357 = vmatpush2.bf16.msra.mxu0 %v3912_v60  ;;  %v3464_v60 = vcombine.low %v63_v46, %v71_v47  ;;  %v134_v43 = vld [vmem:[%s5852_s0 + $0x3c0] sm:$0xff]  ;;  %v127_v46 = vld [vmem:[%s5852_s0 + $0x388] sm:$0xff] }
  0x38   :  { %2470 = vmatpush2.bf16.msra.mxu1 %v3913_v61  ;;  %2358 = vmatprep.subr.bf16.mxu0 %v3914_v62  ;;  %v79_v61 = vld [vmem:[%s5852_s0 + $0x208] sm:$0xff] }
  0x39   :  { %2471 = vmatprep.subr.bf16.mxu1 %v3916_v63  ;;  %v87_v62 = vld [vmem:[%s5852_s0 + $0x248] sm:$0xff]  ;;  %v3965_v63 = vld [vmem:[%s5851_s1 + $0x310] ss:$8 sps:$4 sm:$0xff]  }
  0x3a   :  { %v135_v47 = vld [vmem:[%s5852_s0 + $0x3c8] sm:$0xff] }
  0x3b   :  { %2359 = vmatpush2.bf16.msra.mxu0 %v3918_v0  ;;  %v3970_v0 = vld [vmem:[%s5851_s1 + $0x204] ss:$8 sps:$4 sm:$0xff]  }
  0x3c   :  { %2472 = vmatpush2.bf16.msra.mxu1 %v3919_v1  ;;  %2360 = vmatprep.subr.bf16.mxu0 %v3920_v2  ;;  %v3973_v1 = vld [vmem:[%s5851_s1 + $0x304] ss:$8 sps:$4 sm:$0xff]   ;;  %v3479_v2 = vcombine.high %v78_v57, %v86_v58  ;;  %v4013_v57 = vld [vmem:[%s5851_s1 + $0x390] ss:$8 sps:$4 sm:$0xff]  }
  0x3d   :  { %2473 = vmatprep.subr.bf16.mxu1 %v3922_v3  ;;  %v3481_v3 = vcombine.high %v79_v61, %v87_v62  ;;  %v16_v58 = vld [vmem:[%s5852_s0 + $0x10] sm:$0xff] }
  0x3f   :  { %2361 = vmatpush2.bf16.msra.mxu0 %v3924_v4  ;;  %v3968_v4 = vld [vmem:[%s5851_s1 + $0x200] ss:$8 sps:$4 sm:$0xff]  }
  0x40   :  { %2474 = vmatpush2.bf16.msra.mxu1 %v3925_v5  ;;  %2556 = vmatprep.subr.bf16.mxu0 %v3928_v6  ;;  %v3971_v5 = vld [vmem:[%s5851_s1 + $0x300] ss:$8 sps:$4 sm:$0xff]   ;;  %v3976_v6 = vld [vmem:[%s5851_s1 + $0x2f4] ss:$8 sps:$4 sm:$0xff]  }
  0x41   :  { %2669 = vmatprep.subr.bf16.mxu1 %v3931_v7  ;;  %v3979_v7 = vld [vmem:[%s5851_s1 + $0x3f4] ss:$8 sps:$4 sm:$0xff]  }
  0x42   :  { %2363 = vmatmul.mubr.bf16.vlgmr.msra.gmra.mxu0 %v3414_v11  ;;  %v3480_v11 = vcombine.low %v79_v61, %v87_v62  ;;  %v3528_v61 = vcombine.low %v127_v46, %v135_v47  ;;  %v17_v62 = vld [vmem:[%s5852_s0 + $0x18] sm:$0xff] }
  0x43   :  { %2476 = vmatmul.mubr.bf16.vlgmr.msra.gmra.mxu1 %v3416_v12  ;;  %2557 = vmatpush1.bf16.msra.mxu0 %v3926_v8  ;;  %v94_v8 = vld [vmem:[%s5852_s0 + $0x280] sm:$0xff]  ;;  %v95_v12 = vld [vmem:[%s5852_s0 + $0x288] sm:$0xff] }
  0x44   :  { %2670 = vmatpush1.bf16.msra.mxu1 %v3929_v9  ;;  %2558 = vmatprep.subr.bf16.mxu0 %v3934_v16  ;;  %v102_v9 = vld [vmem:[%s5852_s0 + $0x2c0] sm:$0xff] }
  0x45   :  { %2671 = vmatprep.subr.bf16.mxu1 %v3937_v17  ;;  %2372 = vmatprep.mubr.bf16.mxu0 %v3431_v18  ;;  %v3982_v16 = vld [vmem:[%s5851_s1 + $0x2e4] ss:$8 sps:$4 sm:$0xff]   ;;  %v3495_v18 = vcombine.high %v94_v8, %v102_v9  ;;  %v3494_v27 = vcombine.low %v94_v8, %v102_v9  ;;  %v4022_v8 = vld [vmem:[%s5851_s1 + $0x470] ss:$8 sps:$4 sm:$0xff]  }
  0x46   :  { %2485 = vmatprep.mubr.bf16.mxu1 %v3433_v19  ;;  %v3985_v17 = vld [vmem:[%s5851_s1 + $0x3e4] ss:$8 sps:$4 sm:$0xff]   ;;  %v3497_v19 = vcombine.high %v95_v12, %v103_v13  ;;  %v32_v9 = vld [vmem:[%s5852_s0 + $0x90] sm:$0xff] }
  0x47   :  { %2559 = vmatpush1.bf16.msra.mxu0 %v3932_v20  ;;  %v3980_v20 = vld [vmem:[%s5851_s1 + $0x2e0] ss:$8 sps:$4 sm:$0xff]  }
  0x48   :  { %2672 = vmatpush1.bf16.msra.mxu1 %v3935_v21  ;;  %2560 = vmatprep.subr.bf16.mxu0 %v3940_v22  ;;  %v3983_v21 = vld [vmem:[%s5851_s1 + $0x3e0] ss:$8 sps:$4 sm:$0xff]   ;;  %v3988_v22 = vld [vmem:[%s5851_s1 + $0x2d4] ss:$8 sps:$4 sm:$0xff]  }
  0x49   :  { %2673 = vmatprep.subr.bf16.mxu1 %v3943_v23  ;;  %v3991_v23 = vld [vmem:[%s5851_s1 + $0x3d4] ss:$8 sps:$4 sm:$0xff]  }
  0x4a   :  { %2373 = vmatmul.mubr.bf16.gmra.mxu0 %v3430_v28  ;;  %v3496_v28 = vcombine.low %v95_v12, %v103_v13  ;;  %v33_v13 = vld [vmem:[%s5852_s0 + $0x98] sm:$0xff] }
  0x4b   :  { %2486 = vmatmul.mubr.bf16.gmra.mxu1 %v3432_v29  ;;  %2561 = vmatpush1.bf16.msra.mxu0 %v3938_v24  ;;  %v3986_v24 = vld [vmem:[%s5851_s1 + $0x2d0] ss:$8 sps:$4 sm:$0xff]   ;;  %v118_v29 = vld [vmem:[%s5852_s0 + $0x340] sm:$0xff] }
  0x4c   :  { %2674 = vmatpush1.bf16.msra.mxu1 %v3941_v25  ;;  %2562 = vmatprep.subr.bf16.mxu0 %v3946_v32  ;;  %v3989_v25 = vld [vmem:[%s5851_s1 + $0x3d0] ss:$8 sps:$4 sm:$0xff]   ;;  %v3994_v32 = vld [vmem:[%s5851_s1 + $0x2c4] ss:$8 sps:$4 sm:$0xff]  }
  0x4d   :  { %2675 = vmatprep.subr.bf16.mxu1 %v3949_v33  ;;  %2382 = vmatprep.mubr.bf16.mxu0 %v3447_v34  ;;  %v3997_v33 = vld [vmem:[%s5851_s1 + $0x3c4] ss:$8 sps:$4 sm:$0xff]   ;;  %v3511_v34 = vcombine.high %v110_v26, %v118_v29 }
  0x4e   :  { %2495 = vmatprep.mubr.bf16.mxu1 %v3449_v35  ;;  %v3513_v35 = vcombine.high %v111_v30, %v119_v31 }
  0x4f   :  { %2563 = vmatpush1.bf16.msra.mxu0 %v3944_v36  ;;  %v3992_v36 = vld [vmem:[%s5851_s1 + $0x2c0] ss:$8 sps:$4 sm:$0xff]  }
  0x50   :  { %2676 = vmatpush1.bf16.msra.mxu1 %v3947_v37  ;;  %2564 = vmatprep.subr.bf16.mxu0 %v3952_v38  ;;  %v3995_v37 = vld [vmem:[%s5851_s1 + $0x3c0] ss:$8 sps:$4 sm:$0xff]   ;;  %v4000_v38 = vld [vmem:[%s5851_s1 + $0x2b4] ss:$8 sps:$4 sm:$0xff]  }
  0x51   :  { %2677 = vmatprep.subr.bf16.mxu1 %v3955_v39  ;;  %v4003_v39 = vld [vmem:[%s5851_s1 + $0x3b4] ss:$8 sps:$4 sm:$0xff]  }
  0x52   :  { %2383 = vmatmul.mubr.bf16.gmra.mxu0 %v3446_v44  ;;  %v3510_v44 = vcombine.low %v110_v26, %v118_v29  ;;  %v57_v29 = vld [vmem:[%s5852_s0 + $0x158] sm:$0xff] }
  0x53   :  { %2496 = vmatmul.mubr.bf16.gmra.mxu1 %v3448_v45  ;;  %2565 = vmatpush1.bf16.msra.mxu0 %v3950_v40  ;;  %v3998_v40 = vld [vmem:[%s5851_s1 + $0x2b0] ss:$8 sps:$4 sm:$0xff]   ;;  %v3512_v45 = vcombine.low %v111_v30, %v119_v31 }
  0x54   :  { %2678 = vmatpush1.bf16.msra.mxu1 %v3953_v41  ;;  %2566 = vmatprep.subr.bf16.mxu0 %v3958_v48  ;;  %v4001_v41 = vld [vmem:[%s5851_s1 + $0x3b0] ss:$8 sps:$4 sm:$0xff]   ;;  %v4006_v48 = vld [vmem:[%s5851_s1 + $0x2a4] ss:$8 sps:$4 sm:$0xff]  }
  0x55   :  { %2679 = vmatprep.subr.bf16.mxu1 %v3961_v49  ;;  %2392 = vmatprep.mubr.bf16.mxu0 %v3463_v50  ;;  %v4009_v49 = vld [vmem:[%s5851_s1 + $0x3a4] ss:$8 sps:$4 sm:$0xff]   ;;  %v3527_v50 = vcombine.high %v126_v42, %v134_v43  ;;  %v4034_v30 = vld [vmem:[%s5851_s1 + $0x450] ss:$8 sps:$4 sm:$0xff]  }
  0x56   :  { %2505 = vmatprep.mubr.bf16.mxu1 %v3465_v51  ;;  %v3529_v51 = vcombine.high %v127_v46, %v135_v47  ;;  %v4037_v31 = vld [vmem:[%s5851_s1 + $0x550] ss:$8 sps:$4 sm:$0xff]  }
  0x57   :  { %2567 = vmatpush1.bf16.msra.mxu0 %v3956_v52  ;;  %v4004_v52 = vld [vmem:[%s5851_s1 + $0x2a0] ss:$8 sps:$4 sm:$0xff]   ;;  %v65_v46 = vld [vmem:[%s5852_s0 + $0x198] sm:$0xff] }
  0x58   :  { %2680 = vmatpush1.bf16.msra.mxu1 %v3959_v53  ;;  %2568 = vmatprep.subr.bf16.mxu0 %v3964_v54  ;;  %v4007_v53 = vld [vmem:[%s5851_s1 + $0x3a0] ss:$8 sps:$4 sm:$0xff]   ;;  %v4012_v54 = vld [vmem:[%s5851_s1 + $0x294] ss:$8 sps:$4 sm:$0xff]  }
  0x59   :  { %2681 = vmatprep.subr.bf16.mxu1 %v3967_v55  ;;  %v4015_v55 = vld [vmem:[%s5851_s1 + $0x394] ss:$8 sps:$4 sm:$0xff]  }
  0x5a   :  { %2393 = vmatmul.mubr.bf16.gmra.mxu0 %v3462_v59  ;;  %v24_v59 = vld [vmem:[%s5852_s0 + $0x50] sm:$0xff]  ;;  %v73_v47 = vld [vmem:[%s5852_s0 + $0x1d8] sm:$0xff] }
  0x5b   :  { %2506 = vmatmul.mubr.bf16.gmra.mxu1 %v3464_v60  ;;  %2569 = vmatpush1.bf16.msra.mxu0 %v3962_v56  ;;  %v4010_v56 = vld [vmem:[%s5851_s1 + $0x290] ss:$8 sps:$4 sm:$0xff]   ;;  %v3526_v60 = vcombine.low %v126_v42, %v134_v43 }
  0x5c   :  { %2682 = vmatpush1.bf16.msra.mxu1 %v3965_v63  ;;  %2570 = vmatprep.subr.bf16.mxu0 %v3970_v0  ;;  %v25_v63 = vld [vmem:[%s5852_s0 + $0x58] sm:$0xff]  ;;  %v4018_v0 = vld [vmem:[%s5851_s1 + $0x284] ss:$8 sps:$4 sm:$0xff]   ;;  %v64_v42 = vld [vmem:[%s5852_s0 + $0x190] sm:$0xff] }
  0x5d   :  { %2683 = vmatprep.subr.bf16.mxu1 %v3973_v1  ;;  %2402 = vmatprep.mubr.bf16.mxu0 %v3479_v2  ;;  %v4021_v1 = vld [vmem:[%s5851_s1 + $0x384] ss:$8 sps:$4 sm:$0xff]   ;;  %v3419_v2 = vcombine.high %v16_v58, %v24_v59  ;;  %v3420_v12 = vcombine.low %v17_v62, %v25_v63 }
  0x5e   :  { %2515 = vmatprep.mubr.bf16.mxu1 %v3481_v3  ;;  %v3421_v3 = vcombine.high %v17_v62, %v25_v63  ;;  %v81_v62 = vld [vmem:[%s5852_s0 + $0x218] sm:$0xff] }
  0x5f   :  { %2571 = vmatpush1.bf16.msra.mxu0 %v3968_v4  ;;  %v4016_v4 = vld [vmem:[%s5851_s1 + $0x280] ss:$8 sps:$4 sm:$0xff]   ;;  %v89_v63 = vld [vmem:[%s5852_s0 + $0x258] sm:$0xff] }
  0x60   :  { %2684 = vmatpush1.bf16.msra.mxu1 %v3971_v5  ;;  %2572 = vmatprep.subr.bf16.mxu0 %v3976_v6  ;;  %v4019_v5 = vld [vmem:[%s5851_s1 + $0x380] ss:$8 sps:$4 sm:$0xff]   ;;  %v4024_v6 = vld [vmem:[%s5851_s1 + $0x474] ss:$8 sps:$4 sm:$0xff]  }
  0x61   :  { %2685 = vmatprep.subr.bf16.mxu1 %v3979_v7  ;;  %v4027_v7 = vld [vmem:[%s5851_s1 + $0x574] ss:$8 sps:$4 sm:$0xff]  }
  0x62   :  { %2403 = vmatmul.mubr.bf16.gmra.mxu0 %v3478_v10  ;;  %v40_v10 = vld [vmem:[%s5852_s0 + $0xd0] sm:$0xff] }
  0x63   :  { %2516 = vmatmul.mubr.bf16.gmra.mxu1 %v3480_v11  ;;  %2573 = vmatpush2.bf16.msra.mxu0 %v3974_v14  ;;  %v3418_v11 = vcombine.low %v16_v58, %v24_v59  ;;  %v41_v14 = vld [vmem:[%s5852_s0 + $0xd8] sm:$0xff]  ;;  %v3434_v26 = vcombine.low %v32_v9, %v40_v10  ;;  %v80_v58 = vld [vmem:[%s5852_s0 + $0x210] sm:$0xff] }
  0x64   :  { %2686 = vmatpush2.bf16.msra.mxu1 %v3977_v15  ;;  %2574 = vmatprep.subr.bf16.mxu0 %v3982_v16  ;;  %v4025_v15 = vld [vmem:[%s5851_s1 + $0x570] ss:$8 sps:$4 sm:$0xff]   ;;  %v4030_v16 = vld [vmem:[%s5851_s1 + $0x464] ss:$8 sps:$4 sm:$0xff]  }
  0x65   :  { %2687 = vmatprep.subr.bf16.mxu1 %v3985_v17  ;;  %2412 = vmatprep.mubr.bf16.mxu0 %v3495_v18  ;;  %v4033_v17 = vld [vmem:[%s5851_s1 + $0x564] ss:$8 sps:$4 sm:$0xff]   ;;  %v3435_v18 = vcombine.high %v32_v9, %v40_v10  ;;  %v88_v59 = vld [vmem:[%s5852_s0 + $0x250] sm:$0xff] }
  0x66   :  { %2525 = vmatprep.mubr.bf16.mxu1 %v3497_v19  ;;  %v3437_v19 = vcombine.high %v33_v13, %v41_v14  ;;  %v4073_v9 = vld [vmem:[%s5851_s1 + $0x5f0] ss:$8 sps:$4 sm:$0xff]  }
  0x67   :  { %2575 = vmatpush2.bf16.msra.mxu0 %v3980_v20  ;;  %v4028_v20 = vld [vmem:[%s5851_s1 + $0x460] ss:$8 sps:$4 sm:$0xff]   ;;  %v96_v10 = vld [vmem:[%s5852_s0 + $0x290] sm:$0xff] }
  0x68   :  { %2688 = vmatpush2.bf16.msra.mxu1 %v3983_v21  ;;  %2576 = vmatprep.subr.bf16.mxu0 %v3988_v22  ;;  %v4031_v21 = vld [vmem:[%s5851_s1 + $0x560] ss:$8 sps:$4 sm:$0xff]   ;;  %v4036_v22 = vld [vmem:[%s5851_s1 + $0x454] ss:$8 sps:$4 sm:$0xff]  }
  0x69   :  { %2689 = vmatprep.subr.bf16.mxu1 %v3991_v23  ;;  %v4039_v23 = vld [vmem:[%s5851_s1 + $0x554] ss:$8 sps:$4 sm:$0xff]  }
  0x6a   :  { %2413 = vmatmul.mubr.bf16.gmra.mxu0 %v3494_v27  ;;  %v3436_v27 = vcombine.low %v33_v13, %v41_v14  ;;  %v3484_v13 = vcombine.low %v81_v62, %v89_v63  ;;  %v97_v14 = vld [vmem:[%s5852_s0 + $0x298] sm:$0xff] }
  0x6b   :  { %2526 = vmatmul.mubr.bf16.gmra.mxu1 %v3496_v28  ;;  %2577 = vmatpush2.bf16.msra.mxu0 %v3986_v24  ;;  %v48_v24 = vld [vmem:[%s5852_s0 + $0x110] sm:$0xff]  ;;  %v49_v28 = vld [vmem:[%s5852_s0 + $0x118] sm:$0xff] }
  0x6c   :  { %2690 = vmatpush2.bf16.msra.mxu1 %v3989_v25  ;;  %2578 = vmatprep.subr.bf16.mxu0 %v3994_v32  ;;  %v56_v25 = vld [vmem:[%s5852_s0 + $0x150] sm:$0xff]  ;;  %v4042_v32 = vld [vmem:[%s5851_s1 + $0x444] ss:$8 sps:$4 sm:$0xff]  }
  0x6d   :  { %2691 = vmatprep.subr.bf16.mxu1 %v3997_v33  ;;  %2422 = vmatprep.mubr.bf16.mxu0 %v3511_v34  ;;  %v4045_v33 = vld [vmem:[%s5851_s1 + $0x544] ss:$8 sps:$4 sm:$0xff]   ;;  %v3451_v34 = vcombine.high %v48_v24, %v56_v25  ;;  %v3450_v43 = vcombine.low %v48_v24, %v56_v25  ;;  %v4082_v24 = vld [vmem:[%s5851_s1 + $0x4d0] ss:$8 sps:$4 sm:$0xff]  }
  0x6e   :  { %2535 = vmatprep.mubr.bf16.mxu1 %v3513_v35  ;;  %v3453_v35 = vcombine.high %v49_v28, %v57_v29  ;;  %v112_v25 = vld [vmem:[%s5852_s0 + $0x310] sm:$0xff] }
  0x6f   :  { %2579 = vmatpush2.bf16.msra.mxu0 %v3992_v36  ;;  %v4040_v36 = vld [vmem:[%s5851_s1 + $0x440] ss:$8 sps:$4 sm:$0xff]  }
  0x70   :  { %2692 = vmatpush2.bf16.msra.mxu1 %v3995_v37  ;;  %2580 = vmatprep.subr.bf16.mxu0 %v4000_v38  ;;  %v4043_v37 = vld [vmem:[%s5851_s1 + $0x540] ss:$8 sps:$4 sm:$0xff]   ;;  %v4048_v38 = vld [vmem:[%s5851_s1 + $0x434] ss:$8 sps:$4 sm:$0xff]  }
  0x71   :  { %2693 = vmatprep.subr.bf16.mxu1 %v4003_v39  ;;  %v4051_v39 = vld [vmem:[%s5851_s1 + $0x534] ss:$8 sps:$4 sm:$0xff]  }
  0x72   :  { %2423 = vmatmul.mubr.bf16.gmra.mxu0 %v3510_v44  ;;  %v3452_v44 = vcombine.low %v49_v28, %v57_v29  ;;  %v113_v29 = vld [vmem:[%s5852_s0 + $0x318] sm:$0xff] }
  0x73   :  { %2536 = vmatmul.mubr.bf16.gmra.mxu1 %v3512_v45  ;;  %2581 = vmatpush2.bf16.msra.mxu0 %v3998_v40  ;;  %v4046_v40 = vld [vmem:[%s5851_s1 + $0x430] ss:$8 sps:$4 sm:$0xff]  }
  0x74   :  { %2694 = vmatpush2.bf16.msra.mxu1 %v4001_v41  ;;  %2582 = vmatprep.subr.bf16.mxu0 %v4006_v48  ;;  %v4049_v41 = vld [vmem:[%s5851_s1 + $0x530] ss:$8 sps:$4 sm:$0xff]   ;;  %v4054_v48 = vld [vmem:[%s5851_s1 + $0x424] ss:$8 sps:$4 sm:$0xff]  }
  0x75   :  { %2695 = vmatprep.subr.bf16.mxu1 %v4009_v49  ;;  %2432 = vmatprep.mubr.bf16.mxu0 %v3527_v50  ;;  %v72_v45 = vld [vmem:[%s5852_s0 + $0x1d0] sm:$0xff]  ;;  %v4057_v49 = vld [vmem:[%s5851_s1 + $0x524] ss:$8 sps:$4 sm:$0xff]  }
  0x76   :  { %2545 = vmatprep.mubr.bf16.mxu1 %v3529_v51  ;;  %v3467_v50 = vcombine.high %v64_v42, %v72_v45  ;;  %v3469_v51 = vcombine.high %v65_v46, %v73_v47 }
  0x77   :  { %2583 = vmatpush2.bf16.msra.mxu0 %v4004_v52  ;;  %v4052_v52 = vld [vmem:[%s5851_s1 + $0x420] ss:$8 sps:$4 sm:$0xff]  }
  0x78   :  { %2696 = vmatpush2.bf16.msra.mxu1 %v4007_v53  ;;  %2584 = vmatprep.subr.bf16.mxu0 %v4012_v54  ;;  %v4055_v53 = vld [vmem:[%s5851_s1 + $0x520] ss:$8 sps:$4 sm:$0xff]   ;;  %v4060_v54 = vld [vmem:[%s5851_s1 + $0x414] ss:$8 sps:$4 sm:$0xff]  }
  0x79   :  { %2697 = vmatprep.subr.bf16.mxu1 %v4015_v55  ;;  %v4063_v55 = vld [vmem:[%s5851_s1 + $0x514] ss:$8 sps:$4 sm:$0xff]  }
  0x7a   :  { %2433 = vmatmul.mubr.bf16.gmra.mxu0 %v3526_v60  ;;  %v3466_v60 = vcombine.low %v64_v42, %v72_v45  ;;  %v137_v45 = vld [vmem:[%s5852_s0 + $0x3d8] sm:$0xff] }
  0x7b   :  { %2546 = vmatmul.mubr.bf16.gmra.mxu1 %v3528_v61  ;;  %2585 = vmatpush2.bf16.msra.mxu0 %v4010_v56  ;;  %v4058_v56 = vld [vmem:[%s5851_s1 + $0x410] ss:$8 sps:$4 sm:$0xff]   ;;  %v3468_v61 = vcombine.low %v65_v46, %v73_v47 }
  0x7c   :  { %2698 = vmatpush2.bf16.msra.mxu1 %v4013_v57  ;;  %2586 = vmatprep.subr.bf16.mxu0 %v4018_v0  ;;  %v4061_v57 = vld [vmem:[%s5851_s1 + $0x510] ss:$8 sps:$4 sm:$0xff]   ;;  %v4066_v0 = vld [vmem:[%s5851_s1 + $0x404] ss:$8 sps:$4 sm:$0xff]  }
  0x7d   :  { %2699 = vmatprep.subr.bf16.mxu1 %v4021_v1  ;;  %2588 = vmatprep.mubr.bf16.mxu0 %v3419_v2  ;;  %v4069_v1 = vld [vmem:[%s5851_s1 + $0x504] ss:$8 sps:$4 sm:$0xff]   ;;  %v3483_v2 = vcombine.high %v80_v58, %v88_v59  ;;  %v4094_v46 = vld [vmem:[%s5851_s1 + $0x4b0] ss:$8 sps:$4 sm:$0xff]  }
  0x7e   :  { %2701 = vmatprep.mubr.bf16.mxu1 %v3421_v3  ;;  %v3485_v3 = vcombine.high %v81_v62, %v89_v63  ;;  %v4097_v47 = vld [vmem:[%s5851_s1 + $0x5b0] ss:$8 sps:$4 sm:$0xff]   ;;  %v19_v62 = vld [vmem:[%s5852_s0 + $0x28] sm:$0xff] }
  0x7f   :  { %2587 = vmatpush2.bf16.msra.mxu0 %v4016_v4  ;;  %v4064_v4 = vld [vmem:[%s5851_s1 + $0x400] ss:$8 sps:$4 sm:$0xff]  }
  0x80   :  { %2700 = vmatpush2.bf16.msra.mxu1 %v4019_v5  ;;  %2782 = vmatprep.subr.bf16.mxu0 %v4024_v6  ;;  %v4067_v5 = vld [vmem:[%s5851_s1 + $0x500] ss:$8 sps:$4 sm:$0xff]   ;;  %v4072_v6 = vld [vmem:[%s5851_s1 + $0x4f4] ss:$8 sps:$4 sm:$0xff]  }
  0x81   :  { %2895 = vmatprep.subr.bf16.mxu1 %v4027_v7  ;;  %v4075_v7 = vld [vmem:[%s5851_s1 + $0x5f4] ss:$8 sps:$4 sm:$0xff]   ;;  %v27_v63 = vld [vmem:[%s5852_s0 + $0x68] sm:$0xff] }
  0x82   :  { %2589 = vmatmul.mubr.bf16.vlgmr.msra.gmra.mxu0 %v3418_v11  ;;  %v104_v11 = vld [vmem:[%s5852_s0 + $0x2d0] sm:$0xff] }
  0x83   :  { %2702 = vmatmul.mubr.bf16.vlgmr.msra.gmra.mxu1 %v3420_v12  ;;  %2783 = vmatpush1.bf16.msra.mxu0 %v4022_v8  ;;  %v4070_v8 = vld [vmem:[%s5851_s1 + $0x4f0] ss:$8 sps:$4 sm:$0xff]   ;;  %v3482_v12 = vcombine.low %v80_v58, %v88_v59  ;;  %v18_v58 = vld [vmem:[%s5852_s0 + $0x20] sm:$0xff] }
  0x84   :  { %2896 = vmatpush1.bf16.msra.mxu1 %v4025_v15  ;;  %2784 = vmatprep.subr.bf16.mxu0 %v4030_v16  ;;  %v105_v15 = vld [vmem:[%s5852_s0 + $0x2d8] sm:$0xff]  ;;  %v4078_v16 = vld [vmem:[%s5851_s1 + $0x4e4] ss:$8 sps:$4 sm:$0xff]  }
  0x85   :  { %2897 = vmatprep.subr.bf16.mxu1 %v4033_v17  ;;  %2598 = vmatprep.mubr.bf16.mxu0 %v3435_v18  ;;  %v4081_v17 = vld [vmem:[%s5851_s1 + $0x5e4] ss:$8 sps:$4 sm:$0xff]   ;;  %v3499_v18 = vcombine.high %v96_v10, %v104_v11  ;;  %v3500_v28 = vcombine.low %v97_v14, %v105_v15 }
  0x86   :  { %2711 = vmatprep.mubr.bf16.mxu1 %v3437_v19  ;;  %v3501_v19 = vcombine.high %v97_v14, %v105_v15  ;;  %v35_v14 = vld [vmem:[%s5852_s0 + $0xa8] sm:$0xff] }
  0x87   :  { %2785 = vmatpush1.bf16.msra.mxu0 %v4028_v20  ;;  %v4076_v20 = vld [vmem:[%s5851_s1 + $0x4e0] ss:$8 sps:$4 sm:$0xff]  }
  0x88   :  { %2898 = vmatpush1.bf16.msra.mxu1 %v4031_v21  ;;  %2786 = vmatprep.subr.bf16.mxu0 %v4036_v22  ;;  %v4079_v21 = vld [vmem:[%s5851_s1 + $0x5e0] ss:$8 sps:$4 sm:$0xff]   ;;  %v4084_v22 = vld [vmem:[%s5851_s1 + $0x4d4] ss:$8 sps:$4 sm:$0xff]  }
  0x89   :  { %2899 = vmatprep.subr.bf16.mxu1 %v4039_v23  ;;  %v4087_v23 = vld [vmem:[%s5851_s1 + $0x5d4] ss:$8 sps:$4 sm:$0xff]   ;;  %v43_v15 = vld [vmem:[%s5852_s0 + $0xe8] sm:$0xff] }
  0x8a   :  { %2599 = vmatmul.mubr.bf16.gmra.mxu0 %v3434_v26  ;;  %v120_v26 = vld [vmem:[%s5852_s0 + $0x350] sm:$0xff] }
  0x8b   :  { %2712 = vmatmul.mubr.bf16.gmra.mxu1 %v3436_v27  ;;  %2787 = vmatpush1.bf16.msra.mxu0 %v4034_v30  ;;  %v3498_v27 = vcombine.low %v96_v10, %v104_v11  ;;  %v121_v30 = vld [vmem:[%s5852_s0 + $0x358] sm:$0xff]  ;;  %v3514_v42 = vcombine.low %v112_v25, %v120_v26  ;;  %v34_v10 = vld [vmem:[%s5852_s0 + $0xa0] sm:$0xff] }
  0x8c   :  { %2900 = vmatpush1.bf16.msra.mxu1 %v4037_v31  ;;  %2788 = vmatprep.subr.bf16.mxu0 %v4042_v32  ;;  %v4085_v31 = vld [vmem:[%s5851_s1 + $0x5d0] ss:$8 sps:$4 sm:$0xff]   ;;  %v4090_v32 = vld [vmem:[%s5851_s1 + $0x4c4] ss:$8 sps:$4 sm:$0xff]  }
  0x8d   :  { %2901 = vmatprep.subr.bf16.mxu1 %v4045_v33  ;;  %2608 = vmatprep.mubr.bf16.mxu0 %v3451_v34  ;;  %v4093_v33 = vld [vmem:[%s5851_s1 + $0x5c4] ss:$8 sps:$4 sm:$0xff]   ;;  %v3515_v34 = vcombine.high %v112_v25, %v120_v26  ;;  %v4133_v25 = vld [vmem:[%s5851_s1 + $0x750] ss:$8 sps:$4 sm:$0xff]  }
  0x8e   :  { %2721 = vmatprep.mubr.bf16.mxu1 %v3453_v35  ;;  %v3517_v35 = vcombine.high %v113_v29, %v121_v30  ;;  %v42_v11 = vld [vmem:[%s5852_s0 + $0xe0] sm:$0xff] }
  0x8f   :  { %2789 = vmatpush1.bf16.msra.mxu0 %v4040_v36  ;;  %v4088_v36 = vld [vmem:[%s5851_s1 + $0x4c0] ss:$8 sps:$4 sm:$0xff]  }
  0x90   :  { %2902 = vmatpush1.bf16.msra.mxu1 %v4043_v37  ;;  %2790 = vmatprep.subr.bf16.mxu0 %v4048_v38  ;;  %v4091_v37 = vld [vmem:[%s5851_s1 + $0x5c0] ss:$8 sps:$4 sm:$0xff]   ;;  %v4096_v38 = vld [vmem:[%s5851_s1 + $0x4b4] ss:$8 sps:$4 sm:$0xff]  }
  0x91   :  { %2903 = vmatprep.subr.bf16.mxu1 %v4051_v39  ;;  %v4099_v39 = vld [vmem:[%s5851_s1 + $0x5b4] ss:$8 sps:$4 sm:$0xff]   ;;  %v50_v26 = vld [vmem:[%s5852_s0 + $0x120] sm:$0xff] }
  0x92   :  { %2609 = vmatmul.mubr.bf16.gmra.mxu0 %v3450_v43  ;;  %v3516_v43 = vcombine.low %v113_v29, %v121_v30  ;;  %v3440_v29 = vcombine.low %v35_v14, %v43_v15  ;;  %v51_v30 = vld [vmem:[%s5852_s0 + $0x128] sm:$0xff] }
  0x93   :  { %2722 = vmatmul.mubr.bf16.gmra.mxu1 %v3452_v44  ;;  %2791 = vmatpush1.bf16.msra.mxu0 %v4046_v40  ;;  %v128_v40 = vld [vmem:[%s5852_s0 + $0x390] sm:$0xff]  ;;  %v129_v44 = vld [vmem:[%s5852_s0 + $0x398] sm:$0xff] }
  0x94   :  { %2904 = vmatpush1.bf16.msra.mxu1 %v4049_v41  ;;  %2792 = vmatprep.subr.bf16.mxu0 %v4054_v48  ;;  %v136_v41 = vld [vmem:[%s5852_s0 + $0x3d0] sm:$0xff]  ;;  %v4102_v48 = vld [vmem:[%s5851_s1 + $0x4a4] ss:$8 sps:$4 sm:$0xff]  }
  0x95   :  { %2905 = vmatprep.subr.bf16.mxu1 %v4057_v49  ;;  %2618 = vmatprep.mubr.bf16.mxu0 %v3467_v50  ;;  %v4105_v49 = vld [vmem:[%s5851_s1 + $0x5a4] ss:$8 sps:$4 sm:$0xff]   ;;  %v3531_v50 = vcombine.high %v128_v40, %v136_v41  ;;  %v3530_v59 = vcombine.low %v128_v40, %v136_v41 }
  0x96   :  { %2731 = vmatprep.mubr.bf16.mxu1 %v3469_v51  ;;  %v3533_v51 = vcombine.high %v129_v44, %v137_v45  ;;  %v66_v40 = vld [vmem:[%s5852_s0 + $0x1a0] sm:$0xff] }
  0x97   :  { %2793 = vmatpush1.bf16.msra.mxu0 %v4052_v52  ;;  %v4100_v52 = vld [vmem:[%s5851_s1 + $0x4a0] ss:$8 sps:$4 sm:$0xff]  }
  0x98   :  { %2906 = vmatpush1.bf16.msra.mxu1 %v4055_v53  ;;  %2794 = vmatprep.subr.bf16.mxu0 %v4060_v54  ;;  %v4103_v53 = vld [vmem:[%s5851_s1 + $0x5a0] ss:$8 sps:$4 sm:$0xff]   ;;  %v4108_v54 = vld [vmem:[%s5851_s1 + $0x494] ss:$8 sps:$4 sm:$0xff]  }
  0x99   :  { %2907 = vmatprep.subr.bf16.mxu1 %v4063_v55  ;;  %v4111_v55 = vld [vmem:[%s5851_s1 + $0x594] ss:$8 sps:$4 sm:$0xff]  }
  0x9a   :  { %2619 = vmatmul.mubr.bf16.gmra.mxu0 %v3466_v60  ;;  %v3532_v60 = vcombine.low %v129_v44, %v137_v45  ;;  %v67_v44 = vld [vmem:[%s5852_s0 + $0x1a8] sm:$0xff] }
  0x9b   :  { %2732 = vmatmul.mubr.bf16.gmra.mxu1 %v3468_v61  ;;  %2795 = vmatpush1.bf16.msra.mxu0 %v4058_v56  ;;  %v4106_v56 = vld [vmem:[%s5851_s1 + $0x490] ss:$8 sps:$4 sm:$0xff]   ;;  %v26_v61 = vld [vmem:[%s5852_s0 + $0x60] sm:$0xff]  ;;  %v75_v45 = vld [vmem:[%s5852_s0 + $0x1e8] sm:$0xff] }
  0x9c   :  { %2908 = vmatpush1.bf16.msra.mxu1 %v4061_v57  ;;  %2796 = vmatprep.subr.bf16.mxu0 %v4066_v0  ;;  %v4109_v57 = vld [vmem:[%s5851_s1 + $0x590] ss:$8 sps:$4 sm:$0xff]   ;;  %v4114_v0 = vld [vmem:[%s5851_s1 + $0x484] ss:$8 sps:$4 sm:$0xff]  }
  0x9d   :  { %2909 = vmatprep.subr.bf16.mxu1 %v4069_v1  ;;  %2628 = vmatprep.mubr.bf16.mxu0 %v3483_v2  ;;  %v4117_v1 = vld [vmem:[%s5851_s1 + $0x584] ss:$8 sps:$4 sm:$0xff]   ;;  %v3423_v2 = vcombine.high %v18_v58, %v26_v61 }
  0x9e   :  { %2741 = vmatprep.mubr.bf16.mxu1 %v3485_v3  ;;  %v3425_v3 = vcombine.high %v19_v62, %v27_v63 }
  0x9f   :  { %2797 = vmatpush1.bf16.msra.mxu0 %v4064_v4  ;;  %v4112_v4 = vld [vmem:[%s5851_s1 + $0x480] ss:$8 sps:$4 sm:$0xff]  }
  0xa0   :  { %2910 = vmatpush1.bf16.msra.mxu1 %v4067_v5  ;;  %2798 = vmatprep.subr.bf16.mxu0 %v4072_v6  ;;  %v4115_v5 = vld [vmem:[%s5851_s1 + $0x580] ss:$8 sps:$4 sm:$0xff]   ;;  %v4120_v6 = vld [vmem:[%s5851_s1 + $0x674] ss:$8 sps:$4 sm:$0xff]  }
  0xa1   :  { %2911 = vmatprep.subr.bf16.mxu1 %v4075_v7  ;;  %v4123_v7 = vld [vmem:[%s5851_s1 + $0x774] ss:$8 sps:$4 sm:$0xff]  }
  0xa2   :  { %2629 = vmatmul.mubr.bf16.gmra.mxu0 %v3482_v12  ;;  %v3422_v12 = vcombine.low %v18_v58, %v26_v61  ;;  %v3472_v58 = vcombine.low %v67_v44, %v75_v45  ;;  %v91_v61 = vld [vmem:[%s5852_s0 + $0x268] sm:$0xff] }
  0xa3   :  { %2742 = vmatmul.mubr.bf16.gmra.mxu1 %v3484_v13  ;;  %2799 = vmatpush2.bf16.msra.mxu0 %v4070_v8  ;;  %v4118_v8 = vld [vmem:[%s5851_s1 + $0x670] ss:$8 sps:$4 sm:$0xff]   ;;  %v3424_v13 = vcombine.low %v19_v62, %v27_v63 }
  0xa4   :  { %2912 = vmatpush2.bf16.msra.mxu1 %v4073_v9  ;;  %2800 = vmatprep.subr.bf16.mxu0 %v4078_v16  ;;  %v4121_v9 = vld [vmem:[%s5851_s1 + $0x770] ss:$8 sps:$4 sm:$0xff]   ;;  %v4126_v16 = vld [vmem:[%s5851_s1 + $0x664] ss:$8 sps:$4 sm:$0xff]  }
  0xa5   :  { %2913 = vmatprep.subr.bf16.mxu1 %v4081_v17  ;;  %2638 = vmatprep.mubr.bf16.mxu0 %v3499_v18  ;;  %v4129_v17 = vld [vmem:[%s5851_s1 + $0x764] ss:$8 sps:$4 sm:$0xff]   ;;  %v3439_v18 = vcombine.high %v34_v10, %v42_v11  ;;  %v4154_v62 = vld [vmem:[%s5851_s1 + $0x610] ss:$8 sps:$4 sm:$0xff]  }
  0xa6   :  { %2751 = vmatprep.mubr.bf16.mxu1 %v3501_v19  ;;  %v3441_v19 = vcombine.high %v35_v14, %v43_v15  ;;  %v4157_v63 = vld [vmem:[%s5851_s1 + $0x710] ss:$8 sps:$4 sm:$0xff]  }
  0xa7   :  { %2801 = vmatpush2.bf16.msra.mxu0 %v4076_v20  ;;  %v4124_v20 = vld [vmem:[%s5851_s1 + $0x660] ss:$8 sps:$4 sm:$0xff]   ;;  %v4166_v14 = vld [vmem:[%s5851_s1 + $0x6f0] ss:$8 sps:$4 sm:$0xff]  }
  0xa8   :  { %2914 = vmatpush2.bf16.msra.mxu1 %v4079_v21  ;;  %2802 = vmatprep.subr.bf16.mxu0 %v4084_v22  ;;  %v4127_v21 = vld [vmem:[%s5851_s1 + $0x760] ss:$8 sps:$4 sm:$0xff]   ;;  %v4132_v22 = vld [vmem:[%s5851_s1 + $0x654] ss:$8 sps:$4 sm:$0xff]   ;;  %v4169_v15 = vld [vmem:[%s5851_s1 + $0x7f0] ss:$8 sps:$4 sm:$0xff]  }
  0xa9   :  { %2915 = vmatprep.subr.bf16.mxu1 %v4087_v23  ;;  %v4135_v23 = vld [vmem:[%s5851_s1 + $0x754] ss:$8 sps:$4 sm:$0xff]  }
  0xaa   :  { %2639 = vmatmul.mubr.bf16.gmra.mxu0 %v3498_v27  ;;  %v58_v27 = vld [vmem:[%s5852_s0 + $0x160] sm:$0xff] }
  0xab   :  { %2752 = vmatmul.mubr.bf16.gmra.mxu1 %v3500_v28  ;;  %2803 = vmatpush2.bf16.msra.mxu0 %v4082_v24  ;;  %v4130_v24 = vld [vmem:[%s5851_s1 + $0x650] ss:$8 sps:$4 sm:$0xff]   ;;  %v3438_v28 = vcombine.low %v34_v10, %v42_v11  ;;  %v3454_v41 = vcombine.low %v50_v26, %v58_v27  ;;  %v106_v11 = vld [vmem:[%s5852_s0 + $0x2e0] sm:$0xff] }
  0xac   :  { %2916 = vmatpush2.bf16.msra.mxu1 %v4085_v31  ;;  %2804 = vmatprep.subr.bf16.mxu0 %v4090_v32  ;;  %v59_v31 = vld [vmem:[%s5852_s0 + $0x168] sm:$0xff] }
  0xad   :  { %2917 = vmatprep.subr.bf16.mxu1 %v4093_v33  ;;  %2648 = vmatprep.mubr.bf16.mxu0 %v3515_v34  ;;  %v4138_v32 = vld [vmem:[%s5851_s1 + $0x644] ss:$8 sps:$4 sm:$0xff]   ;;  %v3455_v34 = vcombine.high %v50_v26, %v58_v27 }
  0xae   :  { %2761 = vmatprep.mubr.bf16.mxu1 %v3517_v35  ;;  %v4141_v33 = vld [vmem:[%s5851_s1 + $0x744] ss:$8 sps:$4 sm:$0xff]   ;;  %v3457_v35 = vcombine.high %v51_v30, %v59_v31 }
  0xaf   :  { %2805 = vmatpush2.bf16.msra.mxu0 %v4088_v36  ;;  %v4136_v36 = vld [vmem:[%s5851_s1 + $0x640] ss:$8 sps:$4 sm:$0xff]  }
  0xb0   :  { %2918 = vmatpush2.bf16.msra.mxu1 %v4091_v37  ;;  %2806 = vmatprep.subr.bf16.mxu0 %v4096_v38  ;;  %v4139_v37 = vld [vmem:[%s5851_s1 + $0x740] ss:$8 sps:$4 sm:$0xff]   ;;  %v4144_v38 = vld [vmem:[%s5851_s1 + $0x634] ss:$8 sps:$4 sm:$0xff]  }
  0xb1   :  { %2919 = vmatprep.subr.bf16.mxu1 %v4099_v39  ;;  %v4147_v39 = vld [vmem:[%s5851_s1 + $0x734] ss:$8 sps:$4 sm:$0xff]   ;;  %v122_v27 = vld [vmem:[%s5852_s0 + $0x360] sm:$0xff] }
  0xb2   :  { %2649 = vmatmul.mubr.bf16.gmra.mxu0 %v3514_v42  ;;  %v3456_v42 = vcombine.low %v51_v30, %v59_v31  ;;  %v4178_v30 = vld [vmem:[%s5851_s1 + $0x6d0] ss:$8 sps:$4 sm:$0xff]  }
  0xb3   :  { %2762 = vmatmul.mubr.bf16.gmra.mxu1 %v3516_v43  ;;  %2807 = vmatpush2.bf16.msra.mxu0 %v4094_v46  ;;  %v74_v43 = vld [vmem:[%s5852_s0 + $0x1e0] sm:$0xff]  ;;  %v4142_v46 = vld [vmem:[%s5851_s1 + $0x630] ss:$8 sps:$4 sm:$0xff]  }
  0xb4   :  { %2920 = vmatpush2.bf16.msra.mxu1 %v4097_v47  ;;  %2808 = vmatprep.subr.bf16.mxu0 %v4102_v48  ;;  %v4145_v47 = vld [vmem:[%s5851_s1 + $0x730] ss:$8 sps:$4 sm:$0xff]   ;;  %v4150_v48 = vld [vmem:[%s5851_s1 + $0x624] ss:$8 sps:$4 sm:$0xff]  }
  0xb5   :  { %2921 = vmatprep.subr.bf16.mxu1 %v4105_v49  ;;  %2658 = vmatprep.mubr.bf16.mxu0 %v3531_v50  ;;  %v4153_v49 = vld [vmem:[%s5851_s1 + $0x724] ss:$8 sps:$4 sm:$0xff]   ;;  %v3471_v50 = vcombine.high %v66_v40, %v74_v43  ;;  %v4181_v31 = vld [vmem:[%s5851_s1 + $0x7d0] ss:$8 sps:$4 sm:$0xff]  }
  0xb6   :  { %2771 = vmatprep.mubr.bf16.mxu1 %v3533_v51  ;;  %v3473_v51 = vcombine.high %v67_v44, %v75_v45  ;;  %v131_v44 = vld [vmem:[%s5852_s0 + $0x3a8] sm:$0xff] }
  0xb7   :  { %2809 = vmatpush2.bf16.msra.mxu0 %v4100_v52  ;;  %v4148_v52 = vld [vmem:[%s5851_s1 + $0x620] ss:$8 sps:$4 sm:$0xff]  }
  0xb8   :  { %2922 = vmatpush2.bf16.msra.mxu1 %v4103_v53  ;;  %2810 = vmatprep.subr.bf16.mxu0 %v4108_v54  ;;  %v4151_v53 = vld [vmem:[%s5851_s1 + $0x720] ss:$8 sps:$4 sm:$0xff]   ;;  %v4156_v54 = vld [vmem:[%s5851_s1 + $0x614] ss:$8 sps:$4 sm:$0xff]  }
  0xb9   :  { %2923 = vmatprep.subr.bf16.mxu1 %v4111_v55  ;;  %v4159_v55 = vld [vmem:[%s5851_s1 + $0x714] ss:$8 sps:$4 sm:$0xff]   ;;  %v139_v45 = vld [vmem:[%s5852_s0 + $0x3e8] sm:$0xff] }
  0xba   :  { %2659 = vmatmul.mubr.bf16.gmra.mxu0 %v3530_v59  ;;  %v90_v59 = vld [vmem:[%s5852_s0 + $0x260] sm:$0xff] }
  0xbb   :  { %2772 = vmatmul.mubr.bf16.gmra.mxu1 %v3532_v60  ;;  %2811 = vmatpush2.bf16.msra.mxu0 %v4106_v56  ;;  %v82_v56 = vld [vmem:[%s5852_s0 + $0x220] sm:$0xff]  ;;  %v83_v60 = vld [vmem:[%s5852_s0 + $0x228] sm:$0xff] }
  0xbc   :  { %2924 = vmatpush2.bf16.msra.mxu1 %v4109_v57  ;;  %2812 = vmatprep.subr.bf16.mxu0 %v4114_v0  ;;  %v3470_v57 = vcombine.low %v66_v40, %v74_v43  ;;  %v4162_v0 = vld [vmem:[%s5851_s1 + $0x604] ss:$8 sps:$4 sm:$0xff]   ;;  %v3488_v10 = vcombine.low %v83_v60, %v91_v61 }
  0xbd   :  { %2925 = vmatprep.subr.bf16.mxu1 %v4117_v1  ;;  %2814 = vmatprep.mubr.bf16.mxu0 %v3423_v2  ;;  %v4165_v1 = vld [vmem:[%s5851_s1 + $0x704] ss:$8 sps:$4 sm:$0xff]   ;;  %v3487_v2 = vcombine.high %v82_v56, %v90_v59 }
  0xbe   :  { %2927 = vmatprep.mubr.bf16.mxu1 %v3425_v3  ;;  %v3489_v3 = vcombine.high %v83_v60, %v91_v61  ;;  %v130_v40 = vld [vmem:[%s5852_s0 + $0x3a0] sm:$0xff]  ;;  %v28_v60 = vld [vmem:[%s5852_s0 + $0x70] sm:$0xff]  ;;  %v21_v61 = vld [vmem:[%s5852_s0 + $0x38] sm:$0xff] }
  0xbf   :  { %2813 = vmatpush2.bf16.msra.mxu0 %v4112_v4  ;;  %v4160_v4 = vld [vmem:[%s5851_s1 + $0x600] ss:$8 sps:$4 sm:$0xff]  }
  0xc0   :  { %2926 = vmatpush2.bf16.msra.mxu1 %v4115_v5  ;;  %3008 = vmatprep.subr.bf16.mxu0 %v4120_v6  ;;  %v4163_v5 = vld [vmem:[%s5851_s1 + $0x700] ss:$8 sps:$4 sm:$0xff]   ;;  %v4168_v6 = vld [vmem:[%s5851_s1 + $0x6f4] ss:$8 sps:$4 sm:$0xff]  }
  0xc1   :  { %3121 = vmatprep.subr.bf16.mxu1 %v4123_v7  ;;  %v4171_v7 = vld [vmem:[%s5851_s1 + $0x7f4] ss:$8 sps:$4 sm:$0xff]   ;;  %v138_v43 = vld [vmem:[%s5852_s0 + $0x3e0] sm:$0xff] }
  0xc2   :  { %2815 = vmatmul.mubr.bf16.vlgmr.msra.gmra.mxu0 %v3422_v12  ;;  %v99_v12 = vld [vmem:[%s5852_s0 + $0x2a8] sm:$0xff] }
  0xc3   :  { %2928 = vmatmul.mubr.bf16.vlgmr.msra.gmra.mxu1 %v3424_v13  ;;  %3009 = vmatpush1.bf16.msra.mxu0 %v4118_v8  ;;  %v98_v8 = vld [vmem:[%s5852_s0 + $0x2a0] sm:$0xff]  ;;  %v107_v13 = vld [vmem:[%s5852_s0 + $0x2e8] sm:$0xff] }
  0xc4   :  { %3122 = vmatpush1.bf16.msra.mxu1 %v4121_v9  ;;  %3010 = vmatprep.subr.bf16.mxu0 %v4126_v16  ;;  %v3486_v9 = vcombine.low %v82_v56, %v90_v59  ;;  %v4174_v16 = vld [vmem:[%s5851_s1 + $0x6e4] ss:$8 sps:$4 sm:$0xff]   ;;  %v3504_v26 = vcombine.low %v99_v12, %v107_v13  ;;  %v4207_v56 = vld [vmem:[%s5851_s1 + $0x794] ss:$8 sps:$4 sm:$0xff]   ;;  %v3536_v59 = vcombine.low %v131_v44, %v139_v45 }
  0xc5   :  { %3123 = vmatprep.subr.bf16.mxu1 %v4129_v17  ;;  %2824 = vmatprep.mubr.bf16.mxu0 %v3439_v18  ;;  %v4177_v17 = vld [vmem:[%s5851_s1 + $0x7e4] ss:$8 sps:$4 sm:$0xff]   ;;  %v3503_v18 = vcombine.high %v98_v8, %v106_v11 }
  0xc6   :  { %2937 = vmatprep.mubr.bf16.mxu1 %v3441_v19  ;;  %v3505_v19 = vcombine.high %v99_v12, %v107_v13  ;;  %v37_v12 = vld [vmem:[%s5852_s0 + $0xb8] sm:$0xff] }
  0xc7   :  { %3011 = vmatpush1.bf16.msra.mxu0 %v4124_v20  ;;  %v4172_v20 = vld [vmem:[%s5851_s1 + $0x6e0] ss:$8 sps:$4 sm:$0xff]   ;;  %v45_v13 = vld [vmem:[%s5852_s0 + $0xf8] sm:$0xff] }
  0xc8   :  { %3124 = vmatpush1.bf16.msra.mxu1 %v4127_v21  ;;  %3012 = vmatprep.subr.bf16.mxu0 %v4132_v22  ;;  %v4175_v21 = vld [vmem:[%s5851_s1 + $0x7e0] ss:$8 sps:$4 sm:$0xff]   ;;  %v4180_v22 = vld [vmem:[%s5851_s1 + $0x6d4] ss:$8 sps:$4 sm:$0xff]  }
  0xc9   :  { %3125 = vmatprep.subr.bf16.mxu1 %v4135_v23  ;;  %v4183_v23 = vld [vmem:[%s5851_s1 + $0x7d4] ss:$8 sps:$4 sm:$0xff]  }
  0xca   :  { %2825 = vmatmul.mubr.bf16.gmra.mxu0 %v3438_v28  ;;  %v115_v28 = vld [vmem:[%s5852_s0 + $0x328] sm:$0xff] }
  0xcb   :  { %2938 = vmatmul.mubr.bf16.gmra.mxu1 %v3440_v29  ;;  %3013 = vmatpush1.bf16.msra.mxu0 %v4130_v24  ;;  %v114_v24 = vld [vmem:[%s5852_s0 + $0x320] sm:$0xff]  ;;  %v123_v29 = vld [vmem:[%s5852_s0 + $0x368] sm:$0xff] }
  0xcc   :  { %3126 = vmatpush1.bf16.msra.mxu1 %v4133_v25  ;;  %3014 = vmatprep.subr.bf16.mxu0 %v4138_v32  ;;  %v3502_v25 = vcombine.low %v98_v8, %v106_v11  ;;  %v4186_v32 = vld [vmem:[%s5851_s1 + $0x6c4] ss:$8 sps:$4 sm:$0xff]   ;;  %v398_v8 = vld [vmem:[%s5853_s2] sm:$0x3]  ;;  %v44_v11 = vld [vmem:[%s5852_s0 + $0xf0] sm:$0xff] }
  0xcd   :  { %3127 = vmatprep.subr.bf16.mxu1 %v4141_v33  ;;  %2834 = vmatprep.mubr.bf16.mxu0 %v3455_v34  ;;  %v4189_v33 = vld [vmem:[%s5851_s1 + $0x7c4] ss:$8 sps:$4 sm:$0xff]   ;;  %v3519_v34 = vcombine.high %v114_v24, %v122_v27 }
  0xce   :  { %2947 = vmatprep.mubr.bf16.mxu1 %v3457_v35  ;;  %v3521_v35 = vcombine.high %v115_v28, %v123_v29 }
  0xcf   :  { %3015 = vmatpush1.bf16.msra.mxu0 %v4136_v36  ;;  %v4184_v36 = vld [vmem:[%s5851_s1 + $0x6c0] ss:$8 sps:$4 sm:$0xff]  }
  0xd0   :  { %3128 = vmatpush1.bf16.msra.mxu1 %v4139_v37  ;;  %3016 = vmatprep.subr.bf16.mxu0 %v4144_v38  ;;  %v4187_v37 = vld [vmem:[%s5851_s1 + $0x7c0] ss:$8 sps:$4 sm:$0xff]   ;;  %v4192_v38 = vld [vmem:[%s5851_s1 + $0x6b4] ss:$8 sps:$4 sm:$0xff]  }
  0xd1   :  { %3129 = vmatprep.subr.bf16.mxu1 %v4147_v39  ;;  %v4195_v39 = vld [vmem:[%s5851_s1 + $0x7b4] ss:$8 sps:$4 sm:$0xff]  }
  0xd2   :  { %2835 = vmatmul.mubr.bf16.gmra.mxu0 %v3454_v41  ;;  %v3518_v41 = vcombine.low %v114_v24, %v122_v27  ;;  %v52_v24 = vld [vmem:[%s5852_s0 + $0x130] sm:$0xff] }
  0xd3   :  { %2948 = vmatmul.mubr.bf16.gmra.mxu1 %v3456_v42  ;;  %3017 = vmatpush1.bf16.msra.mxu0 %v4142_v46  ;;  %v3520_v42 = vcombine.low %v115_v28, %v123_v29  ;;  %v4190_v46 = vld [vmem:[%s5851_s1 + $0x6b0] ss:$8 sps:$4 sm:$0xff]  }
  0xd4   :  { %3130 = vmatpush1.bf16.msra.mxu1 %v4145_v47  ;;  %3018 = vmatprep.subr.bf16.mxu0 %v4150_v48  ;;  %v4193_v47 = vld [vmem:[%s5851_s1 + $0x7b0] ss:$8 sps:$4 sm:$0xff]   ;;  %v4198_v48 = vld [vmem:[%s5851_s1 + $0x6a4] ss:$8 sps:$4 sm:$0xff]  }
  0xd5   :  { %3131 = vmatprep.subr.bf16.mxu1 %v4153_v49  ;;  %2844 = vmatprep.mubr.bf16.mxu0 %v3471_v50  ;;  %v4201_v49 = vld [vmem:[%s5851_s1 + $0x7a4] ss:$8 sps:$4 sm:$0xff]   ;;  %v3535_v50 = vcombine.high %v130_v40, %v138_v43  ;;  %v60_v27 = vld [vmem:[%s5852_s0 + $0x170] sm:$0xff]  ;;  %v53_v28 = vld [vmem:[%s5852_s0 + $0x138] sm:$0xff] }
  0xd6   :  { %2957 = vmatprep.mubr.bf16.mxu1 %v3473_v51  ;;  %v3537_v51 = vcombine.high %v131_v44, %v139_v45  ;;  %v61_v29 = vld [vmem:[%s5852_s0 + $0x178] sm:$0xff] }
  0xd7   :  { %3019 = vmatpush1.bf16.msra.mxu0 %v4148_v52  ;;  %v4196_v52 = vld [vmem:[%s5851_s1 + $0x6a0] ss:$8 sps:$4 sm:$0xff]  }
  0xd8   :  { %3132 = vmatpush1.bf16.msra.mxu1 %v4151_v53  ;;  %3020 = vmatprep.subr.bf16.mxu0 %v4156_v54  ;;  %v4199_v53 = vld [vmem:[%s5851_s1 + $0x7a0] ss:$8 sps:$4 sm:$0xff]   ;;  %v400_v54 = vlaneseq }
  0xd9   :  { %3133 = vmatprep.subr.bf16.mxu1 %v4159_v55  ;;  %v4204_v55 = vld [vmem:[%s5851_s1 + $0x694] ss:$8 sps:$4 sm:$0xff]  }
  0xda   :  { %2845 = vmatmul.mubr.bf16.gmra.mxu0 %v3470_v57  ;;  %v20_v57 = vld [vmem:[%s5852_s0 + $0x30] sm:$0xff] }
  0xdb   :  { %2958 = vmatmul.mubr.bf16.gmra.mxu1 %v3472_v58  ;;  %3021 = vmatpush1.bf16.msra.mxu0 %v4154_v62  ;;  %v3534_v58 = vcombine.low %v130_v40, %v138_v43  ;;  %v29_v62 = vld [vmem:[%s5852_s0 + $0x78] sm:$0xff] }
  0xdc   :  { %3134 = vmatpush1.bf16.msra.mxu1 %v4157_v63  ;;  %3022 = vmatprep.subr.bf16.mxu0 %v4162_v0  ;;  %v4202_v63 = vld [vmem:[%s5851_s1 + $0x690] ss:$8 sps:$4 sm:$0xff]  }
  0xdd   :  { %3135 = vmatprep.subr.bf16.mxu1 %v4165_v1  ;;  %2854 = vmatprep.mubr.bf16.mxu0 %v3487_v2  ;;  %v4205_v0 = vld [vmem:[%s5851_s1 + $0x790] ss:$8 sps:$4 sm:$0xff]   ;;  %v401_v1 = vshrl.u32 %v400_v54, 7  ;;  %v4210_v2 = vld [vmem:[%s5851_s1 + $0x684] ss:$8 sps:$4 sm:$0xff]  }
  0xde   :  { %2967 = vmatprep.mubr.bf16.mxu1 %v3489_v3  ;;  %v4213_v3 = vld [vmem:[%s5851_s1 + $0x784] ss:$8 sps:$4 sm:$0xff]  }
  0xdf   :  { %3023 = vmatpush1.bf16.msra.mxu0 %v4160_v4  ;;  %v3427_v4 = vcombine.high %v20_v57, %v28_v60 }
  0xe0   :  { %3136 = vmatpush1.bf16.msra.mxu1 %v4163_v5  ;;  %3024 = vmatprep.subr.bf16.mxu0 %v4168_v6  ;;  %v3429_v5 = vcombine.high %v21_v61, %v29_v62  ;;  %v4208_v6 = vld [vmem:[%s5851_s1 + $0x680] ss:$8 sps:$4 sm:$0xff]  }
  0xe1   :  { %3137 = vmatprep.subr.bf16.mxu1 %v4171_v7  ;;  %v4211_v7 = vld [vmem:[%s5851_s1 + $0x780] ss:$8 sps:$4 sm:$0xff]  }
  0xe2   :  { %2855 = vmatmul.mubr.bf16.gmra.mxu0 %v3486_v9  ;;  %v402_v9 = vsub.s32 0, %v401_v1 }
  0xe3   :  { %2968 = vmatmul.mubr.bf16.gmra.mxu1 %v3488_v10  ;;  %3025 = vmatpush2.bf16.msra.mxu0 %v4166_v14  ;;  %v36_v10 = vld [vmem:[%s5852_s0 + $0xb0] sm:$0xff]  ;;  %v406_v14 = vsub.s32 1, %v401_v1 }
  0xe4   :  { %3138 = vmatpush2.bf16.msra.mxu1 %v4169_v15  ;;  %3026 = vmatprep.subr.bf16.mxu0 %v4174_v16  ;;  %v3426_v15 = vcombine.low %v20_v57, %v28_v60  ;;  %v3428_v16 = vcombine.low %v21_v61, %v29_v62 }
  0xe5   :  { %3139 = vmatprep.subr.bf16.mxu1 %v4177_v17  ;;  %2864 = vmatprep.mubr.bf16.mxu0 %v3503_v18  ;;  %v5317_v17 = vrot.slane %v398_v8, %v402_v9  ;;  %v3443_v18 = vcombine.high %v36_v10, %v44_v11 }
  0xe6   :  { %2977 = vmatprep.mubr.bf16.mxu1 %v3505_v19  ;;  %v3445_v19 = vcombine.high %v37_v12, %v45_v13 }
  0xe7   :  { %3027 = vmatpush2.bf16.msra.mxu0 %v4172_v20  ;;  %v5319_v20 = vrot.slane %v398_v8, %v406_v14  ;;  %v84_v8 = vld [vmem:[%s5852_s0 + $0x230] sm:$0xff] }
  0xe8   :  { %3140 = vmatpush2.bf16.msra.mxu1 %v4175_v21  ;;  %3028 = vmatprep.subr.bf16.mxu0 %v4180_v22 }
  0xe9   :  { %3141 = vmatprep.subr.bf16.mxu1 %v4183_v23 }
  0xea   :  { %2865 = vmatmul.mubr.bf16.gmra.mxu0 %v3502_v25 }
  0xeb   :  { %2978 = vmatmul.mubr.bf16.gmra.mxu1 %v3504_v26  ;;  %3029 = vmatpush2.bf16.msra.mxu0 %v4178_v30 }
  0xec   :  { %3142 = vmatpush2.bf16.msra.mxu1 %v4181_v31  ;;  %3030 = vmatprep.subr.bf16.mxu0 %v4186_v32 }
  0xed   :  { %3143 = vmatprep.subr.bf16.mxu1 %v4189_v33  ;;  %2874 = vmatprep.mubr.bf16.mxu0 %v3519_v34  ;;  %v3442_v34 = vcombine.low %v36_v10, %v44_v11  ;;  %v92_v11 = vld [vmem:[%s5852_s0 + $0x270] sm:$0xff] }
  0xee   :  { %2987 = vmatprep.mubr.bf16.mxu1 %v3521_v35  ;;  %v3444_v35 = vcombine.low %v37_v12, %v45_v13  ;;  %v85_v12 = vld [vmem:[%s5852_s0 + $0x238] sm:$0xff] }
  0xef   :  { %3031 = vmatpush2.bf16.msra.mxu0 %v4184_v36  ;;  %v93_v13 = vld [vmem:[%s5852_s0 + $0x278] sm:$0xff] }
  0xf0   :  { %3144 = vmatpush2.bf16.msra.mxu1 %v4187_v37  ;;  %3032 = vmatprep.subr.bf16.mxu0 %v4192_v38  ;;  %v3459_v38 = vcombine.high %v52_v24, %v60_v27 }
  0xf1   :  { %3145 = vmatprep.subr.bf16.mxu1 %v4195_v39  ;;  %v3461_v39 = vcombine.high %v53_v28, %v61_v29 }
  0xf2   :  { %2875 = vmatmul.mubr.bf16.gmra.mxu0 %v3518_v41 }
  0xf3   :  { %2988 = vmatmul.mubr.bf16.gmra.mxu1 %v3520_v42  ;;  %3033 = vmatpush2.bf16.msra.mxu0 %v4190_v46 }
  0xf4   :  { %3146 = vmatpush2.bf16.msra.mxu1 %v4193_v47  ;;  %3034 = vmatprep.subr.bf16.mxu0 %v4198_v48  ;;  %v68_v48 = vld [vmem:[%s5852_s0 + $0x1b0] sm:$0xff] }
  0xf5   :  { %3147 = vmatprep.subr.bf16.mxu1 %v4201_v49  ;;  %2884 = vmatprep.mubr.bf16.mxu0 %v3535_v50 }
  0xf6   :  { %2997 = vmatprep.mubr.bf16.mxu1 %v3537_v51  ;;  %v76_v51 = vld [vmem:[%s5852_s0 + $0x1f0] sm:$0xff] }
  0xf7   :  { %3035 = vmatpush2.bf16.msra.mxu0 %v4196_v52  ;;  %v69_v52 = vld [vmem:[%s5852_s0 + $0x1b8] sm:$0xff]  ;;  %v3475_v62 = vcombine.high %v68_v48, %v76_v51 }
  0xf8   :  { %3148 = vmatpush2.bf16.msra.mxu1 %v4199_v53  ;;  %3036 = vmatprep.subr.bf16.mxu0 %v4204_v55  ;;  %v77_v53 = vld [vmem:[%s5852_s0 + $0x1f8] sm:$0xff] }
  0xf9   :  { %3149 = vmatprep.subr.bf16.mxu1 %v4207_v56 }
  0xfa   :  { %2885 = vmatmul.mubr.bf16.gmra.mxu0 %v3534_v58  ;;  %v3458_v58 = vcombine.low %v52_v24, %v60_v27  ;;  %v3491_v24 = vcombine.high %v84_v8, %v92_v11 }
  0xfb   :  { %2998 = vmatmul.mubr.bf16.gmra.mxu1 %v3536_v59  ;;  %3037 = vmatpush2.bf16.msra.mxu0 %v4202_v63  ;;  %v3460_v59 = vcombine.low %v53_v28, %v61_v29  ;;  %v3477_v63 = vcombine.high %v69_v52, %v77_v53 }
  0xfc   :  { %3150 = vmatpush2.bf16.msra.mxu1 %v4205_v0  ;;  %3038 = vmatprep.subr.bf16.mxu0 %v4210_v2 }
  0xfd   :  { %3151 = vmatprep.subr.bf16.mxu1 %v4213_v3  ;;  %3040 = vmatprep.mubr.bf16.mxu0 %v3427_v4 }
  0xfe   :  { %3153 = vmatprep.mubr.bf16.mxu1 %v3429_v5 }
  0xff   :  { %3039 = vmatpush2.bf16.msra.mxu0 %v4208_v6 }
 0x100   :  { %3152 = vmatpush2.bf16.msra.mxu1 %v4211_v7 }
 0x102   :  { %v2364_v21 = vpop.f32.mrf.mxu0  ;;  %3041 = vmatmul.mubr.bf16.vlgmr.msra.gmra.mxu0 %v3426_v15 }
 0x103   :  { %v2477_v22 = vpop.f32.mrf.mxu1  ;;  %3154 = vmatmul.mubr.bf16.vlgmr.msra.gmra.mxu1 %v3428_v16  ;;  %v2365_v23 = vadd.f32 %v2364_v21, %v5317_v17  ;;  %3050 = vmatprep.mubr.bf16.mxu0 %v3443_v18  ;;  %v3476_v21 = vcombine.low %v69_v52, %v77_v53 }
 0x104   :  { %3163 = vmatprep.mubr.bf16.mxu1 %v3445_v19  ;;  %v2366_v25 = vpop.f32.mrf.mxu0  ;;  %v3474_v19 = vcombine.low %v68_v48, %v76_v51  ;;  %v3490_v48 = vcombine.low %v84_v8, %v92_v11 }
 0x105   :  { %v2479_v26 = vpop.f32.mrf.mxu1  ;;  %v5334_v30 = vadd.f32 %v2477_v22, %v2365_v23  ;;  %v2367_v31 = vadd.f32 %v2366_v25, %v5319_v20  ;;  %v3493_v25 = vcombine.high %v85_v12, %v93_v13 }
 0x106   :  { %v2368_v32 = vpop.f32.mrf.mxu0 }
 0x107   :  { %v2481_v33 = vpop.f32.mrf.mxu1  ;;  %v5337_v36 = vadd.f32 %v2479_v26, %v2367_v31  ;;  %v2369_v37 = vadd.f32 %v2368_v32, %v5317_v17 }
 0x108   :  { %v2370_v40 = vpop.f32.mrf.mxu0 }
 0x109   :  { %v2483_v41 = vpop.f32.mrf.mxu1  ;;  %v5340_v42 = vadd.f32 %v2481_v33, %v2369_v37  ;;  %v2371_v43 = vadd.f32 %v2370_v40, %v5319_v20  ;;  %v101_v40 = vld [vmem:[%s5852_s0 + $0x2b8] sm:$0xff] }
 0x10a   :  { %v2374_v44 = vpop.f32.mrf.mxu0  ;;  %3051 = vmatmul.mubr.bf16.gmra.mxu0 %v3442_v34 }
 0x10b   :  { %v2487_v45 = vpop.f32.mrf.mxu1  ;;  %3164 = vmatmul.mubr.bf16.gmra.mxu1 %v3444_v35  ;;  %v5343_v46 = vadd.f32 %v2483_v41, %v2371_v43  ;;  %v2375_v47 = vadd.f32 %v2374_v44, %v5317_v17  ;;  %3060 = vmatprep.mubr.bf16.mxu0 %v3459_v38  ;;  %v100_v35 = vld [vmem:[%s5852_s0 + $0x2b0] sm:$0xff]  ;;  %v109_v41 = vld [vmem:[%s5852_s0 + $0x2f8] sm:$0xff] }
 0x10c   :  { %3173 = vmatprep.mubr.bf16.mxu1 %v3461_v39  ;;  %v2376_v49 = vpop.f32.mrf.mxu0  ;;  %v108_v39 = vld [vmem:[%s5852_s0 + $0x2f0] sm:$0xff]  ;;  %v3509_v53 = vcombine.high %v101_v40, %v109_v41 }
 0x10d   :  { %v2489_v50 = vpop.f32.mrf.mxu1  ;;  %v5358_v54 = vadd.f32 %v2487_v45, %v2375_v47  ;;  %v2377_v55 = vadd.f32 %v2376_v49, %v5319_v20  ;;  %v3492_v49 = vcombine.low %v85_v12, %v93_v13  ;;  %v3507_v52 = vcombine.high %v100_v35, %v108_v39 }
 0x10e   :  { %v2378_v56 = vpop.f32.mrf.mxu0  ;;  %v3506_v12 = vcombine.low %v100_v35, %v108_v39  ;;  %v3508_v13 = vcombine.low %v101_v40, %v109_v41  ;;  %v141_v39 = vld [vmem:[%s5852_s0 + $0x3f8] sm:$0xff] }
 0x10f   :  { %v2491_v57 = vpop.f32.mrf.mxu1  ;;  %v5361_v60 = vadd.f32 %v2489_v50, %v2377_v55  ;;  %v2379_v61 = vadd.f32 %v2378_v56, %v5317_v17 }
 0x110   :  { %v2380_v0 = vpop.f32.mrf.mxu0 }
 0x111   :  { %v2493_v1 = vpop.f32.mrf.mxu1  ;;  %v5364_v2 = vadd.f32 %v2491_v57, %v2379_v61  ;;  %v2381_v3 = vadd.f32 %v2380_v0, %v5319_v20  ;;  %v116_v0 = vld [vmem:[%s5852_s0 + $0x330] sm:$0xff] }
 0x112   :  { %v2384_v4 = vpop.f32.mrf.mxu0  ;;  %3061 = vmatmul.mubr.bf16.gmra.mxu0 %v3458_v58 }
 0x113   :  { %v2497_v5 = vpop.f32.mrf.mxu1  ;;  %3174 = vmatmul.mubr.bf16.gmra.mxu1 %v3460_v59  ;;  %v5367_v6 = vadd.f32 %v2493_v1, %v2381_v3  ;;  %v2385_v7 = vadd.f32 %v2384_v4, %v5317_v17  ;;  %3070 = vmatprep.mubr.bf16.mxu0 %v3475_v62  ;;  %v124_v4 = vld [vmem:[%s5852_s0 + $0x370] sm:$0xff] }
 0x114   :  { %3183 = vmatprep.mubr.bf16.mxu1 %v3477_v63  ;;  %v2386_v9 = vpop.f32.mrf.mxu0 }
 0x115   :  { %v2499_v10 = vpop.f32.mrf.mxu1  ;;  %v5382_v14 = vadd.f32 %v2497_v5, %v2385_v7  ;;  %v2387_v15 = vadd.f32 %v2386_v9, %v5319_v20  ;;  %v117_v5 = vld [vmem:[%s5852_s0 + $0x338] sm:$0xff] }
 0x116   :  { %v2388_v16 = vpop.f32.mrf.mxu0  ;;  %v125_v7 = vld [vmem:[%s5852_s0 + $0x378] sm:$0xff] }
 0x117   :  { %v2501_v18 = vpop.f32.mrf.mxu1  ;;  %v5385_v22 = vadd.f32 %v2499_v10, %v2387_v15  ;;  %v2389_v23 = vadd.f32 %v2388_v16, %v5317_v17 }
 0x118   :  { %v2390_v26 = vpop.f32.mrf.mxu0 }
 0x119   :  { %v2503_v27 = vpop.f32.mrf.mxu1  ;;  %v5388_v28 = vadd.f32 %v2501_v18, %v2389_v23  ;;  %v2391_v29 = vadd.f32 %v2390_v26, %v5319_v20  ;;  %v3523_v18 = vcombine.high %v116_v0, %v124_v4 }
 0x11a   :  { %v2394_v31 = vpop.f32.mrf.mxu0  ;;  %3071 = vmatmul.mubr.bf16.gmra.mxu0 %v3474_v19  ;;  %v3525_v19 = vcombine.high %v117_v5, %v125_v7 }
 0x11b   :  { %v2507_v32 = vpop.f32.mrf.mxu1  ;;  %3184 = vmatmul.mubr.bf16.gmra.mxu1 %v3476_v21  ;;  %v5391_v33 = vadd.f32 %v2503_v27, %v2391_v29  ;;  %v2395_v34 = vadd.f32 %v2394_v31, %v5317_v17  ;;  %3080 = vmatprep.mubr.bf16.mxu0 %v3491_v24 }
 0x11c   :  { %3193 = vmatprep.mubr.bf16.mxu1 %v3493_v25  ;;  %v2396_v37 = vpop.f32.mrf.mxu0 }
 0x11d   :  { %v2509_v38 = vpop.f32.mrf.mxu1  ;;  %v5406_v43 = vadd.f32 %v2507_v32, %v2395_v34  ;;  %v2397_v44 = vadd.f32 %v2396_v37, %v5319_v20  ;;  %v132_v32 = vld [vmem:[%s5852_s0 + $0x3b0] sm:$0xff] }
 0x11e   :  { %v2398_v45 = vpop.f32.mrf.mxu0  ;;  %v140_v37 = vld [vmem:[%s5852_s0 + $0x3f0] sm:$0xff] }
 0x11f   :  { %v2511_v47 = vpop.f32.mrf.mxu1  ;;  %v5409_v50 = vadd.f32 %v2509_v38, %v2397_v44  ;;  %v2399_v51 = vadd.f32 %v2398_v45, %v5317_v17  ;;  %v133_v38 = vld [vmem:[%s5852_s0 + $0x3b8] sm:$0xff] }
 0x120   :  { %v2400_v55 = vpop.f32.mrf.mxu0 }
 0x121   :  { %v2513_v56 = vpop.f32.mrf.mxu1  ;;  %v5412_v57 = vadd.f32 %v2511_v47, %v2399_v51  ;;  %v2401_v58 = vadd.f32 %v2400_v55, %v5319_v20  ;;  %v3522_v47 = vcombine.low %v116_v0, %v124_v4 }
 0x122   :  { %v2404_v59 = vpop.f32.mrf.mxu0  ;;  %3081 = vmatmul.mubr.bf16.gmra.mxu0 %v3490_v48  ;;  %v3524_v48 = vcombine.low %v117_v5, %v125_v7 }
 0x123   :  { %v2517_v61 = vpop.f32.mrf.mxu1  ;;  %3194 = vmatmul.mubr.bf16.gmra.mxu1 %v3492_v49  ;;  %v5415_v62 = vadd.f32 %v2513_v56, %v2401_v58  ;;  %v2405_v63 = vadd.f32 %v2404_v59, %v5317_v17  ;;  %3090 = vmatprep.mubr.bf16.mxu0 %v3507_v52  ;;  %v3539_v52 = vcombine.high %v132_v32, %v140_v37 }
 0x124   :  { %3203 = vmatprep.mubr.bf16.mxu1 %v3509_v53  ;;  %v2406_v1 = vpop.f32.mrf.mxu0  ;;  %v3541_v53 = vcombine.high %v133_v38, %v141_v39 }
 0x125   :  { %v2519_v3 = vpop.f32.mrf.mxu1  ;;  %v5430_v8 = vadd.f32 %v2517_v61, %v2405_v63  ;;  %v2407_v9 = vadd.f32 %v2406_v1, %v5319_v20 }
 0x126   :  { %v2408_v10 = vpop.f32.mrf.mxu0 }
 0x127   :  { %v2521_v11 = vpop.f32.mrf.mxu1  ;;  %v5433_v15 = vadd.f32 %v2519_v3, %v2407_v9  ;;  %v2409_v16 = vadd.f32 %v2408_v10, %v5317_v17 }
 0x128   :  { %v2410_v21 = vpop.f32.mrf.mxu0 }
 0x129   :  { %v2523_v23 = vpop.f32.mrf.mxu1  ;;  %v5436_v24 = vadd.f32 %v2521_v11, %v2409_v16  ;;  %v2411_v25 = vadd.f32 %v2410_v21, %v5319_v20  ;;  %v3538_v11 = vcombine.low %v132_v32, %v140_v37 }
 0x12a   :  { %v2414_v26 = vpop.f32.mrf.mxu0  ;;  %3091 = vmatmul.mubr.bf16.gmra.mxu0 %v3506_v12  ;;  %v3540_v12 = vcombine.low %v133_v38, %v141_v39 }
 0x12b   :  { %v2527_v27 = vpop.f32.mrf.mxu1  ;;  %3204 = vmatmul.mubr.bf16.gmra.mxu1 %v3508_v13  ;;  %v5439_v29 = vadd.f32 %v2523_v23, %v2411_v25  ;;  %v2415_v31 = vadd.f32 %v2414_v26, %v5317_v17  ;;  %3100 = vmatprep.mubr.bf16.mxu0 %v3523_v18 }
 0x12c   :  { %3213 = vmatprep.mubr.bf16.mxu1 %v3525_v19  ;;  %v2416_v34 = vpop.f32.mrf.mxu0 }
 0x12d   :  { %v2529_v35 = vpop.f32.mrf.mxu1  ;;  %v5454_v40 = vadd.f32 %v2527_v27, %v2415_v31  ;;  %v2417_v41 = vadd.f32 %v2416_v34, %v5319_v20 }
 0x12e   :  { %v2418_v44 = vpop.f32.mrf.mxu0 }
 0x12f   :  { %v2531_v45 = vpop.f32.mrf.mxu1  ;;  %v5457_v49 = vadd.f32 %v2529_v35, %v2417_v41  ;;  %v2419_v51 = vadd.f32 %v2418_v44, %v5317_v17 }
 0x130   :  { %v2420_v55 = vpop.f32.mrf.mxu0 }
 0x131   :  { %v2533_v56 = vpop.f32.mrf.mxu1  ;;  %v5460_v58 = vadd.f32 %v2531_v45, %v2419_v51  ;;  %v2421_v59 = vadd.f32 %v2420_v55, %v5319_v20 }
 0x132   :  { %v2424_v61 = vpop.f32.mrf.mxu0  ;;  %3101 = vmatmul.mubr.bf16.gmra.mxu0 %v3522_v47 }
 0x133   :  { %v2537_v63 = vpop.f32.mrf.mxu1  ;;  %3214 = vmatmul.mubr.bf16.gmra.mxu1 %v3524_v48  ;;  %v5463_v1 = vadd.f32 %v2533_v56, %v2421_v59  ;;  %v2425_v0 = vadd.f32 %v2424_v61, %v5317_v17  ;;  %3110 = vmatprep.mubr.bf16.mxu0 %v3539_v52 }
 0x134   :  { %3223 = vmatprep.mubr.bf16.mxu1 %v3541_v53  ;;  %v2426_v3 = vpop.f32.mrf.mxu0 }
 0x135   :  { %v2539_v4 = vpop.f32.mrf.mxu1  ;;  %v5466_v5 = vadd.f32 %v2537_v63, %v2425_v0  ;;  %v2427_v7 = vadd.f32 %v2426_v3, %v5319_v20 }
 0x136   :  { %v2428_v9 = vpop.f32.mrf.mxu0 }
 0x137   :  { %v2541_v10 = vpop.f32.mrf.mxu1  ;;  %v5469_v13 = vadd.f32 %v2539_v4, %v2427_v7  ;;  %v2429_v16 = vadd.f32 %v2428_v9, %v5317_v17 }
 0x138   :  { %v2430_v18 = vpop.f32.mrf.mxu0 }
 0x139   :  { %v2543_v19 = vpop.f32.mrf.mxu1  ;;  %v5472_v21 = vadd.f32 %v2541_v10, %v2429_v16  ;;  %v2431_v23 = vadd.f32 %v2430_v18, %v5319_v20 }
 0x13a   :  { %v2434_v25 = vpop.f32.mrf.mxu0  ;;  %3111 = vmatmul.mubr.bf16.gmra.mxu0 %v3538_v11 }
 0x13b   :  { %v2547_v26 = vpop.f32.mrf.mxu1  ;;  %3224 = vmatmul.mubr.bf16.gmra.mxu1 %v3540_v12  ;;  %v5475_v27 = vadd.f32 %v2543_v19, %v2431_v23  ;;  %v2435_v31 = vadd.f32 %v2434_v25, %v5317_v17 }
 0x13c   :  { %v2436_v32 = vpop.f32.mrf.mxu0 }
 0x13d   :  { %v2549_v34 = vpop.f32.mrf.mxu1  ;;  %v5478_v35 = vadd.f32 %v2547_v26, %v2435_v31  ;;  %v2437_v37 = vadd.f32 %v2436_v32, %v5319_v20 }
 0x13e   :  { %v2438_v38 = vpop.f32.mrf.mxu0 }
 0x13f   :  { %v2551_v39 = vpop.f32.mrf.mxu1  ;;  %v5481_v41 = vadd.f32 %v2549_v34, %v2437_v37  ;;  %v2439_v44 = vadd.f32 %v2438_v38, %v5317_v17 }
 0x140   :  { %v2440_v45 = vpop.f32.mrf.mxu0 }
 0x141   :  { %v2553_v47 = vpop.f32.mrf.mxu1  ;;  %v5484_v48 = vadd.f32 %v2551_v39, %v2439_v44  ;;  %v2441_v51 = vadd.f32 %v2440_v45, %v5319_v20 }
 0x142   :  { %v2590_v52 = vpop.f32.mrf.mxu0 }
 0x143   :  { %v2703_v53 = vpop.f32.mrf.mxu1  ;;  %v5487_v55 = vadd.f32 %v2553_v47, %v2441_v51  ;;  %v2591_v56 = vadd.f32 %v2590_v52, %v5334_v30 }
 0x144   :  { %v2592_v59 = vpop.f32.mrf.mxu0 }
 0x145   :  { %v2705_v61 = vpop.f32.mrf.mxu1  ;;  %v5490_v63 = vadd.f32 %v2703_v53, %v2591_v56  ;;  %v2593_v0 = vadd.f32 %v2592_v59, %v5337_v36 }
 0x146   :  { %v2594_v3 = vpop.f32.mrf.mxu0 }
 0x147   :  { %v2707_v17 = vpop.f32.mrf.mxu1  ;;  %v5493_v4 = vadd.f32 %v2705_v61, %v2593_v0  ;;  %v2595_v7 = vadd.f32 %v2594_v3, %v5340_v42 }
 0x148   :  { %v2596_v9 = vpop.f32.mrf.mxu0 }
 0x149   :  { %v2709_v20 = vpop.f32.mrf.mxu1  ;;  %v5496_v10 = vadd.f32 %v2707_v17, %v2595_v7  ;;  %v2597_v11 = vadd.f32 %v2596_v9, %v5343_v46 }
 0x14a   :  { %v2600_v12 = vpop.f32.mrf.mxu0 }
 0x14b   :  { %v2713_v30 = vpop.f32.mrf.mxu1  ;;  %v5499_v16 = vadd.f32 %v2709_v20, %v2597_v11  ;;  %v2601_v18 = vadd.f32 %v2600_v12, %v5358_v54 }
 0x14c   :  { %v2602_v19 = vpop.f32.mrf.mxu0 }
 0x14d   :  { %v2715_v36 = vpop.f32.mrf.mxu1  ;;  %v5502_v23 = vadd.f32 %v2713_v30, %v2601_v18  ;;  %v2603_v25 = vadd.f32 %v2602_v19, %v5361_v60 }
 0x14e   :  { %v2604_v26 = vpop.f32.mrf.mxu0 }
 0x14f   :  { %v2717_v42 = vpop.f32.mrf.mxu1  ;;  %v5505_v31 = vadd.f32 %v2715_v36, %v2603_v25  ;;  %v2605_v32 = vadd.f32 %v2604_v26, %v5364_v2 }
 0x150   :  { %v2606_v34 = vpop.f32.mrf.mxu0 }
 0x151   :  { %v2719_v46 = vpop.f32.mrf.mxu1  ;;  %v5508_v37 = vadd.f32 %v2717_v42, %v2605_v32  ;;  %v2607_v38 = vadd.f32 %v2606_v34, %v5367_v6 }
 0x152   :  { %v2610_v39 = vpop.f32.mrf.mxu0 }
 0x153   :  { %v2723_v54 = vpop.f32.mrf.mxu1  ;;  %v5511_v44 = vadd.f32 %v2719_v46, %v2607_v38  ;;  %v2611_v45 = vadd.f32 %v2610_v39, %v5382_v14 }
 0x154   :  { %v2612_v47 = vpop.f32.mrf.mxu0 }
 0x155   :  { %v2725_v60 = vpop.f32.mrf.mxu1  ;;  %v5514_v51 = vadd.f32 %v2723_v54, %v2611_v45  ;;  %v2613_v52 = vadd.f32 %v2612_v47, %v5385_v22 }
 0x156   :  { %v2614_v53 = vpop.f32.mrf.mxu0 }
 0x157   :  { %v2727_v2 = vpop.f32.mrf.mxu1  ;;  %v5517_v56 = vadd.f32 %v2725_v60, %v2613_v52  ;;  %v2615_v59 = vadd.f32 %v2614_v53, %v5388_v28 }
 0x158   :  { %v2616_v61 = vpop.f32.mrf.mxu0 }
 0x159   :  { %v2729_v6 = vpop.f32.mrf.mxu1  ;;  %v5520_v0 = vadd.f32 %v2727_v2, %v2615_v59  ;;  %v2617_v3 = vadd.f32 %v2616_v61, %v5391_v33 }
 0x15a   :  { %v2620_v17 = vpop.f32.mrf.mxu0 }
 0x15b   :  { %v2733_v14 = vpop.f32.mrf.mxu1  ;;  %v5523_v7 = vadd.f32 %v2729_v6, %v2617_v3  ;;  %v2621_v9 = vadd.f32 %v2620_v17, %v5406_v43 }
 0x15c   :  { %v2622_v20 = vpop.f32.mrf.mxu0 }
 0x15d   :  { %v2735_v22 = vpop.f32.mrf.mxu1  ;;  %v5526_v11 = vadd.f32 %v2733_v14, %v2621_v9  ;;  %v2623_v12 = vadd.f32 %v2622_v20, %v5409_v50 }
 0x15e   :  { %v2624_v30 = vpop.f32.mrf.mxu0 }
 0x15f   :  { %v2737_v28 = vpop.f32.mrf.mxu1  ;;  %v5529_v18 = vadd.f32 %v2735_v22, %v2623_v12  ;;  %v2625_v19 = vadd.f32 %v2624_v30, %v5412_v57 }
 0x160   :  { %v2626_v36 = vpop.f32.mrf.mxu0 }
 0x161   :  { %v2739_v33 = vpop.f32.mrf.mxu1  ;;  %v5532_v25 = vadd.f32 %v2737_v28, %v2625_v19  ;;  %v2627_v26 = vadd.f32 %v2626_v36, %v5415_v62 }
 0x162   :  { %v2630_v42 = vpop.f32.mrf.mxu0 }
 0x163   :  { %v2743_v43 = vpop.f32.mrf.mxu1  ;;  %v5535_v32 = vadd.f32 %v2739_v33, %v2627_v26  ;;  %v2631_v34 = vadd.f32 %v2630_v42, %v5430_v8 }
 0x164   :  { %v2632_v46 = vpop.f32.mrf.mxu0 }
 0x165   :  { %v2745_v50 = vpop.f32.mrf.mxu1  ;;  %v5538_v38 = vadd.f32 %v2743_v43, %v2631_v34  ;;  %v2633_v39 = vadd.f32 %v2632_v46, %v5433_v15 }
 0x166   :  { %v2634_v54 = vpop.f32.mrf.mxu0 }
 0x167   :  { %v2747_v57 = vpop.f32.mrf.mxu1  ;;  %v5541_v45 = vadd.f32 %v2745_v50, %v2633_v39  ;;  %v2635_v47 = vadd.f32 %v2634_v54, %v5436_v24 }
 0x168   :  { %v2636_v60 = vpop.f32.mrf.mxu0 }
 0x169   :  { %v2749_v62 = vpop.f32.mrf.mxu1  ;;  %v5544_v52 = vadd.f32 %v2747_v57, %v2635_v47  ;;  %v2637_v53 = vadd.f32 %v2636_v60, %v5439_v29 }
 0x16a   :  { %v2640_v2 = vpop.f32.mrf.mxu0 }
 0x16b   :  { %5855 = vst [vmem:[#allocation2_spill] sm:$0xff] %v5544_v52  ;;  %v2753_v8 = vpop.f32.mrf.mxu1  ;;  %v5547_v59 = vadd.f32 %v2749_v62, %v2637_v53  ;;  %v2641_v61 = vadd.f32 %v2640_v2, %v5454_v40 }
 0x16c   :  { %v2642_v6 = vpop.f32.mrf.mxu0 }
 0x16d   :  { %5856 = vst [vmem:[#allocation3_spill] sm:$0xff] %v5547_v59  ;;  %v2755_v15 = vpop.f32.mrf.mxu1  ;;  %v5550_v3 = vadd.f32 %v2753_v8, %v2641_v61  ;;  %v2643_v17 = vadd.f32 %v2642_v6, %v5457_v49 }
 0x16e   :  { %v2644_v14 = vpop.f32.mrf.mxu0 }
 0x16f   :  { %5857 = vst [vmem:[#allocation4_spill] sm:$0xff] %v5550_v3  ;;  %v2757_v24 = vpop.f32.mrf.mxu1  ;;  %v5553_v9 = vadd.f32 %v2755_v15, %v2643_v17  ;;  %v2645_v20 = vadd.f32 %v2644_v14, %v5460_v58 }
 0x170   :  { %v2646_v22 = vpop.f32.mrf.mxu0 }
 0x171   :  { %5858 = vst [vmem:[#allocation5_spill] sm:$0xff] %v5553_v9  ;;  %v2759_v29 = vpop.f32.mrf.mxu1  ;;  %v5556_v12 = vadd.f32 %v2757_v24, %v2645_v20  ;;  %v2647_v30 = vadd.f32 %v2646_v22, %v5463_v1 }
 0x172   :  { %v2650_v28 = vpop.f32.mrf.mxu0 }
 0x173   :  { %5859 = vst [vmem:[#allocation6_spill] sm:$0xff] %v5556_v12  ;;  %v2763_v40 = vpop.f32.mrf.mxu1  ;;  %v5559_v19 = vadd.f32 %v2759_v29, %v2647_v30  ;;  %v2651_v36 = vadd.f32 %v2650_v28, %v5466_v5 }
 0x174   :  { %v2652_v33 = vpop.f32.mrf.mxu0 }
 0x175   :  { %5860 = vst [vmem:[#allocation7_spill] sm:$0xff] %v5559_v19  ;;  %v2765_v49 = vpop.f32.mrf.mxu1  ;;  %v5562_v26 = vadd.f32 %v2763_v40, %v2651_v36  ;;  %v2653_v42 = vadd.f32 %v2652_v33, %v5469_v13 }
 0x176   :  { %v2654_v43 = vpop.f32.mrf.mxu0 }
 0x177   :  { %5861 = vst [vmem:[#allocation8_spill] sm:$0xff] %v5562_v26  ;;  %v2767_v58 = vpop.f32.mrf.mxu1  ;;  %v5565_v34 = vadd.f32 %v2765_v49, %v2653_v42  ;;  %v2655_v46 = vadd.f32 %v2654_v43, %v5472_v21 }
 0x178   :  { %v2656_v50 = vpop.f32.mrf.mxu0 }
 0x179   :  { %5862 = vst [vmem:[#allocation9_spill] sm:$0xff] %v5565_v34  ;;  %v2769_v1 = vpop.f32.mrf.mxu1  ;;  %v5568_v39 = vadd.f32 %v2767_v58, %v2655_v46  ;;  %v2657_v54 = vadd.f32 %v2656_v50, %v5475_v27 }
 0x17a   :  { %v2660_v57 = vpop.f32.mrf.mxu0 }
 0x17b   :  { %5863 = vst [vmem:[#allocation10_spill] sm:$0xff] %v5568_v39  ;;  %v2773_v5 = vpop.f32.mrf.mxu1  ;;  %v5571_v47 = vadd.f32 %v2769_v1, %v2657_v54  ;;  %v2661_v60 = vadd.f32 %v2660_v57, %v5478_v35 }
 0x17c   :  { %v2662_v62 = vpop.f32.mrf.mxu0 }
 0x17d   :  { %5864 = vst [vmem:[#allocation11_spill] sm:$0xff] %v5571_v47  ;;  %v2775_v13 = vpop.f32.mrf.mxu1  ;;  %v5574_v53 = vadd.f32 %v2773_v5, %v2661_v60  ;;  %v2663_v2 = vadd.f32 %v2662_v62, %v5481_v41 }
 0x17e   :  { %v2664_v8 = vpop.f32.mrf.mxu0 }
 0x17f   :  { %5865 = vst [vmem:[#allocation12_spill] sm:$0xff] %v5574_v53  ;;  %v2777_v21 = vpop.f32.mrf.mxu1  ;;  %v5577_v61 = vadd.f32 %v2775_v13, %v2663_v2  ;;  %v2665_v6 = vadd.f32 %v2664_v8, %v5484_v48 }
 0x180   :  { %v2666_v15 = vpop.f32.mrf.mxu0 }
 0x181   :  { %5866 = vst [vmem:[#allocation13_spill] sm:$0xff] %v5577_v61  ;;  %v2779_v27 = vpop.f32.mrf.mxu1  ;;  %v5580_v17 = vadd.f32 %v2777_v21, %v2665_v6  ;;  %v2667_v14 = vadd.f32 %v2666_v15, %v5487_v55 }
 0x182   :  { %v2816_v24 = vpop.f32.mrf.mxu0 }
 0x183   :  { %5867 = vst [vmem:[#allocation14_spill] sm:$0xff] %v5580_v17  ;;  %v5583_v35 = vpop.f32.mrf.mxu1  ;;  %v5585_v20 = vadd.f32 %v2779_v27, %v2667_v14 }
 0x184   :  { %v2818_v22 = vpop.f32.mrf.mxu0 }
 0x185   :  { %5868 = vst [vmem:[#allocation15_spill] sm:$0xff] %v5585_v20  ;;  %v5587_v29 = vpop.f32.mrf.mxu1 }
 0x186   :  { %v5589_v41 = vpop.f32.mrf.mxu0 }
 0x187   :  { %v5591_v30 = vpop.f32.mrf.mxu1 }
 0x188   :  { %v5593_v28 = vpop.f32.mrf.mxu0 }
 0x189   :  { %v5595_v48 = vpop.f32.mrf.mxu1 }
 0x18a   :  { %v5597_v40 = vpop.f32.mrf.mxu0 }
 0x18b   :  { %v5599_v36 = vpop.f32.mrf.mxu1 }
 0x18c   :  { %v5601_v55 = vpop.f32.mrf.mxu0 }
 0x18d   :  { %v5603_v33 = vpop.f32.mrf.mxu1 }
 0x18e   :  { %v5605_v49 = vpop.f32.mrf.mxu0 }
 0x18f   :  { %v5607_v42 = vpop.f32.mrf.mxu1 }
 0x190   :  { %v5609_v43 = vpop.f32.mrf.mxu0 }
 0x191   :  { %v5611_v58 = vpop.f32.mrf.mxu1 }
 0x192   :  { %v5613_v46 = vpop.f32.mrf.mxu0 }
 0x193   :  { %v5615_v50 = vpop.f32.mrf.mxu1 }
 0x194   :  { %v5617_v1 = vpop.f32.mrf.mxu0 }
 0x195   :  { %v5619_v54 = vpop.f32.mrf.mxu1 }
 0x196   :  { %v5621_v57 = vpop.f32.mrf.mxu0 }
 0x197   :  { %v5623_v5 = vpop.f32.mrf.mxu1 }
 0x198   :  { %v5625_v60 = vpop.f32.mrf.mxu0 }
 0x199   :  { %v5627_v62 = vpop.f32.mrf.mxu1 }
 0x19a   :  { %v5629_v13 = vpop.f32.mrf.mxu0 }
 0x19b   :  { %v5631_v2 = vpop.f32.mrf.mxu1 }
 0x19c   :  { %v5633_v8 = vpop.f32.mrf.mxu0 }
 0x19d   :  { %v5635_v21 = vpop.f32.mrf.mxu1 }
 0x19e   :  { %v5637_v6 = vpop.f32.mrf.mxu0 }
 0x19f   :  { %v5639_v15 = vpop.f32.mrf.mxu1 }
 0x1a0   :  { %v5641_v27 = vpop.f32.mrf.mxu0 }
 0x1a1   :  { %v5643_v14 = vpop.f32.mrf.mxu1 }
 0x1a2   :  { %v5645_v20 = vpop.f32.mrf.mxu0 }
 0x1a3   :  { %v5647_v17 = vpop.f32.mrf.mxu1 }
 0x1a4   :  { %v5649_v61 = vpop.f32.mrf.mxu0 }
 0x1a5   :  { %5869 = vst [vmem:[#allocation16_spill] sm:$0xff] %v5649_v61  ;;  %v5651_v53 = vpop.f32.mrf.mxu1 }
 0x1a6   :  { %5870 = vst [vmem:[#allocation17_spill] sm:$0xff] %v5651_v53  ;;  %v5653_v47 = vpop.f32.mrf.mxu0 }
 0x1a7   :  { %5871 = vst [vmem:[#allocation18_spill] sm:$0xff] %v5653_v47  ;;  %v5655_v39 = vpop.f32.mrf.mxu1 }
 0x1a8   :  { %5872 = vst [vmem:[#allocation19_spill] sm:$0xff] %v5655_v39  ;;  %v5657_v34 = vpop.f32.mrf.mxu0 }
 0x1a9   :  { %5873 = vst [vmem:[#allocation20_spill] sm:$0xff] %v5657_v34  ;;  %v5659_v26 = vpop.f32.mrf.mxu1 }
 0x1aa   :  { %5874 = vst [vmem:[#allocation21_spill] sm:$0xff] %v5659_v26  ;;  %v5661_v19 = vpop.f32.mrf.mxu0 }
 0x1ab   :  { %5875 = vst [vmem:[#allocation22_spill] sm:$0xff] %v5661_v19  ;;  %v5663_v12 = vpop.f32.mrf.mxu1 }
 0x1ac   :  { %5876 = vst [vmem:[#allocation23_spill] sm:$0xff] %v5663_v12  ;;  %v5665_v9 = vpop.f32.mrf.mxu0 }
 0x1ad   :  { %5877 = vst [vmem:[#allocation24_spill] sm:$0xff] %v5665_v9  ;;  %v5667_v3 = vpop.f32.mrf.mxu1 }
 0x1ae   :  { %5878 = vst [vmem:[#allocation25_spill] sm:$0xff] %v5667_v3  ;;  %v5669_v59 = vpop.f32.mrf.mxu0 }
 0x1af   :  { %5879 = vst [vmem:[#allocation26_spill] sm:$0xff] %v5669_v59  ;;  %v5671_v52 = vpop.f32.mrf.mxu1 }
 0x1b0   :  { %5880 = vst [vmem:[#allocation27_spill] sm:$0xff] %v5671_v52  ;;  %v5673_v53 = vpop.f32.mrf.mxu0 }
 0x1b1   :  { %5881 = vst [vmem:[#allocation28_spill] sm:$0xff] %v5673_v53  ;;  %v5675_v47 = vpop.f32.mrf.mxu1 }
 0x1b2   :  { %5882 = vst [vmem:[#allocation29_spill] sm:$0xff] %v5675_v47  ;;  %v5677_v39 = vpop.f32.mrf.mxu0 }
 0x1b3   :  { %5883 = vst [vmem:[#allocation30_spill] sm:$0xff] %v5677_v39  ;;  %v5679_v34 = vpop.f32.mrf.mxu1 }
 0x1b4   :  { %5884 = vst [vmem:[#allocation31_spill] sm:$0xff] %v5679_v34  ;;  %v5681_v26 = vpop.f32.mrf.mxu0  ;;  %v2817_v34 = vadd.f32 %v2816_v24, %v5490_v63  ;;  %v2823_v63 = vadd.f32 %v5593_v28, %v5499_v16  ;;  %v2829_v16 = vadd.f32 %v5601_v55, %v5505_v31  ;;  %v2837_v55 = vadd.f32 %v5613_v46, %v5514_v51 }
 0x1b5   :  { %5885 = vst [vmem:[#allocation32_spill] sm:$0xff] %v5681_v26  ;;  %v5683_v19 = vpop.f32.mrf.mxu1 }
 0x1b6   :  { %5886 = vst [vmem:[#allocation33_spill] sm:$0xff] %v5683_v19  ;;  %v5685_v12 = vpop.f32.mrf.mxu0  ;;  %v2942_v31 = vadd.f32 %v5603_v33, %v2829_v16 }
 0x1b7   :  { %5887 = vst [vmem:[#allocation34_spill] sm:$0xff] %v5685_v12  ;;  %v5687_v9 = vpop.f32.mrf.mxu1 }
 0x1b8   :  { %5888 = vst [vmem:[#allocation35_spill] sm:$0xff] %v5687_v9  ;;  %v5689_v3 = vpop.f32.mrf.mxu0  ;;  %v2819_v9 = vadd.f32 %v2818_v22, %v5493_v4  ;;  %v2827_v4 = vadd.f32 %v5597_v40, %v5502_v23 }
 0x1b9   :  { %5889 = vst [vmem:[#allocation36_spill] sm:$0xff] %v5689_v3  ;;  %v5691_v59 = vpop.f32.mrf.mxu1 }
 0x1ba   :  { %5890 = vst [vmem:[#allocation37_spill] sm:$0xff] %v5691_v59  ;;  %v5693_v52 = vpop.f32.mrf.mxu0  ;;  %v2930_v59 = vadd.f32 %v5583_v35, %v2817_v34 }
 0x1bb   :  { %5891 = vst [vmem:[#allocation38_spill] sm:$0xff] %v5693_v52  ;;  %v5695_v53 = vpop.f32.mrf.mxu1 }
 0x1bc   :  { %5892 = vst [vmem:[#allocation39_spill] sm:$0xff] %v5695_v53  ;;  %v5697_v47 = vpop.f32.mrf.mxu0  ;;  %v2821_v53 = vadd.f32 %v5589_v41, %v5496_v10  ;;  %v2936_v10 = vadd.f32 %v5595_v48, %v2823_v63 }
 0x1bd   :  { %5893 = vst [vmem:[#allocation40_spill] sm:$0xff] %v5697_v47  ;;  %v5699_v39 = vpop.f32.mrf.mxu1 }
 0x1be   :  { %5894 = vst [vmem:[#allocation41_spill] sm:$0xff] %v5699_v39  ;;  %v5702_v26 = vpop.f32.mrf.mxu0  ;;  %v2932_v39 = vadd.f32 %v5587_v29, %v2819_v9  ;;  %v2940_v29 = vadd.f32 %v5599_v36, %v2827_v4 }
 0x1bf   :  { %5895 = vst [vmem:[#allocation42_spill] sm:$0xff] %v5702_v26  ;;  %v5704_v19 = vpop.f32.mrf.mxu1 }
 0x1c0   :  { %5896 = vst [vmem:[#allocation43_spill] sm:$0xff] %v5704_v19  ;;  %v5707_v12 = vpop.f32.mrf.mxu0 }
 0x1c1   :  { %5897 = vst [vmem:[#allocation44_spill] sm:$0xff] %v5707_v12  ;;  %v5709_v3 = vpop.f32.mrf.mxu1 }
 0x1c2   :  { %5898 = vst [vmem:[#allocation45_spill] sm:$0xff] %v5709_v3  ;;  %v3042_v47 = vpop.f32.mrf.mxu0  ;;  %v2934_v3 = vadd.f32 %v5591_v30, %v2821_v53  ;;  %v2833_v30 = vadd.f32 %v5609_v43, %v5511_v44 }
 0x1c3   :  { %v3155_v52 = vpop.f32.mrf.mxu1  ;;  %v3043_v24 = vadd.f32 %v3042_v47, %v2930_v59  ;;  %v2831_v47 = vadd.f32 %v5605_v49, %v5508_v37 }
 0x1c4   :  { %v3044_v22 = vpop.f32.mrf.mxu0  ;;  %v2946_v44 = vadd.f32 %v5611_v58, %v2833_v30  ;;  %v2841_v58 = vadd.f32 %v5621_v57, %v5520_v0  ;;  %v2847_v0 = vadd.f32 %v5629_v13, %v5526_v11 }
 0x1c5   :  { %v3157_v19 = vpop.f32.mrf.mxu1  ;;  %v3156_v12 = vadd.f32 %v3155_v52, %v3043_v24  ;;  %v3045_v34 = vadd.f32 %v3044_v22, %v2932_v39 }
 0x1c6   :  { %v3046_v35 = vpop.f32.mrf.mxu0 }
 0x1c7   :  { %v3159_v26 = vpop.f32.mrf.mxu1  ;;  %v3234_v41 = vmul.f32 0.2, %v3156_v12  ;;  %v3158_v61 = vadd.f32 %v3157_v19, %v3045_v34  ;;  %v3047_v9 = vadd.f32 %v3046_v35, %v2934_v3  ;;  %v2839_v34 = vadd.f32 %v5617_v1, %v5517_v56 }
 0x1c8   :  { %v3048_v59 = vpop.f32.mrf.mxu0 }
 0x1c9   :  { %v3161_v23 = vpop.f32.mrf.mxu1  ;;  %v3235_v53 = vmul.f32 0.2, %v3158_v61  ;;  %v3160_v52 = vadd.f32 %v3159_v26, %v3047_v9  ;;  %v3049_v39 = vadd.f32 %v3048_v59, %v2936_v10  ;;  %v3266_v28 = vmax.f32 %v3156_v12, %v3234_v41 }
 0x1ca   :  { %v3052_v48 = vpop.f32.mrf.mxu0  ;;  %v2944_v26 = vadd.f32 %v5607_v42, %v2831_v47  ;;  %v2950_v42 = vadd.f32 %v5615_v50, %v2837_v55  ;;  %v2952_v47 = vadd.f32 %v5619_v54, %v2839_v34 }
 0x1cb   :  { %v3165_v19 = vpop.f32.mrf.mxu1  ;;  %v3267_v3 = vmax.f32 %v3158_v61, %v3235_v53  ;;  %v3236_v40 = vmul.f32 0.2, %v3160_v52  ;;  %v3162_v36 = vadd.f32 %v3161_v23, %v3049_v39  ;;  %v3053_v63 = vadd.f32 %v3052_v48, %v2940_v29 }
 0x1cc   :  { %v3054_v24 = vpop.f32.mrf.mxu0  ;;  %v2843_v39 = vadd.f32 %v5625_v60, %v5523_v7 }
 0x1cd   :  { %v3167_v37 = vpop.f32.mrf.mxu1  ;;  %v3814_v49 = vpack.c.bf16 %v3267_v3, %v3266_v28  ;;  %v3237_v4 = vmul.f32 0.2, %v3162_v36  ;;  %v3166_v22 = vadd.f32 %v3165_v19, %v3053_v63  ;;  %v3055_v12 = vadd.f32 %v3054_v24, %v2942_v31 }
 0x1ce   :  { %v3056_v43 = vpop.f32.mrf.mxu0  ;;  %v3268_v51 = vmax.f32 %v3160_v52, %v3236_v40  ;;  %v2954_v19 = vadd.f32 %v5623_v5, %v2841_v58  ;;  %v2956_v13 = vadd.f32 %v5627_v62, %v2843_v39  ;;  %v2853_v62 = vadd.f32 %v5641_v27, %v5535_v32 }
 0x1cf   :  { %v3169_v61 = vpop.f32.mrf.mxu1  ;;  %3394 = vst [vmem:[%s5854_s3] sm:$0xff] %v3814_v49  ;;  %v3269_v33 = vmax.f32 %v3162_v36, %v3237_v4  ;;  %v3057_v46 = vadd.f32 %v3056_v43, %v2944_v26  ;;  %v3238_v35 = vmul.f32 0.2, %v3166_v22  ;;  %v3168_v10 = vadd.f32 %v3167_v37, %v3055_v12 }
 0x1d0   :  { %v3058_v41 = vpop.f32.mrf.mxu0  ;;  %v2849_v36 = vadd.f32 %v5633_v8, %v5529_v18  ;;  %v2960_v26 = vadd.f32 %v5631_v2, %v2847_v0  ;;  %v2851_v18 = vadd.f32 %v5637_v6, %v5532_v25  ;;  %v2857_v25 = vadd.f32 %v5645_v20, %v5538_v38 }
 0x1d1   :  { %v3171_v9 = vpop.f32.mrf.mxu1  ;;  %v3815_v29 = vpack.c.bf16 %v3269_v33, %v3268_v51  ;;  %v3170_v16 = vadd.f32 %v3169_v61, %v3057_v46  ;;  %v3059_v59 = vadd.f32 %v3058_v41, %v2946_v44  ;;  %v3239_v56 = vmul.f32 0.2, %v3168_v10 }
 0x1d2   :  { %v3062_v1 = vpop.f32.mrf.mxu0  ;;  %v3270_v57 = vmax.f32 %v3166_v22, %v3238_v35  ;;  %v2962_v44 = vadd.f32 %v5635_v21, %v2849_v36  ;;  %v2966_v58 = vadd.f32 %v5643_v14, %v2853_v62 }
 0x1d3   :  { %v3175_v23 = vpop.f32.mrf.mxu1  ;;  %3395 = vst [vmem:[%s5854_s3 + $0x8] sm:$0xff] %v3815_v29  ;;  %v3240_v50 = vmul.f32 0.2, %v3170_v16  ;;  %v3172_v53 = vadd.f32 %v3171_v9, %v3059_v59  ;;  %v3063_v52 = vadd.f32 %v3062_v1, %v2950_v42  ;;  %v3271_v30 = vmax.f32 %v3168_v10, %v3239_v56  ;;  %v5899_v59 = vld [vmem:[#allocation16_spill] sm:$0xff] }
 0x1d4   :  { %v3064_v28 = vpop.f32.mrf.mxu0  ;;  %v2964_v42 = vadd.f32 %v5639_v15, %v2851_v18  ;;  %v2859_v15 = vadd.f32 %v5899_v59, %v5541_v45  ;;  %v5908_v18 = vld [vmem:[#allocation21_spill] sm:$0xff] }
 0x1d5   :  { %v3177_v48 = vpop.f32.mrf.mxu1  ;;  %v3241_v54 = vmul.f32 0.2, %v3172_v53  ;;  %v3176_v3 = vadd.f32 %v3175_v23, %v3063_v52  ;;  %v3065_v40 = vadd.f32 %v3064_v28, %v2952_v47  ;;  %v3816_v63 = vpack.c.bf16 %v3271_v30, %v3270_v57  ;;  %v5902_v57 = vld [vmem:[#allocation3_spill] sm:$0xff]  ;;  %v5903_v30 = vld [vmem:[#allocation20_spill] sm:$0xff] }
 0x1d6   :  { %v3272_v31 = vmax.f32 %v3170_v16, %v3240_v50  ;;  %v3066_v55 = vpop.f32.mrf.mxu0  ;;  %v2970_v16 = vadd.f32 %v5647_v17, %v2857_v25  ;;  %v5900_v50 = vld [vmem:[#allocation2_spill] sm:$0xff]  ;;  %v2863_v28 = vadd.f32 %v5903_v30, %v5902_v57  ;;  %v5919_v57 = vld [vmem:[#allocation27_spill] sm:$0xff] }
 0x1d7   :  { %v3179_v24 = vpop.f32.mrf.mxu1  ;;  %v3273_v7 = vmax.f32 %v3172_v53, %v3241_v54  ;;  %v3242_v60 = vmul.f32 0.2, %v3176_v3  ;;  %v3178_v37 = vadd.f32 %v3177_v48, %v3065_v40  ;;  %v3067_v11 = vadd.f32 %v3066_v55, %v2954_v19  ;;  %3396 = vst [vmem:[%s5854_s3 + $0x10] sm:$0xff] %v3816_v63  ;;  %v5901_v53 = vld [vmem:[#allocation18_spill] sm:$0xff]  ;;  %v5904_v63 = vld [vmem:[#allocation17_spill] sm:$0xff]  ;;  %v5905_v55 = vld [vmem:[#allocation4_spill] sm:$0xff] }
 0x1d8   :  { %v3068_v5 = vpop.f32.mrf.mxu0  ;;  %v2861_v52 = vadd.f32 %v5901_v53, %v5900_v50  ;;  %v5918_v50 = vld [vmem:[#allocation30_spill] sm:$0xff] }
 0x1d9   :  { %v3181_v49 = vpop.f32.mrf.mxu1  ;;  %v3817_v8 = vpack.c.bf16 %v3273_v7, %v3272_v31  ;;  %v3243_v4 = vmul.f32 0.2, %v3178_v37  ;;  %v3180_v22 = vadd.f32 %v3179_v24, %v3067_v11  ;;  %v3069_v12 = vadd.f32 %v3068_v5, %v2956_v13  ;;  %v5906_v24 = vld [vmem:[#allocation22_spill] sm:$0xff]  ;;  %v5907_v11 = vld [vmem:[#allocation19_spill] sm:$0xff] }
 0x1da   :  { %v3072_v43 = vpop.f32.mrf.mxu0  ;;  %v3274_v2 = vmax.f32 %v3176_v3, %v3242_v60  ;;  %v2972_v31 = vadd.f32 %v5904_v63, %v2859_v15  ;;  %v2867_v7 = vadd.f32 %v5906_v24, %v5905_v55  ;;  %v2974_v13 = vadd.f32 %v5907_v11, %v2861_v52  ;;  %v5923_v11 = vld [vmem:[#allocation31_spill] sm:$0xff] }
 0x1db   :  { %v3185_v61 = vpop.f32.mrf.mxu1  ;;  %3397 = vst [vmem:[%s5854_s3 + $0x18] sm:$0xff] %v3817_v8  ;;  %v3275_v34 = vmax.f32 %v3178_v37, %v3243_v4  ;;  %v3073_v51 = vadd.f32 %v3072_v43, %v2960_v26  ;;  %v3244_v6 = vmul.f32 0.2, %v3180_v22  ;;  %v3182_v33 = vadd.f32 %v3181_v49, %v3069_v12  ;;  %v5909_v12 = vld [vmem:[#allocation5_spill] sm:$0xff]  ;;  %v5910_v43 = vld [vmem:[#allocation24_spill] sm:$0xff] }
 0x1dc   :  { %v3074_v46 = vpop.f32.mrf.mxu0  ;;  %v2976_v8 = vadd.f32 %v5908_v18, %v2863_v28  ;;  %v5925_v18 = vld [vmem:[#allocation34_spill] sm:$0xff] }
 0x1dd   :  { %v3187_v21 = vpop.f32.mrf.mxu1  ;;  %v3818_v35 = vpack.c.bf16 %v3275_v34, %v3274_v2  ;;  %v3186_v10 = vadd.f32 %v3185_v61, %v3073_v51  ;;  %v3075_v41 = vadd.f32 %v3074_v46, %v2962_v44  ;;  %v3245_v32 = vmul.f32 0.2, %v3182_v33  ;;  %v5911_v51 = vld [vmem:[#allocation23_spill] sm:$0xff] }
 0x1de   :  { %v3076_v27 = vpop.f32.mrf.mxu0  ;;  %v3276_v56 = vmax.f32 %v3180_v22, %v3244_v6  ;;  %v2869_v61 = vadd.f32 %v5910_v43, %v5909_v12  ;;  %v2980_v25 = vadd.f32 %v5911_v51, %v2867_v7  ;;  %v5926_v12 = vld [vmem:[#allocation33_spill] sm:$0xff]  ;;  %v5928_v51 = vld [vmem:[#allocation36_spill] sm:$0xff] }
 0x1df   :  { %v3189_v9 = vpop.f32.mrf.mxu1  ;;  %3398 = vst [vmem:[%s5854_s3 + $0x20] sm:$0xff] %v3818_v35  ;;  %v3246_v29 = vmul.f32 0.2, %v3186_v10  ;;  %v3188_v38 = vadd.f32 %v3187_v21, %v3075_v41  ;;  %v3077_v20 = vadd.f32 %v3076_v27, %v2964_v42  ;;  %v3277_v1 = vmax.f32 %v3182_v33, %v3245_v32  ;;  %v5912_v42 = vld [vmem:[#allocation6_spill] sm:$0xff] }
 0x1e0   :  { %v3078_v23 = vpop.f32.mrf.mxu0  ;;  %v5913_v35 = vld [vmem:[#allocation26_spill] sm:$0xff] }
 0x1e1   :  { %v3191_v47 = vpop.f32.mrf.mxu1  ;;  %v3247_v14 = vmul.f32 0.2, %v3188_v38  ;;  %v3190_v39 = vadd.f32 %v3189_v9, %v3077_v20  ;;  %v3079_v0 = vadd.f32 %v3078_v23, %v2966_v58  ;;  %v3819_v48 = vpack.c.bf16 %v3277_v1, %v3276_v56  ;;  %v5915_v56 = vld [vmem:[#allocation7_spill] sm:$0xff]  ;;  %v5916_v1 = vld [vmem:[#allocation28_spill] sm:$0xff] }
 0x1e2   :  { %v3278_v19 = vmax.f32 %v3186_v10, %v3246_v29  ;;  %v3082_v54 = vpop.f32.mrf.mxu0  ;;  %v2871_v10 = vadd.f32 %v5913_v35, %v5912_v42  ;;  %v2873_v23 = vadd.f32 %v5916_v1, %v5915_v56  ;;  %v5930_v42 = vld [vmem:[#allocation38_spill] sm:$0xff]  ;;  %v5932_v56 = vld [vmem:[#allocation37_spill] sm:$0xff] }
 0x1e3   :  { %v3195_v17 = vpop.f32.mrf.mxu1  ;;  %v3279_v3 = vmax.f32 %v3188_v38, %v3247_v14  ;;  %v3248_v40 = vmul.f32 0.2, %v3190_v39  ;;  %v3192_v45 = vadd.f32 %v3191_v47, %v3079_v0  ;;  %v3083_v36 = vadd.f32 %v3082_v54, %v2970_v16  ;;  %3399 = vst [vmem:[%s5854_s3 + $0x28] sm:$0xff] %v3819_v48  ;;  %v5914_v38 = vld [vmem:[#allocation25_spill] sm:$0xff]  ;;  %v5917_v47 = vld [vmem:[#allocation8_spill] sm:$0xff] }
 0x1e4   :  { %v3084_v60 = vpop.f32.mrf.mxu0  ;;  %v2982_v20 = vadd.f32 %v5914_v38, %v2869_v61  ;;  %v2877_v53 = vadd.f32 %v5918_v50, %v5917_v47  ;;  %v2984_v30 = vadd.f32 %v5919_v57, %v2871_v10  ;;  %v5920_v54 = vld [vmem:[#allocation9_spill] sm:$0xff] }
 0x1e5   :  { %v3197_v37 = vpop.f32.mrf.mxu1  ;;  %v3820_v26 = vpack.c.bf16 %v3279_v3, %v3278_v19  ;;  %v3249_v5 = vmul.f32 0.2, %v3192_v45  ;;  %v3196_v49 = vadd.f32 %v3195_v17, %v3083_v36  ;;  %v3085_v4 = vadd.f32 %v3084_v60, %v2972_v31  ;;  %v5921_v17 = vld [vmem:[#allocation32_spill] sm:$0xff]  ;;  %v5922_v60 = vld [vmem:[#allocation29_spill] sm:$0xff] }
 0x1e6   :  { %v3086_v22 = vpop.f32.mrf.mxu0  ;;  %v3280_v62 = vmax.f32 %v3190_v39, %v3248_v40  ;;  %v2879_v3 = vadd.f32 %v5921_v17, %v5920_v54  ;;  %v5937_v54 = vld [vmem:[#allocation42_spill] sm:$0xff] }
 0x1e7   :  { %v3199_v44 = vpop.f32.mrf.mxu1  ;;  %3400 = vst [vmem:[%s5854_s3 + $0x30] sm:$0xff] %v3820_v26  ;;  %v3281_v2 = vmax.f32 %v3192_v45, %v3249_v5  ;;  %v3087_v34 = vadd.f32 %v3086_v22, %v2974_v13  ;;  %v3250_v6 = vmul.f32 0.2, %v3196_v49  ;;  %v3198_v33 = vadd.f32 %v3197_v37, %v3085_v4 }
 0x1e8   :  { %v3088_v46 = vpop.f32.mrf.mxu0  ;;  %v2986_v37 = vadd.f32 %v5922_v60, %v2873_v23  ;;  %v2990_v13 = vadd.f32 %v5923_v11, %v2877_v53  ;;  %v2992_v43 = vadd.f32 %v5926_v12, %v2879_v3  ;;  %v5933_v53 = vld [vmem:[#allocation39_spill] sm:$0xff] }
 0x1e9   :  { %v3201_v21 = vpop.f32.mrf.mxu1  ;;  %v3821_v41 = vpack.c.bf16 %v3281_v2, %v3280_v62  ;;  %v3200_v32 = vadd.f32 %v3199_v44, %v3087_v34  ;;  %v3089_v27 = vadd.f32 %v3088_v46, %v2976_v8  ;;  %v3251_v9 = vmul.f32 0.2, %v3198_v33  ;;  %v5927_v34 = vld [vmem:[#allocation11_spill] sm:$0xff] }
 0x1ea   :  { %v3092_v58 = vpop.f32.mrf.mxu0  ;;  %v3282_v52 = vmax.f32 %v3196_v49, %v3250_v6  ;;  %v5924_v49 = vld [vmem:[#allocation10_spill] sm:$0xff] }
 0x1eb   :  { %v3205_v29 = vpop.f32.mrf.mxu1  ;;  %3401 = vst [vmem:[%s5854_s3 + $0x38] sm:$0xff] %v3821_v41  ;;  %v3252_v16 = vmul.f32 0.2, %v3200_v32  ;;  %v3202_v59 = vadd.f32 %v3201_v21, %v3089_v27  ;;  %v3093_v15 = vadd.f32 %v3092_v58, %v2980_v25  ;;  %v3283_v14 = vmax.f32 %v3198_v33, %v3251_v9  ;;  %v5929_v21 = vld [vmem:[#allocation12_spill] sm:$0xff]  ;;  %v5931_v9 = vld [vmem:[#allocation35_spill] sm:$0xff] }
 0x1ec   :  { %v3094_v39 = vpop.f32.mrf.mxu0  ;;  %v2881_v8 = vadd.f32 %v5925_v18, %v5924_v49  ;;  %v2883_v25 = vadd.f32 %v5928_v51, %v5927_v34  ;;  %v2887_v35 = vadd.f32 %v5930_v42, %v5929_v21  ;;  %v5942_v34 = vld [vmem:[#allocation45_spill] sm:$0xff] }
 0x1ed   :  { %v3207_v0 = vpop.f32.mrf.mxu1  ;;  %v3253_v28 = vmul.f32 0.2, %v3202_v59  ;;  %v3206_v48 = vadd.f32 %v3205_v29, %v3093_v15  ;;  %v3095_v19 = vadd.f32 %v3094_v39, %v2982_v20  ;;  %v3822_v40 = vpack.c.bf16 %v3283_v14, %v3282_v52  ;;  %v5934_v14 = vld [vmem:[#allocation13_spill] sm:$0xff]  ;;  %v5935_v39 = vld [vmem:[#allocation40_spill] sm:$0xff] }
 0x1ee   :  { %v3284_v45 = vmax.f32 %v3200_v32, %v3252_v16  ;;  %v3096_v36 = vpop.f32.mrf.mxu0  ;;  %v2994_v58 = vadd.f32 %v5931_v9, %v2881_v8  ;;  %v2996_v1 = vadd.f32 %v5932_v56, %v2883_v25  ;;  %v3000_v52 = vadd.f32 %v5933_v53, %v2887_v35 }
 0x1ef   :  { %v3209_v63 = vpop.f32.mrf.mxu1  ;;  %v3285_v31 = vmax.f32 %v3202_v59, %v3253_v28  ;;  %v3254_v55 = vmul.f32 0.2, %v3206_v48  ;;  %v3208_v24 = vadd.f32 %v3207_v0, %v3095_v19  ;;  %v3097_v7 = vadd.f32 %v3096_v36, %v2984_v30  ;;  %3402 = vst [vmem:[%s5854_s3 + $0x40] sm:$0xff] %v3822_v40  ;;  %v5936_v19 = vld [vmem:[#allocation14_spill] sm:$0xff]  ;;  %v5938_v36 = vld [vmem:[#allocation15_spill] sm:$0xff] }
 0x1f0   :  { %v3098_v26 = vpop.f32.mrf.mxu0  ;;  %v2889_v0 = vadd.f32 %v5935_v39, %v5934_v14  ;;  %v2891_v17 = vadd.f32 %v5937_v54, %v5936_v19 }
 0x1f1   :  { %v3211_v5 = vpop.f32.mrf.mxu1  ;;  %v3823_v4 = vpack.c.bf16 %v3285_v31, %v3284_v45  ;;  %v3255_v22 = vmul.f32 0.2, %v3208_v24  ;;  %v3210_v44 = vadd.f32 %v3209_v63, %v3097_v7  ;;  %v3099_v61 = vadd.f32 %v3098_v26, %v2986_v37  ;;  %v5939_v63 = vld [vmem:[#allocation44_spill] sm:$0xff] }
 0x1f2   :  { %v3102_v62 = vpop.f32.mrf.mxu0  ;;  %v3286_v6 = vmax.f32 %v3206_v48, %v3254_v55  ;;  %v2893_v31 = vadd.f32 %v5939_v63, %v5938_v36 }
 0x1f3   :  { %v3215_v2 = vpop.f32.mrf.mxu1  ;;  %3403 = vst [vmem:[%s5854_s3 + $0x48] sm:$0xff] %v3823_v4  ;;  %v3287_v33 = vmax.f32 %v3208_v24, %v3255_v22  ;;  %v3103_v46 = vadd.f32 %v3102_v62, %v2990_v13  ;;  %v3256_v10 = vmul.f32 0.2, %v3210_v44  ;;  %v3212_v41 = vadd.f32 %v3211_v5, %v3099_v61  ;;  %v5940_v5 = vld [vmem:[#allocation41_spill] sm:$0xff]  ;;  %v5941_v4 = vld [vmem:[#allocation43_spill] sm:$0xff] }
 0x1f4   :  { %v3104_v32 = vpop.f32.mrf.mxu0  ;;  %v3002_v49 = vadd.f32 %v5940_v5, %v2889_v0  ;;  %v3004_v22 = vadd.f32 %v5941_v4, %v2891_v17  ;;  %v3006_v51 = vadd.f32 %v5942_v34, %v2893_v31 }
 0x1f5   :  { %v3217_v27 = vpop.f32.mrf.mxu1  ;;  %v3824_v29 = vpack.c.bf16 %v3287_v33, %v3286_v6  ;;  %v3216_v38 = vadd.f32 %v3215_v2, %v3103_v46  ;;  %v3105_v20 = vadd.f32 %v3104_v32, %v2992_v43  ;;  %v3257_v16 = vmul.f32 0.2, %v3212_v41 }
 0x1f6   :  { %v3106_v59 = vpop.f32.mrf.mxu0  ;;  %v3288_v57 = vmax.f32 %v3210_v44, %v3256_v10 }
 0x1f7   :  { %v3219_v15 = vpop.f32.mrf.mxu1  ;;  %3404 = vst [vmem:[%s5854_s3 + $0x50] sm:$0xff] %v3824_v29  ;;  %v3258_v23 = vmul.f32 0.2, %v3216_v38  ;;  %v3218_v47 = vadd.f32 %v3217_v27, %v3105_v20  ;;  %v3107_v50 = vadd.f32 %v3106_v59, %v2994_v58  ;;  %v3289_v30 = vmax.f32 %v3212_v41, %v3257_v16 }
 0x1f8   :  { %v3108_v28 = vpop.f32.mrf.mxu0 }
 0x1f9   :  { %v3221_v48 = vpop.f32.mrf.mxu1  ;;  %v3259_v3 = vmul.f32 0.2, %v3218_v47  ;;  %v3220_v40 = vadd.f32 %v3219_v15, %v3107_v50  ;;  %v3109_v45 = vadd.f32 %v3108_v28, %v2996_v1  ;;  %v3825_v55 = vpack.c.bf16 %v3289_v30, %v3288_v57 }
 0x1fa   :  { %v3290_v24 = vmax.f32 %v3216_v38, %v3258_v23  ;;  %v3112_v7 = vpop.f32.mrf.mxu0 }
 0x1fb   :  { %v3225_v60 = vpop.f32.mrf.mxu1  ;;  %v3291_v37 = vmax.f32 %v3218_v47, %v3259_v3  ;;  %v3260_v11 = vmul.f32 0.2, %v3220_v40  ;;  %v3222_v13 = vadd.f32 %v3221_v48, %v3109_v45  ;;  %v3113_v26 = vadd.f32 %v3112_v7, %v3000_v52  ;;  %3405 = vst [vmem:[%s5854_s3 + $0x58] sm:$0xff] %v3825_v55 }
 0x1fc   :  { %v3114_v18 = vpop.f32.mrf.mxu0 }
 0x1fd   :  { %v3227_v8 = vpop.f32.mrf.mxu1  ;;  %v3826_v44 = vpack.c.bf16 %v3291_v37, %v3290_v24  ;;  %v3261_v12 = vmul.f32 0.2, %v3222_v13  ;;  %v3226_v43 = vadd.f32 %v3225_v60, %v3113_v26  ;;  %v3115_v61 = vadd.f32 %v3114_v18, %v3002_v49 }
 0x1fe   :  { %v3116_v62 = vpop.f32.mrf.mxu0  ;;  %v3292_v25 = vmax.f32 %v3220_v40, %v3260_v11 }
 0x1ff   :  { %v3229_v2 = vpop.f32.mrf.mxu1  ;;  %3406 = vst [vmem:[%s5854_s3 + $0x60] sm:$0xff] %v3826_v44  ;;  %v3293_v6 = vmax.f32 %v3222_v13, %v3261_v12  ;;  %v3117_v33 = vadd.f32 %v3116_v62, %v3004_v22  ;;  %v3262_v46 = vmul.f32 0.2, %v3226_v43  ;;  %v3228_v21 = vadd.f32 %v3227_v8, %v3115_v61 }
 0x200   :  { %v3118_v42 = vpop.f32.mrf.mxu0 }
 0x201   :  { %v3827_v35 = vpack.c.bf16 %v3293_v6, %v3292_v25  ;;  %v3230_v10 = vadd.f32 %v3229_v2, %v3117_v33  ;;  %v3119_v41 = vadd.f32 %v3118_v42, %v3006_v51  ;;  %v3263_v32 = vmul.f32 0.2, %v3228_v21  ;;  %v3231_v27 = vpop.f32.mrf.mxu1 }
 0x202   :  { %v3294_v29 = vmax.f32 %v3226_v43, %v3262_v46 }
 0x203   :  { %3407 = vst [vmem:[%s5854_s3 + $0x68] sm:$0xff] %v3827_v35  ;;  %v3264_v9 = vmul.f32 0.2, %v3230_v10  ;;  %v3232_v58 = vadd.f32 %v3231_v27, %v3119_v41  ;;  %v3295_v38 = vmax.f32 %v3228_v21, %v3263_v32 }
 0x205   :  { %v3265_v20 = vmul.f32 0.2, %v3232_v58  ;;  %v3828_v16 = vpack.c.bf16 %v3295_v38, %v3294_v29  ;;  %v3296_v59 = vmax.f32 %v3230_v10, %v3264_v9 }
 0x207   :  { %v3297_v15 = vmax.f32 %v3232_v58, %v3265_v20  ;;  %3408 = vst [vmem:[%s5854_s3 + $0x70] sm:$0xff] %v3828_v16 }
 0x209   :  { %v3829_v56 = vpack.c.bf16 %v3297_v15, %v3296_v59 }
 0x20b   :  { %3409 = vst [vmem:[%s5854_s3 + $0x78] sm:$0xff] %v3829_v56 }

// kernel: discriminator_forward.7
= control target key start
LH: loop header
LB: loop body
LE: loop exit
PB: predicated region body
PF: predicated region fallthrough
CT: control target
= control target key end

     0   :  { %s15254_s1 = inlined_call_operand.vmem [shape: bf16[4096,512], index: 1, kind: input, shape index: {}]   ;;  %s15255_s0 = inlined_call_operand.vmem [shape: bf16[32,4096], index: 0, kind: input, shape index: {}]   ;;  %s15256_s2 = inlined_call_operand.vmem [shape: f32[1,512], index: 2, kind: input, shape index: {}]   ;;  %s15257_s3 = inlined_call_operand.vmem [shape: bf16[32,512], index: 3, kind: output, shape index: {}]  }
   0x1   :  { %v9456_v0 = vld [vmem:[%s15254_s1 + $0xe4] ss:$16 sps:$4 sm:$0xff]   ;;  %v9460_v2 = vld [vmem:[%s15254_s1 + $0xe0] ss:$16 sps:$4 sm:$0xff]   ;;  %v15_v50 = vld [vmem:[%s15255_s0 + $0x8] sm:$0xff] }
   0x2   :  { %v9458_v1 = vld [vmem:[%s15254_s1 + $0x2e4] ss:$16 sps:$4 sm:$0xff]   ;;  %6564 = vmatprep.subr.bf16.mxu0 %v9456_v0  ;;  %v9461_v3 = vld [vmem:[%s15254_s1 + $0x2e0] ss:$16 sps:$4 sm:$0xff]   ;;  %v31_v51 = vld [vmem:[%s15255_s0 + $0x88] sm:$0xff] }
   0x3   :  { %6617 = vmatprep.subr.bf16.mxu1 %v9458_v1  ;;  %v9462_v4 = vld [vmem:[%s15254_s1 + $0xc4] ss:$16 sps:$4 sm:$0xff]   ;;  %6565 = vmatpush1.bf16.msra.mxu0 %v9460_v2  ;;  %v9466_v6 = vld [vmem:[%s15254_s1 + $0xc0] ss:$16 sps:$4 sm:$0xff]   ;;  %v11177_v55 = vcombine.high %v15_v50, %v31_v51 }
   0x4   :  { %6618 = vmatpush1.bf16.msra.mxu1 %v9461_v3  ;;  %v9464_v5 = vld [vmem:[%s15254_s1 + $0x2c4] ss:$16 sps:$4 sm:$0xff]   ;;  %6566 = vmatprep.subr.bf16.mxu0 %v9462_v4  ;;  %v9467_v7 = vld [vmem:[%s15254_s1 + $0x2c0] ss:$16 sps:$4 sm:$0xff]  }
   0x5   :  { %6619 = vmatprep.subr.bf16.mxu1 %v9464_v5  ;;  %v9468_v8 = vld [vmem:[%s15254_s1 + $0xa4] ss:$16 sps:$4 sm:$0xff]   ;;  %v9472_v10 = vld [vmem:[%s15254_s1 + $0xa0] ss:$16 sps:$4 sm:$0xff]   ;;  %6649 = vmatprep.mubr.bf16.mxu1 %v11177_v55 }
   0x6   :  { %v9470_v9 = vld [vmem:[%s15254_s1 + $0x2a4] ss:$16 sps:$4 sm:$0xff]   ;;  %v9473_v11 = vld [vmem:[%s15254_s1 + $0x2a0] ss:$16 sps:$4 sm:$0xff]  }
   0x7   :  { %6567 = vmatpush1.bf16.msra.mxu0 %v9466_v6  ;;  %v9474_v12 = vld [vmem:[%s15254_s1 + $0x84] ss:$16 sps:$4 sm:$0xff]   ;;  %v9478_v14 = vld [vmem:[%s15254_s1 + $0x80] ss:$16 sps:$4 sm:$0xff]  }
   0x8   :  { %6620 = vmatpush1.bf16.msra.mxu1 %v9467_v7  ;;  %6568 = vmatprep.subr.bf16.mxu0 %v9468_v8  ;;  %v9476_v13 = vld [vmem:[%s15254_s1 + $0x284] ss:$16 sps:$4 sm:$0xff]   ;;  %v9479_v15 = vld [vmem:[%s15254_s1 + $0x280] ss:$16 sps:$4 sm:$0xff]  }
   0x9   :  { %6621 = vmatprep.subr.bf16.mxu1 %v9470_v9  ;;  %v9480_v16 = vld [vmem:[%s15254_s1 + $0x64] ss:$16 sps:$4 sm:$0xff]   ;;  %v9484_v18 = vld [vmem:[%s15254_s1 + $0x60] ss:$16 sps:$4 sm:$0xff]   ;;  %v11231_v9 = vcombine.low %v15_v50, %v31_v51  ;;  %v11365_v50 = vld [vmem:[%s15255_s0 + $0x98] sm:$0xff] }
   0xa   :  { %v9482_v17 = vld [vmem:[%s15254_s1 + $0x264] ss:$16 sps:$4 sm:$0xff]   ;;  %v9485_v19 = vld [vmem:[%s15254_s1 + $0x260] ss:$16 sps:$4 sm:$0xff]  }
   0xb   :  { %6569 = vmatpush1.bf16.msra.mxu0 %v9472_v10  ;;  %v9486_v20 = vld [vmem:[%s15254_s1 + $0x44] ss:$16 sps:$4 sm:$0xff]   ;;  %v9490_v22 = vld [vmem:[%s15254_s1 + $0x40] ss:$16 sps:$4 sm:$0xff]  }
   0xc   :  { %6622 = vmatpush1.bf16.msra.mxu1 %v9473_v11  ;;  %6570 = vmatprep.subr.bf16.mxu0 %v9474_v12  ;;  %v9488_v21 = vld [vmem:[%s15254_s1 + $0x244] ss:$16 sps:$4 sm:$0xff]   ;;  %v9491_v23 = vld [vmem:[%s15254_s1 + $0x240] ss:$16 sps:$4 sm:$0xff]  }
   0xd   :  { %6623 = vmatprep.subr.bf16.mxu1 %v9476_v13  ;;  %v9492_v24 = vld [vmem:[%s15254_s1 + $0x24] ss:$16 sps:$4 sm:$0xff]   ;;  %v9496_v26 = vld [vmem:[%s15254_s1 + $0x20] ss:$16 sps:$4 sm:$0xff]  }
   0xe   :  { %v9494_v25 = vld [vmem:[%s15254_s1 + $0x224] ss:$16 sps:$4 sm:$0xff]   ;;  %v9497_v27 = vld [vmem:[%s15254_s1 + $0x220] ss:$16 sps:$4 sm:$0xff]  }
   0xf   :  { %6571 = vmatpush1.bf16.msra.mxu0 %v9478_v14  ;;  %v9498_v28 = vld [vmem:[%s15254_s1 + $0x4] ss:$16 sps:$4 sm:$0xff]   ;;  %v9502_v30 = vld [vmem:[%s15254_s1] ss:$16 sps:$4 sm:$0xff]  }
  0x10   :  { %6624 = vmatpush1.bf16.msra.mxu1 %v9479_v15  ;;  %6572 = vmatprep.subr.bf16.mxu0 %v9480_v16  ;;  %v9500_v29 = vld [vmem:[%s15254_s1 + $0x204] ss:$16 sps:$4 sm:$0xff]   ;;  %v9503_v31 = vld [vmem:[%s15254_s1 + $0x200] ss:$16 sps:$4 sm:$0xff]  }
  0x11   :  { %6625 = vmatprep.subr.bf16.mxu1 %v9482_v17  ;;  %v9504_v32 = vld [vmem:[%s15254_s1 + $0x1e4] ss:$16 sps:$4 sm:$0xff]   ;;  %v9508_v34 = vld [vmem:[%s15254_s1 + $0x1e0] ss:$16 sps:$4 sm:$0xff]  }
  0x12   :  { %v9506_v33 = vld [vmem:[%s15254_s1 + $0x3e4] ss:$16 sps:$4 sm:$0xff]   ;;  %v9509_v35 = vld [vmem:[%s15254_s1 + $0x3e0] ss:$16 sps:$4 sm:$0xff]  }
  0x13   :  { %6573 = vmatpush1.bf16.msra.mxu0 %v9484_v18  ;;  %v9510_v36 = vld [vmem:[%s15254_s1 + $0x1c4] ss:$16 sps:$4 sm:$0xff]   ;;  %v9514_v38 = vld [vmem:[%s15254_s1 + $0x1c0] ss:$16 sps:$4 sm:$0xff]  }
  0x14   :  { %6626 = vmatpush1.bf16.msra.mxu1 %v9485_v19  ;;  %6574 = vmatprep.subr.bf16.mxu0 %v9486_v20  ;;  %v9512_v37 = vld [vmem:[%s15254_s1 + $0x3c4] ss:$16 sps:$4 sm:$0xff]   ;;  %v9515_v39 = vld [vmem:[%s15254_s1 + $0x3c0] ss:$16 sps:$4 sm:$0xff]  }
  0x15   :  { %6627 = vmatprep.subr.bf16.mxu1 %v9488_v21  ;;  %v9516_v40 = vld [vmem:[%s15254_s1 + $0x1a4] ss:$16 sps:$4 sm:$0xff]   ;;  %v9520_v42 = vld [vmem:[%s15254_s1 + $0x1a0] ss:$16 sps:$4 sm:$0xff]  }
  0x16   :  { %v9518_v41 = vld [vmem:[%s15254_s1 + $0x3a4] ss:$16 sps:$4 sm:$0xff]   ;;  %v9521_v43 = vld [vmem:[%s15254_s1 + $0x3a0] ss:$16 sps:$4 sm:$0xff]  }
  0x17   :  { %6575 = vmatpush1.bf16.msra.mxu0 %v9490_v22  ;;  %v9522_v44 = vld [vmem:[%s15254_s1 + $0x184] ss:$16 sps:$4 sm:$0xff]   ;;  %v9526_v46 = vld [vmem:[%s15254_s1 + $0x180] ss:$16 sps:$4 sm:$0xff]  }
  0x18   :  { %6628 = vmatpush1.bf16.msra.mxu1 %v9491_v23  ;;  %6576 = vmatprep.subr.bf16.mxu0 %v9492_v24  ;;  %v9524_v45 = vld [vmem:[%s15254_s1 + $0x384] ss:$16 sps:$4 sm:$0xff]   ;;  %v9527_v47 = vld [vmem:[%s15254_s1 + $0x380] ss:$16 sps:$4 sm:$0xff]  }
  0x19   :  { %6629 = vmatprep.subr.bf16.mxu1 %v9494_v25  ;;  %v14_v48 = vld [vmem:[%s15255_s0] sm:$0xff] }
  0x1a   :  { %v30_v49 = vld [vmem:[%s15255_s0 + $0x80] sm:$0xff] }
  0x1b   :  { %6577 = vmatpush1.bf16.msra.mxu0 %v9496_v26  ;;  %v9528_v52 = vld [vmem:[%s15254_s1 + $0x164] ss:$16 sps:$4 sm:$0xff]   ;;  %v11172_v53 = vcombine.high %v14_v48, %v30_v49  ;;  %v9532_v56 = vld [vmem:[%s15254_s1 + $0x160] ss:$16 sps:$4 sm:$0xff]   ;;  %v11229_v8 = vcombine.low %v14_v48, %v30_v49  ;;  %v11356_v48 = vld [vmem:[%s15255_s0 + $0x18] sm:$0xff] }
  0x1c   :  { %6630 = vmatpush1.bf16.msra.mxu1 %v9497_v27  ;;  %6578 = vmatprep.subr.bf16.mxu0 %v9498_v28  ;;  %v9530_v54 = vld [vmem:[%s15254_s1 + $0x364] ss:$16 sps:$4 sm:$0xff]   ;;  %v9533_v57 = vld [vmem:[%s15254_s1 + $0x360] ss:$16 sps:$4 sm:$0xff]   ;;  %v11369_v51 = vcombine.high %v11356_v48, %v11365_v50 }
  0x1d   :  { %6631 = vmatprep.subr.bf16.mxu1 %v9500_v29  ;;  %6596 = vmatprep.mubr.bf16.mxu0 %v11172_v53  ;;  %v9534_v58 = vld [vmem:[%s15254_s1 + $0x144] ss:$16 sps:$4 sm:$0xff]   ;;  %v9538_v60 = vld [vmem:[%s15254_s1 + $0x140] ss:$16 sps:$4 sm:$0xff]  }
  0x1e   :  { %v9536_v59 = vld [vmem:[%s15254_s1 + $0x344] ss:$16 sps:$4 sm:$0xff]   ;;  %v9539_v61 = vld [vmem:[%s15254_s1 + $0x340] ss:$16 sps:$4 sm:$0xff]  }
  0x1f   :  { %6579 = vmatpush1.bf16.msra.mxu0 %v9502_v30  ;;  %v9540_v62 = vld [vmem:[%s15254_s1 + $0x124] ss:$16 sps:$4 sm:$0xff]   ;;  %v9544_v0 = vld [vmem:[%s15254_s1 + $0x120] ss:$16 sps:$4 sm:$0xff]   ;;  %v47_v30 = vld [vmem:[%s15255_s0 + $0x108] sm:$0xff] }
  0x20   :  { %6632 = vmatpush1.bf16.msra.mxu1 %v9503_v31  ;;  %6580 = vmatprep.subr.bf16.mxu0 %v9504_v32  ;;  %v9542_v63 = vld [vmem:[%s15254_s1 + $0x324] ss:$16 sps:$4 sm:$0xff]   ;;  %v9545_v1 = vld [vmem:[%s15254_s1 + $0x320] ss:$16 sps:$4 sm:$0xff]   ;;  %v63_v31 = vld [vmem:[%s15255_s0 + $0x188] sm:$0xff] }
  0x21   :  { %6633 = vmatprep.subr.bf16.mxu1 %v9506_v33  ;;  %v9546_v2 = vld [vmem:[%s15254_s1 + $0x104] ss:$16 sps:$4 sm:$0xff]   ;;  %v9550_v4 = vld [vmem:[%s15254_s1 + $0x100] ss:$16 sps:$4 sm:$0xff]  }
  0x22   :  { %v9548_v3 = vld [vmem:[%s15254_s1 + $0x304] ss:$16 sps:$4 sm:$0xff]   ;;  %v9551_v5 = vld [vmem:[%s15254_s1 + $0x300] ss:$16 sps:$4 sm:$0xff]  }
  0x23   :  { %6581 = vmatpush2.bf16.msra.mxu0 %v9508_v34  ;;  %v9554_v6 = vld [vmem:[%s15254_s1 + $0x4e4] ss:$16 sps:$4 sm:$0xff]   ;;  %v9552_v10 = vld [vmem:[%s15254_s1 + $0x4e0] ss:$16 sps:$4 sm:$0xff]  }
  0x24   :  { %6634 = vmatpush2.bf16.msra.mxu1 %v9509_v35  ;;  %6582 = vmatprep.subr.bf16.mxu0 %v9510_v36  ;;  %v9557_v7 = vld [vmem:[%s15254_s1 + $0x6e4] ss:$16 sps:$4 sm:$0xff]   ;;  %v9555_v11 = vld [vmem:[%s15254_s1 + $0x6e0] ss:$16 sps:$4 sm:$0xff]   ;;  %v11308_v35 = vcombine.high %v47_v30, %v63_v31 }
  0x25   :  { %6635 = vmatprep.subr.bf16.mxu1 %v9512_v37  ;;  %v9560_v12 = vld [vmem:[%s15254_s1 + $0x4c4] ss:$16 sps:$4 sm:$0xff]   ;;  %v9558_v14 = vld [vmem:[%s15254_s1 + $0x4c0] ss:$16 sps:$4 sm:$0xff]   ;;  %v11313_v37 = vcombine.low %v47_v30, %v63_v31 }
  0x26   :  { %v9563_v13 = vld [vmem:[%s15254_s1 + $0x6c4] ss:$16 sps:$4 sm:$0xff]   ;;  %v9561_v15 = vld [vmem:[%s15254_s1 + $0x6c0] ss:$16 sps:$4 sm:$0xff]  }
  0x27   :  { %6583 = vmatpush2.bf16.msra.mxu0 %v9514_v38  ;;  %v9566_v16 = vld [vmem:[%s15254_s1 + $0x4a4] ss:$16 sps:$4 sm:$0xff]   ;;  %v9564_v18 = vld [vmem:[%s15254_s1 + $0x4a0] ss:$16 sps:$4 sm:$0xff]  }
  0x28   :  { %6636 = vmatpush2.bf16.msra.mxu1 %v9515_v39  ;;  %6584 = vmatprep.subr.bf16.mxu0 %v9516_v40  ;;  %v9569_v17 = vld [vmem:[%s15254_s1 + $0x6a4] ss:$16 sps:$4 sm:$0xff]   ;;  %v9567_v19 = vld [vmem:[%s15254_s1 + $0x6a0] ss:$16 sps:$4 sm:$0xff]  }
  0x29   :  { %6637 = vmatprep.subr.bf16.mxu1 %v9518_v41  ;;  %v9572_v20 = vld [vmem:[%s15254_s1 + $0x484] ss:$16 sps:$4 sm:$0xff]   ;;  %v9570_v22 = vld [vmem:[%s15254_s1 + $0x480] ss:$16 sps:$4 sm:$0xff]  }
  0x2a   :  { %v9575_v21 = vld [vmem:[%s15254_s1 + $0x684] ss:$16 sps:$4 sm:$0xff]   ;;  %v9573_v23 = vld [vmem:[%s15254_s1 + $0x680] ss:$16 sps:$4 sm:$0xff]  }
  0x2b   :  { %6585 = vmatpush2.bf16.msra.mxu0 %v9520_v42  ;;  %v9578_v24 = vld [vmem:[%s15254_s1 + $0x464] ss:$16 sps:$4 sm:$0xff]   ;;  %v9576_v26 = vld [vmem:[%s15254_s1 + $0x460] ss:$16 sps:$4 sm:$0xff]  }
  0x2c   :  { %6638 = vmatpush2.bf16.msra.mxu1 %v9521_v43  ;;  %6586 = vmatprep.subr.bf16.mxu0 %v9522_v44  ;;  %v9581_v25 = vld [vmem:[%s15254_s1 + $0x664] ss:$16 sps:$4 sm:$0xff]   ;;  %v9579_v27 = vld [vmem:[%s15254_s1 + $0x660] ss:$16 sps:$4 sm:$0xff]  }
  0x2d   :  { %6639 = vmatprep.subr.bf16.mxu1 %v9524_v45  ;;  %v46_v28 = vld [vmem:[%s15255_s0 + $0x100] sm:$0xff]  ;;  %v48_v30 = vld [vmem:[%s15255_s0 + $0x110] sm:$0xff] }
  0x2e   :  { %v62_v29 = vld [vmem:[%s15255_s0 + $0x180] sm:$0xff]  ;;  %v64_v31 = vld [vmem:[%s15255_s0 + $0x190] sm:$0xff] }
  0x2f   :  { %6587 = vmatpush2.bf16.msra.mxu0 %v9526_v46  ;;  %v9584_v32 = vld [vmem:[%s15254_s1 + $0x444] ss:$16 sps:$4 sm:$0xff]   ;;  %v11304_v33 = vcombine.high %v46_v28, %v62_v29  ;;  %v11306_v34 = vcombine.low %v46_v28, %v62_v29  ;;  %v9582_v38 = vld [vmem:[%s15254_s1 + $0x440] ss:$16 sps:$4 sm:$0xff]  }
  0x30   :  { %6640 = vmatpush2.bf16.msra.mxu1 %v9527_v47  ;;  %6588 = vmatprep.subr.bf16.mxu0 %v9528_v52  ;;  %v9587_v36 = vld [vmem:[%s15254_s1 + $0x644] ss:$16 sps:$4 sm:$0xff]   ;;  %v9585_v39 = vld [vmem:[%s15254_s1 + $0x640] ss:$16 sps:$4 sm:$0xff]  }
  0x31   :  { %6641 = vmatprep.subr.bf16.mxu1 %v9530_v54  ;;  %v9590_v40 = vld [vmem:[%s15254_s1 + $0x424] ss:$16 sps:$4 sm:$0xff]   ;;  %v9588_v42 = vld [vmem:[%s15254_s1 + $0x420] ss:$16 sps:$4 sm:$0xff]  }
  0x32   :  { %v9593_v41 = vld [vmem:[%s15254_s1 + $0x624] ss:$16 sps:$4 sm:$0xff]   ;;  %v9591_v43 = vld [vmem:[%s15254_s1 + $0x620] ss:$16 sps:$4 sm:$0xff]  }
  0x33   :  { %6589 = vmatpush2.bf16.msra.mxu0 %v9532_v56  ;;  %v9596_v44 = vld [vmem:[%s15254_s1 + $0x404] ss:$16 sps:$4 sm:$0xff]   ;;  %v9594_v52 = vld [vmem:[%s15254_s1 + $0x400] ss:$16 sps:$4 sm:$0xff]  }
  0x34   :  { %6642 = vmatpush2.bf16.msra.mxu1 %v9533_v57  ;;  %6590 = vmatprep.subr.bf16.mxu0 %v9534_v58  ;;  %v9599_v45 = vld [vmem:[%s15254_s1 + $0x604] ss:$16 sps:$4 sm:$0xff]   ;;  %v9597_v54 = vld [vmem:[%s15254_s1 + $0x600] ss:$16 sps:$4 sm:$0xff]  }
  0x35   :  { %6643 = vmatprep.subr.bf16.mxu1 %v9536_v59  ;;  %v11346_v46 = vld [vmem:[%s15255_s0 + $0x10] sm:$0xff] }
  0x36   :  { %v11351_v47 = vld [vmem:[%s15255_s0 + $0x90] sm:$0xff] }
  0x37   :  { %6591 = vmatpush2.bf16.msra.mxu0 %v9538_v60  ;;  %v11360_v49 = vcombine.high %v11346_v46, %v11351_v47  ;;  %v9602_v56 = vld [vmem:[%s15254_s1 + $0x5e4] ss:$16 sps:$4 sm:$0xff]   ;;  %v9600_v58 = vld [vmem:[%s15254_s1 + $0x5e0] ss:$16 sps:$4 sm:$0xff]  }
  0x38   :  { %6644 = vmatpush2.bf16.msra.mxu1 %v9539_v61  ;;  %6592 = vmatprep.subr.bf16.mxu0 %v9540_v62  ;;  %v9605_v57 = vld [vmem:[%s15254_s1 + $0x7e4] ss:$16 sps:$4 sm:$0xff]   ;;  %v9603_v59 = vld [vmem:[%s15254_s1 + $0x7e0] ss:$16 sps:$4 sm:$0xff]  }
  0x39   :  { %6645 = vmatprep.subr.bf16.mxu1 %v9542_v63  ;;  %v9608_v60 = vld [vmem:[%s15254_s1 + $0x5c4] ss:$16 sps:$4 sm:$0xff]   ;;  %v9606_v62 = vld [vmem:[%s15254_s1 + $0x5c0] ss:$16 sps:$4 sm:$0xff]  }
  0x3a   :  { %v9611_v61 = vld [vmem:[%s15254_s1 + $0x7c4] ss:$16 sps:$4 sm:$0xff]   ;;  %v9609_v63 = vld [vmem:[%s15254_s1 + $0x7c0] ss:$16 sps:$4 sm:$0xff]  }
  0x3b   :  { %6593 = vmatpush2.bf16.msra.mxu0 %v9544_v0  ;;  %v9614_v0 = vld [vmem:[%s15254_s1 + $0x5a4] ss:$16 sps:$4 sm:$0xff]   ;;  %v9648_v28 = vld [vmem:[%s15254_s1 + $0x8e0] ss:$16 sps:$4 sm:$0xff]  }
  0x3c   :  { %6646 = vmatpush2.bf16.msra.mxu1 %v9545_v1  ;;  %6594 = vmatprep.subr.bf16.mxu0 %v9546_v2  ;;  %v9617_v1 = vld [vmem:[%s15254_s1 + $0x7a4] ss:$16 sps:$4 sm:$0xff]   ;;  %v9612_v2 = vld [vmem:[%s15254_s1 + $0x5a0] ss:$16 sps:$4 sm:$0xff]  }
  0x3d   :  { %6647 = vmatprep.subr.bf16.mxu1 %v9548_v3  ;;  %v9615_v3 = vld [vmem:[%s15254_s1 + $0x7a0] ss:$16 sps:$4 sm:$0xff]  }
  0x3e   :  { %v9651_v29 = vld [vmem:[%s15254_s1 + $0xae0] ss:$16 sps:$4 sm:$0xff]  }
  0x3f   :  { %6595 = vmatpush2.bf16.msra.mxu0 %v9550_v4  ;;  %v9620_v4 = vld [vmem:[%s15254_s1 + $0x584] ss:$16 sps:$4 sm:$0xff]  }
  0x40   :  { %6648 = vmatpush2.bf16.msra.mxu1 %v9551_v5  ;;  %6670 = vmatprep.subr.bf16.mxu0 %v9554_v6  ;;  %v9623_v5 = vld [vmem:[%s15254_s1 + $0x784] ss:$16 sps:$4 sm:$0xff]   ;;  %v9618_v6 = vld [vmem:[%s15254_s1 + $0x580] ss:$16 sps:$4 sm:$0xff]  }
  0x41   :  { %6723 = vmatprep.subr.bf16.mxu1 %v9557_v7  ;;  %v9621_v7 = vld [vmem:[%s15254_s1 + $0x780] ss:$16 sps:$4 sm:$0xff]  }
  0x42   :  { %6597 = vmatmul.mubr.bf16.vlgmr.msra.gmra.mxu0 %v11229_v8 }
  0x43   :  { %6650 = vmatmul.mubr.bf16.vlgmr.msra.gmra.mxu1 %v11231_v9  ;;  %6671 = vmatpush1.bf16.msra.mxu0 %v9552_v10  ;;  %v9626_v10 = vld [vmem:[%s15254_s1 + $0x564] ss:$16 sps:$4 sm:$0xff]  }
  0x44   :  { %6724 = vmatpush1.bf16.msra.mxu1 %v9555_v11  ;;  %6672 = vmatprep.subr.bf16.mxu0 %v9560_v12  ;;  %v9629_v11 = vld [vmem:[%s15254_s1 + $0x764] ss:$16 sps:$4 sm:$0xff]   ;;  %v9624_v12 = vld [vmem:[%s15254_s1 + $0x560] ss:$16 sps:$4 sm:$0xff]  }
  0x45   :  { %6725 = vmatprep.subr.bf16.mxu1 %v9563_v13  ;;  %6606 = vmatprep.mubr.bf16.mxu0 %v11304_v33  ;;  %v9627_v13 = vld [vmem:[%s15254_s1 + $0x760] ss:$16 sps:$4 sm:$0xff]  }
  0x46   :  { %6659 = vmatprep.mubr.bf16.mxu1 %v11308_v35 }
  0x47   :  { %6673 = vmatpush1.bf16.msra.mxu0 %v9558_v14  ;;  %v9632_v14 = vld [vmem:[%s15254_s1 + $0x544] ss:$16 sps:$4 sm:$0xff]  }
  0x48   :  { %6726 = vmatpush1.bf16.msra.mxu1 %v9561_v15  ;;  %6674 = vmatprep.subr.bf16.mxu0 %v9566_v16  ;;  %v9635_v15 = vld [vmem:[%s15254_s1 + $0x744] ss:$16 sps:$4 sm:$0xff]   ;;  %v9630_v16 = vld [vmem:[%s15254_s1 + $0x540] ss:$16 sps:$4 sm:$0xff]  }
  0x49   :  { %6727 = vmatprep.subr.bf16.mxu1 %v9569_v17  ;;  %v9633_v17 = vld [vmem:[%s15254_s1 + $0x740] ss:$16 sps:$4 sm:$0xff]  }
  0x4a   :  { %6607 = vmatmul.mubr.bf16.gmra.mxu0 %v11306_v34 }
  0x4b   :  { %6675 = vmatpush1.bf16.msra.mxu0 %v9564_v18  ;;  %6660 = vmatmul.mubr.bf16.gmra.mxu1 %v11313_v37  ;;  %v9638_v18 = vld [vmem:[%s15254_s1 + $0x524] ss:$16 sps:$4 sm:$0xff]  }
  0x4c   :  { %6728 = vmatpush1.bf16.msra.mxu1 %v9567_v19  ;;  %6676 = vmatprep.subr.bf16.mxu0 %v9572_v20  ;;  %v9641_v19 = vld [vmem:[%s15254_s1 + $0x724] ss:$16 sps:$4 sm:$0xff]   ;;  %v9636_v20 = vld [vmem:[%s15254_s1 + $0x520] ss:$16 sps:$4 sm:$0xff]  }
  0x4d   :  { %6729 = vmatprep.subr.bf16.mxu1 %v9575_v21  ;;  %6702 = vmatprep.mubr.bf16.mxu0 %v11360_v49  ;;  %v9639_v21 = vld [vmem:[%s15254_s1 + $0x720] ss:$16 sps:$4 sm:$0xff]  }
  0x4e   :  { %6755 = vmatprep.mubr.bf16.mxu1 %v11369_v51 }
  0x4f   :  { %6677 = vmatpush1.bf16.msra.mxu0 %v9570_v22  ;;  %v9644_v22 = vld [vmem:[%s15254_s1 + $0x504] ss:$16 sps:$4 sm:$0xff]  }
  0x50   :  { %6730 = vmatpush1.bf16.msra.mxu1 %v9573_v23  ;;  %6678 = vmatprep.subr.bf16.mxu0 %v9578_v24  ;;  %v9647_v23 = vld [vmem:[%s15254_s1 + $0x704] ss:$16 sps:$4 sm:$0xff]   ;;  %v9642_v24 = vld [vmem:[%s15254_s1 + $0x500] ss:$16 sps:$4 sm:$0xff]  }
  0x51   :  { %6731 = vmatprep.subr.bf16.mxu1 %v9581_v25  ;;  %v9645_v25 = vld [vmem:[%s15254_s1 + $0x700] ss:$16 sps:$4 sm:$0xff]  }
  0x53   :  { %6679 = vmatpush1.bf16.msra.mxu0 %v9576_v26  ;;  %v9650_v26 = vld [vmem:[%s15254_s1 + $0x8e4] ss:$16 sps:$4 sm:$0xff]  }
  0x54   :  { %6732 = vmatpush1.bf16.msra.mxu1 %v9579_v27  ;;  %6680 = vmatprep.subr.bf16.mxu0 %v9584_v32  ;;  %v9653_v27 = vld [vmem:[%s15254_s1 + $0xae4] ss:$16 sps:$4 sm:$0xff]   ;;  %v11495_v32 = vcombine.low %v11346_v46, %v11351_v47 }
  0x55   :  { %6733 = vmatprep.subr.bf16.mxu1 %v9587_v36  ;;  %v11499_v36 = vcombine.low %v11356_v48, %v11365_v50  ;;  %v9662_v46 = vld [vmem:[%s15254_s1 + $0x8a4] ss:$16 sps:$4 sm:$0xff]   ;;  %v9660_v48 = vld [vmem:[%s15254_s1 + $0x8a0] ss:$16 sps:$4 sm:$0xff]  }
  0x56   :  { %v9665_v47 = vld [vmem:[%s15254_s1 + $0xaa4] ss:$16 sps:$4 sm:$0xff]   ;;  %v9663_v50 = vld [vmem:[%s15254_s1 + $0xaa0] ss:$16 sps:$4 sm:$0xff]  }
  0x57   :  { %6681 = vmatpush1.bf16.msra.mxu0 %v9582_v38  ;;  %v49_v38 = vld [vmem:[%s15255_s0 + $0x118] sm:$0xff] }
  0x58   :  { %6734 = vmatpush1.bf16.msra.mxu1 %v9585_v39  ;;  %6682 = vmatprep.subr.bf16.mxu0 %v9590_v40  ;;  %v65_v39 = vld [vmem:[%s15255_s0 + $0x198] sm:$0xff]  ;;  %v9656_v40 = vld [vmem:[%s15254_s1 + $0x8c4] ss:$16 sps:$4 sm:$0xff]  }
  0x59   :  { %6735 = vmatprep.subr.bf16.mxu1 %v9593_v41  ;;  %v9659_v41 = vld [vmem:[%s15254_s1 + $0xac4] ss:$16 sps:$4 sm:$0xff]  }
  0x5b   :  { %6683 = vmatpush1.bf16.msra.mxu0 %v9588_v42  ;;  %v11513_v42 = vcombine.high %v48_v30, %v64_v31 }
  0x5c   :  { %6736 = vmatpush1.bf16.msra.mxu1 %v9591_v43  ;;  %6684 = vmatprep.subr.bf16.mxu0 %v9596_v44  ;;  %v11515_v43 = vcombine.high %v49_v38, %v65_v39  ;;  %v9654_v44 = vld [vmem:[%s15254_s1 + $0x8c0] ss:$16 sps:$4 sm:$0xff]  }
  0x5d   :  { %6737 = vmatprep.subr.bf16.mxu1 %v9599_v45  ;;  %v9657_v45 = vld [vmem:[%s15254_s1 + $0xac0] ss:$16 sps:$4 sm:$0xff]  }
  0x5f   :  { %6685 = vmatpush1.bf16.msra.mxu0 %v9594_v52  ;;  %v11542_v52 = vld [vmem:[%s15255_s0 + $0x20] sm:$0xff] }
  0x60   :  { %6738 = vmatpush1.bf16.msra.mxu1 %v9597_v54  ;;  %6686 = vmatprep.subr.bf16.mxu0 %v9602_v56  ;;  %v11547_v54 = vld [vmem:[%s15255_s0 + $0xa0] sm:$0xff]  ;;  %v11549_v56 = vcombine.low %v48_v30, %v64_v31 }
  0x61   :  { %6739 = vmatprep.subr.bf16.mxu1 %v9605_v57  ;;  %v11551_v57 = vcombine.low %v49_v38, %v65_v39  ;;  %v9708_v30 = vld [vmem:[%s15254_s1 + $0x9a0] ss:$16 sps:$4 sm:$0xff]   ;;  %v9716_v38 = vld [vmem:[%s15254_s1 + $0x984] ss:$16 sps:$4 sm:$0xff]  }
  0x62   :  { %v9711_v31 = vld [vmem:[%s15254_s1 + $0xba0] ss:$16 sps:$4 sm:$0xff]   ;;  %v9719_v39 = vld [vmem:[%s15254_s1 + $0xb84] ss:$16 sps:$4 sm:$0xff]  }
  0x63   :  { %6687 = vmatpush2.bf16.msra.mxu0 %v9600_v58  ;;  %v11556_v58 = vld [vmem:[%s15255_s0 + $0x28] sm:$0xff] }
  0x64   :  { %6740 = vmatpush2.bf16.msra.mxu1 %v9603_v59  ;;  %6688 = vmatprep.subr.bf16.mxu0 %v9608_v60  ;;  %v11561_v59 = vld [vmem:[%s15255_s0 + $0xa8] sm:$0xff]  ;;  %v9668_v60 = vld [vmem:[%s15254_s1 + $0x884] ss:$16 sps:$4 sm:$0xff]  }
  0x65   :  { %6741 = vmatprep.subr.bf16.mxu1 %v9611_v61  ;;  %v9671_v61 = vld [vmem:[%s15254_s1 + $0xa84] ss:$16 sps:$4 sm:$0xff]  }
  0x67   :  { %6689 = vmatpush2.bf16.msra.mxu0 %v9606_v62  ;;  %v11571_v62 = vcombine.high %v11542_v52, %v11547_v54 }
  0x68   :  { %6742 = vmatpush2.bf16.msra.mxu1 %v9609_v63  ;;  %6690 = vmatprep.subr.bf16.mxu0 %v9614_v0  ;;  %v11575_v63 = vcombine.high %v11556_v58, %v11561_v59  ;;  %v9666_v0 = vld [vmem:[%s15254_s1 + $0x880] ss:$16 sps:$4 sm:$0xff]  }
  0x69   :  { %6743 = vmatprep.subr.bf16.mxu1 %v9617_v1  ;;  %v9669_v1 = vld [vmem:[%s15254_s1 + $0xa80] ss:$16 sps:$4 sm:$0xff]  }
  0x6b   :  { %6691 = vmatpush2.bf16.msra.mxu0 %v9612_v2  ;;  %v9674_v2 = vld [vmem:[%s15254_s1 + $0x864] ss:$16 sps:$4 sm:$0xff]  }
  0x6c   :  { %6744 = vmatpush2.bf16.msra.mxu1 %v9615_v3  ;;  %6692 = vmatprep.subr.bf16.mxu0 %v9620_v4  ;;  %v9677_v3 = vld [vmem:[%s15254_s1 + $0xa64] ss:$16 sps:$4 sm:$0xff]   ;;  %v9672_v4 = vld [vmem:[%s15254_s1 + $0x860] ss:$16 sps:$4 sm:$0xff]  }
  0x6d   :  { %6745 = vmatprep.subr.bf16.mxu1 %v9623_v5  ;;  %v9675_v5 = vld [vmem:[%s15254_s1 + $0xa60] ss:$16 sps:$4 sm:$0xff]  }
  0x6f   :  { %6693 = vmatpush2.bf16.msra.mxu0 %v9618_v6  ;;  %v9680_v6 = vld [vmem:[%s15254_s1 + $0x844] ss:$16 sps:$4 sm:$0xff]  }
  0x70   :  { %6746 = vmatpush2.bf16.msra.mxu1 %v9621_v7  ;;  %6694 = vmatprep.subr.bf16.mxu0 %v9626_v10  ;;  %v9683_v7 = vld [vmem:[%s15254_s1 + $0xa44] ss:$16 sps:$4 sm:$0xff]   ;;  %v9678_v10 = vld [vmem:[%s15254_s1 + $0x840] ss:$16 sps:$4 sm:$0xff]  }
  0x71   :  { %6747 = vmatprep.subr.bf16.mxu1 %v9629_v11  ;;  %v9681_v11 = vld [vmem:[%s15254_s1 + $0xa40] ss:$16 sps:$4 sm:$0xff]  }
  0x73   :  { %6695 = vmatpush2.bf16.msra.mxu0 %v9624_v12  ;;  %v9686_v12 = vld [vmem:[%s15254_s1 + $0x824] ss:$16 sps:$4 sm:$0xff]  }
  0x74   :  { %6748 = vmatpush2.bf16.msra.mxu1 %v9627_v13  ;;  %6696 = vmatprep.subr.bf16.mxu0 %v9632_v14  ;;  %v9689_v13 = vld [vmem:[%s15254_s1 + $0xa24] ss:$16 sps:$4 sm:$0xff]   ;;  %v9684_v14 = vld [vmem:[%s15254_s1 + $0x820] ss:$16 sps:$4 sm:$0xff]  }
  0x75   :  { %6749 = vmatprep.subr.bf16.mxu1 %v9635_v15  ;;  %v9687_v15 = vld [vmem:[%s15254_s1 + $0xa20] ss:$16 sps:$4 sm:$0xff]  }
  0x77   :  { %6697 = vmatpush2.bf16.msra.mxu0 %v9630_v16  ;;  %v9692_v16 = vld [vmem:[%s15254_s1 + $0x804] ss:$16 sps:$4 sm:$0xff]  }
  0x78   :  { %6750 = vmatpush2.bf16.msra.mxu1 %v9633_v17  ;;  %6698 = vmatprep.subr.bf16.mxu0 %v9638_v18  ;;  %v9695_v17 = vld [vmem:[%s15254_s1 + $0xa04] ss:$16 sps:$4 sm:$0xff]   ;;  %v9690_v18 = vld [vmem:[%s15254_s1 + $0x800] ss:$16 sps:$4 sm:$0xff]  }
  0x79   :  { %6751 = vmatprep.subr.bf16.mxu1 %v9641_v19  ;;  %v9693_v19 = vld [vmem:[%s15254_s1 + $0xa00] ss:$16 sps:$4 sm:$0xff]  }
  0x7b   :  { %6699 = vmatpush2.bf16.msra.mxu0 %v9636_v20  ;;  %v9698_v20 = vld [vmem:[%s15254_s1 + $0x9e4] ss:$16 sps:$4 sm:$0xff]  }
  0x7c   :  { %6752 = vmatpush2.bf16.msra.mxu1 %v9639_v21  ;;  %6700 = vmatprep.subr.bf16.mxu0 %v9644_v22  ;;  %v9701_v21 = vld [vmem:[%s15254_s1 + $0xbe4] ss:$16 sps:$4 sm:$0xff]   ;;  %v9696_v22 = vld [vmem:[%s15254_s1 + $0x9e0] ss:$16 sps:$4 sm:$0xff]  }
  0x7d   :  { %6753 = vmatprep.subr.bf16.mxu1 %v9647_v23  ;;  %v9699_v23 = vld [vmem:[%s15254_s1 + $0xbe0] ss:$16 sps:$4 sm:$0xff]  }
  0x7f   :  { %6701 = vmatpush2.bf16.msra.mxu0 %v9642_v24  ;;  %v9704_v24 = vld [vmem:[%s15254_s1 + $0x9c4] ss:$16 sps:$4 sm:$0xff]  }
  0x80   :  { %6754 = vmatpush2.bf16.msra.mxu1 %v9645_v25  ;;  %6776 = vmatprep.subr.bf16.mxu0 %v9650_v26  ;;  %v9707_v25 = vld [vmem:[%s15254_s1 + $0xbc4] ss:$16 sps:$4 sm:$0xff]   ;;  %v9702_v26 = vld [vmem:[%s15254_s1 + $0x9c0] ss:$16 sps:$4 sm:$0xff]  }
  0x81   :  { %6829 = vmatprep.subr.bf16.mxu1 %v9653_v27  ;;  %v9705_v27 = vld [vmem:[%s15254_s1 + $0xbc0] ss:$16 sps:$4 sm:$0xff]  }
  0x82   :  { %6703 = vmatmul.mubr.bf16.vlgmr.msra.gmra.mxu0 %v11495_v32 }
  0x83   :  { %6756 = vmatmul.mubr.bf16.vlgmr.msra.gmra.mxu1 %v11499_v36  ;;  %6777 = vmatpush1.bf16.msra.mxu0 %v9648_v28  ;;  %v9710_v28 = vld [vmem:[%s15254_s1 + $0x9a4] ss:$16 sps:$4 sm:$0xff]  }
  0x84   :  { %6830 = vmatpush1.bf16.msra.mxu1 %v9651_v29  ;;  %6778 = vmatprep.subr.bf16.mxu0 %v9656_v40  ;;  %v9713_v29 = vld [vmem:[%s15254_s1 + $0xba4] ss:$16 sps:$4 sm:$0xff]   ;;  %v9714_v40 = vld [vmem:[%s15254_s1 + $0x980] ss:$16 sps:$4 sm:$0xff]  }
  0x85   :  { %6831 = vmatprep.subr.bf16.mxu1 %v9659_v41  ;;  %6712 = vmatprep.mubr.bf16.mxu0 %v11513_v42  ;;  %v9717_v41 = vld [vmem:[%s15254_s1 + $0xb80] ss:$16 sps:$4 sm:$0xff]  }
  0x86   :  { %6765 = vmatprep.mubr.bf16.mxu1 %v11515_v43 }
  0x87   :  { %6779 = vmatpush1.bf16.msra.mxu0 %v9654_v44  ;;  %v9722_v44 = vld [vmem:[%s15254_s1 + $0x964] ss:$16 sps:$4 sm:$0xff]  }
  0x88   :  { %6832 = vmatpush1.bf16.msra.mxu1 %v9657_v45  ;;  %6780 = vmatprep.subr.bf16.mxu0 %v9662_v46  ;;  %v9725_v45 = vld [vmem:[%s15254_s1 + $0xb64] ss:$16 sps:$4 sm:$0xff]   ;;  %v9720_v46 = vld [vmem:[%s15254_s1 + $0x960] ss:$16 sps:$4 sm:$0xff]  }
  0x89   :  { %6833 = vmatprep.subr.bf16.mxu1 %v9665_v47  ;;  %v9723_v47 = vld [vmem:[%s15254_s1 + $0xb60] ss:$16 sps:$4 sm:$0xff]  }
  0x8a   :  { %6713 = vmatmul.mubr.bf16.gmra.mxu0 %v11549_v56 }
  0x8b   :  { %6766 = vmatmul.mubr.bf16.gmra.mxu1 %v11551_v57  ;;  %6781 = vmatpush1.bf16.msra.mxu0 %v9660_v48  ;;  %v9728_v48 = vld [vmem:[%s15254_s1 + $0x944] ss:$16 sps:$4 sm:$0xff]  }
  0x8c   :  { %6834 = vmatpush1.bf16.msra.mxu1 %v9663_v50  ;;  %6782 = vmatprep.subr.bf16.mxu0 %v9668_v60  ;;  %v9731_v50 = vld [vmem:[%s15254_s1 + $0xb44] ss:$16 sps:$4 sm:$0xff]   ;;  %v9726_v60 = vld [vmem:[%s15254_s1 + $0x940] ss:$16 sps:$4 sm:$0xff]  }
  0x8d   :  { %6835 = vmatprep.subr.bf16.mxu1 %v9671_v61  ;;  %6808 = vmatprep.mubr.bf16.mxu0 %v11571_v62  ;;  %v9729_v61 = vld [vmem:[%s15254_s1 + $0xb40] ss:$16 sps:$4 sm:$0xff]  }
  0x8e   :  { %6861 = vmatprep.mubr.bf16.mxu1 %v11575_v63 }
  0x8f   :  { %6783 = vmatpush1.bf16.msra.mxu0 %v9666_v0  ;;  %v9734_v0 = vld [vmem:[%s15254_s1 + $0x924] ss:$16 sps:$4 sm:$0xff]  }
  0x90   :  { %6836 = vmatpush1.bf16.msra.mxu1 %v9669_v1  ;;  %6784 = vmatprep.subr.bf16.mxu0 %v9674_v2  ;;  %v9737_v1 = vld [vmem:[%s15254_s1 + $0xb24] ss:$16 sps:$4 sm:$0xff]   ;;  %v9732_v2 = vld [vmem:[%s15254_s1 + $0x920] ss:$16 sps:$4 sm:$0xff]  }
  0x91   :  { %6837 = vmatprep.subr.bf16.mxu1 %v9677_v3  ;;  %v9735_v3 = vld [vmem:[%s15254_s1 + $0xb20] ss:$16 sps:$4 sm:$0xff]  }
  0x93   :  { %6785 = vmatpush1.bf16.msra.mxu0 %v9672_v4  ;;  %v9740_v4 = vld [vmem:[%s15254_s1 + $0x904] ss:$16 sps:$4 sm:$0xff]  }
  0x94   :  { %6838 = vmatpush1.bf16.msra.mxu1 %v9675_v5  ;;  %6786 = vmatprep.subr.bf16.mxu0 %v9680_v6  ;;  %v9743_v5 = vld [vmem:[%s15254_s1 + $0xb04] ss:$16 sps:$4 sm:$0xff]   ;;  %v9738_v6 = vld [vmem:[%s15254_s1 + $0x900] ss:$16 sps:$4 sm:$0xff]  }
  0x95   :  { %6839 = vmatprep.subr.bf16.mxu1 %v9683_v7  ;;  %v9741_v7 = vld [vmem:[%s15254_s1 + $0xb00] ss:$16 sps:$4 sm:$0xff]  }
  0x97   :  { %6787 = vmatpush1.bf16.msra.mxu0 %v9678_v10  ;;  %v9746_v10 = vld [vmem:[%s15254_s1 + $0xce4] ss:$16 sps:$4 sm:$0xff]  }
  0x98   :  { %6840 = vmatpush1.bf16.msra.mxu1 %v9681_v11  ;;  %6788 = vmatprep.subr.bf16.mxu0 %v9686_v12  ;;  %v9749_v11 = vld [vmem:[%s15254_s1 + $0xee4] ss:$16 sps:$4 sm:$0xff]  }
  0x99   :  { %6841 = vmatprep.subr.bf16.mxu1 %v9689_v13  ;;  %v50_v12 = vld [vmem:[%s15255_s0 + $0x120] sm:$0xff] }
  0x9a   :  { %v9744_v13 = vld [vmem:[%s15254_s1 + $0xce0] ss:$16 sps:$4 sm:$0xff]  }
  0x9b   :  { %6789 = vmatpush1.bf16.msra.mxu0 %v9684_v14  ;;  %v66_v14 = vld [vmem:[%s15255_s0 + $0x1a0] sm:$0xff] }
  0x9c   :  { %6842 = vmatpush1.bf16.msra.mxu1 %v9687_v15  ;;  %6790 = vmatprep.subr.bf16.mxu0 %v9692_v16  ;;  %v51_v15 = vld [vmem:[%s15255_s0 + $0x128] sm:$0xff]  ;;  %v11751_v16 = vcombine.low %v11542_v52, %v11547_v54  ;;  %v9752_v52 = vld [vmem:[%s15254_s1 + $0xcc4] ss:$16 sps:$4 sm:$0xff]  }
  0x9d   :  { %6843 = vmatprep.subr.bf16.mxu1 %v9695_v17  ;;  %v11755_v17 = vcombine.low %v11556_v58, %v11561_v59  ;;  %v9755_v54 = vld [vmem:[%s15254_s1 + $0xec4] ss:$16 sps:$4 sm:$0xff]   ;;  %v9750_v58 = vld [vmem:[%s15254_s1 + $0xcc0] ss:$16 sps:$4 sm:$0xff]   ;;  %v11772_v59 = vcombine.high %v50_v12, %v66_v14 }
  0x9e   :  { %15306 = vst [vmem:[#allocation2_spill] sm:$0xff] %v11751_v16 }
  0x9f   :  { %6791 = vmatpush1.bf16.msra.mxu0 %v9690_v18  ;;  %15307 = vst [vmem:[#allocation3_spill] sm:$0xff] %v11755_v17  ;;  %v67_v18 = vld [vmem:[%s15255_s0 + $0x1a8] sm:$0xff]  ;;  %15308 = vst [vmem:[#allocation4_spill] sm:$0xff] %v11772_v59 }
  0xa0   :  { %6844 = vmatpush1.bf16.msra.mxu1 %v9693_v19  ;;  %6792 = vmatprep.subr.bf16.mxu0 %v9698_v20  ;;  %v9747_v19 = vld [vmem:[%s15254_s1 + $0xee0] ss:$16 sps:$4 sm:$0xff]   ;;  %v11774_v20 = vcombine.high %v51_v15, %v67_v18 }
  0xa1   :  { %6845 = vmatprep.subr.bf16.mxu1 %v9701_v21  ;;  %v9753_v21 = vld [vmem:[%s15254_s1 + $0xec0] ss:$16 sps:$4 sm:$0xff]  }
  0xa2   :  { %15309 = vst [vmem:[#allocation5_spill] sm:$0xff] %v11774_v20 }
  0xa3   :  { %6793 = vmatpush2.bf16.msra.mxu0 %v9696_v22  ;;  %v9758_v22 = vld [vmem:[%s15254_s1 + $0xca4] ss:$16 sps:$4 sm:$0xff]  }
  0xa4   :  { %6846 = vmatpush2.bf16.msra.mxu1 %v9699_v23  ;;  %6794 = vmatprep.subr.bf16.mxu0 %v9704_v24  ;;  %v9761_v23 = vld [vmem:[%s15254_s1 + $0xea4] ss:$16 sps:$4 sm:$0xff]  }
  0xa5   :  { %6847 = vmatprep.subr.bf16.mxu1 %v9707_v25  ;;  %v11790_v24 = vld [vmem:[%s15255_s0 + $0x30] sm:$0xff] }
  0xa6   :  { %v9756_v25 = vld [vmem:[%s15254_s1 + $0xca0] ss:$16 sps:$4 sm:$0xff]  }
  0xa7   :  { %6795 = vmatpush2.bf16.msra.mxu0 %v9702_v26  ;;  %v11800_v26 = vld [vmem:[%s15255_s0 + $0xb0] sm:$0xff] }
  0xa8   :  { %6848 = vmatpush2.bf16.msra.mxu1 %v9705_v27  ;;  %6796 = vmatprep.subr.bf16.mxu0 %v9710_v28  ;;  %v11805_v27 = vld [vmem:[%s15255_s0 + $0x38] sm:$0xff]  ;;  %v11807_v28 = vcombine.low %v50_v12, %v66_v14  ;;  %v9794_v12 = vld [vmem:[%s15254_s1 + $0xde4] ss:$16 sps:$4 sm:$0xff]   ;;  %v9792_v14 = vld [vmem:[%s15254_s1 + $0xde0] ss:$16 sps:$4 sm:$0xff]  }
  0xa9   :  { %6849 = vmatprep.subr.bf16.mxu1 %v9713_v29  ;;  %v11809_v29 = vcombine.low %v51_v15, %v67_v18  ;;  %v9795_v15 = vld [vmem:[%s15254_s1 + $0xfe0] ss:$16 sps:$4 sm:$0xff]   ;;  %v9800_v18 = vld [vmem:[%s15254_s1 + $0xdc4] ss:$16 sps:$4 sm:$0xff]  }
  0xaa   :  { %15310 = vst [vmem:[#allocation6_spill] sm:$0xff] %v11807_v28 }
  0xab   :  { %6797 = vmatpush2.bf16.msra.mxu0 %v9708_v30  ;;  %15311 = vst [vmem:[#allocation7_spill] sm:$0xff] %v11809_v29  ;;  %v11814_v30 = vld [vmem:[%s15255_s0 + $0xb8] sm:$0xff] }
  0xac   :  { %6850 = vmatpush2.bf16.msra.mxu1 %v9711_v31  ;;  %6798 = vmatprep.subr.bf16.mxu0 %v9716_v38  ;;  %v9759_v31 = vld [vmem:[%s15254_s1 + $0xea0] ss:$16 sps:$4 sm:$0xff]   ;;  %v9764_v38 = vld [vmem:[%s15254_s1 + $0xc84] ss:$16 sps:$4 sm:$0xff]  }
  0xad   :  { %6851 = vmatprep.subr.bf16.mxu1 %v9719_v39  ;;  %v9767_v39 = vld [vmem:[%s15254_s1 + $0xe84] ss:$16 sps:$4 sm:$0xff]  }
  0xaf   :  { %6799 = vmatpush2.bf16.msra.mxu0 %v9714_v40  ;;  %v11827_v40 = vcombine.high %v11790_v24, %v11800_v26 }
  0xb0   :  { %6852 = vmatpush2.bf16.msra.mxu1 %v9717_v41  ;;  %6800 = vmatprep.subr.bf16.mxu0 %v9722_v44  ;;  %v11831_v41 = vcombine.high %v11805_v27, %v11814_v30  ;;  %v9762_v44 = vld [vmem:[%s15254_s1 + $0xc80] ss:$16 sps:$4 sm:$0xff]  }
  0xb1   :  { %6853 = vmatprep.subr.bf16.mxu1 %v9725_v45  ;;  %15312 = vst [vmem:[#allocation8_spill] sm:$0xff] %v11827_v40  ;;  %v9765_v45 = vld [vmem:[%s15254_s1 + $0xe80] ss:$16 sps:$4 sm:$0xff]  }
  0xb2   :  { %15313 = vst [vmem:[#allocation9_spill] sm:$0xff] %v11831_v41 }
  0xb3   :  { %6801 = vmatpush2.bf16.msra.mxu0 %v9720_v46  ;;  %v9770_v46 = vld [vmem:[%s15254_s1 + $0xc64] ss:$16 sps:$4 sm:$0xff]  }
  0xb4   :  { %6854 = vmatpush2.bf16.msra.mxu1 %v9723_v47  ;;  %6802 = vmatprep.subr.bf16.mxu0 %v9728_v48  ;;  %v9773_v47 = vld [vmem:[%s15254_s1 + $0xe64] ss:$16 sps:$4 sm:$0xff]   ;;  %v9768_v48 = vld [vmem:[%s15254_s1 + $0xc60] ss:$16 sps:$4 sm:$0xff]  }
  0xb5   :  { %6855 = vmatprep.subr.bf16.mxu1 %v9731_v50  ;;  %v9771_v50 = vld [vmem:[%s15254_s1 + $0xe60] ss:$16 sps:$4 sm:$0xff]  }
  0xb7   :  { %6803 = vmatpush2.bf16.msra.mxu0 %v9726_v60  ;;  %v9776_v60 = vld [vmem:[%s15254_s1 + $0xc44] ss:$16 sps:$4 sm:$0xff]  }
  0xb8   :  { %6856 = vmatpush2.bf16.msra.mxu1 %v9729_v61  ;;  %6804 = vmatprep.subr.bf16.mxu0 %v9734_v0  ;;  %v9779_v61 = vld [vmem:[%s15254_s1 + $0xe44] ss:$16 sps:$4 sm:$0xff]   ;;  %v9774_v0 = vld [vmem:[%s15254_s1 + $0xc40] ss:$16 sps:$4 sm:$0xff]  }
  0xb9   :  { %6857 = vmatprep.subr.bf16.mxu1 %v9737_v1  ;;  %v9777_v1 = vld [vmem:[%s15254_s1 + $0xe40] ss:$16 sps:$4 sm:$0xff]  }
  0xbb   :  { %6805 = vmatpush2.bf16.msra.mxu0 %v9732_v2  ;;  %v9782_v2 = vld [vmem:[%s15254_s1 + $0xc24] ss:$16 sps:$4 sm:$0xff]  }
  0xbc   :  { %6858 = vmatpush2.bf16.msra.mxu1 %v9735_v3  ;;  %6806 = vmatprep.subr.bf16.mxu0 %v9740_v4  ;;  %v9785_v3 = vld [vmem:[%s15254_s1 + $0xe24] ss:$16 sps:$4 sm:$0xff]   ;;  %v9780_v4 = vld [vmem:[%s15254_s1 + $0xc20] ss:$16 sps:$4 sm:$0xff]  }
  0xbd   :  { %6859 = vmatprep.subr.bf16.mxu1 %v9743_v5  ;;  %v9783_v5 = vld [vmem:[%s15254_s1 + $0xe20] ss:$16 sps:$4 sm:$0xff]  }
  0xbf   :  { %6807 = vmatpush2.bf16.msra.mxu0 %v9738_v6  ;;  %v9788_v6 = vld [vmem:[%s15254_s1 + $0xc04] ss:$16 sps:$4 sm:$0xff]  }
  0xc0   :  { %6860 = vmatpush2.bf16.msra.mxu1 %v9741_v7  ;;  %6882 = vmatprep.subr.bf16.mxu0 %v9746_v10  ;;  %v9791_v7 = vld [vmem:[%s15254_s1 + $0xe04] ss:$16 sps:$4 sm:$0xff]   ;;  %v9786_v10 = vld [vmem:[%s15254_s1 + $0xc00] ss:$16 sps:$4 sm:$0xff]  }
  0xc1   :  { %6935 = vmatprep.subr.bf16.mxu1 %v9749_v11  ;;  %v9789_v11 = vld [vmem:[%s15254_s1 + $0xe00] ss:$16 sps:$4 sm:$0xff]  }
  0xc2   :  { %6809 = vmatmul.mubr.bf16.vlgmr.msra.gmra.mxu0 %v11751_v16  ;;  %v10394_v16 = vld [vmem:[%s15254_s1 + $0x56c] ss:$16 sps:$4 sm:$0xff]  }
  0xc3   :  { %6862 = vmatmul.mubr.bf16.vlgmr.msra.gmra.mxu1 %v11755_v17  ;;  %6883 = vmatpush1.bf16.msra.mxu0 %v9744_v13  ;;  %v9797_v13 = vld [vmem:[%s15254_s1 + $0xfe4] ss:$16 sps:$4 sm:$0xff]   ;;  %v10389_v17 = vld [vmem:[%s15254_s1 + $0x788] ss:$16 sps:$4 sm:$0xff]  }
  0xc4   :  { %6936 = vmatpush1.bf16.msra.mxu1 %v9747_v19  ;;  %6884 = vmatprep.subr.bf16.mxu0 %v9752_v52  ;;  %v9803_v19 = vld [vmem:[%s15254_s1 + $0xfc4] ss:$16 sps:$4 sm:$0xff]   ;;  %v9798_v52 = vld [vmem:[%s15254_s1 + $0xdc0] ss:$16 sps:$4 sm:$0xff]  }
  0xc5   :  { %6937 = vmatprep.subr.bf16.mxu1 %v9755_v54  ;;  %6818 = vmatprep.mubr.bf16.mxu0 %v11772_v59  ;;  %v9801_v54 = vld [vmem:[%s15254_s1 + $0xfc0] ss:$16 sps:$4 sm:$0xff]   ;;  %v10388_v59 = vld [vmem:[%s15254_s1 + $0x58c] ss:$16 sps:$4 sm:$0xff]  }
  0xc6   :  { %6871 = vmatprep.mubr.bf16.mxu1 %v11774_v20 }
  0xc7   :  { %6885 = vmatpush1.bf16.msra.mxu0 %v9750_v58  ;;  %v9806_v58 = vld [vmem:[%s15254_s1 + $0xda4] ss:$16 sps:$4 sm:$0xff]  }
  0xc8   :  { %6938 = vmatpush1.bf16.msra.mxu1 %v9753_v21  ;;  %6886 = vmatprep.subr.bf16.mxu0 %v9758_v22  ;;  %v9809_v21 = vld [vmem:[%s15254_s1 + $0xfa4] ss:$16 sps:$4 sm:$0xff]   ;;  %v9804_v22 = vld [vmem:[%s15254_s1 + $0xda0] ss:$16 sps:$4 sm:$0xff]  }
  0xc9   :  { %6939 = vmatprep.subr.bf16.mxu1 %v9761_v23  ;;  %v9807_v23 = vld [vmem:[%s15254_s1 + $0xfa0] ss:$16 sps:$4 sm:$0xff]  }
  0xca   :  { %6819 = vmatmul.mubr.bf16.gmra.mxu0 %v11807_v28  ;;  %v10380_v28 = vld [vmem:[%s15254_s1 + $0x5a8] ss:$16 sps:$4 sm:$0xff]  }
  0xcb   :  { %6872 = vmatmul.mubr.bf16.gmra.mxu1 %v11809_v29  ;;  %6887 = vmatpush1.bf16.msra.mxu0 %v9756_v25  ;;  %v9812_v25 = vld [vmem:[%s15254_s1 + $0xd84] ss:$16 sps:$4 sm:$0xff]   ;;  %v10382_v29 = vld [vmem:[%s15254_s1 + $0x5ac] ss:$16 sps:$4 sm:$0xff]  }
  0xcc   :  { %6940 = vmatpush1.bf16.msra.mxu1 %v9759_v31  ;;  %6888 = vmatprep.subr.bf16.mxu0 %v9764_v38  ;;  %v9815_v31 = vld [vmem:[%s15254_s1 + $0xf84] ss:$16 sps:$4 sm:$0xff]   ;;  %v9810_v38 = vld [vmem:[%s15254_s1 + $0xd80] ss:$16 sps:$4 sm:$0xff]  }
  0xcd   :  { %6941 = vmatprep.subr.bf16.mxu1 %v9767_v39  ;;  %6914 = vmatprep.mubr.bf16.mxu0 %v11827_v40  ;;  %v9813_v39 = vld [vmem:[%s15254_s1 + $0xf80] ss:$16 sps:$4 sm:$0xff]   ;;  %v10374_v40 = vld [vmem:[%s15254_s1 + $0x5c8] ss:$16 sps:$4 sm:$0xff]  }
  0xce   :  { %6967 = vmatprep.mubr.bf16.mxu1 %v11831_v41  ;;  %v10365_v41 = vld [vmem:[%s15254_s1 + $0x608] ss:$16 sps:$4 sm:$0xff]  }
  0xcf   :  { %6889 = vmatpush1.bf16.msra.mxu0 %v9762_v44  ;;  %v9818_v44 = vld [vmem:[%s15254_s1 + $0xd64] ss:$16 sps:$4 sm:$0xff]  }
  0xd0   :  { %6942 = vmatpush1.bf16.msra.mxu1 %v9765_v45  ;;  %6890 = vmatprep.subr.bf16.mxu0 %v9770_v46  ;;  %v9821_v45 = vld [vmem:[%s15254_s1 + $0xf64] ss:$16 sps:$4 sm:$0xff]   ;;  %v9816_v46 = vld [vmem:[%s15254_s1 + $0xd60] ss:$16 sps:$4 sm:$0xff]  }
  0xd1   :  { %6943 = vmatprep.subr.bf16.mxu1 %v9773_v47  ;;  %v9819_v47 = vld [vmem:[%s15254_s1 + $0xf60] ss:$16 sps:$4 sm:$0xff]  }
  0xd3   :  { %6891 = vmatpush1.bf16.msra.mxu0 %v9768_v48  ;;  %v9824_v48 = vld [vmem:[%s15254_s1 + $0xd44] ss:$16 sps:$4 sm:$0xff]  }
  0xd4   :  { %6944 = vmatpush1.bf16.msra.mxu1 %v9771_v50  ;;  %6892 = vmatprep.subr.bf16.mxu0 %v9776_v60  ;;  %v9827_v50 = vld [vmem:[%s15254_s1 + $0xf44] ss:$16 sps:$4 sm:$0xff]   ;;  %v9822_v60 = vld [vmem:[%s15254_s1 + $0xd40] ss:$16 sps:$4 sm:$0xff]  }
  0xd5   :  { %6945 = vmatprep.subr.bf16.mxu1 %v9779_v61  ;;  %v9825_v61 = vld [vmem:[%s15254_s1 + $0xf40] ss:$16 sps:$4 sm:$0xff]  }
  0xd7   :  { %6893 = vmatpush1.bf16.msra.mxu0 %v9774_v0  ;;  %v1104_v0 = vlaneseq }
  0xd8   :  { %6946 = vmatpush1.bf16.msra.mxu1 %v9777_v1  ;;  %6894 = vmatprep.subr.bf16.mxu0 %v9782_v2  ;;  %v9830_v1 = vld [vmem:[%s15254_s1 + $0xd24] ss:$16 sps:$4 sm:$0xff]  }
  0xd9   :  { %6947 = vmatprep.subr.bf16.mxu1 %v9785_v3  ;;  %v9833_v2 = vld [vmem:[%s15254_s1 + $0xf24] ss:$16 sps:$4 sm:$0xff]   ;;  %v9828_v3 = vld [vmem:[%s15254_s1 + $0xd20] ss:$16 sps:$4 sm:$0xff]  }
  0xdb   :  { %6895 = vmatpush1.bf16.msra.mxu0 %v9780_v4  ;;  %v9831_v4 = vld [vmem:[%s15254_s1 + $0xf20] ss:$16 sps:$4 sm:$0xff]  }
  0xdc   :  { %6948 = vmatpush1.bf16.msra.mxu1 %v9783_v5  ;;  %6896 = vmatprep.subr.bf16.mxu0 %v9788_v6  ;;  %v11975_v5 = vshrl.u32 %v1104_v0, 7  ;;  %v9836_v6 = vld [vmem:[%s15254_s1 + $0xd04] ss:$16 sps:$4 sm:$0xff]  }
  0xdd   :  { %6949 = vmatprep.subr.bf16.mxu1 %v9791_v7  ;;  %v9839_v7 = vld [vmem:[%s15254_s1 + $0xf04] ss:$16 sps:$4 sm:$0xff]  }
  0xde   :  { %15314 = vst [vmem:[#allocation10_spill] sm:$0xff] %v11975_v5  ;;  %v12058_v0 = vld [vmem:[%s15255_s0 + $0x40] sm:$0xff] }
  0xdf   :  { %6897 = vmatpush1.bf16.msra.mxu0 %v9786_v10  ;;  %v9834_v10 = vld [vmem:[%s15254_s1 + $0xd00] ss:$16 sps:$4 sm:$0xff]  }
  0xe0   :  { %6950 = vmatpush1.bf16.msra.mxu1 %v9789_v11  ;;  %6898 = vmatprep.subr.bf16.mxu0 %v9794_v12  ;;  %v9837_v11 = vld [vmem:[%s15254_s1 + $0xf00] ss:$16 sps:$4 sm:$0xff]  }
  0xe1   :  { %6951 = vmatprep.subr.bf16.mxu1 %v9797_v13  ;;  %v1102_v12 = vld [vmem:[%s15256_s2] sm:$0xf]  ;;  %v1106_v13 = vsub.s32 0, %v11975_v5 }
  0xe3   :  { %6899 = vmatpush2.bf16.msra.mxu0 %v9792_v14  ;;  %v9842_v14 = vld [vmem:[%s15254_s1 + $0x10e4] ss:$16 sps:$4 sm:$0xff]  }
  0xe4   :  { %6952 = vmatpush2.bf16.msra.mxu1 %v9795_v15  ;;  %6900 = vmatprep.subr.bf16.mxu0 %v9800_v18  ;;  %v9845_v15 = vld [vmem:[%s15254_s1 + $0x12e4] ss:$16 sps:$4 sm:$0xff]  }
  0xe5   :  { %6953 = vmatprep.subr.bf16.mxu1 %v9803_v19  ;;  %v52_v18 = vld [vmem:[%s15255_s0 + $0x130] sm:$0xff] }
  0xe6   :  { %v9840_v19 = vld [vmem:[%s15254_s1 + $0x10e0] ss:$16 sps:$4 sm:$0xff]  }
  0xe7   :  { %6901 = vmatpush2.bf16.msra.mxu0 %v9798_v52  ;;  %v1110_v52 = vsub.s32 1, %v11975_v5  ;;  %v10364_v5 = vld [vmem:[%s15254_s1 + $0x40c] ss:$16 sps:$4 sm:$0xff]  }
  0xe8   :  { %6954 = vmatpush2.bf16.msra.mxu1 %v9801_v54  ;;  %6902 = vmatprep.subr.bf16.mxu0 %v9806_v58  ;;  %v68_v54 = vld [vmem:[%s15255_s0 + $0x1b0] sm:$0xff]  ;;  %v53_v58 = vld [vmem:[%s15255_s0 + $0x138] sm:$0xff] }
  0xe9   :  { %6955 = vmatprep.subr.bf16.mxu1 %v9809_v21  ;;  %v12014_v21 = vcombine.low %v11790_v24, %v11800_v26  ;;  %v9848_v24 = vld [vmem:[%s15254_s1 + $0x10c4] ss:$16 sps:$4 sm:$0xff]  }
  0xea   :  { %v9851_v26 = vld [vmem:[%s15254_s1 + $0x12c4] ss:$16 sps:$4 sm:$0xff]  }
  0xeb   :  { %6903 = vmatpush2.bf16.msra.mxu0 %v9804_v22  ;;  %15315 = vst [vmem:[#allocation11_spill] sm:$0xff] %v12014_v21  ;;  %v12018_v22 = vcombine.low %v11805_v27, %v11814_v30  ;;  %v12034_v27 = vrot.slane %v1102_v12, %v1110_v52  ;;  %v9846_v30 = vld [vmem:[%s15254_s1 + $0x10c0] ss:$16 sps:$4 sm:$0xff]   ;;  %v9863_v52 = vld [vmem:[%s15254_s1 + $0x1284] ss:$16 sps:$4 sm:$0xff]  }
  0xec   :  { %6956 = vmatpush2.bf16.msra.mxu1 %v9807_v23  ;;  %6904 = vmatprep.subr.bf16.mxu0 %v9812_v25  ;;  %v69_v23 = vld [vmem:[%s15255_s0 + $0x1b8] sm:$0xff]  ;;  %v12023_v25 = vrot.slane %v1102_v12, %v1106_v13  ;;  %v12085_v12 = vld [vmem:[%s15255_s0 + $0xc8] sm:$0xff] }
  0xed   :  { %6957 = vmatprep.subr.bf16.mxu1 %v9815_v31  ;;  %15316 = vst [vmem:[#allocation12_spill] sm:$0xff] %v12018_v22  ;;  %v9843_v31 = vld [vmem:[%s15254_s1 + $0x12e0] ss:$16 sps:$4 sm:$0xff]  }
  0xef   :  { %6905 = vmatpush2.bf16.msra.mxu0 %v9810_v38  ;;  %v12039_v38 = vcombine.high %v52_v18, %v68_v54 }
  0xf0   :  { %6958 = vmatpush2.bf16.msra.mxu1 %v9813_v39  ;;  %6906 = vmatprep.subr.bf16.mxu0 %v9818_v44  ;;  %v12041_v39 = vcombine.high %v53_v58, %v69_v23 }
  0xf1   :  { %6959 = vmatprep.subr.bf16.mxu1 %v9821_v45  ;;  %15317 = vst [vmem:[#allocation13_spill] sm:$0xff] %v12039_v38 }
  0xf2   :  { %15318 = vst [vmem:[#allocation14_spill] sm:$0xff] %v12041_v39 }
  0xf3   :  { %6907 = vmatpush2.bf16.msra.mxu0 %v9816_v46  ;;  %v9849_v46 = vld [vmem:[%s15254_s1 + $0x12c0] ss:$16 sps:$4 sm:$0xff]  }
  0xf4   :  { %6960 = vmatpush2.bf16.msra.mxu1 %v9819_v47  ;;  %6908 = vmatprep.subr.bf16.mxu0 %v9824_v48  ;;  %v9854_v48 = vld [vmem:[%s15254_s1 + $0x10a4] ss:$16 sps:$4 sm:$0xff]  }
  0xf5   :  { %6961 = vmatprep.subr.bf16.mxu1 %v9827_v50 }
  0xf7   :  { %6909 = vmatpush2.bf16.msra.mxu0 %v9822_v60 }
  0xf8   :  { %6962 = vmatpush2.bf16.msra.mxu1 %v9825_v61  ;;  %6910 = vmatprep.subr.bf16.mxu0 %v9830_v1  ;;  %v9857_v61 = vld [vmem:[%s15254_s1 + $0x12a4] ss:$16 sps:$4 sm:$0xff]  }
  0xf9   :  { %6963 = vmatprep.subr.bf16.mxu1 %v9833_v2 }
  0xfb   :  { %6911 = vmatpush2.bf16.msra.mxu0 %v9828_v3  ;;  %v9852_v3 = vld [vmem:[%s15254_s1 + $0x10a0] ss:$16 sps:$4 sm:$0xff]  }
  0xfc   :  { %6964 = vmatpush2.bf16.msra.mxu1 %v9831_v4  ;;  %6912 = vmatprep.subr.bf16.mxu0 %v9836_v6  ;;  %v12071_v4 = vld [vmem:[%s15255_s0 + $0xc0] sm:$0xff]  ;;  %v12076_v6 = vld [vmem:[%s15255_s0 + $0x48] sm:$0xff] }
  0xfd   :  { %6965 = vmatprep.subr.bf16.mxu1 %v9839_v7 }
  0xff   :  { %6913 = vmatpush2.bf16.msra.mxu0 %v9834_v10  ;;  %v12078_v10 = vcombine.low %v52_v18, %v68_v54  ;;  %v9860_v18 = vld [vmem:[%s15254_s1 + $0x1084] ss:$16 sps:$4 sm:$0xff]  }
 0x100   :  { %6966 = vmatpush2.bf16.msra.mxu1 %v9837_v11  ;;  %6988 = vmatprep.subr.bf16.mxu0 %v9842_v14  ;;  %v12080_v11 = vcombine.low %v53_v58, %v69_v23  ;;  %v12103_v58 = vcombine.high %v12058_v0, %v12071_v4  ;;  %v12107_v23 = vcombine.high %v12076_v6, %v12085_v12 }
 0x101   :  { %7041 = vmatprep.subr.bf16.mxu1 %v9845_v15  ;;  %15319 = vst [vmem:[#allocation15_spill] sm:$0xff] %v12078_v10  ;;  %v9855_v15 = vld [vmem:[%s15254_s1 + $0x12a0] ss:$16 sps:$4 sm:$0xff]  }
 0x102   :  { %v6598_v44 = vpop.f32.mrf.mxu0  ;;  %6915 = vmatmul.mubr.bf16.vlgmr.msra.gmra.mxu0 %v12014_v21  ;;  %15320 = vst [vmem:[#allocation16_spill] sm:$0xff] %v12080_v11  ;;  %15321 = vst [vmem:[#allocation17_spill] sm:$0xff] %v12103_v58 }
 0x103   :  { %v6651_v45 = vpop.f32.mrf.mxu1  ;;  %6968 = vmatmul.mubr.bf16.vlgmr.msra.gmra.mxu1 %v12018_v22  ;;  %v6599_v47 = vadd.f32 %v6598_v44, %v12023_v25  ;;  %6989 = vmatpush1.bf16.msra.mxu0 %v9840_v19  ;;  %15322 = vst [vmem:[#allocation18_spill] sm:$0xff] %v12107_v23  ;;  %v9864_v44 = vld [vmem:[%s15254_s1 + $0x1060] ss:$16 sps:$4 sm:$0xff]  }
 0x104   :  { %7042 = vmatpush1.bf16.msra.mxu1 %v9843_v31  ;;  %v6600_v50 = vpop.f32.mrf.mxu0  ;;  %6990 = vmatprep.subr.bf16.mxu0 %v9848_v24  ;;  %v9858_v31 = vld [vmem:[%s15254_s1 + $0x1080] ss:$16 sps:$4 sm:$0xff]  }
 0x105   :  { %v6653_v60 = vpop.f32.mrf.mxu1  ;;  %7043 = vmatprep.subr.bf16.mxu1 %v9851_v26  ;;  %v12060_v1 = vadd.f32 %v6651_v45, %v6599_v47  ;;  %v6601_v2 = vadd.f32 %v6600_v50, %v12034_v27  ;;  %6924 = vmatprep.mubr.bf16.mxu0 %v12039_v38  ;;  %v9861_v24 = vld [vmem:[%s15254_s1 + $0x1280] ss:$16 sps:$4 sm:$0xff]   ;;  %v9866_v26 = vld [vmem:[%s15254_s1 + $0x1064] ss:$16 sps:$4 sm:$0xff]  }
 0x106   :  { %6977 = vmatprep.mubr.bf16.mxu1 %v12041_v39  ;;  %v6602_v7 = vpop.f32.mrf.mxu0  ;;  %v9867_v45 = vld [vmem:[%s15254_s1 + $0x1260] ss:$16 sps:$4 sm:$0xff]   ;;  %v9875_v50 = vld [vmem:[%s15254_s1 + $0x1244] ss:$16 sps:$4 sm:$0xff]  }
 0x107   :  { %v12087_v13 = vadd.f32 %v6653_v60, %v6601_v2  ;;  %v6603_v14 = vadd.f32 %v6602_v7, %v12023_v25  ;;  %6991 = vmatpush1.bf16.msra.mxu0 %v9846_v30  ;;  %v6655_v19 = vpop.f32.mrf.mxu1  ;;  %v9869_v30 = vld [vmem:[%s15254_s1 + $0x1264] ss:$16 sps:$4 sm:$0xff]   ;;  %v9870_v2 = vld [vmem:[%s15254_s1 + $0x1040] ss:$16 sps:$4 sm:$0xff]  }
 0x108   :  { %7044 = vmatpush1.bf16.msra.mxu1 %v9849_v46  ;;  %6992 = vmatprep.subr.bf16.mxu0 %v9854_v48  ;;  %v12131_v46 = vpop.f32.mrf.mxu0  ;;  %v9872_v48 = vld [vmem:[%s15254_s1 + $0x1044] ss:$16 sps:$4 sm:$0xff]  }
 0x109   :  { %7045 = vmatprep.subr.bf16.mxu1 %v9857_v61  ;;  %v12099_v54 = vadd.f32 %v6655_v19, %v6603_v14  ;;  %v12133_v47 = vpop.f32.mrf.mxu1  ;;  %v9878_v7 = vld [vmem:[%s15254_s1 + $0x1024] ss:$16 sps:$4 sm:$0xff]  }
 0x10a   :  { %6925 = vmatmul.mubr.bf16.gmra.mxu0 %v12078_v10  ;;  %v6608_v60 = vpop.f32.mrf.mxu0  ;;  %v9965_v39 = vld [vmem:[%s15254_s1 + $0x1664] ss:$16 sps:$4 sm:$0xff]  }
 0x10b   :  { %6978 = vmatmul.mubr.bf16.gmra.mxu1 %v12080_v11  ;;  %6993 = vmatpush1.bf16.msra.mxu0 %v9852_v3  ;;  %v6661_v61 = vpop.f32.mrf.mxu1  ;;  %v9873_v3 = vld [vmem:[%s15254_s1 + $0x1240] ss:$16 sps:$4 sm:$0xff]   ;;  %v6609_v14 = vadd.f32 %v6608_v60, %v12023_v25  ;;  %v9953_v11 = vld [vmem:[%s15254_s1 + $0x16a4] ss:$16 sps:$4 sm:$0xff]  }
 0x10c   :  { %7046 = vmatpush1.bf16.msra.mxu1 %v9855_v15  ;;  %6994 = vmatprep.subr.bf16.mxu0 %v9860_v18  ;;  %v9881_v15 = vld [vmem:[%s15254_s1 + $0x1224] ss:$16 sps:$4 sm:$0xff]   ;;  %v6610_v19 = vpop.f32.mrf.mxu0 }
 0x10d   :  { %7047 = vmatprep.subr.bf16.mxu1 %v9863_v52  ;;  %7020 = vmatprep.mubr.bf16.mxu0 %v12103_v58  ;;  %v6663_v18 = vpop.f32.mrf.mxu1  ;;  %v6611_v52 = vadd.f32 %v6610_v19, %v12034_v27  ;;  %v9896_v19 = vld [vmem:[%s15254_s1 + $0x11c4] ss:$16 sps:$4 sm:$0xff]  }
 0x10e   :  { %7073 = vmatprep.mubr.bf16.mxu1 %v12107_v23  ;;  %v9950_v58 = vld [vmem:[%s15254_s1 + $0x14a4] ss:$16 sps:$4 sm:$0xff]  }
 0x10f   :  { %6995 = vmatpush1.bf16.msra.mxu0 %v9858_v31  ;;  %v12155_v31 = vadd.f32 %v6661_v61, %v6609_v14  ;;  %v6665_v60 = vpop.f32.mrf.mxu1  ;;  %v9888_v14 = vld [vmem:[%s15254_s1 + $0x11e0] ss:$16 sps:$4 sm:$0xff]  }
 0x110   :  { %7048 = vmatpush1.bf16.msra.mxu1 %v9861_v24  ;;  %6996 = vmatprep.subr.bf16.mxu0 %v9866_v26  ;;  %v9876_v24 = vld [vmem:[%s15254_s1 + $0x1020] ss:$16 sps:$4 sm:$0xff]   ;;  %v6612_v26 = vpop.f32.mrf.mxu0 }
 0x111   :  { %7049 = vmatprep.subr.bf16.mxu1 %v9869_v30  ;;  %v9879_v30 = vld [vmem:[%s15254_s1 + $0x1220] ss:$16 sps:$4 sm:$0xff]  }
 0x113   :  { %6997 = vmatpush1.bf16.msra.mxu0 %v9864_v44  ;;  %v6613_v44 = vadd.f32 %v6612_v26, %v12023_v25  ;;  %v9885_v25 = vld [vmem:[%s15254_s1 + $0x1200] ss:$16 sps:$4 sm:$0xff]   ;;  %v9902_v26 = vld [vmem:[%s15254_s1 + $0x11a4] ss:$16 sps:$4 sm:$0xff]  }
 0x114   :  { %7050 = vmatpush1.bf16.msra.mxu1 %v9867_v45  ;;  %6998 = vmatprep.subr.bf16.mxu0 %v9872_v48  ;;  %v12164_v45 = vadd.f32 %v6663_v18, %v6611_v52  ;;  %v9884_v48 = vld [vmem:[%s15254_s1 + $0x1004] ss:$16 sps:$4 sm:$0xff]   ;;  %v9894_v52 = vld [vmem:[%s15254_s1 + $0x11c0] ss:$16 sps:$4 sm:$0xff]  }
 0x115   :  { %7051 = vmatprep.subr.bf16.mxu1 %v9875_v50  ;;  %v9887_v50 = vld [vmem:[%s15254_s1 + $0x1204] ss:$16 sps:$4 sm:$0xff]   ;;  %v12172_v61 = vadd.f32 %v6665_v60, %v6613_v44  ;;  %v9900_v44 = vld [vmem:[%s15254_s1 + $0x11a0] ss:$16 sps:$4 sm:$0xff]  }
 0x116   :  { %v9899_v18 = vld [vmem:[%s15254_s1 + $0x13c4] ss:$16 sps:$4 sm:$0xff]  }
 0x117   :  { %6999 = vmatpush1.bf16.msra.mxu0 %v9870_v2  ;;  %v9882_v2 = vld [vmem:[%s15254_s1 + $0x1000] ss:$16 sps:$4 sm:$0xff]   ;;  %v9911_v60 = vld [vmem:[%s15254_s1 + $0x1384] ss:$16 sps:$4 sm:$0xff]  }
 0x118   :  { %7052 = vmatpush1.bf16.msra.mxu1 %v9873_v3  ;;  %7000 = vmatprep.subr.bf16.mxu0 %v9878_v7  ;;  %v9890_v3 = vld [vmem:[%s15254_s1 + $0x11e4] ss:$16 sps:$4 sm:$0xff]  }
 0x119   :  { %7053 = vmatprep.subr.bf16.mxu1 %v9881_v15  ;;  %v9893_v7 = vld [vmem:[%s15254_s1 + $0x13e4] ss:$16 sps:$4 sm:$0xff]   ;;  %v9891_v15 = vld [vmem:[%s15254_s1 + $0x13e0] ss:$16 sps:$4 sm:$0xff]  }
 0x11b   :  { %7001 = vmatpush1.bf16.msra.mxu0 %v9876_v24  ;;  %v9897_v24 = vld [vmem:[%s15254_s1 + $0x13c0] ss:$16 sps:$4 sm:$0xff]  }
 0x11c   :  { %7054 = vmatpush1.bf16.msra.mxu1 %v9879_v30  ;;  %7002 = vmatprep.subr.bf16.mxu0 %v9884_v48  ;;  %v9905_v30 = vld [vmem:[%s15254_s1 + $0x13a4] ss:$16 sps:$4 sm:$0xff]   ;;  %v9903_v48 = vld [vmem:[%s15254_s1 + $0x13a0] ss:$16 sps:$4 sm:$0xff]  }
 0x11d   :  { %7055 = vmatprep.subr.bf16.mxu1 %v9887_v50  ;;  %v9908_v50 = vld [vmem:[%s15254_s1 + $0x1184] ss:$16 sps:$4 sm:$0xff]  }
 0x11f   :  { %7003 = vmatpush1.bf16.msra.mxu0 %v9882_v2  ;;  %v9906_v2 = vld [vmem:[%s15254_s1 + $0x1180] ss:$16 sps:$4 sm:$0xff]  }
 0x120   :  { %7056 = vmatpush1.bf16.msra.mxu1 %v9885_v25  ;;  %7004 = vmatprep.subr.bf16.mxu0 %v9890_v3  ;;  %v9909_v25 = vld [vmem:[%s15254_s1 + $0x1380] ss:$16 sps:$4 sm:$0xff]   ;;  %v9914_v3 = vld [vmem:[%s15254_s1 + $0x1164] ss:$16 sps:$4 sm:$0xff]  }
 0x121   :  { %7057 = vmatprep.subr.bf16.mxu1 %v9893_v7  ;;  %v9917_v7 = vld [vmem:[%s15254_s1 + $0x1364] ss:$16 sps:$4 sm:$0xff]  }
 0x123   :  { %7005 = vmatpush2.bf16.msra.mxu0 %v9888_v14  ;;  %v9912_v14 = vld [vmem:[%s15254_s1 + $0x1160] ss:$16 sps:$4 sm:$0xff]  }
 0x124   :  { %7058 = vmatpush2.bf16.msra.mxu1 %v9891_v15  ;;  %7006 = vmatprep.subr.bf16.mxu0 %v9896_v19  ;;  %v9915_v15 = vld [vmem:[%s15254_s1 + $0x1360] ss:$16 sps:$4 sm:$0xff]   ;;  %v9920_v19 = vld [vmem:[%s15254_s1 + $0x1144] ss:$16 sps:$4 sm:$0xff]  }
 0x125   :  { %7059 = vmatprep.subr.bf16.mxu1 %v9899_v18  ;;  %v9923_v18 = vld [vmem:[%s15254_s1 + $0x1344] ss:$16 sps:$4 sm:$0xff]  }
 0x127   :  { %7007 = vmatpush2.bf16.msra.mxu0 %v9894_v52  ;;  %v9918_v52 = vld [vmem:[%s15254_s1 + $0x1140] ss:$16 sps:$4 sm:$0xff]  }
 0x128   :  { %7060 = vmatpush2.bf16.msra.mxu1 %v9897_v24  ;;  %7008 = vmatprep.subr.bf16.mxu0 %v9902_v26  ;;  %v9921_v24 = vld [vmem:[%s15254_s1 + $0x1340] ss:$16 sps:$4 sm:$0xff]   ;;  %v9926_v26 = vld [vmem:[%s15254_s1 + $0x1124] ss:$16 sps:$4 sm:$0xff]  }
 0x129   :  { %7061 = vmatprep.subr.bf16.mxu1 %v9905_v30  ;;  %v9929_v30 = vld [vmem:[%s15254_s1 + $0x1324] ss:$16 sps:$4 sm:$0xff]  }
 0x12b   :  { %7009 = vmatpush2.bf16.msra.mxu0 %v9900_v44  ;;  %v9924_v44 = vld [vmem:[%s15254_s1 + $0x1120] ss:$16 sps:$4 sm:$0xff]  }
 0x12c   :  { %7062 = vmatpush2.bf16.msra.mxu1 %v9903_v48  ;;  %7010 = vmatprep.subr.bf16.mxu0 %v9908_v50  ;;  %v9927_v48 = vld [vmem:[%s15254_s1 + $0x1320] ss:$16 sps:$4 sm:$0xff]   ;;  %v9932_v50 = vld [vmem:[%s15254_s1 + $0x1104] ss:$16 sps:$4 sm:$0xff]  }
 0x12d   :  { %7063 = vmatprep.subr.bf16.mxu1 %v9911_v60  ;;  %v9935_v60 = vld [vmem:[%s15254_s1 + $0x1304] ss:$16 sps:$4 sm:$0xff]  }
 0x12f   :  { %7011 = vmatpush2.bf16.msra.mxu0 %v9906_v2  ;;  %v9930_v2 = vld [vmem:[%s15254_s1 + $0x1100] ss:$16 sps:$4 sm:$0xff]  }
 0x130   :  { %7064 = vmatpush2.bf16.msra.mxu1 %v9909_v25  ;;  %7012 = vmatprep.subr.bf16.mxu0 %v9914_v3  ;;  %v9933_v25 = vld [vmem:[%s15254_s1 + $0x1300] ss:$16 sps:$4 sm:$0xff]   ;;  %v9938_v3 = vld [vmem:[%s15254_s1 + $0x14e4] ss:$16 sps:$4 sm:$0xff]  }
 0x131   :  { %7065 = vmatprep.subr.bf16.mxu1 %v9917_v7  ;;  %v9941_v7 = vld [vmem:[%s15254_s1 + $0x16e4] ss:$16 sps:$4 sm:$0xff]  }
 0x133   :  { %7013 = vmatpush2.bf16.msra.mxu0 %v9912_v14  ;;  %v54_v14 = vld [vmem:[%s15255_s0 + $0x140] sm:$0xff] }
 0x134   :  { %7066 = vmatpush2.bf16.msra.mxu1 %v9915_v15  ;;  %7014 = vmatprep.subr.bf16.mxu0 %v9920_v19  ;;  %v9936_v15 = vld [vmem:[%s15254_s1 + $0x14e0] ss:$16 sps:$4 sm:$0xff]   ;;  %v12290_v19 = vcombine.low %v12058_v0, %v12071_v4  ;;  %v12308_v4 = vpop.f32.mrf.mxu0 }
 0x135   :  { %7067 = vmatprep.subr.bf16.mxu1 %v9923_v18  ;;  %v12294_v18 = vcombine.low %v12076_v6, %v12085_v12  ;;  %v9939_v0 = vld [vmem:[%s15254_s1 + $0x16e0] ss:$16 sps:$4 sm:$0xff]   ;;  %v12310_v6 = vpop.f32.mrf.mxu1  ;;  %v9944_v12 = vld [vmem:[%s15254_s1 + $0x14c4] ss:$16 sps:$4 sm:$0xff]  }
 0x136   :  { %15323 = vst [vmem:[#allocation19_spill] sm:$0xff] %v12290_v19 }
 0x137   :  { %7015 = vmatpush2.bf16.msra.mxu0 %v9918_v52  ;;  %15324 = vst [vmem:[#allocation20_spill] sm:$0xff] %v12294_v18  ;;  %v70_v52 = vld [vmem:[%s15255_s0 + $0x1c0] sm:$0xff] }
 0x138   :  { %7068 = vmatpush2.bf16.msra.mxu1 %v9921_v24  ;;  %7016 = vmatprep.subr.bf16.mxu0 %v9926_v26  ;;  %v55_v24 = vld [vmem:[%s15255_s0 + $0x148] sm:$0xff] }
 0x139   :  { %7069 = vmatprep.subr.bf16.mxu1 %v9929_v30  ;;  %v71_v26 = vld [vmem:[%s15255_s0 + $0x1c8] sm:$0xff]  ;;  %v9947_v30 = vld [vmem:[%s15254_s1 + $0x16c4] ss:$16 sps:$4 sm:$0xff]  }
 0x13b   :  { %7017 = vmatpush2.bf16.msra.mxu0 %v9924_v44  ;;  %v9942_v44 = vld [vmem:[%s15254_s1 + $0x14c0] ss:$16 sps:$4 sm:$0xff]  }
 0x13c   :  { %7070 = vmatpush2.bf16.msra.mxu1 %v9927_v48  ;;  %7018 = vmatprep.subr.bf16.mxu0 %v9932_v50  ;;  %v9945_v48 = vld [vmem:[%s15254_s1 + $0x16c0] ss:$16 sps:$4 sm:$0xff]   ;;  %v12324_v50 = vcombine.high %v54_v14, %v70_v52 }
 0x13d   :  { %7071 = vmatprep.subr.bf16.mxu1 %v9935_v60  ;;  %v12326_v60 = vcombine.high %v55_v24, %v71_v26 }
 0x13e   :  { %15325 = vst [vmem:[#allocation21_spill] sm:$0xff] %v12324_v50 }
 0x13f   :  { %7019 = vmatpush2.bf16.msra.mxu0 %v9930_v2  ;;  %15326 = vst [vmem:[#allocation22_spill] sm:$0xff] %v12326_v60 }
 0x140   :  { %7072 = vmatpush2.bf16.msra.mxu1 %v9933_v25  ;;  %7094 = vmatprep.subr.bf16.mxu0 %v9938_v3 }
 0x141   :  { %7147 = vmatprep.subr.bf16.mxu1 %v9941_v7 }
 0x142   :  { %v6704_v2 = vpop.f32.mrf.mxu0  ;;  %7021 = vmatmul.mubr.bf16.vlgmr.msra.gmra.mxu0 %v12290_v19  ;;  %v9962_v19 = vld [vmem:[%s15254_s1 + $0x1464] ss:$16 sps:$4 sm:$0xff]  }
 0x143   :  { %v6757_v25 = vpop.f32.mrf.mxu1  ;;  %7074 = vmatmul.mubr.bf16.vlgmr.msra.gmra.mxu1 %v12294_v18  ;;  %v6705_v3 = vadd.f32 %v6704_v2, %v12060_v1  ;;  %7095 = vmatpush1.bf16.msra.mxu0 %v9936_v15  ;;  %v9948_v1 = vld [vmem:[%s15254_s1 + $0x14a0] ss:$16 sps:$4 sm:$0xff]   ;;  %v12358_v2 = vcombine.low %v54_v14, %v70_v52 }
 0x144   :  { %7148 = vmatpush1.bf16.msra.mxu1 %v9939_v0  ;;  %v6706_v7 = vpop.f32.mrf.mxu0  ;;  %7096 = vmatprep.subr.bf16.mxu0 %v9944_v12  ;;  %v9951_v15 = vld [vmem:[%s15254_s1 + $0x16a0] ss:$16 sps:$4 sm:$0xff]  }
 0x145   :  { %v6759_v23 = vpop.f32.mrf.mxu1  ;;  %7149 = vmatprep.subr.bf16.mxu1 %v9947_v30  ;;  %v12337_v10 = vadd.f32 %v6757_v25, %v6705_v3  ;;  %v6707_v18 = vadd.f32 %v6706_v7, %v12087_v13  ;;  %7030 = vmatprep.mubr.bf16.mxu0 %v12324_v50  ;;  %v12351_v0 = vld [vmem:[%s15255_s0 + $0x50] sm:$0xff]  ;;  %15327 = vst [vmem:[#allocation23_spill] sm:$0xff] %v12358_v2  ;;  %v12365_v3 = vld [vmem:[%s15255_s0 + $0x58] sm:$0xff] }
 0x146   :  { %7083 = vmatprep.mubr.bf16.mxu1 %v12326_v60  ;;  %v12356_v13 = vld [vmem:[%s15255_s0 + $0xd0] sm:$0xff]  ;;  %v6708_v12 = vpop.f32.mrf.mxu0  ;;  %v12360_v25 = vcombine.low %v55_v24, %v71_v26  ;;  %v12370_v7 = vld [vmem:[%s15255_s0 + $0xd8] sm:$0xff] }
 0x147   :  { %v6761_v30 = vpop.f32.mrf.mxu1  ;;  %v12372_v60 = vadd.f32 %v6759_v23, %v6707_v18  ;;  %v6709_v50 = vadd.f32 %v6708_v12, %v12099_v54  ;;  %7097 = vmatpush1.bf16.msra.mxu0 %v9942_v44  ;;  %v9956_v24 = vld [vmem:[%s15254_s1 + $0x1484] ss:$16 sps:$4 sm:$0xff]   ;;  %v9954_v54 = vld [vmem:[%s15254_s1 + $0x1480] ss:$16 sps:$4 sm:$0xff]  }
 0x148   :  { %15328 = vst [vmem:[#allocation24_spill] sm:$0xff] %v12360_v25  ;;  %7150 = vmatpush1.bf16.msra.mxu1 %v9945_v48  ;;  %v12375_v14 = vpop.f32.mrf.mxu0  ;;  %7098 = vmatprep.subr.bf16.mxu0 %v9950_v58  ;;  %v9959_v26 = vld [vmem:[%s15254_s1 + $0x1684] ss:$16 sps:$4 sm:$0xff]   ;;  %v9957_v18 = vld [vmem:[%s15254_s1 + $0x1680] ss:$16 sps:$4 sm:$0xff]   ;;  %v12399_v58 = vcombine.high %v12365_v3, %v12370_v7 }
 0x149   :  { %v12377_v52 = vpop.f32.mrf.mxu1  ;;  %7151 = vmatprep.subr.bf16.mxu1 %v9953_v11  ;;  %v12385_v23 = vadd.f32 %v6761_v30, %v6709_v50  ;;  %v12395_v11 = vcombine.high %v12351_v0, %v12356_v13 }
 0x14a   :  { %15330 = vst [vmem:[#allocation26_spill] sm:$0xff] %v12399_v58  ;;  %v6714_v44 = vpop.f32.mrf.mxu0  ;;  %7031 = vmatmul.mubr.bf16.gmra.mxu0 %v12358_v2 }
 0x14b   :  { %15329 = vst [vmem:[#allocation25_spill] sm:$0xff] %v12395_v11  ;;  %v6767_v48 = vpop.f32.mrf.mxu1  ;;  %7084 = vmatmul.mubr.bf16.gmra.mxu1 %v12360_v25  ;;  %v6715_v50 = vadd.f32 %v6714_v44, %v12155_v31  ;;  %7099 = vmatpush1.bf16.msra.mxu0 %v9948_v1  ;;  %v9960_v31 = vld [vmem:[%s15254_s1 + $0x1460] ss:$16 sps:$4 sm:$0xff]   ;;  %v10347_v25 = vld [vmem:[%s15254_s1 + $0x668] ss:$16 sps:$4 sm:$0xff]  }
 0x14c   :  { %7152 = vmatpush1.bf16.msra.mxu1 %v9951_v15  ;;  %v6716_v12 = vpop.f32.mrf.mxu0  ;;  %7100 = vmatprep.subr.bf16.mxu0 %v9956_v24  ;;  %v9963_v1 = vld [vmem:[%s15254_s1 + $0x1660] ss:$16 sps:$4 sm:$0xff]  }
 0x14d   :  { %v6769_v30 = vpop.f32.mrf.mxu1  ;;  %7153 = vmatprep.subr.bf16.mxu1 %v9959_v26  ;;  %v6717_v2 = vadd.f32 %v6716_v12, %v12164_v45  ;;  %v12411_v38 = vadd.f32 %v6767_v48, %v6715_v50  ;;  %7126 = vmatprep.mubr.bf16.mxu0 %v12395_v11  ;;  %v9968_v45 = vld [vmem:[%s15254_s1 + $0x1444] ss:$16 sps:$4 sm:$0xff]   ;;  %v10344_v11 = vld [vmem:[%s15254_s1 + $0x468] ss:$16 sps:$4 sm:$0xff]  }
 0x14e   :  { %7179 = vmatprep.mubr.bf16.mxu1 %v12399_v58  ;;  %v6718_v15 = vpop.f32.mrf.mxu0  ;;  %v9971_v48 = vld [vmem:[%s15254_s1 + $0x1644] ss:$16 sps:$4 sm:$0xff]   ;;  %v10337_v58 = vld [vmem:[%s15254_s1 + $0x6ac] ss:$16 sps:$4 sm:$0xff]  }
 0x14f   :  { %v6771_v24 = vpop.f32.mrf.mxu1  ;;  %v6719_v26 = vadd.f32 %v6718_v15, %v12172_v61  ;;  %v12422_v44 = vadd.f32 %v6769_v30, %v6717_v2  ;;  %7101 = vmatpush1.bf16.msra.mxu0 %v9954_v54  ;;  %v9966_v61 = vld [vmem:[%s15254_s1 + $0x1440] ss:$16 sps:$4 sm:$0xff]   ;;  %v9977_v2 = vld [vmem:[%s15254_s1 + $0x1624] ss:$16 sps:$4 sm:$0xff]  }
 0x150   :  { %7154 = vmatpush1.bf16.msra.mxu1 %v9957_v18  ;;  %7102 = vmatprep.subr.bf16.mxu0 %v9962_v19  ;;  %v9974_v19 = vld [vmem:[%s15254_s1 + $0x1424] ss:$16 sps:$4 sm:$0xff]   ;;  %v9972_v54 = vld [vmem:[%s15254_s1 + $0x1420] ss:$16 sps:$4 sm:$0xff]  }
 0x151   :  { %7155 = vmatprep.subr.bf16.mxu1 %v9965_v39  ;;  %v12430_v50 = vadd.f32 %v6771_v24, %v6719_v26  ;;  %v9969_v39 = vld [vmem:[%s15254_s1 + $0x1640] ss:$16 sps:$4 sm:$0xff]   ;;  %v9980_v12 = vld [vmem:[%s15254_s1 + $0x1404] ss:$16 sps:$4 sm:$0xff]  }
 0x152   :  { %v9975_v18 = vld [vmem:[%s15254_s1 + $0x1620] ss:$16 sps:$4 sm:$0xff]   ;;  %v9983_v30 = vld [vmem:[%s15254_s1 + $0x1604] ss:$16 sps:$4 sm:$0xff]  }
 0x153   :  { %7103 = vmatpush1.bf16.msra.mxu0 %v9960_v31  ;;  %v9978_v31 = vld [vmem:[%s15254_s1 + $0x1400] ss:$16 sps:$4 sm:$0xff]   ;;  %v9986_v15 = vld [vmem:[%s15254_s1 + $0x15e4] ss:$16 sps:$4 sm:$0xff]  }
 0x154   :  { %7156 = vmatpush1.bf16.msra.mxu1 %v9963_v1  ;;  %7104 = vmatprep.subr.bf16.mxu0 %v9968_v45  ;;  %v9981_v1 = vld [vmem:[%s15254_s1 + $0x1600] ss:$16 sps:$4 sm:$0xff]   ;;  %v9989_v24 = vld [vmem:[%s15254_s1 + $0x17e4] ss:$16 sps:$4 sm:$0xff]  }
 0x155   :  { %7157 = vmatprep.subr.bf16.mxu1 %v9971_v48  ;;  %v9984_v26 = vld [vmem:[%s15254_s1 + $0x15e0] ss:$16 sps:$4 sm:$0xff]   ;;  %v9992_v48 = vld [vmem:[%s15254_s1 + $0x15c4] ss:$16 sps:$4 sm:$0xff]  }
 0x156   :  { %v9987_v45 = vld [vmem:[%s15254_s1 + $0x17e0] ss:$16 sps:$4 sm:$0xff]  }
 0x157   :  { %7105 = vmatpush1.bf16.msra.mxu0 %v9966_v61  ;;  %v9995_v61 = vld [vmem:[%s15254_s1 + $0x17c4] ss:$16 sps:$4 sm:$0xff]  }
 0x158   :  { %7158 = vmatpush1.bf16.msra.mxu1 %v9969_v39  ;;  %7106 = vmatprep.subr.bf16.mxu0 %v9974_v19  ;;  %v9990_v39 = vld [vmem:[%s15254_s1 + $0x15c0] ss:$16 sps:$4 sm:$0xff]  }
 0x159   :  { %7159 = vmatprep.subr.bf16.mxu1 %v9977_v2  ;;  %v9993_v19 = vld [vmem:[%s15254_s1 + $0x17c0] ss:$16 sps:$4 sm:$0xff]   ;;  %v9998_v2 = vld [vmem:[%s15254_s1 + $0x15a4] ss:$16 sps:$4 sm:$0xff]  }
 0x15b   :  { %7107 = vmatpush1.bf16.msra.mxu0 %v9972_v54  ;;  %v10001_v54 = vld [vmem:[%s15254_s1 + $0x17a4] ss:$16 sps:$4 sm:$0xff]  }
 0x15c   :  { %7160 = vmatpush1.bf16.msra.mxu1 %v9975_v18  ;;  %7108 = vmatprep.subr.bf16.mxu0 %v9980_v12  ;;  %v9996_v18 = vld [vmem:[%s15254_s1 + $0x15a0] ss:$16 sps:$4 sm:$0xff]  }
 0x15d   :  { %7161 = vmatprep.subr.bf16.mxu1 %v9983_v30  ;;  %v9999_v12 = vld [vmem:[%s15254_s1 + $0x17a0] ss:$16 sps:$4 sm:$0xff]   ;;  %v10004_v30 = vld [vmem:[%s15254_s1 + $0x1584] ss:$16 sps:$4 sm:$0xff]  }
 0x15f   :  { %7109 = vmatpush1.bf16.msra.mxu0 %v9978_v31  ;;  %v10007_v31 = vld [vmem:[%s15254_s1 + $0x1784] ss:$16 sps:$4 sm:$0xff]  }
 0x160   :  { %7162 = vmatpush1.bf16.msra.mxu1 %v9981_v1  ;;  %7110 = vmatprep.subr.bf16.mxu0 %v9986_v15  ;;  %v10002_v1 = vld [vmem:[%s15254_s1 + $0x1580] ss:$16 sps:$4 sm:$0xff]  }
 0x161   :  { %7163 = vmatprep.subr.bf16.mxu1 %v9989_v24  ;;  %v10005_v15 = vld [vmem:[%s15254_s1 + $0x1780] ss:$16 sps:$4 sm:$0xff]   ;;  %v10010_v24 = vld [vmem:[%s15254_s1 + $0x1564] ss:$16 sps:$4 sm:$0xff]  }
 0x163   :  { %7111 = vmatpush2.bf16.msra.mxu0 %v9984_v26  ;;  %v10013_v26 = vld [vmem:[%s15254_s1 + $0x1764] ss:$16 sps:$4 sm:$0xff]  }
 0x164   :  { %7164 = vmatpush2.bf16.msra.mxu1 %v9987_v45  ;;  %7112 = vmatprep.subr.bf16.mxu0 %v9992_v48  ;;  %v10008_v45 = vld [vmem:[%s15254_s1 + $0x1560] ss:$16 sps:$4 sm:$0xff]  }
 0x165   :  { %7165 = vmatprep.subr.bf16.mxu1 %v9995_v61  ;;  %v10011_v48 = vld [vmem:[%s15254_s1 + $0x1760] ss:$16 sps:$4 sm:$0xff]   ;;  %v10016_v61 = vld [vmem:[%s15254_s1 + $0x1544] ss:$16 sps:$4 sm:$0xff]  }
 0x167   :  { %7113 = vmatpush2.bf16.msra.mxu0 %v9990_v39  ;;  %v10019_v39 = vld [vmem:[%s15254_s1 + $0x1744] ss:$16 sps:$4 sm:$0xff]  }
 0x168   :  { %7166 = vmatpush2.bf16.msra.mxu1 %v9993_v19  ;;  %7114 = vmatprep.subr.bf16.mxu0 %v9998_v2  ;;  %v10014_v19 = vld [vmem:[%s15254_s1 + $0x1540] ss:$16 sps:$4 sm:$0xff]  }
 0x169   :  { %7167 = vmatprep.subr.bf16.mxu1 %v10001_v54  ;;  %v10017_v2 = vld [vmem:[%s15254_s1 + $0x1740] ss:$16 sps:$4 sm:$0xff]   ;;  %v10022_v54 = vld [vmem:[%s15254_s1 + $0x1524] ss:$16 sps:$4 sm:$0xff]  }
 0x16b   :  { %7115 = vmatpush2.bf16.msra.mxu0 %v9996_v18  ;;  %v10025_v18 = vld [vmem:[%s15254_s1 + $0x1724] ss:$16 sps:$4 sm:$0xff]  }
 0x16c   :  { %7168 = vmatpush2.bf16.msra.mxu1 %v9999_v12  ;;  %7116 = vmatprep.subr.bf16.mxu0 %v10004_v30  ;;  %v10020_v12 = vld [vmem:[%s15254_s1 + $0x1520] ss:$16 sps:$4 sm:$0xff]  }
 0x16d   :  { %7169 = vmatprep.subr.bf16.mxu1 %v10007_v31  ;;  %v10023_v30 = vld [vmem:[%s15254_s1 + $0x1720] ss:$16 sps:$4 sm:$0xff]   ;;  %v10028_v31 = vld [vmem:[%s15254_s1 + $0x1504] ss:$16 sps:$4 sm:$0xff]  }
 0x16f   :  { %7117 = vmatpush2.bf16.msra.mxu0 %v10002_v1  ;;  %v10031_v1 = vld [vmem:[%s15254_s1 + $0x1704] ss:$16 sps:$4 sm:$0xff]  }
 0x170   :  { %7170 = vmatpush2.bf16.msra.mxu1 %v10005_v15  ;;  %7118 = vmatprep.subr.bf16.mxu0 %v10010_v24  ;;  %v10026_v15 = vld [vmem:[%s15254_s1 + $0x1500] ss:$16 sps:$4 sm:$0xff]  }
 0x171   :  { %7171 = vmatprep.subr.bf16.mxu1 %v10013_v26  ;;  %v10029_v24 = vld [vmem:[%s15254_s1 + $0x1700] ss:$16 sps:$4 sm:$0xff]   ;;  %v10034_v26 = vld [vmem:[%s15254_s1 + $0x18e4] ss:$16 sps:$4 sm:$0xff]  }
 0x173   :  { %7119 = vmatpush2.bf16.msra.mxu0 %v10008_v45  ;;  %v10037_v45 = vld [vmem:[%s15254_s1 + $0x1ae4] ss:$16 sps:$4 sm:$0xff]  }
 0x174   :  { %7172 = vmatpush2.bf16.msra.mxu1 %v10011_v48  ;;  %7120 = vmatprep.subr.bf16.mxu0 %v10016_v61  ;;  %v56_v48 = vld [vmem:[%s15255_s0 + $0x150] sm:$0xff] }
 0x175   :  { %7173 = vmatprep.subr.bf16.mxu1 %v10019_v39  ;;  %v10032_v61 = vld [vmem:[%s15254_s1 + $0x18e0] ss:$16 sps:$4 sm:$0xff]   ;;  %v12572_v39 = vcombine.low %v12351_v0, %v12356_v13  ;;  %v10040_v13 = vld [vmem:[%s15254_s1 + $0x18c4] ss:$16 sps:$4 sm:$0xff]  }
 0x176   :  { %v10035_v0 = vld [vmem:[%s15254_s1 + $0x1ae0] ss:$16 sps:$4 sm:$0xff]  }
 0x177   :  { %7121 = vmatpush2.bf16.msra.mxu0 %v10014_v19  ;;  %15331 = vst [vmem:[#allocation27_spill] sm:$0xff] %v12572_v39  ;;  %v12576_v19 = vcombine.low %v12365_v3, %v12370_v7  ;;  %v10043_v3 = vld [vmem:[%s15254_s1 + $0x1ac4] ss:$16 sps:$4 sm:$0xff]   ;;  %v10038_v7 = vld [vmem:[%s15254_s1 + $0x18c0] ss:$16 sps:$4 sm:$0xff]  }
 0x178   :  { %7174 = vmatpush2.bf16.msra.mxu1 %v10017_v2  ;;  %7122 = vmatprep.subr.bf16.mxu0 %v10022_v54  ;;  %v72_v2 = vld [vmem:[%s15255_s0 + $0x1d0] sm:$0xff]  ;;  %v57_v54 = vld [vmem:[%s15255_s0 + $0x158] sm:$0xff] }
 0x179   :  { %7175 = vmatprep.subr.bf16.mxu1 %v10025_v18  ;;  %15332 = vst [vmem:[#allocation28_spill] sm:$0xff] %v12576_v19  ;;  %v73_v18 = vld [vmem:[%s15255_s0 + $0x1d8] sm:$0xff] }
 0x17b   :  { %7123 = vmatpush2.bf16.msra.mxu0 %v10020_v12  ;;  %v10041_v12 = vld [vmem:[%s15254_s1 + $0x1ac0] ss:$16 sps:$4 sm:$0xff]  }
 0x17c   :  { %7176 = vmatpush2.bf16.msra.mxu1 %v10023_v30  ;;  %7124 = vmatprep.subr.bf16.mxu0 %v10028_v31  ;;  %v12602_v30 = vcombine.high %v56_v48, %v72_v2  ;;  %v12604_v31 = vcombine.high %v57_v54, %v73_v18 }
 0x17d   :  { %7177 = vmatprep.subr.bf16.mxu1 %v10031_v1  ;;  %v10046_v1 = vld [vmem:[%s15254_s1 + $0x18a4] ss:$16 sps:$4 sm:$0xff]  }
 0x17e   :  { %15333 = vst [vmem:[#allocation29_spill] sm:$0xff] %v12602_v30  ;;  %15334 = vst [vmem:[#allocation30_spill] sm:$0xff] %v12604_v31 }
 0x17f   :  { %7125 = vmatpush2.bf16.msra.mxu0 %v10026_v15  ;;  %v10049_v15 = vld [vmem:[%s15254_s1 + $0x1aa4] ss:$16 sps:$4 sm:$0xff]  }
 0x180   :  { %7178 = vmatpush2.bf16.msra.mxu1 %v10029_v24  ;;  %7200 = vmatprep.subr.bf16.mxu0 %v10034_v26  ;;  %v10044_v24 = vld [vmem:[%s15254_s1 + $0x18a0] ss:$16 sps:$4 sm:$0xff]  }
 0x181   :  { %7253 = vmatprep.subr.bf16.mxu1 %v10037_v45  ;;  %v10047_v26 = vld [vmem:[%s15254_s1 + $0x1aa0] ss:$16 sps:$4 sm:$0xff]  }
 0x182   :  { %7127 = vmatmul.mubr.bf16.vlgmr.msra.gmra.mxu0 %v12572_v39  ;;  %v12625_v45 = vld [vmem:[%s15255_s0 + $0x60] sm:$0xff] }
 0x183   :  { %7180 = vmatmul.mubr.bf16.vlgmr.msra.gmra.mxu1 %v12576_v19  ;;  %7201 = vmatpush1.bf16.msra.mxu0 %v10032_v61  ;;  %v12630_v61 = vld [vmem:[%s15255_s0 + $0xe0] sm:$0xff] }
 0x184   :  { %7254 = vmatpush1.bf16.msra.mxu1 %v10035_v0  ;;  %7202 = vmatprep.subr.bf16.mxu0 %v10040_v13  ;;  %v12632_v0 = vcombine.low %v56_v48, %v72_v2  ;;  %v12634_v13 = vcombine.low %v57_v54, %v73_v18  ;;  %v10052_v48 = vld [vmem:[%s15254_s1 + $0x1884] ss:$16 sps:$4 sm:$0xff]   ;;  %v10050_v54 = vld [vmem:[%s15254_s1 + $0x1880] ss:$16 sps:$4 sm:$0xff]  }
 0x185   :  { %7255 = vmatprep.subr.bf16.mxu1 %v10043_v3  ;;  %7136 = vmatprep.mubr.bf16.mxu0 %v12602_v30  ;;  %v12639_v3 = vld [vmem:[%s15255_s0 + $0x68] sm:$0xff]  ;;  %v10055_v2 = vld [vmem:[%s15254_s1 + $0x1a84] ss:$16 sps:$4 sm:$0xff]   ;;  %v10053_v18 = vld [vmem:[%s15254_s1 + $0x1a80] ss:$16 sps:$4 sm:$0xff]  }
 0x186   :  { %7189 = vmatprep.mubr.bf16.mxu1 %v12604_v31  ;;  %15335 = vst [vmem:[#allocation31_spill] sm:$0xff] %v12632_v0  ;;  %15336 = vst [vmem:[#allocation32_spill] sm:$0xff] %v12634_v13  ;;  %v12644_v31 = vld [vmem:[%s15255_s0 + $0xe8] sm:$0xff]  ;;  %v10056_v30 = vld [vmem:[%s15254_s1 + $0x1860] ss:$16 sps:$4 sm:$0xff]  }
 0x187   :  { %7203 = vmatpush1.bf16.msra.mxu0 %v10038_v7  ;;  %v12660_v7 = vcombine.high %v12625_v45, %v12630_v61  ;;  %v10139_v19 = vld [vmem:[%s15254_s1 + $0x1ec4] ss:$16 sps:$4 sm:$0xff]   ;;  %v10146_v39 = vld [vmem:[%s15254_s1 + $0x1c80] ss:$16 sps:$4 sm:$0xff]  }
 0x188   :  { %7256 = vmatpush1.bf16.msra.mxu1 %v10041_v12  ;;  %7204 = vmatprep.subr.bf16.mxu0 %v10046_v1  ;;  %v12664_v12 = vcombine.high %v12639_v3, %v12644_v31  ;;  %v10058_v1 = vld [vmem:[%s15254_s1 + $0x1864] ss:$16 sps:$4 sm:$0xff]  }
 0x189   :  { %7257 = vmatprep.subr.bf16.mxu1 %v10049_v15  ;;  %15337 = vst [vmem:[#allocation33_spill] sm:$0xff] %v12660_v7  ;;  %v10061_v15 = vld [vmem:[%s15254_s1 + $0x1a64] ss:$16 sps:$4 sm:$0xff]  }
 0x18a   :  { %15338 = vst [vmem:[#allocation34_spill] sm:$0xff] %v12664_v12  ;;  %7137 = vmatmul.mubr.bf16.gmra.mxu0 %v12632_v0  ;;  %v10136_v0 = vld [vmem:[%s15254_s1 + $0x1cc4] ss:$16 sps:$4 sm:$0xff]  }
 0x18b   :  { %7190 = vmatmul.mubr.bf16.gmra.mxu1 %v12634_v13  ;;  %7205 = vmatpush1.bf16.msra.mxu0 %v10044_v24  ;;  %v10059_v13 = vld [vmem:[%s15254_s1 + $0x1a60] ss:$16 sps:$4 sm:$0xff]   ;;  %v10064_v24 = vld [vmem:[%s15254_s1 + $0x1844] ss:$16 sps:$4 sm:$0xff]  }
 0x18c   :  { %7258 = vmatpush1.bf16.msra.mxu1 %v10047_v26  ;;  %7206 = vmatprep.subr.bf16.mxu0 %v10052_v48  ;;  %v10067_v26 = vld [vmem:[%s15254_s1 + $0x1a44] ss:$16 sps:$4 sm:$0xff]   ;;  %v10062_v48 = vld [vmem:[%s15254_s1 + $0x1840] ss:$16 sps:$4 sm:$0xff]  }
 0x18d   :  { %7259 = vmatprep.subr.bf16.mxu1 %v10055_v2  ;;  %7232 = vmatprep.mubr.bf16.mxu0 %v12660_v7  ;;  %v10065_v2 = vld [vmem:[%s15254_s1 + $0x1a40] ss:$16 sps:$4 sm:$0xff]   ;;  %v12844_v7 = vcombine.low %v12639_v3, %v12644_v31 }
 0x18e   :  { %7285 = vmatprep.mubr.bf16.mxu1 %v12664_v12  ;;  %v12840_v12 = vcombine.low %v12625_v45, %v12630_v61  ;;  %v10134_v45 = vld [vmem:[%s15254_s1 + $0x1cc0] ss:$16 sps:$4 sm:$0xff]  }
 0x18f   :  { %7207 = vmatpush1.bf16.msra.mxu0 %v10050_v54  ;;  %v10070_v54 = vld [vmem:[%s15254_s1 + $0x1824] ss:$16 sps:$4 sm:$0xff]   ;;  %15340 = vst [vmem:[#allocation36_spill] sm:$0xff] %v12844_v7  ;;  %v10137_v31 = vld [vmem:[%s15254_s1 + $0x1ec0] ss:$16 sps:$4 sm:$0xff]  }
 0x190   :  { %7260 = vmatpush1.bf16.msra.mxu1 %v10053_v18  ;;  %7208 = vmatprep.subr.bf16.mxu0 %v10058_v1  ;;  %v10073_v18 = vld [vmem:[%s15254_s1 + $0x1a24] ss:$16 sps:$4 sm:$0xff]   ;;  %15339 = vst [vmem:[#allocation35_spill] sm:$0xff] %v12840_v12 }
 0x191   :  { %7261 = vmatprep.subr.bf16.mxu1 %v10061_v15  ;;  %v10076_v1 = vld [vmem:[%s15254_s1 + $0x1804] ss:$16 sps:$4 sm:$0xff]  }
 0x192   :  { %v10079_v15 = vld [vmem:[%s15254_s1 + $0x1a04] ss:$16 sps:$4 sm:$0xff]  }
 0x193   :  { %7209 = vmatpush1.bf16.msra.mxu0 %v10056_v30  ;;  %v10068_v30 = vld [vmem:[%s15254_s1 + $0x1820] ss:$16 sps:$4 sm:$0xff]  }
 0x194   :  { %7262 = vmatpush1.bf16.msra.mxu1 %v10059_v13  ;;  %7210 = vmatprep.subr.bf16.mxu0 %v10064_v24  ;;  %v10071_v13 = vld [vmem:[%s15254_s1 + $0x1a20] ss:$16 sps:$4 sm:$0xff]  }
 0x195   :  { %7263 = vmatprep.subr.bf16.mxu1 %v10067_v26  ;;  %v10074_v24 = vld [vmem:[%s15254_s1 + $0x1800] ss:$16 sps:$4 sm:$0xff]  }
 0x196   :  { %v10077_v26 = vld [vmem:[%s15254_s1 + $0x1a00] ss:$16 sps:$4 sm:$0xff]  }
 0x197   :  { %7211 = vmatpush1.bf16.msra.mxu0 %v10062_v48  ;;  %v10082_v48 = vld [vmem:[%s15254_s1 + $0x19e4] ss:$16 sps:$4 sm:$0xff]  }
 0x198   :  { %7264 = vmatpush1.bf16.msra.mxu1 %v10065_v2  ;;  %7212 = vmatprep.subr.bf16.mxu0 %v10070_v54  ;;  %v10085_v2 = vld [vmem:[%s15254_s1 + $0x1be4] ss:$16 sps:$4 sm:$0xff]   ;;  %v10080_v54 = vld [vmem:[%s15254_s1 + $0x19e0] ss:$16 sps:$4 sm:$0xff]  }
 0x199   :  { %7265 = vmatprep.subr.bf16.mxu1 %v10073_v18  ;;  %v10083_v18 = vld [vmem:[%s15254_s1 + $0x1be0] ss:$16 sps:$4 sm:$0xff]  }
 0x19b   :  { %7213 = vmatpush1.bf16.msra.mxu0 %v10068_v30  ;;  %v10088_v30 = vld [vmem:[%s15254_s1 + $0x19c4] ss:$16 sps:$4 sm:$0xff]  }
 0x19c   :  { %7266 = vmatpush1.bf16.msra.mxu1 %v10071_v13  ;;  %7214 = vmatprep.subr.bf16.mxu0 %v10076_v1  ;;  %v10091_v13 = vld [vmem:[%s15254_s1 + $0x1bc4] ss:$16 sps:$4 sm:$0xff]   ;;  %v10086_v1 = vld [vmem:[%s15254_s1 + $0x19c0] ss:$16 sps:$4 sm:$0xff]  }
 0x19d   :  { %7267 = vmatprep.subr.bf16.mxu1 %v10079_v15  ;;  %v10089_v15 = vld [vmem:[%s15254_s1 + $0x1bc0] ss:$16 sps:$4 sm:$0xff]  }
 0x19f   :  { %7215 = vmatpush1.bf16.msra.mxu0 %v10074_v24  ;;  %v10094_v24 = vld [vmem:[%s15254_s1 + $0x19a4] ss:$16 sps:$4 sm:$0xff]  }
 0x1a0   :  { %7268 = vmatpush1.bf16.msra.mxu1 %v10077_v26  ;;  %7216 = vmatprep.subr.bf16.mxu0 %v10082_v48  ;;  %v10097_v26 = vld [vmem:[%s15254_s1 + $0x1ba4] ss:$16 sps:$4 sm:$0xff]   ;;  %v10092_v48 = vld [vmem:[%s15254_s1 + $0x19a0] ss:$16 sps:$4 sm:$0xff]  }
 0x1a1   :  { %7269 = vmatprep.subr.bf16.mxu1 %v10085_v2  ;;  %v10095_v2 = vld [vmem:[%s15254_s1 + $0x1ba0] ss:$16 sps:$4 sm:$0xff]  }
 0x1a3   :  { %7217 = vmatpush2.bf16.msra.mxu0 %v10080_v54  ;;  %v10100_v54 = vld [vmem:[%s15254_s1 + $0x1984] ss:$16 sps:$4 sm:$0xff]  }
 0x1a4   :  { %7270 = vmatpush2.bf16.msra.mxu1 %v10083_v18  ;;  %7218 = vmatprep.subr.bf16.mxu0 %v10088_v30  ;;  %v10103_v18 = vld [vmem:[%s15254_s1 + $0x1b84] ss:$16 sps:$4 sm:$0xff]   ;;  %v10098_v30 = vld [vmem:[%s15254_s1 + $0x1980] ss:$16 sps:$4 sm:$0xff]  }
 0x1a5   :  { %7271 = vmatprep.subr.bf16.mxu1 %v10091_v13  ;;  %v10101_v13 = vld [vmem:[%s15254_s1 + $0x1b80] ss:$16 sps:$4 sm:$0xff]  }
 0x1a7   :  { %7219 = vmatpush2.bf16.msra.mxu0 %v10086_v1  ;;  %v10106_v1 = vld [vmem:[%s15254_s1 + $0x1964] ss:$16 sps:$4 sm:$0xff]  }
 0x1a8   :  { %7272 = vmatpush2.bf16.msra.mxu1 %v10089_v15  ;;  %7220 = vmatprep.subr.bf16.mxu0 %v10094_v24  ;;  %v10109_v15 = vld [vmem:[%s15254_s1 + $0x1b64] ss:$16 sps:$4 sm:$0xff]   ;;  %v10104_v24 = vld [vmem:[%s15254_s1 + $0x1960] ss:$16 sps:$4 sm:$0xff]  }
 0x1a9   :  { %7273 = vmatprep.subr.bf16.mxu1 %v10097_v26  ;;  %v10107_v26 = vld [vmem:[%s15254_s1 + $0x1b60] ss:$16 sps:$4 sm:$0xff]  }
 0x1ab   :  { %7221 = vmatpush2.bf16.msra.mxu0 %v10092_v48  ;;  %v10112_v48 = vld [vmem:[%s15254_s1 + $0x1944] ss:$16 sps:$4 sm:$0xff]  }
 0x1ac   :  { %7274 = vmatpush2.bf16.msra.mxu1 %v10095_v2  ;;  %7222 = vmatprep.subr.bf16.mxu0 %v10100_v54  ;;  %v10115_v2 = vld [vmem:[%s15254_s1 + $0x1b44] ss:$16 sps:$4 sm:$0xff]   ;;  %v10110_v54 = vld [vmem:[%s15254_s1 + $0x1940] ss:$16 sps:$4 sm:$0xff]  }
 0x1ad   :  { %7275 = vmatprep.subr.bf16.mxu1 %v10103_v18  ;;  %v10113_v18 = vld [vmem:[%s15254_s1 + $0x1b40] ss:$16 sps:$4 sm:$0xff]  }
 0x1af   :  { %7223 = vmatpush2.bf16.msra.mxu0 %v10098_v30  ;;  %v10118_v30 = vld [vmem:[%s15254_s1 + $0x1924] ss:$16 sps:$4 sm:$0xff]  }
 0x1b0   :  { %7276 = vmatpush2.bf16.msra.mxu1 %v10101_v13  ;;  %7224 = vmatprep.subr.bf16.mxu0 %v10106_v1  ;;  %v10121_v13 = vld [vmem:[%s15254_s1 + $0x1b24] ss:$16 sps:$4 sm:$0xff]   ;;  %v10116_v1 = vld [vmem:[%s15254_s1 + $0x1920] ss:$16 sps:$4 sm:$0xff]  }
 0x1b1   :  { %7277 = vmatprep.subr.bf16.mxu1 %v10109_v15  ;;  %v10119_v15 = vld [vmem:[%s15254_s1 + $0x1b20] ss:$16 sps:$4 sm:$0xff]  }
 0x1b3   :  { %7225 = vmatpush2.bf16.msra.mxu0 %v10104_v24  ;;  %v10124_v24 = vld [vmem:[%s15254_s1 + $0x1904] ss:$16 sps:$4 sm:$0xff]  }
 0x1b4   :  { %7278 = vmatpush2.bf16.msra.mxu1 %v10107_v26  ;;  %7226 = vmatprep.subr.bf16.mxu0 %v10112_v48  ;;  %v10127_v26 = vld [vmem:[%s15254_s1 + $0x1b04] ss:$16 sps:$4 sm:$0xff]   ;;  %v10122_v48 = vld [vmem:[%s15254_s1 + $0x1900] ss:$16 sps:$4 sm:$0xff]  }
 0x1b5   :  { %7279 = vmatprep.subr.bf16.mxu1 %v10115_v2  ;;  %v10125_v2 = vld [vmem:[%s15254_s1 + $0x1b00] ss:$16 sps:$4 sm:$0xff]  }
 0x1b7   :  { %7227 = vmatpush2.bf16.msra.mxu0 %v10110_v54  ;;  %v10130_v54 = vld [vmem:[%s15254_s1 + $0x1ce4] ss:$16 sps:$4 sm:$0xff]  }
 0x1b8   :  { %7280 = vmatpush2.bf16.msra.mxu1 %v10113_v18  ;;  %7228 = vmatprep.subr.bf16.mxu0 %v10118_v30  ;;  %v10133_v18 = vld [vmem:[%s15254_s1 + $0x1ee4] ss:$16 sps:$4 sm:$0xff]  }
 0x1b9   :  { %7281 = vmatprep.subr.bf16.mxu1 %v10121_v13  ;;  %v58_v30 = vld [vmem:[%s15255_s0 + $0x160] sm:$0xff] }
 0x1ba   :  { %v74_v13 = vld [vmem:[%s15255_s0 + $0x1e0] sm:$0xff] }
 0x1bb   :  { %7229 = vmatpush2.bf16.msra.mxu0 %v10116_v1  ;;  %v59_v1 = vld [vmem:[%s15255_s0 + $0x168] sm:$0xff]  ;;  %v12858_v61 = vcombine.high %v58_v30, %v74_v13 }
 0x1bc   :  { %7282 = vmatpush2.bf16.msra.mxu1 %v10119_v15  ;;  %7230 = vmatprep.subr.bf16.mxu0 %v10124_v24  ;;  %v75_v15 = vld [vmem:[%s15255_s0 + $0x1e8] sm:$0xff]  ;;  %v10128_v24 = vld [vmem:[%s15254_s1 + $0x1ce0] ss:$16 sps:$4 sm:$0xff]  }
 0x1bd   :  { %7283 = vmatprep.subr.bf16.mxu1 %v10127_v26  ;;  %v10131_v26 = vld [vmem:[%s15254_s1 + $0x1ee0] ss:$16 sps:$4 sm:$0xff]   ;;  %15341 = vst [vmem:[#allocation37_spill] sm:$0xff] %v12858_v61  ;;  %v12860_v3 = vcombine.high %v59_v1, %v75_v15 }
 0x1bf   :  { %7231 = vmatpush2.bf16.msra.mxu0 %v10122_v48  ;;  %15342 = vst [vmem:[#allocation38_spill] sm:$0xff] %v12860_v3  ;;  %v10142_v48 = vld [vmem:[%s15254_s1 + $0x1ca4] ss:$16 sps:$4 sm:$0xff]  }
 0x1c0   :  { %7284 = vmatpush2.bf16.msra.mxu1 %v10125_v2  ;;  %7306 = vmatprep.subr.bf16.mxu0 %v10130_v54  ;;  %v10145_v2 = vld [vmem:[%s15254_s1 + $0x1ea4] ss:$16 sps:$4 sm:$0xff]  }
 0x1c1   :  { %7359 = vmatprep.subr.bf16.mxu1 %v10133_v18  ;;  %v12873_v54 = vld [vmem:[%s15255_s0 + $0x70] sm:$0xff] }
 0x1c2   :  { %7233 = vmatmul.mubr.bf16.vlgmr.msra.gmra.mxu0 %v12840_v12  ;;  %v12878_v18 = vld [vmem:[%s15255_s0 + $0xf0] sm:$0xff] }
 0x1c3   :  { %7286 = vmatmul.mubr.bf16.vlgmr.msra.gmra.mxu1 %v12844_v7  ;;  %7307 = vmatpush1.bf16.msra.mxu0 %v10128_v24  ;;  %v10140_v7 = vld [vmem:[%s15254_s1 + $0x1ca0] ss:$16 sps:$4 sm:$0xff]   ;;  %v12896_v24 = vld [vmem:[%s15255_s0 + $0xf8] sm:$0xff]  ;;  %v10151_v12 = vld [vmem:[%s15254_s1 + $0x1e84] ss:$16 sps:$4 sm:$0xff]  }
 0x1c4   :  { %7360 = vmatpush1.bf16.msra.mxu1 %v10131_v26  ;;  %7308 = vmatprep.subr.bf16.mxu0 %v10136_v0  ;;  %v12891_v0 = vld [vmem:[%s15255_s0 + $0x78] sm:$0xff]  ;;  %v12898_v26 = vcombine.low %v58_v30, %v74_v13  ;;  %v10149_v30 = vld [vmem:[%s15254_s1 + $0x1e80] ss:$16 sps:$4 sm:$0xff]   ;;  %v12916_v13 = vcombine.high %v12873_v54, %v12878_v18 }
 0x1c5   :  { %7361 = vmatprep.subr.bf16.mxu1 %v10139_v19  ;;  %7242 = vmatprep.mubr.bf16.mxu0 %v12858_v61  ;;  %v10143_v19 = vld [vmem:[%s15254_s1 + $0x1ea0] ss:$16 sps:$4 sm:$0xff]   ;;  %v12900_v61 = vcombine.low %v59_v1, %v75_v15  ;;  %v12920_v1 = vcombine.high %v12891_v0, %v12896_v24  ;;  %v10154_v15 = vld [vmem:[%s15254_s1 + $0x1c64] ss:$16 sps:$4 sm:$0xff]  }
 0x1c6   :  { %7295 = vmatprep.mubr.bf16.mxu1 %v12860_v3  ;;  %15343 = vst [vmem:[#allocation39_spill] sm:$0xff] %v12898_v26  ;;  %v10148_v3 = vld [vmem:[%s15254_s1 + $0x1c84] ss:$16 sps:$4 sm:$0xff]   ;;  %15345 = vst [vmem:[#allocation41_spill] sm:$0xff] %v12916_v13 }
 0x1c7   :  { %15344 = vst [vmem:[#allocation40_spill] sm:$0xff] %v12900_v61  ;;  %7309 = vmatpush1.bf16.msra.mxu0 %v10134_v45  ;;  %15346 = vst [vmem:[#allocation42_spill] sm:$0xff] %v12920_v1  ;;  %v10157_v45 = vld [vmem:[%s15254_s1 + $0x1e64] ss:$16 sps:$4 sm:$0xff]  }
 0x1c8   :  { %7362 = vmatpush1.bf16.msra.mxu1 %v10137_v31  ;;  %7310 = vmatprep.subr.bf16.mxu0 %v10142_v48  ;;  %v10152_v31 = vld [vmem:[%s15254_s1 + $0x1c60] ss:$16 sps:$4 sm:$0xff]  }
 0x1c9   :  { %7363 = vmatprep.subr.bf16.mxu1 %v10145_v2  ;;  %v10155_v48 = vld [vmem:[%s15254_s1 + $0x1e60] ss:$16 sps:$4 sm:$0xff]   ;;  %v10166_v2 = vld [vmem:[%s15254_s1 + $0x1c24] ss:$16 sps:$4 sm:$0xff]  }
 0x1ca   :  { %7243 = vmatmul.mubr.bf16.gmra.mxu0 %v12898_v26  ;;  %v10334_v26 = vld [vmem:[%s15254_s1 + $0x4ac] ss:$16 sps:$4 sm:$0xff]  }
 0x1cb   :  { %7296 = vmatmul.mubr.bf16.gmra.mxu1 %v12900_v61  ;;  %7311 = vmatpush1.bf16.msra.mxu0 %v10140_v7  ;;  %v10160_v7 = vld [vmem:[%s15254_s1 + $0x1c44] ss:$16 sps:$4 sm:$0xff]   ;;  %v10235_v61 = vld [vmem:[%s15254_s1 + $0x2cc] ss:$16 sps:$4 sm:$0xff]  }
 0x1cc   :  { %7364 = vmatpush1.bf16.msra.mxu1 %v10143_v19  ;;  %7312 = vmatprep.subr.bf16.mxu0 %v10148_v3  ;;  %v10158_v3 = vld [vmem:[%s15254_s1 + $0x1c40] ss:$16 sps:$4 sm:$0xff]   ;;  %v10169_v19 = vld [vmem:[%s15254_s1 + $0x1e24] ss:$16 sps:$4 sm:$0xff]  }
 0x1cd   :  { %7365 = vmatprep.subr.bf16.mxu1 %v10151_v12  ;;  %7338 = vmatprep.mubr.bf16.mxu0 %v12916_v13  ;;  %v10163_v12 = vld [vmem:[%s15254_s1 + $0x1e44] ss:$16 sps:$4 sm:$0xff]   ;;  %v10232_v13 = vld [vmem:[%s15254_s1 + $0xcc] ss:$16 sps:$4 sm:$0xff]  }
 0x1ce   :  { %7391 = vmatprep.mubr.bf16.mxu1 %v12920_v1  ;;  %v13100_v1 = vcombine.low %v12891_v0, %v12896_v24 }
 0x1cf   :  { %7313 = vmatpush1.bf16.msra.mxu0 %v10146_v39  ;;  %v10161_v39 = vld [vmem:[%s15254_s1 + $0x1e40] ss:$16 sps:$4 sm:$0xff]  }
 0x1d0   :  { %7366 = vmatpush1.bf16.msra.mxu1 %v10149_v30  ;;  %7314 = vmatprep.subr.bf16.mxu0 %v10154_v15  ;;  %v10164_v30 = vld [vmem:[%s15254_s1 + $0x1c20] ss:$16 sps:$4 sm:$0xff]   ;;  %15348 = vst [vmem:[#allocation44_spill] sm:$0xff] %v13100_v1 }
 0x1d1   :  { %7367 = vmatprep.subr.bf16.mxu1 %v10157_v45  ;;  %v10167_v15 = vld [vmem:[%s15254_s1 + $0x1e20] ss:$16 sps:$4 sm:$0xff]   ;;  %v10172_v45 = vld [vmem:[%s15254_s1 + $0x1c04] ss:$16 sps:$4 sm:$0xff]  }
 0x1d3   :  { %7315 = vmatpush1.bf16.msra.mxu0 %v10152_v31  ;;  %v10175_v31 = vld [vmem:[%s15254_s1 + $0x1e04] ss:$16 sps:$4 sm:$0xff]  }
 0x1d4   :  { %7368 = vmatpush1.bf16.msra.mxu1 %v10155_v48  ;;  %7316 = vmatprep.subr.bf16.mxu0 %v10160_v7  ;;  %v10170_v48 = vld [vmem:[%s15254_s1 + $0x1c00] ss:$16 sps:$4 sm:$0xff]  }
 0x1d5   :  { %7369 = vmatprep.subr.bf16.mxu1 %v10163_v12  ;;  %v10173_v7 = vld [vmem:[%s15254_s1 + $0x1e00] ss:$16 sps:$4 sm:$0xff]   ;;  %v10178_v12 = vld [vmem:[%s15254_s1 + $0x1de4] ss:$16 sps:$4 sm:$0xff]  }
 0x1d7   :  { %7317 = vmatpush1.bf16.msra.mxu0 %v10158_v3  ;;  %v10181_v3 = vld [vmem:[%s15254_s1 + $0x1fe4] ss:$16 sps:$4 sm:$0xff]  }
 0x1d8   :  { %7370 = vmatpush1.bf16.msra.mxu1 %v10161_v39  ;;  %7318 = vmatprep.subr.bf16.mxu0 %v10166_v2  ;;  %v10176_v39 = vld [vmem:[%s15254_s1 + $0x1de0] ss:$16 sps:$4 sm:$0xff]  }
 0x1d9   :  { %7371 = vmatprep.subr.bf16.mxu1 %v10169_v19  ;;  %v10179_v2 = vld [vmem:[%s15254_s1 + $0x1fe0] ss:$16 sps:$4 sm:$0xff]   ;;  %v10184_v19 = vld [vmem:[%s15254_s1 + $0x1dc4] ss:$16 sps:$4 sm:$0xff]  }
 0x1db   :  { %7319 = vmatpush1.bf16.msra.mxu0 %v10164_v30  ;;  %v10187_v30 = vld [vmem:[%s15254_s1 + $0x1fc4] ss:$16 sps:$4 sm:$0xff]  }
 0x1dc   :  { %7372 = vmatpush1.bf16.msra.mxu1 %v10167_v15  ;;  %7320 = vmatprep.subr.bf16.mxu0 %v10172_v45  ;;  %v10182_v15 = vld [vmem:[%s15254_s1 + $0x1dc0] ss:$16 sps:$4 sm:$0xff]  }
 0x1dd   :  { %7373 = vmatprep.subr.bf16.mxu1 %v10175_v31  ;;  %v10185_v45 = vld [vmem:[%s15254_s1 + $0x1fc0] ss:$16 sps:$4 sm:$0xff]   ;;  %v10190_v31 = vld [vmem:[%s15254_s1 + $0x1da4] ss:$16 sps:$4 sm:$0xff]  }
 0x1df   :  { %7321 = vmatpush1.bf16.msra.mxu0 %v10170_v48  ;;  %v10193_v48 = vld [vmem:[%s15254_s1 + $0x1fa4] ss:$16 sps:$4 sm:$0xff]  }
 0x1e0   :  { %7374 = vmatpush1.bf16.msra.mxu1 %v10173_v7  ;;  %7322 = vmatprep.subr.bf16.mxu0 %v10178_v12  ;;  %v10188_v7 = vld [vmem:[%s15254_s1 + $0x1da0] ss:$16 sps:$4 sm:$0xff]  }
 0x1e1   :  { %7375 = vmatprep.subr.bf16.mxu1 %v10181_v3  ;;  %v10191_v12 = vld [vmem:[%s15254_s1 + $0x1fa0] ss:$16 sps:$4 sm:$0xff]   ;;  %v10196_v3 = vld [vmem:[%s15254_s1 + $0x1d84] ss:$16 sps:$4 sm:$0xff]  }
 0x1e3   :  { %7323 = vmatpush2.bf16.msra.mxu0 %v10176_v39  ;;  %v10199_v39 = vld [vmem:[%s15254_s1 + $0x1f84] ss:$16 sps:$4 sm:$0xff]  }
 0x1e4   :  { %7376 = vmatpush2.bf16.msra.mxu1 %v10179_v2  ;;  %7324 = vmatprep.subr.bf16.mxu0 %v10184_v19  ;;  %v10194_v2 = vld [vmem:[%s15254_s1 + $0x1d80] ss:$16 sps:$4 sm:$0xff]  }
 0x1e5   :  { %7377 = vmatprep.subr.bf16.mxu1 %v10187_v30  ;;  %v10197_v19 = vld [vmem:[%s15254_s1 + $0x1f80] ss:$16 sps:$4 sm:$0xff]   ;;  %v10202_v30 = vld [vmem:[%s15254_s1 + $0x1d64] ss:$16 sps:$4 sm:$0xff]  }
 0x1e7   :  { %7325 = vmatpush2.bf16.msra.mxu0 %v10182_v15  ;;  %v10205_v15 = vld [vmem:[%s15254_s1 + $0x1f64] ss:$16 sps:$4 sm:$0xff]  }
 0x1e8   :  { %7378 = vmatpush2.bf16.msra.mxu1 %v10185_v45  ;;  %7326 = vmatprep.subr.bf16.mxu0 %v10190_v31  ;;  %v10200_v45 = vld [vmem:[%s15254_s1 + $0x1d60] ss:$16 sps:$4 sm:$0xff]  }
 0x1e9   :  { %7379 = vmatprep.subr.bf16.mxu1 %v10193_v48  ;;  %v10203_v31 = vld [vmem:[%s15254_s1 + $0x1f60] ss:$16 sps:$4 sm:$0xff]   ;;  %v10208_v48 = vld [vmem:[%s15254_s1 + $0x1d44] ss:$16 sps:$4 sm:$0xff]  }
 0x1eb   :  { %7327 = vmatpush2.bf16.msra.mxu0 %v10188_v7  ;;  %v10211_v7 = vld [vmem:[%s15254_s1 + $0x1f44] ss:$16 sps:$4 sm:$0xff]  }
 0x1ec   :  { %7380 = vmatpush2.bf16.msra.mxu1 %v10191_v12  ;;  %7328 = vmatprep.subr.bf16.mxu0 %v10196_v3  ;;  %v10206_v12 = vld [vmem:[%s15254_s1 + $0x1d40] ss:$16 sps:$4 sm:$0xff]  }
 0x1ed   :  { %7381 = vmatprep.subr.bf16.mxu1 %v10199_v39  ;;  %v10209_v3 = vld [vmem:[%s15254_s1 + $0x1f40] ss:$16 sps:$4 sm:$0xff]   ;;  %v10214_v39 = vld [vmem:[%s15254_s1 + $0x1d24] ss:$16 sps:$4 sm:$0xff]  }
 0x1ef   :  { %7329 = vmatpush2.bf16.msra.mxu0 %v10194_v2  ;;  %v10217_v2 = vld [vmem:[%s15254_s1 + $0x1f24] ss:$16 sps:$4 sm:$0xff]  }
 0x1f0   :  { %7382 = vmatpush2.bf16.msra.mxu1 %v10197_v19  ;;  %7330 = vmatprep.subr.bf16.mxu0 %v10202_v30  ;;  %v10212_v19 = vld [vmem:[%s15254_s1 + $0x1d20] ss:$16 sps:$4 sm:$0xff]  }
 0x1f1   :  { %7383 = vmatprep.subr.bf16.mxu1 %v10205_v15  ;;  %v10215_v30 = vld [vmem:[%s15254_s1 + $0x1f20] ss:$16 sps:$4 sm:$0xff]   ;;  %v10220_v15 = vld [vmem:[%s15254_s1 + $0x1d04] ss:$16 sps:$4 sm:$0xff]  }
 0x1f3   :  { %7331 = vmatpush2.bf16.msra.mxu0 %v10200_v45  ;;  %v10223_v45 = vld [vmem:[%s15254_s1 + $0x1f04] ss:$16 sps:$4 sm:$0xff]  }
 0x1f4   :  { %7384 = vmatpush2.bf16.msra.mxu1 %v10203_v31  ;;  %7332 = vmatprep.subr.bf16.mxu0 %v10208_v48  ;;  %v10218_v31 = vld [vmem:[%s15254_s1 + $0x1d00] ss:$16 sps:$4 sm:$0xff]  }
 0x1f5   :  { %7385 = vmatprep.subr.bf16.mxu1 %v10211_v7  ;;  %v10221_v48 = vld [vmem:[%s15254_s1 + $0x1f00] ss:$16 sps:$4 sm:$0xff]   ;;  %v10226_v7 = vld [vmem:[%s15254_s1 + $0xec] ss:$16 sps:$4 sm:$0xff]  }
 0x1f7   :  { %7333 = vmatpush2.bf16.msra.mxu0 %v10206_v12  ;;  %v10229_v12 = vld [vmem:[%s15254_s1 + $0x2ec] ss:$16 sps:$4 sm:$0xff]  }
 0x1f8   :  { %7386 = vmatpush2.bf16.msra.mxu1 %v10209_v3  ;;  %7334 = vmatprep.subr.bf16.mxu0 %v10214_v39  ;;  %v60_v3 = vld [vmem:[%s15255_s0 + $0x170] sm:$0xff] }
 0x1f9   :  { %7387 = vmatprep.subr.bf16.mxu1 %v10217_v2  ;;  %v76_v39 = vld [vmem:[%s15255_s0 + $0x1f0] sm:$0xff]  ;;  %v61_v2 = vld [vmem:[%s15255_s0 + $0x178] sm:$0xff] }
 0x1fa   :  { %v13114_v0 = vcombine.high %v60_v3, %v76_v39 }
 0x1fb   :  { %7335 = vmatpush2.bf16.msra.mxu0 %v10212_v19  ;;  %v77_v19 = vld [vmem:[%s15255_s0 + $0x1f8] sm:$0xff] }
 0x1fc   :  { %7388 = vmatpush2.bf16.msra.mxu1 %v10215_v30  ;;  %7336 = vmatprep.subr.bf16.mxu0 %v10220_v15  ;;  %v10224_v30 = vld [vmem:[%s15254_s1 + $0xe8] ss:$16 sps:$4 sm:$0xff]   ;;  %15349 = vst [vmem:[#allocation45_spill] sm:$0xff] %v13114_v0  ;;  %v13116_v24 = vcombine.high %v61_v2, %v77_v19 }
 0x1fd   :  { %7389 = vmatprep.subr.bf16.mxu1 %v10223_v45  ;;  %v10227_v15 = vld [vmem:[%s15254_s1 + $0x2e8] ss:$16 sps:$4 sm:$0xff]   ;;  %v13096_v45 = vcombine.low %v12873_v54, %v12878_v18 }
 0x1fe   :  { %v10230_v54 = vld [vmem:[%s15254_s1 + $0xc8] ss:$16 sps:$4 sm:$0xff]   ;;  %15350 = vst [vmem:[#allocation46_spill] sm:$0xff] %v13116_v24 }
 0x1ff   :  { %15347 = vst [vmem:[#allocation43_spill] sm:$0xff] %v13096_v45  ;;  %7337 = vmatpush2.bf16.msra.mxu0 %v10218_v31  ;;  %v10233_v18 = vld [vmem:[%s15254_s1 + $0x2c8] ss:$16 sps:$4 sm:$0xff]   ;;  %v10238_v31 = vld [vmem:[%s15254_s1 + $0xac] ss:$16 sps:$4 sm:$0xff]  }
 0x200   :  { %7390 = vmatpush2.bf16.msra.mxu1 %v10221_v48  ;;  %7412 = vmatprep.subr.bf16.mxu0 %v10226_v7  ;;  %v10241_v48 = vld [vmem:[%s15254_s1 + $0x2ac] ss:$16 sps:$4 sm:$0xff]   ;;  %v10236_v7 = vld [vmem:[%s15254_s1 + $0xa8] ss:$16 sps:$4 sm:$0xff]  }
 0x201   :  { %7465 = vmatprep.subr.bf16.mxu1 %v10229_v12  ;;  %v10239_v12 = vld [vmem:[%s15254_s1 + $0x2a8] ss:$16 sps:$4 sm:$0xff]  }
 0x202   :  { %7339 = vmatmul.mubr.bf16.vlgmr.msra.gmra.mxu0 %v13096_v45  ;;  %v10326_v45 = vld [vmem:[%s15254_s1 + $0x4c8] ss:$16 sps:$4 sm:$0xff]  }
 0x203   :  { %7392 = vmatmul.mubr.bf16.vlgmr.msra.gmra.mxu1 %v13100_v1  ;;  %7413 = vmatpush1.bf16.msra.mxu0 %v10224_v30  ;;  %v10244_v30 = vld [vmem:[%s15254_s1 + $0x8c] ss:$16 sps:$4 sm:$0xff]  }
 0x204   :  { %7466 = vmatpush1.bf16.msra.mxu1 %v10227_v15  ;;  %7414 = vmatprep.subr.bf16.mxu0 %v10232_v13  ;;  %v13136_v13 = vcombine.low %v61_v2, %v77_v19  ;;  %v10247_v15 = vld [vmem:[%s15254_s1 + $0x28c] ss:$16 sps:$4 sm:$0xff]   ;;  %v10248_v19 = vld [vmem:[%s15254_s1 + $0x68] ss:$16 sps:$4 sm:$0xff]  }
 0x205   :  { %7467 = vmatprep.subr.bf16.mxu1 %v10235_v61  ;;  %7348 = vmatprep.mubr.bf16.mxu0 %v13114_v0  ;;  %v13134_v61 = vcombine.low %v60_v3, %v76_v39  ;;  %v10245_v3 = vld [vmem:[%s15254_s1 + $0x288] ss:$16 sps:$4 sm:$0xff]   ;;  %v10250_v39 = vld [vmem:[%s15254_s1 + $0x6c] ss:$16 sps:$4 sm:$0xff]  }
 0x206   :  { %7401 = vmatprep.mubr.bf16.mxu1 %v13116_v24  ;;  %15352 = vst [vmem:[#allocation48_spill] sm:$0xff] %v13136_v13  ;;  %v10242_v24 = vld [vmem:[%s15254_s1 + $0x88] ss:$16 sps:$4 sm:$0xff]   ;;  %v10253_v2 = vld [vmem:[%s15254_s1 + $0x26c] ss:$16 sps:$4 sm:$0xff]  }
 0x207   :  { %15351 = vst [vmem:[#allocation47_spill] sm:$0xff] %v13134_v61  ;;  %7415 = vmatpush1.bf16.msra.mxu0 %v10230_v54  ;;  %v10251_v54 = vld [vmem:[%s15254_s1 + $0x268] ss:$16 sps:$4 sm:$0xff]   ;;  %v10331_v1 = vld [vmem:[%s15254_s1 + $0x6cc] ss:$16 sps:$4 sm:$0xff]  }
 0x208   :  { %7468 = vmatpush1.bf16.msra.mxu1 %v10233_v18  ;;  %7416 = vmatprep.subr.bf16.mxu0 %v10238_v31  ;;  %v10256_v18 = vld [vmem:[%s15254_s1 + $0x4c] ss:$16 sps:$4 sm:$0xff]  }
 0x209   :  { %7469 = vmatprep.subr.bf16.mxu1 %v10241_v48  ;;  %v10259_v31 = vld [vmem:[%s15254_s1 + $0x24c] ss:$16 sps:$4 sm:$0xff]  }
 0x20a   :  { %7349 = vmatmul.mubr.bf16.gmra.mxu0 %v13134_v61  ;;  %v10265_v48 = vld [vmem:[%s15254_s1 + $0x22c] ss:$16 sps:$4 sm:$0xff]   ;;  %v10323_v61 = vld [vmem:[%s15254_s1 + $0x6e8] ss:$16 sps:$4 sm:$0xff]  }
 0x20b   :  { %7402 = vmatmul.mubr.bf16.gmra.mxu1 %v13136_v13  ;;  %7417 = vmatpush1.bf16.msra.mxu0 %v10236_v7  ;;  %v10260_v7 = vld [vmem:[%s15254_s1 + $0x28] ss:$16 sps:$4 sm:$0xff]   ;;  %v10322_v13 = vld [vmem:[%s15254_s1 + $0x4ec] ss:$16 sps:$4 sm:$0xff]  }
 0x20c   :  { %7470 = vmatpush1.bf16.msra.mxu1 %v10239_v12  ;;  %7418 = vmatprep.subr.bf16.mxu0 %v10244_v30  ;;  %v10263_v12 = vld [vmem:[%s15254_s1 + $0x228] ss:$16 sps:$4 sm:$0xff]   ;;  %v10268_v30 = vld [vmem:[%s15254_s1 + $0xc] ss:$16 sps:$4 sm:$0xff]  }
 0x20d   :  { %7471 = vmatprep.subr.bf16.mxu1 %v10247_v15  ;;  %7444 = vmatprep.mubr.bf16.mxu0 %v11172_v53  ;;  %v10254_v53 = vld [vmem:[%s15254_s1 + $0x48] ss:$16 sps:$4 sm:$0xff]   ;;  %v10271_v15 = vld [vmem:[%s15254_s1 + $0x20c] ss:$16 sps:$4 sm:$0xff]  }
 0x20e   :  { %7497 = vmatprep.mubr.bf16.mxu1 %v11177_v55  ;;  %v10257_v55 = vld [vmem:[%s15254_s1 + $0x248] ss:$16 sps:$4 sm:$0xff]  }
 0x20f   :  { %7419 = vmatpush1.bf16.msra.mxu0 %v10242_v24  ;;  %v10262_v24 = vld [vmem:[%s15254_s1 + $0x2c] ss:$16 sps:$4 sm:$0xff]  }
 0x210   :  { %7472 = vmatpush1.bf16.msra.mxu1 %v10245_v3  ;;  %7420 = vmatprep.subr.bf16.mxu0 %v10250_v39  ;;  %v10266_v3 = vld [vmem:[%s15254_s1 + $0x8] ss:$16 sps:$4 sm:$0xff]  }
 0x211   :  { %7473 = vmatprep.subr.bf16.mxu1 %v10253_v2  ;;  %v10269_v39 = vld [vmem:[%s15254_s1 + $0x208] ss:$16 sps:$4 sm:$0xff]   ;;  %v10274_v2 = vld [vmem:[%s15254_s1 + $0x1ec] ss:$16 sps:$4 sm:$0xff]  }
 0x213   :  { %7421 = vmatpush1.bf16.msra.mxu0 %v10248_v19  ;;  %v10277_v19 = vld [vmem:[%s15254_s1 + $0x3ec] ss:$16 sps:$4 sm:$0xff]  }
 0x214   :  { %7474 = vmatpush1.bf16.msra.mxu1 %v10251_v54  ;;  %7422 = vmatprep.subr.bf16.mxu0 %v10256_v18  ;;  %v10272_v54 = vld [vmem:[%s15254_s1 + $0x1e8] ss:$16 sps:$4 sm:$0xff]  }
 0x215   :  { %7475 = vmatprep.subr.bf16.mxu1 %v10259_v31  ;;  %v10275_v18 = vld [vmem:[%s15254_s1 + $0x3e8] ss:$16 sps:$4 sm:$0xff]   ;;  %v10280_v31 = vld [vmem:[%s15254_s1 + $0x1cc] ss:$16 sps:$4 sm:$0xff]  }
 0x217   :  { %7423 = vmatpush1.bf16.msra.mxu0 %v10254_v53  ;;  %v10283_v53 = vld [vmem:[%s15254_s1 + $0x3cc] ss:$16 sps:$4 sm:$0xff]  }
 0x218   :  { %7476 = vmatpush1.bf16.msra.mxu1 %v10257_v55  ;;  %7424 = vmatprep.subr.bf16.mxu0 %v10262_v24  ;;  %v10278_v55 = vld [vmem:[%s15254_s1 + $0x1c8] ss:$16 sps:$4 sm:$0xff]  }
 0x219   :  { %7477 = vmatprep.subr.bf16.mxu1 %v10265_v48  ;;  %v10281_v24 = vld [vmem:[%s15254_s1 + $0x3c8] ss:$16 sps:$4 sm:$0xff]   ;;  %v10286_v48 = vld [vmem:[%s15254_s1 + $0x1ac] ss:$16 sps:$4 sm:$0xff]  }
 0x21b   :  { %7425 = vmatpush1.bf16.msra.mxu0 %v10260_v7  ;;  %v10289_v7 = vld [vmem:[%s15254_s1 + $0x3ac] ss:$16 sps:$4 sm:$0xff]  }
 0x21c   :  { %7478 = vmatpush1.bf16.msra.mxu1 %v10263_v12  ;;  %7426 = vmatprep.subr.bf16.mxu0 %v10268_v30  ;;  %v10284_v12 = vld [vmem:[%s15254_s1 + $0x1a8] ss:$16 sps:$4 sm:$0xff]  }
 0x21d   :  { %7479 = vmatprep.subr.bf16.mxu1 %v10271_v15  ;;  %v10287_v30 = vld [vmem:[%s15254_s1 + $0x3a8] ss:$16 sps:$4 sm:$0xff]   ;;  %v10292_v15 = vld [vmem:[%s15254_s1 + $0x18c] ss:$16 sps:$4 sm:$0xff]  }
 0x21f   :  { %7427 = vmatpush1.bf16.msra.mxu0 %v10266_v3  ;;  %v10295_v3 = vld [vmem:[%s15254_s1 + $0x38c] ss:$16 sps:$4 sm:$0xff]  }
 0x220   :  { %7480 = vmatpush1.bf16.msra.mxu1 %v10269_v39  ;;  %7428 = vmatprep.subr.bf16.mxu0 %v10274_v2  ;;  %v13244_v39 = vpop.f32.mrf.mxu0  ;;  %v10290_v2 = vld [vmem:[%s15254_s1 + $0x188] ss:$16 sps:$4 sm:$0xff]  }
 0x221   :  { %7481 = vmatprep.subr.bf16.mxu1 %v10277_v19  ;;  %v10293_v19 = vld [vmem:[%s15254_s1 + $0x388] ss:$16 sps:$4 sm:$0xff]  }
 0x223   :  { %7429 = vmatpush2.bf16.msra.mxu0 %v10272_v54  ;;  %v13252_v54 = vpop.f32.mrf.mxu0 }
 0x224   :  { %7482 = vmatpush2.bf16.msra.mxu1 %v10275_v18  ;;  %7430 = vmatprep.subr.bf16.mxu0 %v10280_v31  ;;  %v10298_v18 = vld [vmem:[%s15254_s1 + $0x16c] ss:$16 sps:$4 sm:$0xff]  }
 0x225   :  { %7483 = vmatprep.subr.bf16.mxu1 %v10283_v53  ;;  %v10301_v31 = vld [vmem:[%s15254_s1 + $0x36c] ss:$16 sps:$4 sm:$0xff]   ;;  %v10296_v53 = vld [vmem:[%s15254_s1 + $0x168] ss:$16 sps:$4 sm:$0xff]  }
 0x227   :  { %7431 = vmatpush2.bf16.msra.mxu0 %v10278_v55  ;;  %v10299_v55 = vld [vmem:[%s15254_s1 + $0x368] ss:$16 sps:$4 sm:$0xff]  }
 0x228   :  { %7484 = vmatpush2.bf16.msra.mxu1 %v10281_v24  ;;  %7432 = vmatprep.subr.bf16.mxu0 %v10286_v48  ;;  %v13266_v24 = vpop.f32.mrf.mxu0  ;;  %v10304_v48 = vld [vmem:[%s15254_s1 + $0x14c] ss:$16 sps:$4 sm:$0xff]  }
 0x229   :  { %7485 = vmatprep.subr.bf16.mxu1 %v10289_v7  ;;  %v10307_v7 = vld [vmem:[%s15254_s1 + $0x34c] ss:$16 sps:$4 sm:$0xff]  }
 0x22b   :  { %7433 = vmatpush2.bf16.msra.mxu0 %v10284_v12  ;;  %v10302_v12 = vld [vmem:[%s15254_s1 + $0x148] ss:$16 sps:$4 sm:$0xff]  }
 0x22c   :  { %7486 = vmatpush2.bf16.msra.mxu1 %v10287_v30  ;;  %7434 = vmatprep.subr.bf16.mxu0 %v10292_v15  ;;  %v10305_v30 = vld [vmem:[%s15254_s1 + $0x348] ss:$16 sps:$4 sm:$0xff]   ;;  %v13280_v15 = vpop.f32.mrf.mxu1 }
 0x22d   :  { %7487 = vmatprep.subr.bf16.mxu1 %v10295_v3  ;;  %v13282_v3 = vpop.f32.mrf.mxu0 }
 0x22f   :  { %7435 = vmatpush2.bf16.msra.mxu0 %v10290_v2  ;;  %v10310_v2 = vld [vmem:[%s15254_s1 + $0x12c] ss:$16 sps:$4 sm:$0xff]  }
 0x230   :  { %7488 = vmatpush2.bf16.msra.mxu1 %v10293_v19  ;;  %7436 = vmatprep.subr.bf16.mxu0 %v10298_v18  ;;  %v10313_v19 = vld [vmem:[%s15254_s1 + $0x32c] ss:$16 sps:$4 sm:$0xff]   ;;  %v13290_v18 = vpop.f32.mrf.mxu1 }
 0x231   :  { %7489 = vmatprep.subr.bf16.mxu1 %v10301_v31  ;;  %v10308_v31 = vld [vmem:[%s15254_s1 + $0x128] ss:$16 sps:$4 sm:$0xff]  }
 0x233   :  { %7437 = vmatpush2.bf16.msra.mxu0 %v10296_v53  ;;  %v10311_v53 = vld [vmem:[%s15254_s1 + $0x328] ss:$16 sps:$4 sm:$0xff]  }
 0x234   :  { %7490 = vmatpush2.bf16.msra.mxu1 %v10299_v55  ;;  %7438 = vmatprep.subr.bf16.mxu0 %v10304_v48  ;;  %v13298_v55 = vpop.f32.mrf.mxu0  ;;  %v10316_v48 = vld [vmem:[%s15254_s1 + $0x10c] ss:$16 sps:$4 sm:$0xff]  }
 0x235   :  { %7491 = vmatprep.subr.bf16.mxu1 %v10307_v7  ;;  %v10319_v7 = vld [vmem:[%s15254_s1 + $0x30c] ss:$16 sps:$4 sm:$0xff]  }
 0x237   :  { %7439 = vmatpush2.bf16.msra.mxu0 %v10302_v12  ;;  %v13306_v12 = vpop.f32.mrf.mxu1 }
 0x238   :  { %7492 = vmatpush2.bf16.msra.mxu1 %v10305_v30  ;;  %7440 = vmatprep.subr.bf16.mxu0 %v10310_v2  ;;  %v10314_v30 = vld [vmem:[%s15254_s1 + $0x108] ss:$16 sps:$4 sm:$0xff]  }
 0x239   :  { %7493 = vmatprep.subr.bf16.mxu1 %v10313_v19  ;;  %v10317_v2 = vld [vmem:[%s15254_s1 + $0x308] ss:$16 sps:$4 sm:$0xff]   ;;  %v13314_v19 = vpop.f32.mrf.mxu0  ;;  %v13328_v0 = vpop.f32.mrf.mxu1 }
 0x23b   :  { %7441 = vmatpush2.bf16.msra.mxu0 %v10308_v31  ;;  %v10325_v31 = vld [vmem:[%s15254_s1 + $0x6ec] ss:$16 sps:$4 sm:$0xff]  }
 0x23c   :  { %7494 = vmatpush2.bf16.msra.mxu1 %v10311_v53  ;;  %7442 = vmatprep.subr.bf16.mxu0 %v10316_v48  ;;  %v10320_v53 = vld [vmem:[%s15254_s1 + $0x4e8] ss:$16 sps:$4 sm:$0xff]   ;;  %v13330_v48 = vpop.f32.mrf.mxu0 }
 0x23d   :  { %7495 = vmatprep.subr.bf16.mxu1 %v10319_v7  ;;  %v10328_v7 = vld [vmem:[%s15254_s1 + $0x4cc] ss:$16 sps:$4 sm:$0xff]  }
 0x23f   :  { %7443 = vmatpush2.bf16.msra.mxu0 %v10314_v30  ;;  %v10329_v30 = vld [vmem:[%s15254_s1 + $0x6c8] ss:$16 sps:$4 sm:$0xff]  }
 0x240   :  { %7496 = vmatpush2.bf16.msra.mxu1 %v10317_v2  ;;  %7518 = vmatprep.subr.bf16.mxu0 %v10322_v13  ;;  %v13344_v2 = vpop.f32.mrf.mxu1 }
 0x241   :  { %7571 = vmatprep.subr.bf16.mxu1 %v10325_v31  ;;  %v13350_v31 = vpop.f32.mrf.mxu0 }
 0x242   :  { %7445 = vmatmul.mubr.bf16.vlgmr.msra.gmra.mxu0 %v11229_v8  ;;  %v13348_v13 = vpop.f32.mrf.mxu1  ;;  %v10332_v8 = vld [vmem:[%s15254_s1 + $0x4a8] ss:$16 sps:$4 sm:$0xff]  }
 0x243   :  { %7498 = vmatmul.mubr.bf16.vlgmr.msra.gmra.mxu1 %v11231_v9  ;;  %7519 = vmatpush1.bf16.msra.mxu0 %v10320_v53  ;;  %v10335_v9 = vld [vmem:[%s15254_s1 + $0x6a8] ss:$16 sps:$4 sm:$0xff]   ;;  %v10340_v53 = vld [vmem:[%s15254_s1 + $0x48c] ss:$16 sps:$4 sm:$0xff]  }
 0x244   :  { %7572 = vmatpush1.bf16.msra.mxu1 %v10323_v61  ;;  %7520 = vmatprep.subr.bf16.mxu0 %v10328_v7  ;;  %v13368_v61 = vpop.f32.mrf.mxu0  ;;  %v10343_v7 = vld [vmem:[%s15254_s1 + $0x68c] ss:$16 sps:$4 sm:$0xff]  }
 0x245   :  { %7573 = vmatprep.subr.bf16.mxu1 %v10331_v1  ;;  %7454 = vmatprep.mubr.bf16.mxu0 %v11304_v33  ;;  %v13366_v1 = vpop.f32.mrf.mxu1  ;;  %v10338_v33 = vld [vmem:[%s15254_s1 + $0x488] ss:$16 sps:$4 sm:$0xff]  }
 0x246   :  { %7507 = vmatprep.mubr.bf16.mxu1 %v11308_v35  ;;  %v10341_v35 = vld [vmem:[%s15254_s1 + $0x688] ss:$16 sps:$4 sm:$0xff]  }
 0x247   :  { %7521 = vmatpush1.bf16.msra.mxu0 %v10326_v45  ;;  %v13382_v45 = vpop.f32.mrf.mxu0 }
 0x248   :  { %7574 = vmatpush1.bf16.msra.mxu1 %v10329_v30  ;;  %7522 = vmatprep.subr.bf16.mxu0 %v10334_v26  ;;  %v10349_v26 = vld [vmem:[%s15254_s1 + $0x66c] ss:$16 sps:$4 sm:$0xff]   ;;  %v13392_v30 = vpop.f32.mrf.mxu1 }
 0x249   :  { %7575 = vmatprep.subr.bf16.mxu1 %v10337_v58  ;;  %v10346_v58 = vld [vmem:[%s15254_s1 + $0x46c] ss:$16 sps:$4 sm:$0xff]  }
 0x24a   :  { %7455 = vmatmul.mubr.bf16.gmra.mxu0 %v11306_v34  ;;  %v13402_v34 = vpop.f32.mrf.mxu0 }
 0x24b   :  { %7508 = vmatmul.mubr.bf16.gmra.mxu1 %v11313_v37  ;;  %7523 = vmatpush1.bf16.msra.mxu0 %v10332_v8  ;;  %v10352_v37 = vld [vmem:[%s15254_s1 + $0x44c] ss:$16 sps:$4 sm:$0xff]  }
 0x24c   :  { %7576 = vmatpush1.bf16.msra.mxu1 %v10335_v9  ;;  %7524 = vmatprep.subr.bf16.mxu0 %v10340_v53  ;;  %v10355_v8 = vld [vmem:[%s15254_s1 + $0x64c] ss:$16 sps:$4 sm:$0xff]   ;;  %v13410_v9 = vpop.f32.mrf.mxu1 }
 0x24d   :  { %7577 = vmatprep.subr.bf16.mxu1 %v10343_v7  ;;  %7550 = vmatprep.mubr.bf16.mxu0 %v11360_v49  ;;  %v10350_v49 = vld [vmem:[%s15254_s1 + $0x448] ss:$16 sps:$4 sm:$0xff]   ;;  %v13420_v7 = vpop.f32.mrf.mxu0 }
 0x24e   :  { %7603 = vmatprep.mubr.bf16.mxu1 %v11369_v51  ;;  %v10353_v51 = vld [vmem:[%s15254_s1 + $0x648] ss:$16 sps:$4 sm:$0xff]   ;;  %v13418_v53 = vpop.f32.mrf.mxu1 }
 0x24f   :  { %7525 = vmatpush1.bf16.msra.mxu0 %v10338_v33  ;;  %v10358_v33 = vld [vmem:[%s15254_s1 + $0x42c] ss:$16 sps:$4 sm:$0xff]   ;;  %v13436_v21 = vpop.f32.mrf.mxu0 }
 0x250   :  { %7578 = vmatpush1.bf16.msra.mxu1 %v10341_v35  ;;  %7526 = vmatprep.subr.bf16.mxu0 %v10346_v58  ;;  %v10361_v35 = vld [vmem:[%s15254_s1 + $0x62c] ss:$16 sps:$4 sm:$0xff]   ;;  %v10356_v58 = vld [vmem:[%s15254_s1 + $0x428] ss:$16 sps:$4 sm:$0xff]   ;;  %v13434_v22 = vpop.f32.mrf.mxu1 }
 0x251   :  { %7579 = vmatprep.subr.bf16.mxu1 %v10349_v26  ;;  %v10359_v26 = vld [vmem:[%s15254_s1 + $0x628] ss:$16 sps:$4 sm:$0xff]  }
 0x253   :  { %7527 = vmatpush1.bf16.msra.mxu0 %v10344_v11  ;;  %v13444_v11 = vpop.f32.mrf.mxu1 }
 0x254   :  { %7580 = vmatpush1.bf16.msra.mxu1 %v10347_v25  ;;  %7528 = vmatprep.subr.bf16.mxu0 %v10352_v37  ;;  %v10367_v25 = vld [vmem:[%s15254_s1 + $0x60c] ss:$16 sps:$4 sm:$0xff]   ;;  %v13446_v37 = vpop.f32.mrf.mxu0 }
 0x255   :  { %7581 = vmatprep.subr.bf16.mxu1 %v10355_v8  ;;  %v10362_v8 = vld [vmem:[%s15254_s1 + $0x408] ss:$16 sps:$4 sm:$0xff]  }
 0x257   :  { %7529 = vmatpush1.bf16.msra.mxu0 %v10350_v49  ;;  %v10370_v49 = vld [vmem:[%s15254_s1 + $0x5ec] ss:$16 sps:$4 sm:$0xff]  }
 0x258   :  { %7582 = vmatpush1.bf16.msra.mxu1 %v10353_v51  ;;  %7530 = vmatprep.subr.bf16.mxu0 %v10358_v33  ;;  %v10373_v51 = vld [vmem:[%s15254_s1 + $0x7ec] ss:$16 sps:$4 sm:$0xff]   ;;  %v13460_v33 = vpop.f32.mrf.mxu1 }
 0x259   :  { %7583 = vmatprep.subr.bf16.mxu1 %v10361_v35  ;;  %v13462_v35 = vpop.f32.mrf.mxu0 }
 0x25b   :  { %7531 = vmatpush1.bf16.msra.mxu0 %v10356_v58  ;;  %v10368_v58 = vld [vmem:[%s15254_s1 + $0x5e8] ss:$16 sps:$4 sm:$0xff]  }
 0x25c   :  { %7584 = vmatpush1.bf16.msra.mxu1 %v10359_v26  ;;  %7532 = vmatprep.subr.bf16.mxu0 %v10364_v5  ;;  %v10371_v5 = vld [vmem:[%s15254_s1 + $0x7e8] ss:$16 sps:$4 sm:$0xff]   ;;  %v13470_v26 = vpop.f32.mrf.mxu1 }
 0x25d   :  { %7585 = vmatprep.subr.bf16.mxu1 %v10367_v25  ;;  %v10376_v25 = vld [vmem:[%s15254_s1 + $0x5cc] ss:$16 sps:$4 sm:$0xff]  }
 0x25f   :  { %7533 = vmatpush1.bf16.msra.mxu0 %v10362_v8  ;;  %v13478_v8 = vpop.f32.mrf.mxu0 }
 0x260   :  { %7586 = vmatpush1.bf16.msra.mxu1 %v10365_v41  ;;  %7534 = vmatprep.subr.bf16.mxu0 %v10370_v49  ;;  %v10379_v41 = vld [vmem:[%s15254_s1 + $0x7cc] ss:$16 sps:$4 sm:$0xff]   ;;  %v10377_v49 = vld [vmem:[%s15254_s1 + $0x7c8] ss:$16 sps:$4 sm:$0xff]  }
 0x261   :  { %7587 = vmatprep.subr.bf16.mxu1 %v10373_v51  ;;  %v13486_v51 = vpop.f32.mrf.mxu1 }
 0x262   :  { %15353 = vst [vmem:[#allocation49_spill] sm:$0xff] %v13486_v51  ;;  %v10406_v51 = vld [vmem:[%s15254_s1 + $0x52c] ss:$16 sps:$4 sm:$0xff]  }
 0x263   :  { %7535 = vmatpush2.bf16.msra.mxu0 %v10368_v58  ;;  %v10385_v58 = vld [vmem:[%s15254_s1 + $0x7ac] ss:$16 sps:$4 sm:$0xff]  }
 0x264   :  { %7588 = vmatpush2.bf16.msra.mxu1 %v10371_v5  ;;  %7536 = vmatprep.subr.bf16.mxu0 %v10376_v25  ;;  %v13494_v5 = vpop.f32.mrf.mxu0  ;;  %v10383_v25 = vld [vmem:[%s15254_s1 + $0x7a8] ss:$16 sps:$4 sm:$0xff]  }
 0x265   :  { %7589 = vmatprep.subr.bf16.mxu1 %v10379_v41  ;;  %15354 = vst [vmem:[#allocation50_spill] sm:$0xff] %v13494_v5  ;;  %v13502_v41 = vpop.f32.mrf.mxu1  ;;  %v10398_v5 = vld [vmem:[%s15254_s1 + $0x548] ss:$16 sps:$4 sm:$0xff]  }
 0x266   :  { %15355 = vst [vmem:[#allocation51_spill] sm:$0xff] %v13502_v41  ;;  %v13504_v20 = vpop.f32.mrf.mxu0  ;;  %v10400_v41 = vld [vmem:[%s15254_s1 + $0x54c] ss:$16 sps:$4 sm:$0xff]  }
 0x267   :  { %7537 = vmatpush2.bf16.msra.mxu0 %v10374_v40  ;;  %v10391_v40 = vld [vmem:[%s15254_s1 + $0x78c] ss:$16 sps:$4 sm:$0xff]  }
 0x268   :  { %7590 = vmatpush2.bf16.msra.mxu1 %v10377_v49  ;;  %7538 = vmatprep.subr.bf16.mxu0 %v10382_v29  ;;  %v10386_v49 = vld [vmem:[%s15254_s1 + $0x588] ss:$16 sps:$4 sm:$0xff]   ;;  %v13518_v29 = vpop.f32.mrf.mxu1 }
 0x269   :  { %7591 = vmatprep.subr.bf16.mxu1 %v10385_v58  ;;  %15356 = vst [vmem:[#allocation52_spill] sm:$0xff] %v13518_v29  ;;  %v13520_v58 = vpop.f32.mrf.mxu0  ;;  %v10392_v29 = vld [vmem:[%s15254_s1 + $0x568] ss:$16 sps:$4 sm:$0xff]  }
 0x26b   :  { %7539 = vmatpush2.bf16.msra.mxu0 %v10380_v28  ;;  %v10397_v28 = vld [vmem:[%s15254_s1 + $0x76c] ss:$16 sps:$4 sm:$0xff]  }
 0x26c   :  { %7592 = vmatpush2.bf16.msra.mxu1 %v10383_v25  ;;  %7540 = vmatprep.subr.bf16.mxu0 %v10388_v59  ;;  %v13528_v25 = vpop.f32.mrf.mxu1  ;;  %v10395_v59 = vld [vmem:[%s15254_s1 + $0x768] ss:$16 sps:$4 sm:$0xff]  }
 0x26d   :  { %7593 = vmatprep.subr.bf16.mxu1 %v10391_v40  ;;  %v13536_v40 = vpop.f32.mrf.mxu0 }
 0x26f   :  { %7541 = vmatpush2.bf16.msra.mxu0 %v10386_v49  ;;  %v13544_v49 = vpop.f32.mrf.mxu1 }
 0x270   :  { %7594 = vmatpush2.bf16.msra.mxu1 %v10389_v17  ;;  %7542 = vmatprep.subr.bf16.mxu0 %v10394_v16  ;;  %v10403_v17 = vld [vmem:[%s15254_s1 + $0x74c] ss:$16 sps:$4 sm:$0xff]   ;;  %15357 = vst [vmem:[#allocation53_spill] sm:$0xff] %v13544_v49  ;;  %v10401_v16 = vld [vmem:[%s15254_s1 + $0x748] ss:$16 sps:$4 sm:$0xff]  }
 0x271   :  { %7595 = vmatprep.subr.bf16.mxu1 %v10397_v28  ;;  %v13552_v28 = vpop.f32.mrf.mxu0  ;;  %v10404_v49 = vld [vmem:[%s15254_s1 + $0x528] ss:$16 sps:$4 sm:$0xff]  }
 0x272   :  { %15358 = vst [vmem:[#allocation54_spill] sm:$0xff] %v13552_v28  ;;  %v10412_v28 = vld [vmem:[%s15254_s1 + $0x50c] ss:$16 sps:$4 sm:$0xff]  }
 0x273   :  { %7543 = vmatpush2.bf16.msra.mxu0 %v10392_v29  ;;  %v10409_v29 = vld [vmem:[%s15254_s1 + $0x72c] ss:$16 sps:$4 sm:$0xff]  }
 0x274   :  { %7596 = vmatpush2.bf16.msra.mxu1 %v10395_v59  ;;  %7544 = vmatprep.subr.bf16.mxu0 %v10400_v41  ;;  %v13560_v59 = vpop.f32.mrf.mxu1  ;;  %v10407_v41 = vld [vmem:[%s15254_s1 + $0x728] ss:$16 sps:$4 sm:$0xff]  }
 0x275   :  { %7597 = vmatprep.subr.bf16.mxu1 %v10403_v17  ;;  %15359 = vst [vmem:[#allocation55_spill] sm:$0xff] %v13560_v59  ;;  %v13568_v17 = vpop.f32.mrf.mxu0  ;;  %v10410_v59 = vld [vmem:[%s15254_s1 + $0x508] ss:$16 sps:$4 sm:$0xff]  }
 0x276   :  { %15360 = vst [vmem:[#allocation56_spill] sm:$0xff] %v13568_v17 }
 0x277   :  { %7545 = vmatpush2.bf16.msra.mxu0 %v10398_v5  ;;  %v10415_v5 = vld [vmem:[%s15254_s1 + $0x70c] ss:$16 sps:$4 sm:$0xff]  }
 0x278   :  { %7598 = vmatpush2.bf16.msra.mxu1 %v10401_v16  ;;  %7546 = vmatprep.subr.bf16.mxu0 %v10406_v51  ;;  %v13576_v16 = vpop.f32.mrf.mxu1  ;;  %v10413_v51 = vld [vmem:[%s15254_s1 + $0x708] ss:$16 sps:$4 sm:$0xff]  }
 0x279   :  { %7599 = vmatprep.subr.bf16.mxu1 %v10409_v29  ;;  %15361 = vst [vmem:[#allocation57_spill] sm:$0xff] %v13576_v16  ;;  %v13584_v29 = vpop.f32.mrf.mxu0  ;;  %v10418_v16 = vld [vmem:[%s15254_s1 + $0x8ec] ss:$16 sps:$4 sm:$0xff]  }
 0x27a   :  { %15362 = vst [vmem:[#allocation58_spill] sm:$0xff] %v13584_v29  ;;  %v13586_v17 = vpop.f32.mrf.mxu1  ;;  %v10424_v29 = vld [vmem:[%s15254_s1 + $0x8cc] ss:$16 sps:$4 sm:$0xff]  }
 0x27b   :  { %7547 = vmatpush2.bf16.msra.mxu0 %v10404_v49  ;;  %15363 = vst [vmem:[#allocation59_spill] sm:$0xff] %v13586_v17  ;;  %v10421_v49 = vld [vmem:[%s15254_s1 + $0xaec] ss:$16 sps:$4 sm:$0xff]   ;;  %v10419_v17 = vld [vmem:[%s15254_s1 + $0xae8] ss:$16 sps:$4 sm:$0xff]  }
 0x27c   :  { %7600 = vmatpush2.bf16.msra.mxu1 %v10407_v41  ;;  %7548 = vmatprep.subr.bf16.mxu0 %v10412_v28  ;;  %v10416_v41 = vld [vmem:[%s15254_s1 + $0x8e8] ss:$16 sps:$4 sm:$0xff]   ;;  %v13600_v28 = vpop.f32.mrf.mxu0 }
 0x27d   :  { %7601 = vmatprep.subr.bf16.mxu1 %v10415_v5  ;;  %v13602_v5 = vpop.f32.mrf.mxu1 }
 0x27e   :  { %15364 = vst [vmem:[#allocation60_spill] sm:$0xff] %v13602_v5 }
 0x27f   :  { %7549 = vmatpush2.bf16.msra.mxu0 %v10410_v59  ;;  %v10427_v59 = vld [vmem:[%s15254_s1 + $0xacc] ss:$16 sps:$4 sm:$0xff]   ;;  %v13620_v5 = vpop.f32.mrf.mxu1 }
 0x280   :  { %7602 = vmatpush2.bf16.msra.mxu1 %v10413_v51  ;;  %7624 = vmatprep.subr.bf16.mxu0 %v10418_v16  ;;  %v10422_v51 = vld [vmem:[%s15254_s1 + $0x8c8] ss:$16 sps:$4 sm:$0xff]   ;;  %15366 = vst [vmem:[#allocation62_spill] sm:$0xff] %v13620_v5  ;;  %v10457_v5 = vld [vmem:[%s15254_s1 + $0xa2c] ss:$16 sps:$4 sm:$0xff]  }
 0x281   :  { %7677 = vmatprep.subr.bf16.mxu1 %v10421_v49  ;;  %v10425_v16 = vld [vmem:[%s15254_s1 + $0xac8] ss:$16 sps:$4 sm:$0xff]   ;;  %v13618_v49 = vpop.f32.mrf.mxu0 }
 0x282   :  { %7551 = vmatmul.mubr.bf16.vlgmr.msra.gmra.mxu0 %v11495_v32  ;;  %15365 = vst [vmem:[#allocation61_spill] sm:$0xff] %v13618_v49  ;;  %v10430_v32 = vld [vmem:[%s15254_s1 + $0x8ac] ss:$16 sps:$4 sm:$0xff]  }
 0x283   :  { %7604 = vmatmul.mubr.bf16.vlgmr.msra.gmra.mxu1 %v11499_v36  ;;  %7625 = vmatpush1.bf16.msra.mxu0 %v10416_v41  ;;  %v10433_v36 = vld [vmem:[%s15254_s1 + $0xaac] ss:$16 sps:$4 sm:$0xff]   ;;  %v10431_v41 = vld [vmem:[%s15254_s1 + $0xaa8] ss:$16 sps:$4 sm:$0xff]  }
 0x284   :  { %7678 = vmatpush1.bf16.msra.mxu1 %v10419_v17  ;;  %7626 = vmatprep.subr.bf16.mxu0 %v10424_v29  ;;  %v13630_v17 = vpop.f32.mrf.mxu0  ;;  %v10428_v29 = vld [vmem:[%s15254_s1 + $0x8a8] ss:$16 sps:$4 sm:$0xff]  }
 0x285   :  { %7679 = vmatprep.subr.bf16.mxu1 %v10427_v59  ;;  %7560 = vmatprep.mubr.bf16.mxu0 %v11513_v42  ;;  %v13638_v59 = vpop.f32.mrf.mxu1  ;;  %v10436_v42 = vld [vmem:[%s15254_s1 + $0x88c] ss:$16 sps:$4 sm:$0xff]  }
 0x286   :  { %7613 = vmatprep.mubr.bf16.mxu1 %v11515_v43  ;;  %15367 = vst [vmem:[#allocation63_spill] sm:$0xff] %v13638_v59  ;;  %v10439_v43 = vld [vmem:[%s15254_s1 + $0xa8c] ss:$16 sps:$4 sm:$0xff]  }
 0x287   :  { %7627 = vmatpush1.bf16.msra.mxu0 %v10422_v51  ;;  %v13646_v51 = vpop.f32.mrf.mxu1  ;;  %v10442_v59 = vld [vmem:[%s15254_s1 + $0x86c] ss:$16 sps:$4 sm:$0xff]  }
 0x288   :  { %7680 = vmatpush1.bf16.msra.mxu1 %v10425_v16  ;;  %7628 = vmatprep.subr.bf16.mxu0 %v10430_v32  ;;  %v13648_v16 = vpop.f32.mrf.mxu0  ;;  %v10434_v32 = vld [vmem:[%s15254_s1 + $0x888] ss:$16 sps:$4 sm:$0xff]  }
 0x289   :  { %7681 = vmatprep.subr.bf16.mxu1 %v10433_v36  ;;  %v10437_v36 = vld [vmem:[%s15254_s1 + $0xa88] ss:$16 sps:$4 sm:$0xff]  }
 0x28a   :  { %7561 = vmatmul.mubr.bf16.gmra.mxu0 %v11549_v56  ;;  %v10445_v56 = vld [vmem:[%s15254_s1 + $0xa6c] ss:$16 sps:$4 sm:$0xff]  }
 0x28b   :  { %7614 = vmatmul.mubr.bf16.gmra.mxu1 %v11551_v57  ;;  %7629 = vmatpush1.bf16.msra.mxu0 %v10428_v29  ;;  %v13666_v57 = vpop.f32.mrf.mxu1  ;;  %v13668_v29 = vpop.f32.mrf.mxu0 }
 0x28c   :  { %7682 = vmatpush1.bf16.msra.mxu1 %v10431_v41  ;;  %7630 = vmatprep.subr.bf16.mxu0 %v10436_v42  ;;  %v10440_v41 = vld [vmem:[%s15254_s1 + $0x868] ss:$16 sps:$4 sm:$0xff]  }
 0x28d   :  { %7683 = vmatprep.subr.bf16.mxu1 %v10439_v43  ;;  %7656 = vmatprep.mubr.bf16.mxu0 %v11571_v62  ;;  %v10443_v42 = vld [vmem:[%s15254_s1 + $0xa68] ss:$16 sps:$4 sm:$0xff]   ;;  %v10448_v62 = vld [vmem:[%s15254_s1 + $0x84c] ss:$16 sps:$4 sm:$0xff]   ;;  %v13682_v43 = vpop.f32.mrf.mxu1 }
 0x28e   :  { %7709 = vmatprep.mubr.bf16.mxu1 %v11575_v63  ;;  %v10451_v63 = vld [vmem:[%s15254_s1 + $0xa4c] ss:$16 sps:$4 sm:$0xff]   ;;  %15368 = vst [vmem:[#allocation64_spill] sm:$0xff] %v13682_v43  ;;  %v10452_v43 = vld [vmem:[%s15254_s1 + $0x828] ss:$16 sps:$4 sm:$0xff]  }
 0x28f   :  { %7631 = vmatpush1.bf16.msra.mxu0 %v10434_v32  ;;  %v13684_v32 = vpop.f32.mrf.mxu0 }
 0x290   :  { %7684 = vmatpush1.bf16.msra.mxu1 %v10437_v36  ;;  %7632 = vmatprep.subr.bf16.mxu0 %v10442_v59  ;;  %v10446_v36 = vld [vmem:[%s15254_s1 + $0x848] ss:$16 sps:$4 sm:$0xff]  }
 0x291   :  { %7685 = vmatprep.subr.bf16.mxu1 %v10445_v56  ;;  %v10449_v59 = vld [vmem:[%s15254_s1 + $0xa48] ss:$16 sps:$4 sm:$0xff]   ;;  %v10454_v56 = vld [vmem:[%s15254_s1 + $0x82c] ss:$16 sps:$4 sm:$0xff]  }
 0x293   :  { %7633 = vmatpush1.bf16.msra.mxu0 %v10440_v41  ;;  %v13698_v41 = vpop.f32.mrf.mxu1 }
 0x294   :  { %7686 = vmatpush1.bf16.msra.mxu1 %v10443_v42  ;;  %7634 = vmatprep.subr.bf16.mxu0 %v10448_v62  ;;  %15369 = vst [vmem:[#allocation65_spill] sm:$0xff] %v13698_v41  ;;  %v13700_v42 = vpop.f32.mrf.mxu0  ;;  %v10455_v62 = vld [vmem:[%s15254_s1 + $0xa28] ss:$16 sps:$4 sm:$0xff]   ;;  %v10460_v41 = vld [vmem:[%s15254_s1 + $0x80c] ss:$16 sps:$4 sm:$0xff]  }
 0x295   :  { %7687 = vmatprep.subr.bf16.mxu1 %v10451_v63  ;;  %15370 = vst [vmem:[#allocation66_spill] sm:$0xff] %v13700_v42  ;;  %v13708_v63 = vpop.f32.mrf.mxu1  ;;  %v10458_v42 = vld [vmem:[%s15254_s1 + $0x808] ss:$16 sps:$4 sm:$0xff]  }
 0x296   :  { %15371 = vst [vmem:[#allocation67_spill] sm:$0xff] %v13708_v63  ;;  %v10466_v63 = vld [vmem:[%s15254_s1 + $0x9ec] ss:$16 sps:$4 sm:$0xff]  }
 0x297   :  { %7635 = vmatpush1.bf16.msra.mxu0 %v10446_v36  ;;  %v10463_v36 = vld [vmem:[%s15254_s1 + $0xa0c] ss:$16 sps:$4 sm:$0xff]  }
 0x298   :  { %7688 = vmatpush1.bf16.msra.mxu1 %v10449_v59  ;;  %7636 = vmatprep.subr.bf16.mxu0 %v10454_v56  ;;  %v13716_v59 = vpop.f32.mrf.mxu0  ;;  %v13724_v56 = vpop.f32.mrf.mxu1 }
 0x299   :  { %7689 = vmatprep.subr.bf16.mxu1 %v10457_v5  ;;  %15372 = vst [vmem:[#allocation68_spill] sm:$0xff] %v13716_v59  ;;  %v10461_v5 = vld [vmem:[%s15254_s1 + $0xa08] ss:$16 sps:$4 sm:$0xff]   ;;  %15373 = vst [vmem:[#allocation69_spill] sm:$0xff] %v13724_v56  ;;  %v6605_v59 = vadd.f32 %v12131_v46, %v12034_v27  ;;  %v10475_v46 = vld [vmem:[%s15254_s1 + $0xbcc] ss:$16 sps:$4 sm:$0xff]  }
 0x29a   :  { %v13742_v56 = vpop.f32.mrf.mxu1 }
 0x29b   :  { %7637 = vmatpush1.bf16.msra.mxu0 %v10452_v43  ;;  %v10469_v43 = vld [vmem:[%s15254_s1 + $0xbec] ss:$16 sps:$4 sm:$0xff]   ;;  %15375 = vst [vmem:[#allocation71_spill] sm:$0xff] %v13742_v56  ;;  %v10470_v56 = vld [vmem:[%s15254_s1 + $0x9c8] ss:$16 sps:$4 sm:$0xff]  }
 0x29c   :  { %7690 = vmatpush1.bf16.msra.mxu1 %v10455_v62  ;;  %7638 = vmatprep.subr.bf16.mxu0 %v10460_v41  ;;  %v13732_v62 = vpop.f32.mrf.mxu0  ;;  %v10464_v41 = vld [vmem:[%s15254_s1 + $0x9e8] ss:$16 sps:$4 sm:$0xff]  }
 0x29d   :  { %7691 = vmatprep.subr.bf16.mxu1 %v10463_v36  ;;  %15374 = vst [vmem:[#allocation70_spill] sm:$0xff] %v13732_v62  ;;  %v10467_v36 = vld [vmem:[%s15254_s1 + $0xbe8] ss:$16 sps:$4 sm:$0xff]   ;;  %v10472_v62 = vld [vmem:[%s15254_s1 + $0x9cc] ss:$16 sps:$4 sm:$0xff]  }
 0x29f   :  { %7639 = vmatpush1.bf16.msra.mxu0 %v10458_v42  ;;  %v13750_v42 = vpop.f32.mrf.mxu0 }
 0x2a0   :  { %7692 = vmatpush1.bf16.msra.mxu1 %v10461_v5  ;;  %7640 = vmatprep.subr.bf16.mxu0 %v10466_v63  ;;  %15376 = vst [vmem:[#allocation72_spill] sm:$0xff] %v13750_v42  ;;  %v6658_v5 = vadd.f32 %v12133_v47, %v6605_v59  ;;  %v10473_v63 = vld [vmem:[%s15254_s1 + $0xbc8] ss:$16 sps:$4 sm:$0xff]   ;;  %v10478_v47 = vld [vmem:[%s15254_s1 + $0x9ac] ss:$16 sps:$4 sm:$0xff]  }
 0x2a1   :  { %7693 = vmatprep.subr.bf16.mxu1 %v10469_v43  ;;  %v13759_v43 = vpop.f32.mrf.mxu1  ;;  %v13761_v49 = vpop.f32.mrf.mxu0  ;;  %v10481_v59 = vld [vmem:[%s15254_s1 + $0xbac] ss:$16 sps:$4 sm:$0xff]  }
 0x2a2   :  { %15377 = vst [vmem:[#allocation73_spill] sm:$0xff] %v13759_v43  ;;  %v6615_v43 = vadd.f32 %v12308_v4, %v12034_v27  ;;  %v10484_v27 = vld [vmem:[%s15254_s1 + $0x98c] ss:$16 sps:$4 sm:$0xff]  }
 0x2a3   :  { %7641 = vmatpush2.bf16.msra.mxu0 %v10464_v41  ;;  %v6711_v41 = vadd.f32 %v12375_v14, %v6658_v5  ;;  %v13774_v42 = vpop.f32.mrf.mxu1  ;;  %v10479_v14 = vld [vmem:[%s15254_s1 + $0xba8] ss:$16 sps:$4 sm:$0xff]   ;;  %v13784_v5 = vpop.f32.mrf.mxu0 }
 0x2a4   :  { %7694 = vmatpush2.bf16.msra.mxu1 %v10467_v36  ;;  %7642 = vmatprep.subr.bf16.mxu0 %v10472_v62  ;;  %v6811_v36 = vadd.f32 %v13252_v54, %v12337_v10  ;;  %v6813_v62 = vadd.f32 %v13266_v24, %v12372_v60  ;;  %v10487_v10 = vld [vmem:[%s15254_s1 + $0xb8c] ss:$16 sps:$4 sm:$0xff]   ;;  %v6815_v54 = vadd.f32 %v13282_v3, %v12385_v23  ;;  %v10485_v23 = vld [vmem:[%s15254_s1 + $0xb88] ss:$16 sps:$4 sm:$0xff]  }
 0x2a5   :  { %7695 = vmatprep.subr.bf16.mxu1 %v10475_v46  ;;  %v10476_v46 = vld [vmem:[%s15254_s1 + $0x9a8] ss:$16 sps:$4 sm:$0xff]   ;;  %v6764_v4 = vadd.f32 %v12377_v52, %v6711_v41  ;;  %v6668_v24 = vadd.f32 %v12310_v6, %v6615_v43  ;;  %v6821_v3 = vadd.f32 %v13314_v19, %v12411_v38 }
 0x2a6   :  { %v6864_v60 = vadd.f32 %v13290_v18, %v6811_v36  ;;  %v10482_v52 = vld [vmem:[%s15254_s1 + $0x988] ss:$16 sps:$4 sm:$0xff]   ;;  %v13811_v18 = vpop.f32.mrf.mxu0 }
 0x2a7   :  { %7643 = vmatpush2.bf16.msra.mxu0 %v10470_v56  ;;  %v13797_v56 = vpop.f32.mrf.mxu1  ;;  %v6721_v6 = vadd.f32 %v13244_v39, %v6668_v24  ;;  %v6823_v39 = vadd.f32 %v13330_v48, %v12422_v44  ;;  %v6874_v48 = vadd.f32 %v13348_v13, %v6821_v3  ;;  %v15382_v3 = vld [vmem:[#allocation56_spill] sm:$0xff] }
 0x2a8   :  { %7696 = vmatpush2.bf16.msra.mxu1 %v10473_v63  ;;  %7644 = vmatprep.subr.bf16.mxu0 %v10478_v47  ;;  %v6866_v63 = vadd.f32 %v13306_v12, %v6813_v62  ;;  %v6817_v47 = vadd.f32 %v13298_v55, %v6764_v4  ;;  %v10490_v55 = vld [vmem:[%s15254_s1 + $0x96c] ss:$16 sps:$4 sm:$0xff]   ;;  %v10488_v62 = vld [vmem:[%s15254_s1 + $0x968] ss:$16 sps:$4 sm:$0xff]  }
 0x2a9   :  { %7697 = vmatprep.subr.bf16.mxu1 %v10481_v59  ;;  %v6917_v59 = vadd.f32 %v13382_v45, %v6864_v60  ;;  %v10493_v12 = vld [vmem:[%s15254_s1 + $0xb6c] ss:$16 sps:$4 sm:$0xff]   ;;  %v6868_v45 = vadd.f32 %v13328_v0, %v6815_v54  ;;  %v13823_v38 = vpop.f32.mrf.mxu1  ;;  %v10491_v0 = vld [vmem:[%s15254_s1 + $0xb68] ss:$16 sps:$4 sm:$0xff]   ;;  %v6774_v44 = vadd.f32 %v13280_v15, %v6721_v6 }
 0x2aa   :  { %v6919_v43 = vadd.f32 %v13402_v34, %v6866_v63  ;;  %v6870_v19 = vadd.f32 %v13344_v2, %v6817_v47  ;;  %v6825_v2 = vadd.f32 %v13350_v31, %v12430_v50  ;;  %v13838_v34 = vpop.f32.mrf.mxu0  ;;  %v6876_v50 = vadd.f32 %v13366_v1, %v6823_v39  ;;  %v15378_v47 = vld [vmem:[#allocation53_spill] sm:$0xff]  ;;  %v15383_v39 = vld [vmem:[#allocation55_spill] sm:$0xff] }
 0x2ab   :  { %7645 = vmatpush2.bf16.msra.mxu0 %v10476_v46  ;;  %v6970_v41 = vadd.f32 %v13418_v53, %v6917_v59  ;;  %v6921_v36 = vadd.f32 %v13420_v7, %v6868_v45  ;;  %v10496_v53 = vld [vmem:[%s15254_s1 + $0x94c] ss:$16 sps:$4 sm:$0xff]   ;;  %v6827_v31 = vadd.f32 %v13368_v61, %v6774_v44 }
 0x2ac   :  { %7698 = vmatpush2.bf16.msra.mxu1 %v10479_v14  ;;  %7646 = vmatprep.subr.bf16.mxu0 %v10484_v27  ;;  %v10499_v7 = vld [vmem:[%s15254_s1 + $0xb4c] ss:$16 sps:$4 sm:$0xff]   ;;  %v6972_v46 = vadd.f32 %v13434_v22, %v6919_v43  ;;  %v6923_v15 = vadd.f32 %v13436_v21, %v6870_v19  ;;  %v6927_v14 = vadd.f32 %v13446_v37, %v6874_v48  ;;  %v13852_v27 = vpop.f32.mrf.mxu1  ;;  %v10494_v21 = vld [vmem:[%s15254_s1 + $0x948] ss:$16 sps:$4 sm:$0xff]   ;;  %v13864_v61 = vpop.f32.mrf.mxu0 }
 0x2ad   :  { %7699 = vmatprep.subr.bf16.mxu1 %v10487_v10  ;;  %v7023_v13 = vadd.f32 %v13504_v20, %v6970_v41  ;;  %v6974_v10 = vadd.f32 %v13444_v11, %v6921_v36  ;;  %v10497_v20 = vld [vmem:[%s15254_s1 + $0xb48] ss:$16 sps:$4 sm:$0xff]   ;;  %v6878_v22 = vadd.f32 %v13392_v30, %v6825_v2  ;;  %v6929_v1 = vadd.f32 %v13462_v35, %v6876_v50  ;;  %v10502_v11 = vld [vmem:[%s15254_s1 + $0x92c] ss:$16 sps:$4 sm:$0xff]  }
 0x2ae   :  { %v7025_v4 = vadd.f32 %v13520_v58, %v6972_v46  ;;  %v13866_v37 = vpop.f32.mrf.mxu1  ;;  %v10505_v58 = vld [vmem:[%s15254_s1 + $0xb2c] ss:$16 sps:$4 sm:$0xff]   ;;  %v6976_v60 = vadd.f32 %v13460_v33, %v6923_v15  ;;  %v6880_v54 = vadd.f32 %v13410_v9, %v6827_v31  ;;  %v6980_v24 = vadd.f32 %v13470_v26, %v6927_v14  ;;  %v10500_v33 = vld [vmem:[%s15254_s1 + $0x928] ss:$16 sps:$4 sm:$0xff]   ;;  %v15387_v15 = vld [vmem:[#allocation52_spill] sm:$0xff] }
 0x2af   :  { %7647 = vmatpush2.bf16.msra.mxu0 %v10482_v52  ;;  %v7076_v30 = vadd.f32 %v13528_v25, %v7023_v13  ;;  %v7027_v35 = vadd.f32 %v13536_v40, %v6974_v10  ;;  %v6931_v63 = vadd.f32 %v13478_v8, %v6878_v22  ;;  %v15379_v52 = vld [vmem:[#allocation54_spill] sm:$0xff]  ;;  %v10503_v9 = vld [vmem:[%s15254_s1 + $0xb28] ss:$16 sps:$4 sm:$0xff]   ;;  %v10511_v43 = vld [vmem:[%s15254_s1 + $0xb0c] ss:$16 sps:$4 sm:$0xff]  }
 0x2b0   :  { %7700 = vmatpush2.bf16.msra.mxu1 %v10485_v23  ;;  %7648 = vmatprep.subr.bf16.mxu0 %v10490_v55  ;;  %v7078_v59 = vadd.f32 %v15378_v47, %v7025_v4  ;;  %v7029_v23 = vadd.f32 %v15379_v52, %v6976_v60  ;;  %v15380_v25 = vld [vmem:[#allocation49_spill] sm:$0xff]  ;;  %v15381_v40 = vld [vmem:[#allocation50_spill] sm:$0xff]  ;;  %v7033_v55 = vadd.f32 %v15382_v3, %v6980_v24  ;;  %v13894_v45 = vpop.f32.mrf.mxu1  ;;  %v15384_v36 = vld [vmem:[#allocation51_spill] sm:$0xff] }
 0x2b1   :  { %7701 = vmatprep.subr.bf16.mxu1 %v10493_v12  ;;  %v7129_v6 = vadd.f32 %v13630_v17, %v7076_v30  ;;  %v6982_v26 = vadd.f32 %v15380_v25, %v6929_v1  ;;  %v6933_v8 = vadd.f32 %v15381_v40, %v6880_v54  ;;  %v13892_v12 = vpop.f32.mrf.mxu0  ;;  %v10508_v17 = vld [vmem:[%s15254_s1 + $0x90c] ss:$16 sps:$4 sm:$0xff]   ;;  %v7080_v19 = vadd.f32 %v15383_v39, %v7027_v35  ;;  %v10506_v46 = vld [vmem:[%s15254_s1 + $0x908] ss:$16 sps:$4 sm:$0xff]   ;;  %v15389_v22 = vld [vmem:[#allocation60_spill] sm:$0xff] }
 0x2b2   :  { %v7131_v41 = vadd.f32 %v13648_v16, %v7078_v59  ;;  %v15386_v48 = vld [vmem:[#allocation57_spill] sm:$0xff]  ;;  %v15388_v50 = vld [vmem:[#allocation59_spill] sm:$0xff]  ;;  %v15391_v60 = vld [vmem:[#allocation66_spill] sm:$0xff] }
 0x2b3   :  { %7649 = vmatpush2.bf16.msra.mxu0 %v10488_v62  ;;  %v6984_v62 = vadd.f32 %v15384_v36, %v6931_v63  ;;  %v7082_v2 = vadd.f32 %v15386_v48, %v7029_v23  ;;  %v10509_v16 = vld [vmem:[%s15254_s1 + $0xb08] ss:$16 sps:$4 sm:$0xff]   ;;  %v6986_v13 = vadd.f32 %v15387_v15, %v6933_v8  ;;  %v7086_v31 = vadd.f32 %v15388_v50, %v7033_v55  ;;  %v13918_v10 = vpop.f32.mrf.mxu0  ;;  %v10517_v4 = vld [vmem:[%s15254_s1 + $0xeec] ss:$16 sps:$4 sm:$0xff]   ;;  %v15392_v35 = vld [vmem:[#allocation64_spill] sm:$0xff] }
 0x2b4   :  { %7702 = vmatpush2.bf16.msra.mxu1 %v10491_v0  ;;  %7650 = vmatprep.subr.bf16.mxu0 %v10496_v53  ;;  %v15385_v0 = vld [vmem:[#allocation58_spill] sm:$0xff]  ;;  %v7182_v53 = vadd.f32 %v13646_v51, %v7129_v6  ;;  %v13920_v51 = vpop.f32.mrf.mxu1  ;;  %v15394_v47 = vld [vmem:[#allocation68_spill] sm:$0xff]  ;;  %v10523_v6 = vld [vmem:[%s15254_s1 + $0xecc] ss:$16 sps:$4 sm:$0xff]  }
 0x2b5   :  { %7703 = vmatprep.subr.bf16.mxu1 %v10499_v7  ;;  %v7035_v44 = vadd.f32 %v15385_v0, %v6982_v26  ;;  %v7133_v7 = vadd.f32 %v13668_v29, %v7080_v19  ;;  %v7037_v14 = vadd.f32 %v13600_v28, %v6984_v62  ;;  %v10514_v29 = vld [vmem:[%s15254_s1 + $0xcec] ss:$16 sps:$4 sm:$0xff]   ;;  %v7139_v30 = vadd.f32 %v15391_v60, %v7086_v31  ;;  %v7250_v52 = vpop.f32.mrf.mxu0  ;;  %v10527_v60 = vld [vmem:[%s15254_s1 + $0xea8] ss:$16 sps:$4 sm:$0xff]  }
 0x2b6   :  { %v7235_v28 = vadd.f32 %v13761_v49, %v7182_v53  ;;  %v10515_v49 = vld [vmem:[%s15254_s1 + $0xee8] ss:$16 sps:$4 sm:$0xff]   ;;  %v13944_v23 = vpop.f32.mrf.mxu1  ;;  %v15402_v53 = vld [vmem:[#allocation72_spill] sm:$0xff]  ;;  %v10529_v15 = vld [vmem:[%s15254_s1 + $0xeac] ss:$16 sps:$4 sm:$0xff]  }
 0x2b7   :  { %7651 = vmatpush2.bf16.msra.mxu0 %v10494_v21  ;;  %v7184_v21 = vadd.f32 %v13666_v57, %v7131_v41  ;;  %v7088_v1 = vadd.f32 %v15389_v22, %v7035_v44  ;;  %v7186_v54 = vadd.f32 %v15392_v35, %v7133_v7  ;;  %v10512_v57 = vld [vmem:[%s15254_s1 + $0xce8] ss:$16 sps:$4 sm:$0xff]   ;;  %v15399_v41 = vld [vmem:[#allocation2_spill] sm:$0xff] }
 0x2b8   :  { %7704 = vmatpush2.bf16.msra.mxu1 %v10497_v20  ;;  %7652 = vmatprep.subr.bf16.mxu0 %v10502_v11  ;;  %v7135_v20 = vadd.f32 %v13684_v32, %v7082_v2  ;;  %v15390_v11 = vld [vmem:[#allocation61_spill] sm:$0xff]  ;;  %v15393_v32 = vld [vmem:[#allocation62_spill] sm:$0xff]  ;;  %v7288_v25 = vadd.f32 %v13774_v42, %v7235_v28  ;;  %v15396_v40 = vld [vmem:[#allocation63_spill] sm:$0xff] }
 0x2b9   :  { %7705 = vmatprep.subr.bf16.mxu1 %v10505_v58  ;;  %v7039_v58 = vadd.f32 %v15390_v11, %v6986_v13  ;;  %v7237_v24 = vadd.f32 %v13784_v5, %v7184_v21  ;;  %v7090_v63 = vadd.f32 %v15393_v32, %v7037_v14  ;;  %v7141_v59 = vadd.f32 %v15394_v47, %v7088_v1  ;;  %v10520_v5 = vld [vmem:[%s15254_s1 + $0xccc] ss:$16 sps:$4 sm:$0xff]   ;;  %v10518_v42 = vld [vmem:[%s15254_s1 + $0xcc8] ss:$16 sps:$4 sm:$0xff]   ;;  %v15403_v14 = vld [vmem:[#allocation4_spill] sm:$0xff] }
 0x2ba   :  { %v7239_v26 = vadd.f32 %v13811_v18, %v7186_v54  ;;  %v15397_v3 = vld [vmem:[#allocation67_spill] sm:$0xff]  ;;  %v15401_v48 = vld [vmem:[#allocation69_spill] sm:$0xff] }
 0x2bb   :  { %7653 = vmatpush2.bf16.msra.mxu0 %v10500_v33  ;;  %v15395_v33 = vld [vmem:[#allocation65_spill] sm:$0xff]  ;;  %v7092_v8 = vadd.f32 %v15396_v40, %v7039_v58  ;;  %v7192_v55 = vadd.f32 %v15397_v3, %v7139_v30  ;;  %v15400_v36 = vld [vmem:[#allocation3_spill] sm:$0xff]  ;;  %v7290_v62 = vadd.f32 %v13797_v56, %v7237_v24  ;;  %v7194_v2 = vadd.f32 %v15401_v48, %v7141_v59 }
 0x2bc   :  { %7706 = vmatpush2.bf16.msra.mxu1 %v10503_v9  ;;  %7654 = vmatprep.subr.bf16.mxu0 %v10508_v17  ;;  %v7188_v9 = vadd.f32 %v15395_v33, %v7135_v20  ;;  %v15398_v17 = vld [vmem:[#allocation70_spill] sm:$0xff]  ;;  %v10521_v18 = vld [vmem:[%s15254_s1 + $0xec8] ss:$16 sps:$4 sm:$0xff]   ;;  %v7292_v13 = vadd.f32 %v13823_v38, %v7239_v26 }
 0x2bd   :  { %7707 = vmatprep.subr.bf16.mxu1 %v10511_v43  ;;  %v7143_v43 = vadd.f32 %v15398_v17, %v7090_v63  ;;  %v7145_v7 = vadd.f32 %v15402_v53, %v7092_v8  ;;  %v7247_v21 = vadd.f32 %v13892_v12, %v7194_v2  ;;  %v10524_v38 = vld [vmem:[%s15254_s1 + $0xca8] ss:$16 sps:$4 sm:$0xff]   ;;  %v15407_v33 = vld [vmem:[#allocation6_spill] sm:$0xff]  ;;  %v10538_v17 = vld [vmem:[%s15254_s1 + $0xc6c] ss:$16 sps:$4 sm:$0xff]  }
 0x2be   :  { %v7241_v0 = vadd.f32 %v13838_v34, %v7188_v9  ;;  %v10526_v34 = vld [vmem:[%s15254_s1 + $0xcac] ss:$16 sps:$4 sm:$0xff]  }
 0x2bf   :  { %7655 = vmatpush2.bf16.msra.mxu0 %v10506_v46  ;;  %v7245_v46 = vadd.f32 %v13864_v61, %v7192_v55  ;;  %v15405_v61 = vld [vmem:[#allocation71_spill] sm:$0xff]  ;;  %v15406_v30 = vld [vmem:[#allocation73_spill] sm:$0xff]  ;;  %v7300_v59 = vadd.f32 %v13894_v45, %v7247_v21 }
 0x2c0   :  { %7708 = vmatpush2.bf16.msra.mxu1 %v10509_v16  ;;  %7730 = vmatprep.subr.bf16.mxu0 %v10514_v29  ;;  %v15404_v29 = vld [vmem:[#allocation5_spill] sm:$0xff]  ;;  %v7294_v22 = vadd.f32 %v13852_v27, %v7241_v0  ;;  %v7198_v35 = vadd.f32 %v15406_v30, %v7145_v7 }
 0x2c1   :  { %7783 = vmatprep.subr.bf16.mxu1 %v10517_v4  ;;  %v7196_v4 = vadd.f32 %v15405_v61, %v7143_v43  ;;  %v7298_v12 = vadd.f32 %v13866_v37, %v7245_v46  ;;  %v10532_v27 = vld [vmem:[%s15254_s1 + $0xc8c] ss:$16 sps:$4 sm:$0xff]   ;;  %v10533_v45 = vld [vmem:[%s15254_s1 + $0xe88] ss:$16 sps:$4 sm:$0xff]  }
 0x2c2   :  { %v7340_v39 = vpop.f32.mrf.mxu0  ;;  %7657 = vmatmul.mubr.bf16.vlgmr.msra.gmra.mxu0 %v15399_v41  ;;  %v7251_v37 = vadd.f32 %v7250_v52, %v7198_v35  ;;  %v10541_v43 = vld [vmem:[%s15254_s1 + $0xe6c] ss:$16 sps:$4 sm:$0xff]   ;;  %v10536_v46 = vld [vmem:[%s15254_s1 + $0xc68] ss:$16 sps:$4 sm:$0xff]  }
 0x2c3   :  { %v7393_v19 = vpop.f32.mrf.mxu1  ;;  %7710 = vmatmul.mubr.bf16.vlgmr.msra.gmra.mxu1 %v15400_v36  ;;  %v7341_v44 = vadd.f32 %v7340_v39, %v7288_v25  ;;  %7731 = vmatpush1.bf16.msra.mxu0 %v10512_v57  ;;  %v10535_v57 = vld [vmem:[%s15254_s1 + $0xe8c] ss:$16 sps:$4 sm:$0xff]   ;;  %v10548_v35 = vld [vmem:[%s15254_s1 + $0xc28] ss:$16 sps:$4 sm:$0xff]  }
 0x2c4   :  { %7784 = vmatpush1.bf16.msra.mxu1 %v10515_v49  ;;  %v7342_v56 = vpop.f32.mrf.mxu0  ;;  %7732 = vmatprep.subr.bf16.mxu0 %v10520_v5  ;;  %v7249_v49 = vadd.f32 %v13918_v10, %v7196_v4  ;;  %v15408_v25 = vld [vmem:[#allocation7_spill] sm:$0xff]  ;;  %v15410_v0 = vld [vmem:[#allocation9_spill] sm:$0xff] }
 0x2c5   :  { %v7395_v16 = vpop.f32.mrf.mxu1  ;;  %7785 = vmatprep.subr.bf16.mxu1 %v10523_v6  ;;  %v7394_v50 = vadd.f32 %v7393_v19, %v7341_v44  ;;  %v7343_v31 = vadd.f32 %v7342_v56, %v7290_v62  ;;  %7666 = vmatprep.mubr.bf16.mxu0 %v15403_v14  ;;  %v10530_v10 = vld [vmem:[%s15254_s1 + $0xc88] ss:$16 sps:$4 sm:$0xff]   ;;  %v15409_v62 = vld [vmem:[#allocation8_spill] sm:$0xff]  ;;  %v7304_v44 = vadd.f32 %v13944_v23, %v7251_v37  ;;  %v10568_v37 = vld [vmem:[%s15254_s1 + $0xdcc] ss:$16 sps:$4 sm:$0xff]  }
 0x2c6   :  { %7719 = vmatprep.mubr.bf16.mxu1 %v15404_v29  ;;  %v7344_v20 = vpop.f32.mrf.mxu0  ;;  %v7302_v39 = vadd.f32 %v13920_v51, %v7249_v49  ;;  %v10539_v23 = vld [vmem:[%s15254_s1 + $0xe68] ss:$16 sps:$4 sm:$0xff]  }
 0x2c7   :  { %v7397_v28 = vpop.f32.mrf.mxu1  ;;  %v8260_v1 = vmul.f32 0.2, %v7394_v50  ;;  %v7396_v11 = vadd.f32 %v7395_v16, %v7343_v31  ;;  %v7345_v58 = vadd.f32 %v7344_v20, %v7292_v13  ;;  %7733 = vmatpush1.bf16.msra.mxu0 %v10518_v42  ;;  %v10547_v13 = vld [vmem:[%s15254_s1 + $0xe4c] ss:$16 sps:$4 sm:$0xff]   ;;  %v10557_v49 = vld [vmem:[%s15254_s1 + $0xe08] ss:$16 sps:$4 sm:$0xff]  }
 0x2c8   :  { %7786 = vmatpush1.bf16.msra.mxu1 %v10521_v18  ;;  %v7346_v54 = vpop.f32.mrf.mxu0  ;;  %7734 = vmatprep.subr.bf16.mxu0 %v10526_v34 }
 0x2c9   :  { %v7399_v24 = vpop.f32.mrf.mxu1  ;;  %7787 = vmatprep.subr.bf16.mxu1 %v10529_v15  ;;  %v8261_v32 = vmul.f32 0.2, %v7396_v11  ;;  %v7398_v63 = vadd.f32 %v7397_v28, %v7345_v58  ;;  %v7347_v47 = vadd.f32 %v7346_v54, %v7294_v22  ;;  %v8276_v5 = vmax.f32 %v7394_v50, %v8260_v1  ;;  %v10544_v15 = vld [vmem:[%s15254_s1 + $0xc4c] ss:$16 sps:$4 sm:$0xff]   ;;  %v10542_v28 = vld [vmem:[%s15254_s1 + $0xc48] ss:$16 sps:$4 sm:$0xff]  }
 0x2ca   :  { %v7350_v6 = vpop.f32.mrf.mxu0  ;;  %7667 = vmatmul.mubr.bf16.gmra.mxu0 %v15407_v33  ;;  %v10545_v22 = vld [vmem:[%s15254_s1 + $0xe48] ss:$16 sps:$4 sm:$0xff]   ;;  %v10550_v1 = vld [vmem:[%s15254_s1 + $0xc2c] ss:$16 sps:$4 sm:$0xff]  }
 0x2cb   :  { %v7403_v9 = vpop.f32.mrf.mxu1  ;;  %7720 = vmatmul.mubr.bf16.gmra.mxu1 %v15408_v25  ;;  %v8277_v26 = vmax.f32 %v7396_v11, %v8261_v32  ;;  %v8264_v40 = vmul.f32 0.2, %v7398_v63  ;;  %v7400_v8 = vadd.f32 %v7399_v24, %v7347_v47  ;;  %v7351_v3 = vadd.f32 %v7350_v6, %v7298_v12  ;;  %7735 = vmatpush1.bf16.msra.mxu0 %v10524_v38  ;;  %v10553_v11 = vld [vmem:[%s15254_s1 + $0xe2c] ss:$16 sps:$4 sm:$0xff]   ;;  %v10551_v12 = vld [vmem:[%s15254_s1 + $0xe28] ss:$16 sps:$4 sm:$0xff]  }
 0x2cc   :  { %7788 = vmatpush1.bf16.msra.mxu1 %v10527_v60  ;;  %v7352_v52 = vpop.f32.mrf.mxu0  ;;  %7736 = vmatprep.subr.bf16.mxu0 %v10532_v27  ;;  %v10556_v54 = vld [vmem:[%s15254_s1 + $0xc0c] ss:$16 sps:$4 sm:$0xff]   ;;  %v10560_v47 = vld [vmem:[%s15254_s1 + $0xde8] ss:$16 sps:$4 sm:$0xff]  }
 0x2cd   :  { %v7405_v55 = vpop.f32.mrf.mxu1  ;;  %7789 = vmatprep.subr.bf16.mxu1 %v10535_v57  ;;  %v9448_v19 = vpack.c.bf16 %v8277_v26, %v8276_v5  ;;  %v8265_v41 = vmul.f32 0.2, %v7400_v8  ;;  %v7353_v36 = vadd.f32 %v7352_v52, %v7300_v59  ;;  %7762 = vmatprep.mubr.bf16.mxu0 %v15409_v62  ;;  %v8280_v42 = vmax.f32 %v7398_v63, %v8264_v40  ;;  %v10559_v24 = vld [vmem:[%s15254_s1 + $0xe0c] ss:$16 sps:$4 sm:$0xff]   ;;  %v10554_v57 = vld [vmem:[%s15254_s1 + $0xc08] ss:$16 sps:$4 sm:$0xff]  }
 0x2ce   :  { %7815 = vmatprep.mubr.bf16.mxu1 %v15410_v0  ;;  %v7404_v18 = vadd.f32 %v7403_v9, %v7351_v3  ;;  %v7354_v48 = vpop.f32.mrf.mxu0  ;;  %v10562_v32 = vld [vmem:[%s15254_s1 + $0xdec] ss:$16 sps:$4 sm:$0xff]   ;;  %v10563_v59 = vld [vmem:[%s15254_s1 + $0xfe8] ss:$16 sps:$4 sm:$0xff]  }
 0x2cf   :  { %v7407_v2 = vpop.f32.mrf.mxu1  ;;  %8340 = vst [vmem:[%s15257_s3] sm:$0xff] %v9448_v19  ;;  %v8281_v53 = vmax.f32 %v7400_v8, %v8265_v41  ;;  %v7355_v7 = vadd.f32 %v7354_v48, %v7302_v39  ;;  %v7406_v51 = vadd.f32 %v7405_v55, %v7353_v36  ;;  %7737 = vmatpush1.bf16.msra.mxu0 %v10530_v10  ;;  %v10565_v63 = vld [vmem:[%s15254_s1 + $0xfec] ss:$16 sps:$4 sm:$0xff]   ;;  %v10566_v6 = vld [vmem:[%s15254_s1 + $0xdc8] ss:$16 sps:$4 sm:$0xff]  }
 0x2d0   :  { %7790 = vmatpush1.bf16.msra.mxu1 %v10533_v45  ;;  %v8268_v56 = vmul.f32 0.2, %v7404_v18  ;;  %v7356_v16 = vpop.f32.mrf.mxu0  ;;  %7738 = vmatprep.subr.bf16.mxu0 %v10538_v17  ;;  %v10571_v5 = vld [vmem:[%s15254_s1 + $0xfcc] ss:$16 sps:$4 sm:$0xff]   ;;  %v10569_v33 = vld [vmem:[%s15254_s1 + $0xfc8] ss:$16 sps:$4 sm:$0xff]  }
 0x2d1   :  { %v7409_v34 = vpop.f32.mrf.mxu1  ;;  %7791 = vmatprep.subr.bf16.mxu1 %v10541_v43  ;;  %v9450_v50 = vpack.c.bf16 %v8281_v53, %v8280_v42  ;;  %v8269_v31 = vmul.f32 0.2, %v7406_v51  ;;  %v7357_v14 = vadd.f32 %v7356_v16, %v7304_v44  ;;  %v7408_v29 = vadd.f32 %v7407_v2, %v7355_v7  ;;  %v10574_v9 = vld [vmem:[%s15254_s1 + $0xdac] ss:$16 sps:$4 sm:$0xff]   ;;  %v10572_v26 = vld [vmem:[%s15254_s1 + $0xda8] ss:$16 sps:$4 sm:$0xff]  }
 0x2d2   :  { %v8284_v61 = vmax.f32 %v7404_v18, %v8268_v56  ;;  %v10577_v25 = vld [vmem:[%s15254_s1 + $0xfac] ss:$16 sps:$4 sm:$0xff]   ;;  %v10575_v40 = vld [vmem:[%s15254_s1 + $0xfa8] ss:$16 sps:$4 sm:$0xff]   ;;  %v15411_v7 = vld [vmem:[#allocation10_spill] sm:$0xff] }
 0x2d3   :  { %8342 = vst [vmem:[%s15257_s3 + $0x10] sm:$0xff] %v9450_v50  ;;  %v8285_v4 = vmax.f32 %v7406_v51, %v8269_v31  ;;  %v8272_v21 = vmul.f32 0.2, %v7408_v29  ;;  %v7410_v20 = vadd.f32 %v7409_v34, %v7357_v14  ;;  %7739 = vmatpush1.bf16.msra.mxu0 %v10536_v46  ;;  %v10580_v8 = vld [vmem:[%s15254_s1 + $0xd8c] ss:$16 sps:$4 sm:$0xff]   ;;  %v1114_v51 = vsub.s32 2, %v15411_v7 }
 0x2d4   :  { %7792 = vmatpush1.bf16.msra.mxu1 %v10539_v23  ;;  %7740 = vmatprep.subr.bf16.mxu0 %v10544_v15  ;;  %v10583_v3 = vld [vmem:[%s15254_s1 + $0xf8c] ss:$16 sps:$4 sm:$0xff]   ;;  %v10578_v10 = vld [vmem:[%s15254_s1 + $0xd88] ss:$16 sps:$4 sm:$0xff]   ;;  %v1118_v56 = vsub.s32 3, %v15411_v7 }
 0x2d5   :  { %7793 = vmatprep.subr.bf16.mxu1 %v10547_v13  ;;  %v9452_v58 = vpack.c.bf16 %v8285_v4, %v8284_v61  ;;  %v8273_v38 = vmul.f32 0.2, %v7410_v20  ;;  %v8288_v60 = vmax.f32 %v7408_v29, %v8272_v21  ;;  %v10581_v45 = vld [vmem:[%s15254_s1 + $0xf88] ss:$16 sps:$4 sm:$0xff]   ;;  %v10586_v52 = vld [vmem:[%s15254_s1 + $0xd6c] ss:$16 sps:$4 sm:$0xff]  }
 0x2d6   :  { %v10589_v55 = vld [vmem:[%s15254_s1 + $0xf6c] ss:$16 sps:$4 sm:$0xff]   ;;  %v10584_v17 = vld [vmem:[%s15254_s1 + $0xd68] ss:$16 sps:$4 sm:$0xff]   ;;  %v10992_v16 = vld [vmem:[%s15256_s2] sm:$0xf] }
 0x2d7   :  { %8344 = vst [vmem:[%s15257_s3 + $0x20] sm:$0xff] %v9452_v58  ;;  %v8289_v30 = vmax.f32 %v7410_v20, %v8273_v38  ;;  %7741 = vmatpush1.bf16.msra.mxu0 %v10542_v28  ;;  %v10587_v43 = vld [vmem:[%s15254_s1 + $0xf68] ss:$16 sps:$4 sm:$0xff]   ;;  %v10592_v39 = vld [vmem:[%s15254_s1 + $0xd4c] ss:$16 sps:$4 sm:$0xff]   ;;  %v14178_v34 = vrot.slane %v10992_v16, %v1114_v51  ;;  %v14192_v14 = vrot.slane %v10992_v16, %v1118_v56  ;;  %v15413_v21 = vld [vmem:[#allocation12_spill] sm:$0xff] }
 0x2d8   :  { %7794 = vmatpush1.bf16.msra.mxu1 %v10545_v22  ;;  %7742 = vmatprep.subr.bf16.mxu0 %v10550_v1  ;;  %v10595_v19 = vld [vmem:[%s15254_s1 + $0xf4c] ss:$16 sps:$4 sm:$0xff]   ;;  %v10590_v41 = vld [vmem:[%s15254_s1 + $0xd48] ss:$16 sps:$4 sm:$0xff]  }
 0x2d9   :  { %7795 = vmatprep.subr.bf16.mxu1 %v10553_v11  ;;  %v9454_v27 = vpack.c.bf16 %v8289_v30, %v8288_v60  ;;  %v10593_v36 = vld [vmem:[%s15254_s1 + $0xf48] ss:$16 sps:$4 sm:$0xff]   ;;  %v10598_v62 = vld [vmem:[%s15254_s1 + $0xd2c] ss:$16 sps:$4 sm:$0xff]  }
 0x2da   :  { %v10601_v0 = vld [vmem:[%s15254_s1 + $0xf2c] ss:$16 sps:$4 sm:$0xff]   ;;  %v10596_v44 = vld [vmem:[%s15254_s1 + $0xd28] ss:$16 sps:$4 sm:$0xff]  }
 0x2db   :  { %8346 = vst [vmem:[%s15257_s3 + $0x30] sm:$0xff] %v9454_v27  ;;  %7743 = vmatpush1.bf16.msra.mxu0 %v10548_v35  ;;  %v10599_v42 = vld [vmem:[%s15254_s1 + $0xf28] ss:$16 sps:$4 sm:$0xff]   ;;  %v10604_v18 = vld [vmem:[%s15254_s1 + $0xd0c] ss:$16 sps:$4 sm:$0xff]  }
 0x2dc   :  { %7796 = vmatpush1.bf16.msra.mxu1 %v10551_v12  ;;  %7744 = vmatprep.subr.bf16.mxu0 %v10556_v54  ;;  %v10607_v48 = vld [vmem:[%s15254_s1 + $0xf0c] ss:$16 sps:$4 sm:$0xff]   ;;  %v10602_v2 = vld [vmem:[%s15254_s1 + $0xd08] ss:$16 sps:$4 sm:$0xff]   ;;  %v15415_v12 = vld [vmem:[#allocation14_spill] sm:$0xff] }
 0x2dd   :  { %7797 = vmatprep.subr.bf16.mxu1 %v10559_v24  ;;  %v10605_v53 = vld [vmem:[%s15254_s1 + $0xf08] ss:$16 sps:$4 sm:$0xff]   ;;  %v10610_v46 = vld [vmem:[%s15254_s1 + $0x10ec] ss:$16 sps:$4 sm:$0xff]  }
 0x2de   :  { %v10613_v23 = vld [vmem:[%s15254_s1 + $0x12ec] ss:$16 sps:$4 sm:$0xff]   ;;  %v10608_v15 = vld [vmem:[%s15254_s1 + $0x10e8] ss:$16 sps:$4 sm:$0xff]  }
 0x2df   :  { %7745 = vmatpush1.bf16.msra.mxu0 %v10554_v57  ;;  %v10611_v13 = vld [vmem:[%s15254_s1 + $0x12e8] ss:$16 sps:$4 sm:$0xff]   ;;  %v10616_v50 = vld [vmem:[%s15254_s1 + $0x10cc] ss:$16 sps:$4 sm:$0xff]  }
 0x2e0   :  { %7798 = vmatpush1.bf16.msra.mxu1 %v10557_v49  ;;  %7746 = vmatprep.subr.bf16.mxu0 %v10562_v32  ;;  %v10619_v31 = vld [vmem:[%s15254_s1 + $0x12cc] ss:$16 sps:$4 sm:$0xff]   ;;  %v10614_v28 = vld [vmem:[%s15254_s1 + $0x10c8] ss:$16 sps:$4 sm:$0xff]  }
 0x2e1   :  { %7799 = vmatprep.subr.bf16.mxu1 %v10565_v63  ;;  %v15412_v4 = vld [vmem:[#allocation11_spill] sm:$0xff]  ;;  %v15414_v35 = vld [vmem:[#allocation13_spill] sm:$0xff] }
 0x2e2   :  { %v10617_v22 = vld [vmem:[%s15254_s1 + $0x12c8] ss:$16 sps:$4 sm:$0xff]   ;;  %v10622_v58 = vld [vmem:[%s15254_s1 + $0x10ac] ss:$16 sps:$4 sm:$0xff]  }
 0x2e3   :  { %7747 = vmatpush2.bf16.msra.mxu0 %v10560_v47  ;;  %v10625_v38 = vld [vmem:[%s15254_s1 + $0x12ac] ss:$16 sps:$4 sm:$0xff]   ;;  %v10620_v49 = vld [vmem:[%s15254_s1 + $0x10a8] ss:$16 sps:$4 sm:$0xff]  }
 0x2e4   :  { %7800 = vmatpush2.bf16.msra.mxu1 %v10563_v59  ;;  %7748 = vmatprep.subr.bf16.mxu0 %v10568_v37  ;;  %v10623_v32 = vld [vmem:[%s15254_s1 + $0x12a8] ss:$16 sps:$4 sm:$0xff]   ;;  %v10628_v59 = vld [vmem:[%s15254_s1 + $0x108c] ss:$16 sps:$4 sm:$0xff]  }
 0x2e5   :  { %7801 = vmatprep.subr.bf16.mxu1 %v10571_v5  ;;  %v10631_v37 = vld [vmem:[%s15254_s1 + $0x128c] ss:$16 sps:$4 sm:$0xff]   ;;  %v10641_v56 = vld [vmem:[%s15254_s1 + $0x1248] ss:$16 sps:$4 sm:$0xff]  }
 0x2e7   :  { %7749 = vmatpush2.bf16.msra.mxu0 %v10566_v6 }
 0x2e8   :  { %7802 = vmatpush2.bf16.msra.mxu1 %v10569_v33  ;;  %7750 = vmatprep.subr.bf16.mxu0 %v10574_v9  ;;  %v15416_v33 = vld [vmem:[#allocation15_spill] sm:$0xff]  ;;  %v15417_v9 = vld [vmem:[#allocation16_spill] sm:$0xff] }
 0x2e9   :  { %7803 = vmatprep.subr.bf16.mxu1 %v10577_v25 }
 0x2eb   :  { %7751 = vmatpush2.bf16.msra.mxu0 %v10572_v26 }
 0x2ec   :  { %7804 = vmatpush2.bf16.msra.mxu1 %v10575_v40  ;;  %7752 = vmatprep.subr.bf16.mxu0 %v10580_v8  ;;  %v10626_v8 = vld [vmem:[%s15254_s1 + $0x1088] ss:$16 sps:$4 sm:$0xff]  }
 0x2ed   :  { %7805 = vmatprep.subr.bf16.mxu1 %v10583_v3  ;;  %v10629_v3 = vld [vmem:[%s15254_s1 + $0x1288] ss:$16 sps:$4 sm:$0xff]  }
 0x2ef   :  { %7753 = vmatpush2.bf16.msra.mxu0 %v10578_v10 }
 0x2f0   :  { %7806 = vmatpush2.bf16.msra.mxu1 %v10581_v45  ;;  %7754 = vmatprep.subr.bf16.mxu0 %v10586_v52  ;;  %v10634_v45 = vld [vmem:[%s15254_s1 + $0x106c] ss:$16 sps:$4 sm:$0xff]  }
 0x2f1   :  { %7807 = vmatprep.subr.bf16.mxu1 %v10589_v55  ;;  %v10637_v52 = vld [vmem:[%s15254_s1 + $0x126c] ss:$16 sps:$4 sm:$0xff]  }
 0x2f3   :  { %7755 = vmatpush2.bf16.msra.mxu0 %v10584_v17 }
 0x2f4   :  { %7808 = vmatpush2.bf16.msra.mxu1 %v10587_v43  ;;  %7756 = vmatprep.subr.bf16.mxu0 %v10592_v39 }
 0x2f5   :  { %7809 = vmatprep.subr.bf16.mxu1 %v10595_v19  ;;  %v15418_v19 = vld [vmem:[#allocation17_spill] sm:$0xff] }
 0x2f7   :  { %7757 = vmatpush2.bf16.msra.mxu0 %v10590_v41  ;;  %v15419_v41 = vld [vmem:[#allocation18_spill] sm:$0xff] }
 0x2f8   :  { %7810 = vmatpush2.bf16.msra.mxu1 %v10593_v36  ;;  %7758 = vmatprep.subr.bf16.mxu0 %v10598_v62 }
 0x2f9   :  { %7811 = vmatprep.subr.bf16.mxu1 %v10601_v0  ;;  %v10632_v0 = vld [vmem:[%s15254_s1 + $0x1068] ss:$16 sps:$4 sm:$0xff]  }
 0x2fb   :  { %7759 = vmatpush2.bf16.msra.mxu0 %v10596_v44  ;;  %v10635_v44 = vld [vmem:[%s15254_s1 + $0x1268] ss:$16 sps:$4 sm:$0xff]  }
 0x2fc   :  { %7812 = vmatpush2.bf16.msra.mxu1 %v10599_v42  ;;  %7760 = vmatprep.subr.bf16.mxu0 %v10604_v18 }
 0x2fd   :  { %7813 = vmatprep.subr.bf16.mxu1 %v10607_v48  ;;  %v10640_v48 = vld [vmem:[%s15254_s1 + $0x104c] ss:$16 sps:$4 sm:$0xff]  }
 0x2ff   :  { %7761 = vmatpush2.bf16.msra.mxu0 %v10602_v2  ;;  %v10643_v2 = vld [vmem:[%s15254_s1 + $0x124c] ss:$16 sps:$4 sm:$0xff]  }
 0x300   :  { %7814 = vmatpush2.bf16.msra.mxu1 %v10605_v53  ;;  %7836 = vmatprep.subr.bf16.mxu0 %v10610_v46 }
 0x301   :  { %7889 = vmatprep.subr.bf16.mxu1 %v10613_v23  ;;  %v10638_v23 = vld [vmem:[%s15254_s1 + $0x1048] ss:$16 sps:$4 sm:$0xff]  }
 0x302   :  { %v7446_v29 = vpop.f32.mrf.mxu0  ;;  %7763 = vmatmul.mubr.bf16.vlgmr.msra.gmra.mxu0 %v15412_v4  ;;  %v10658_v4 = vld [vmem:[%s15254_s1 + $0x11ec] ss:$16 sps:$4 sm:$0xff]  }
 0x303   :  { %v7499_v61 = vpop.f32.mrf.mxu1  ;;  %7816 = vmatmul.mubr.bf16.vlgmr.msra.gmra.mxu1 %v15413_v21  ;;  %v7447_v20 = vadd.f32 %v7446_v29, %v14178_v34  ;;  %7837 = vmatpush1.bf16.msra.mxu0 %v10608_v15  ;;  %v10649_v15 = vld [vmem:[%s15254_s1 + $0x122c] ss:$16 sps:$4 sm:$0xff]   ;;  %v10650_v29 = vld [vmem:[%s15254_s1 + $0x1008] ss:$16 sps:$4 sm:$0xff]  }
 0x304   :  { %7890 = vmatpush1.bf16.msra.mxu1 %v10611_v13  ;;  %v7448_v1 = vpop.f32.mrf.mxu0  ;;  %7838 = vmatprep.subr.bf16.mxu0 %v10616_v50  ;;  %v10644_v13 = vld [vmem:[%s15254_s1 + $0x1028] ss:$16 sps:$4 sm:$0xff]   ;;  %v10661_v21 = vld [vmem:[%s15254_s1 + $0x13ec] ss:$16 sps:$4 sm:$0xff]  }
 0x305   :  { %v7501_v11 = vpop.f32.mrf.mxu1  ;;  %7891 = vmatprep.subr.bf16.mxu1 %v10619_v31  ;;  %v14209_v60 = vadd.f32 %v7499_v61, %v7447_v20  ;;  %v7449_v30 = vadd.f32 %v7448_v1, %v14192_v14  ;;  %7772 = vmatprep.mubr.bf16.mxu0 %v15414_v35  ;;  %v10647_v50 = vld [vmem:[%s15254_s1 + $0x1228] ss:$16 sps:$4 sm:$0xff]   ;;  %v10652_v31 = vld [vmem:[%s15254_s1 + $0x100c] ss:$16 sps:$4 sm:$0xff]  }
 0x306   :  { %7825 = vmatprep.mubr.bf16.mxu1 %v15415_v12  ;;  %v7450_v54 = vpop.f32.mrf.mxu0  ;;  %v10653_v61 = vld [vmem:[%s15254_s1 + $0x1208] ss:$16 sps:$4 sm:$0xff]   ;;  %v10667_v1 = vld [vmem:[%s15254_s1 + $0x13cc] ss:$16 sps:$4 sm:$0xff]  }
 0x307   :  { %v7503_v24 = vpop.f32.mrf.mxu1  ;;  %v14214_v27 = vadd.f32 %v7501_v11, %v7449_v30  ;;  %v7451_v57 = vadd.f32 %v7450_v54, %v14178_v34  ;;  %7839 = vmatpush1.bf16.msra.mxu0 %v10614_v28  ;;  %v10656_v20 = vld [vmem:[%s15254_s1 + $0x11e8] ss:$16 sps:$4 sm:$0xff]   ;;  %v10673_v30 = vld [vmem:[%s15254_s1 + $0x13ac] ss:$16 sps:$4 sm:$0xff]  }
 0x308   :  { %7892 = vmatpush1.bf16.msra.mxu1 %v10617_v22  ;;  %v7452_v63 = vpop.f32.mrf.mxu0  ;;  %7840 = vmatprep.subr.bf16.mxu0 %v10622_v58  ;;  %v10659_v28 = vld [vmem:[%s15254_s1 + $0x13e8] ss:$16 sps:$4 sm:$0xff]   ;;  %v10664_v22 = vld [vmem:[%s15254_s1 + $0x11cc] ss:$16 sps:$4 sm:$0xff]  }
 0x309   :  { %v7505_v47 = vpop.f32.mrf.mxu1  ;;  %7893 = vmatprep.subr.bf16.mxu1 %v10625_v38  ;;  %v14229_v5 = vadd.f32 %v7503_v24, %v7451_v57  ;;  %v7453_v6 = vadd.f32 %v7452_v63, %v14192_v14  ;;  %v10662_v11 = vld [vmem:[%s15254_s1 + $0x11c8] ss:$16 sps:$4 sm:$0xff]   ;;  %v10670_v38 = vld [vmem:[%s15254_s1 + $0x11ac] ss:$16 sps:$4 sm:$0xff]  }
 0x30a   :  { %7773 = vmatmul.mubr.bf16.gmra.mxu0 %v15416_v33  ;;  %v7456_v25 = vpop.f32.mrf.mxu0  ;;  %v10665_v58 = vld [vmem:[%s15254_s1 + $0x13c8] ss:$16 sps:$4 sm:$0xff]   ;;  %v10676_v54 = vld [vmem:[%s15254_s1 + $0x118c] ss:$16 sps:$4 sm:$0xff]  }
 0x30b   :  { %7826 = vmatmul.mubr.bf16.gmra.mxu1 %v15417_v9  ;;  %v7509_v26 = vpop.f32.mrf.mxu1  ;;  %v14234_v40 = vadd.f32 %v7505_v47, %v7453_v6  ;;  %7841 = vmatpush1.bf16.msra.mxu0 %v10620_v49  ;;  %v7457_v10 = vadd.f32 %v7456_v25, %v14178_v34  ;;  %v10668_v35 = vld [vmem:[%s15254_s1 + $0x11a8] ss:$16 sps:$4 sm:$0xff]   ;;  %v10679_v24 = vld [vmem:[%s15254_s1 + $0x138c] ss:$16 sps:$4 sm:$0xff]  }
 0x30c   :  { %7894 = vmatpush1.bf16.msra.mxu1 %v10623_v32  ;;  %7842 = vmatprep.subr.bf16.mxu0 %v10628_v59  ;;  %v7458_v55 = vpop.f32.mrf.mxu0  ;;  %v10671_v12 = vld [vmem:[%s15254_s1 + $0x13a8] ss:$16 sps:$4 sm:$0xff]   ;;  %v10682_v32 = vld [vmem:[%s15254_s1 + $0x116c] ss:$16 sps:$4 sm:$0xff]  }
 0x30d   :  { %7895 = vmatprep.subr.bf16.mxu1 %v10631_v37  ;;  %v7511_v17 = vpop.f32.mrf.mxu1  ;;  %v7459_v43 = vadd.f32 %v7458_v55, %v14192_v14  ;;  %v14250_v39 = vadd.f32 %v7509_v26, %v7457_v10  ;;  %7868 = vmatprep.mubr.bf16.mxu0 %v15418_v19  ;;  %v10674_v57 = vld [vmem:[%s15254_s1 + $0x1188] ss:$16 sps:$4 sm:$0xff]   ;;  %v10685_v63 = vld [vmem:[%s15254_s1 + $0x136c] ss:$16 sps:$4 sm:$0xff]  }
 0x30e   :  { %7921 = vmatprep.mubr.bf16.mxu1 %v15419_v41  ;;  %v7460_v36 = vpop.f32.mrf.mxu0  ;;  %v10677_v49 = vld [vmem:[%s15254_s1 + $0x1388] ss:$16 sps:$4 sm:$0xff]   ;;  %v10688_v37 = vld [vmem:[%s15254_s1 + $0x114c] ss:$16 sps:$4 sm:$0xff]  }
 0x30f   :  { %v7513_v62 = vpop.f32.mrf.mxu1  ;;  %7843 = vmatpush1.bf16.msra.mxu0 %v10626_v8  ;;  %v7461_v42 = vadd.f32 %v7460_v36, %v14178_v34  ;;  %v14261_v18 = vadd.f32 %v7511_v17, %v7459_v43  ;;  %v10646_v34 = vld [vmem:[%s15254_s1 + $0x102c] ss:$16 sps:$4 sm:$0xff]   ;;  %v10680_v47 = vld [vmem:[%s15254_s1 + $0x1168] ss:$16 sps:$4 sm:$0xff]  }
 0x310   :  { %7896 = vmatpush1.bf16.msra.mxu1 %v10629_v3  ;;  %7844 = vmatprep.subr.bf16.mxu0 %v10634_v45  ;;  %v7462_v53 = vpop.f32.mrf.mxu0  ;;  %v10683_v59 = vld [vmem:[%s15254_s1 + $0x1368] ss:$16 sps:$4 sm:$0xff]   ;;  %v10691_v6 = vld [vmem:[%s15254_s1 + $0x134c] ss:$16 sps:$4 sm:$0xff]  }
 0x311   :  { %7897 = vmatprep.subr.bf16.mxu1 %v10637_v52  ;;  %v7515_v7 = vpop.f32.mrf.mxu1  ;;  %v7463_v51 = vadd.f32 %v7462_v53, %v14192_v14  ;;  %v14270_v46 = vadd.f32 %v7513_v62, %v7461_v42  ;;  %v10655_v14 = vld [vmem:[%s15254_s1 + $0x120c] ss:$16 sps:$4 sm:$0xff]   ;;  %v10686_v33 = vld [vmem:[%s15254_s1 + $0x1148] ss:$16 sps:$4 sm:$0xff]  }
 0x312   :  { %v10689_v9 = vld [vmem:[%s15254_s1 + $0x1348] ss:$16 sps:$4 sm:$0xff]   ;;  %v10694_v25 = vld [vmem:[%s15254_s1 + $0x112c] ss:$16 sps:$4 sm:$0xff]  }
 0x313   :  { %7845 = vmatpush1.bf16.msra.mxu0 %v10632_v0  ;;  %v14278_v16 = vadd.f32 %v7515_v7, %v7463_v51  ;;  %v10697_v26 = vld [vmem:[%s15254_s1 + $0x132c] ss:$16 sps:$4 sm:$0xff]   ;;  %v10692_v8 = vld [vmem:[%s15254_s1 + $0x1128] ss:$16 sps:$4 sm:$0xff]  }
 0x314   :  { %7898 = vmatpush1.bf16.msra.mxu1 %v10635_v44  ;;  %7846 = vmatprep.subr.bf16.mxu0 %v10640_v48  ;;  %v10695_v3 = vld [vmem:[%s15254_s1 + $0x1328] ss:$16 sps:$4 sm:$0xff]   ;;  %v10700_v10 = vld [vmem:[%s15254_s1 + $0x110c] ss:$16 sps:$4 sm:$0xff]   ;;  %v15421_v48 = vld [vmem:[#allocation20_spill] sm:$0xff] }
 0x315   :  { %7899 = vmatprep.subr.bf16.mxu1 %v10643_v2  ;;  %v10703_v45 = vld [vmem:[%s15254_s1 + $0x130c] ss:$16 sps:$4 sm:$0xff]   ;;  %v10698_v52 = vld [vmem:[%s15254_s1 + $0x1108] ss:$16 sps:$4 sm:$0xff]  }
 0x316   :  { %v10701_v55 = vld [vmem:[%s15254_s1 + $0x1308] ss:$16 sps:$4 sm:$0xff]   ;;  %v10706_v17 = vld [vmem:[%s15254_s1 + $0x14ec] ss:$16 sps:$4 sm:$0xff]  }
 0x317   :  { %7847 = vmatpush1.bf16.msra.mxu0 %v10638_v23  ;;  %v10709_v43 = vld [vmem:[%s15254_s1 + $0x16ec] ss:$16 sps:$4 sm:$0xff]   ;;  %v10704_v19 = vld [vmem:[%s15254_s1 + $0x14e8] ss:$16 sps:$4 sm:$0xff]  }
 0x318   :  { %7900 = vmatpush1.bf16.msra.mxu1 %v10641_v56  ;;  %7848 = vmatprep.subr.bf16.mxu0 %v10646_v34  ;;  %v10707_v41 = vld [vmem:[%s15254_s1 + $0x16e8] ss:$16 sps:$4 sm:$0xff]   ;;  %v10712_v36 = vld [vmem:[%s15254_s1 + $0x14cc] ss:$16 sps:$4 sm:$0xff]  }
 0x319   :  { %7901 = vmatprep.subr.bf16.mxu1 %v10649_v15  ;;  %v10715_v62 = vld [vmem:[%s15254_s1 + $0x16cc] ss:$16 sps:$4 sm:$0xff]   ;;  %v10710_v53 = vld [vmem:[%s15254_s1 + $0x14c8] ss:$16 sps:$4 sm:$0xff]  }
 0x31a   :  { %v15420_v42 = vld [vmem:[#allocation19_spill] sm:$0xff] }
 0x31b   :  { %7849 = vmatpush1.bf16.msra.mxu0 %v10644_v13  ;;  %v10713_v7 = vld [vmem:[%s15254_s1 + $0x16c8] ss:$16 sps:$4 sm:$0xff]   ;;  %v10718_v56 = vld [vmem:[%s15254_s1 + $0x14ac] ss:$16 sps:$4 sm:$0xff]  }
 0x31c   :  { %7902 = vmatpush1.bf16.msra.mxu1 %v10647_v50  ;;  %7850 = vmatprep.subr.bf16.mxu0 %v10652_v31  ;;  %v15422_v13 = vld [vmem:[#allocation21_spill] sm:$0xff]  ;;  %v15423_v50 = vld [vmem:[#allocation22_spill] sm:$0xff] }
 0x31d   :  { %7903 = vmatprep.subr.bf16.mxu1 %v10655_v14 }
 0x31f   :  { %7851 = vmatpush1.bf16.msra.mxu0 %v10650_v29 }
 0x320   :  { %7904 = vmatpush1.bf16.msra.mxu1 %v10653_v61  ;;  %7852 = vmatprep.subr.bf16.mxu0 %v10658_v4  ;;  %v10716_v4 = vld [vmem:[%s15254_s1 + $0x14a8] ss:$16 sps:$4 sm:$0xff]  }
 0x321   :  { %7905 = vmatprep.subr.bf16.mxu1 %v10661_v21 }
 0x323   :  { %7853 = vmatpush2.bf16.msra.mxu0 %v10656_v20 }
 0x324   :  { %7906 = vmatpush2.bf16.msra.mxu1 %v10659_v28  ;;  %7854 = vmatprep.subr.bf16.mxu0 %v10664_v22  ;;  %v10724_v28 = vld [vmem:[%s15254_s1 + $0x148c] ss:$16 sps:$4 sm:$0xff]  }
 0x325   :  { %7907 = vmatprep.subr.bf16.mxu1 %v10667_v1 }
 0x327   :  { %7855 = vmatpush2.bf16.msra.mxu0 %v10662_v11 }
 0x328   :  { %7908 = vmatpush2.bf16.msra.mxu1 %v10665_v58  ;;  %7856 = vmatprep.subr.bf16.mxu0 %v10670_v38  ;;  %v15424_v58 = vld [vmem:[#allocation23_spill] sm:$0xff] }
 0x329   :  { %7909 = vmatprep.subr.bf16.mxu1 %v10673_v30  ;;  %v15425_v30 = vld [vmem:[#allocation24_spill] sm:$0xff] }
 0x32b   :  { %7857 = vmatpush2.bf16.msra.mxu0 %v10668_v35 }
 0x32c   :  { %7910 = vmatpush2.bf16.msra.mxu1 %v10671_v12  ;;  %7858 = vmatprep.subr.bf16.mxu0 %v10676_v54  ;;  %v10722_v54 = vld [vmem:[%s15254_s1 + $0x1488] ss:$16 sps:$4 sm:$0xff]  }
 0x32d   :  { %7911 = vmatprep.subr.bf16.mxu1 %v10679_v24 }
 0x32f   :  { %7859 = vmatpush2.bf16.msra.mxu0 %v10674_v57 }
 0x330   :  { %7912 = vmatpush2.bf16.msra.mxu1 %v10677_v49  ;;  %7860 = vmatprep.subr.bf16.mxu0 %v10682_v32  ;;  %v10730_v49 = vld [vmem:[%s15254_s1 + $0x146c] ss:$16 sps:$4 sm:$0xff]  }
 0x331   :  { %7913 = vmatprep.subr.bf16.mxu1 %v10685_v63 }
 0x333   :  { %7861 = vmatpush2.bf16.msra.mxu0 %v10680_v47  ;;  %v15426_v47 = vld [vmem:[#allocation25_spill] sm:$0xff] }
 0x334   :  { %7914 = vmatpush2.bf16.msra.mxu1 %v10683_v59  ;;  %7862 = vmatprep.subr.bf16.mxu0 %v10688_v37  ;;  %v15427_v59 = vld [vmem:[#allocation26_spill] sm:$0xff] }
 0x335   :  { %7915 = vmatprep.subr.bf16.mxu1 %v10691_v6 }
 0x337   :  { %7863 = vmatpush2.bf16.msra.mxu0 %v10686_v33 }
 0x338   :  { %7916 = vmatpush2.bf16.msra.mxu1 %v10689_v9  ;;  %7864 = vmatprep.subr.bf16.mxu0 %v10694_v25  ;;  %v10728_v25 = vld [vmem:[%s15254_s1 + $0x1468] ss:$16 sps:$4 sm:$0xff]  }
 0x339   :  { %7917 = vmatprep.subr.bf16.mxu1 %v10697_v26 }
 0x33b   :  { %7865 = vmatpush2.bf16.msra.mxu0 %v10692_v8 }
 0x33c   :  { %7918 = vmatpush2.bf16.msra.mxu1 %v10695_v3  ;;  %7866 = vmatprep.subr.bf16.mxu0 %v10700_v10  ;;  %v10739_v3 = vld [vmem:[%s15254_s1 + $0x164c] ss:$16 sps:$4 sm:$0xff]  }
 0x33d   :  { %7919 = vmatprep.subr.bf16.mxu1 %v10703_v45 }
 0x33f   :  { %7867 = vmatpush2.bf16.msra.mxu0 %v10698_v52 }
 0x340   :  { %7920 = vmatpush2.bf16.msra.mxu1 %v10701_v55  ;;  %7942 = vmatprep.subr.bf16.mxu0 %v10706_v17  ;;  %v10734_v55 = vld [vmem:[%s15254_s1 + $0x1448] ss:$16 sps:$4 sm:$0xff]  }
 0x341   :  { %7995 = vmatprep.subr.bf16.mxu1 %v10709_v43  ;;  %v10737_v17 = vld [vmem:[%s15254_s1 + $0x1648] ss:$16 sps:$4 sm:$0xff]   ;;  %v10745_v43 = vld [vmem:[%s15254_s1 + $0x162c] ss:$16 sps:$4 sm:$0xff]  }
 0x342   :  { %v7552_v0 = vpop.f32.mrf.mxu0  ;;  %7869 = vmatmul.mubr.bf16.vlgmr.msra.gmra.mxu0 %v15420_v42  ;;  %v10754_v42 = vld [vmem:[%s15254_s1 + $0x15ec] ss:$16 sps:$4 sm:$0xff]  }
 0x343   :  { %v7605_v44 = vpop.f32.mrf.mxu1  ;;  %7922 = vmatmul.mubr.bf16.vlgmr.msra.gmra.mxu1 %v15421_v48  ;;  %v7553_v2 = vadd.f32 %v7552_v0, %v14209_v60  ;;  %7943 = vmatpush1.bf16.msra.mxu0 %v10704_v19  ;;  %v10721_v60 = vld [vmem:[%s15254_s1 + $0x16ac] ss:$16 sps:$4 sm:$0xff]   ;;  %v10740_v19 = vld [vmem:[%s15254_s1 + $0x1428] ss:$16 sps:$4 sm:$0xff]  }
 0x344   :  { %7996 = vmatpush1.bf16.msra.mxu1 %v10707_v41  ;;  %v7554_v51 = vpop.f32.mrf.mxu0  ;;  %7944 = vmatprep.subr.bf16.mxu0 %v10712_v36  ;;  %v10743_v41 = vld [vmem:[%s15254_s1 + $0x1628] ss:$16 sps:$4 sm:$0xff]   ;;  %v10748_v36 = vld [vmem:[%s15254_s1 + $0x140c] ss:$16 sps:$4 sm:$0xff]  }
 0x345   :  { %v7607_v23 = vpop.f32.mrf.mxu1  ;;  %7997 = vmatprep.subr.bf16.mxu1 %v10715_v62  ;;  %v14433_v34 = vadd.f32 %v7605_v44, %v7553_v2  ;;  %v7555_v15 = vadd.f32 %v7554_v51, %v14214_v27  ;;  %7878 = vmatprep.mubr.bf16.mxu0 %v15422_v13  ;;  %v10719_v27 = vld [vmem:[%s15254_s1 + $0x16a8] ss:$16 sps:$4 sm:$0xff]   ;;  %v10751_v62 = vld [vmem:[%s15254_s1 + $0x160c] ss:$16 sps:$4 sm:$0xff]  }
 0x346   :  { %7931 = vmatprep.mubr.bf16.mxu1 %v15423_v50  ;;  %v7556_v31 = vpop.f32.mrf.mxu0  ;;  %v10746_v0 = vld [vmem:[%s15254_s1 + $0x1408] ss:$16 sps:$4 sm:$0xff]   ;;  %v10757_v48 = vld [vmem:[%s15254_s1 + $0x17ec] ss:$16 sps:$4 sm:$0xff]  }
 0x347   :  { %v7609_v14 = vpop.f32.mrf.mxu1  ;;  %v14438_v29 = vadd.f32 %v7607_v23, %v7555_v15  ;;  %v7557_v61 = vadd.f32 %v7556_v31, %v14229_v5  ;;  %7945 = vmatpush1.bf16.msra.mxu0 %v10710_v53  ;;  %v10727_v5 = vld [vmem:[%s15254_s1 + $0x168c] ss:$16 sps:$4 sm:$0xff]   ;;  %v10749_v44 = vld [vmem:[%s15254_s1 + $0x1608] ss:$16 sps:$4 sm:$0xff]  }
 0x348   :  { %7998 = vmatpush1.bf16.msra.mxu1 %v10713_v7  ;;  %v7558_v21 = vpop.f32.mrf.mxu0  ;;  %7946 = vmatprep.subr.bf16.mxu0 %v10718_v56  ;;  %v10752_v2 = vld [vmem:[%s15254_s1 + $0x15e8] ss:$16 sps:$4 sm:$0xff]   ;;  %v10760_v7 = vld [vmem:[%s15254_s1 + $0x15cc] ss:$16 sps:$4 sm:$0xff]  }
 0x349   :  { %v7611_v20 = vpop.f32.mrf.mxu1  ;;  %7999 = vmatprep.subr.bf16.mxu1 %v10721_v60  ;;  %v14453_v22 = vadd.f32 %v7609_v14, %v7557_v61  ;;  %v7559_v1 = vadd.f32 %v7558_v21, %v14234_v40  ;;  %v10725_v40 = vld [vmem:[%s15254_s1 + $0x1688] ss:$16 sps:$4 sm:$0xff]   ;;  %v10763_v51 = vld [vmem:[%s15254_s1 + $0x17cc] ss:$16 sps:$4 sm:$0xff]  }
 0x34a   :  { %v7562_v11 = vpop.f32.mrf.mxu0  ;;  %7879 = vmatmul.mubr.bf16.gmra.mxu0 %v15424_v58  ;;  %v10755_v53 = vld [vmem:[%s15254_s1 + $0x17e8] ss:$16 sps:$4 sm:$0xff]   ;;  %v10766_v60 = vld [vmem:[%s15254_s1 + $0x15ac] ss:$16 sps:$4 sm:$0xff]  }
 0x34b   :  { %v7615_v38 = vpop.f32.mrf.mxu1  ;;  %7932 = vmatmul.mubr.bf16.gmra.mxu1 %v15425_v30  ;;  %v14458_v35 = vadd.f32 %v7611_v20, %v7559_v1  ;;  %v7563_v12 = vadd.f32 %v7562_v11, %v14250_v39  ;;  %7947 = vmatpush1.bf16.msra.mxu0 %v10716_v4  ;;  %v10733_v39 = vld [vmem:[%s15254_s1 + $0x166c] ss:$16 sps:$4 sm:$0xff]   ;;  %v10758_v23 = vld [vmem:[%s15254_s1 + $0x15c8] ss:$16 sps:$4 sm:$0xff]  }
 0x34c   :  { %8000 = vmatpush1.bf16.msra.mxu1 %v10719_v27  ;;  %v7564_v24 = vpop.f32.mrf.mxu0  ;;  %7948 = vmatprep.subr.bf16.mxu0 %v10724_v28  ;;  %v10761_v56 = vld [vmem:[%s15254_s1 + $0x17c8] ss:$16 sps:$4 sm:$0xff]   ;;  %v10769_v15 = vld [vmem:[%s15254_s1 + $0x17ac] ss:$16 sps:$4 sm:$0xff]  }
 0x34d   :  { %v7617_v57 = vpop.f32.mrf.mxu1  ;;  %8001 = vmatprep.subr.bf16.mxu1 %v10727_v5  ;;  %v7565_v32 = vadd.f32 %v7564_v24, %v14261_v18  ;;  %v14474_v63 = vadd.f32 %v7615_v38, %v7563_v12  ;;  %7974 = vmatprep.mubr.bf16.mxu0 %v15426_v47  ;;  %v10731_v18 = vld [vmem:[%s15254_s1 + $0x1668] ss:$16 sps:$4 sm:$0xff]   ;;  %v10772_v31 = vld [vmem:[%s15254_s1 + $0x158c] ss:$16 sps:$4 sm:$0xff]  }
 0x34e   :  { %8027 = vmatprep.mubr.bf16.mxu1 %v15427_v59  ;;  %v7566_v37 = vpop.f32.mrf.mxu0  ;;  %v10764_v13 = vld [vmem:[%s15254_s1 + $0x15a8] ss:$16 sps:$4 sm:$0xff]   ;;  %v10775_v14 = vld [vmem:[%s15254_s1 + $0x178c] ss:$16 sps:$4 sm:$0xff]  }
 0x34f   :  { %v7619_v6 = vpop.f32.mrf.mxu1  ;;  %v7567_v33 = vadd.f32 %v7566_v37, %v14270_v46  ;;  %v14479_v9 = vadd.f32 %v7617_v57, %v7565_v32  ;;  %7949 = vmatpush1.bf16.msra.mxu0 %v10722_v54  ;;  %v10736_v46 = vld [vmem:[%s15254_s1 + $0x144c] ss:$16 sps:$4 sm:$0xff]   ;;  %v10767_v50 = vld [vmem:[%s15254_s1 + $0x17a8] ss:$16 sps:$4 sm:$0xff]  }
 0x350   :  { %8002 = vmatpush1.bf16.msra.mxu1 %v10725_v40  ;;  %v7568_v26 = vpop.f32.mrf.mxu0  ;;  %7950 = vmatprep.subr.bf16.mxu0 %v10730_v49  ;;  %v10770_v61 = vld [vmem:[%s15254_s1 + $0x1588] ss:$16 sps:$4 sm:$0xff]   ;;  %v10778_v27 = vld [vmem:[%s15254_s1 + $0x156c] ss:$16 sps:$4 sm:$0xff]  }
 0x351   :  { %v7621_v8 = vpop.f32.mrf.mxu1  ;;  %8003 = vmatprep.subr.bf16.mxu1 %v10733_v39  ;;  %v7569_v10 = vadd.f32 %v7568_v26, %v14278_v16  ;;  %v14494_v45 = vadd.f32 %v7619_v6, %v7567_v33  ;;  %v10742_v16 = vld [vmem:[%s15254_s1 + $0x142c] ss:$16 sps:$4 sm:$0xff]   ;;  %v10773_v4 = vld [vmem:[%s15254_s1 + $0x1788] ss:$16 sps:$4 sm:$0xff]  }
 0x352   :  { %v10781_v21 = vld [vmem:[%s15254_s1 + $0x176c] ss:$16 sps:$4 sm:$0xff]   ;;  %v10776_v20 = vld [vmem:[%s15254_s1 + $0x1568] ss:$16 sps:$4 sm:$0xff]  }
 0x353   :  { %v14496_v52 = vadd.f32 %v7621_v8, %v7569_v10  ;;  %7951 = vmatpush1.bf16.msra.mxu0 %v10728_v25  ;;  %v10779_v28 = vld [vmem:[%s15254_s1 + $0x1768] ss:$16 sps:$4 sm:$0xff]   ;;  %v10784_v5 = vld [vmem:[%s15254_s1 + $0x154c] ss:$16 sps:$4 sm:$0xff]   ;;  %v15429_v25 = vld [vmem:[#allocation28_spill] sm:$0xff] }
 0x354   :  { %8004 = vmatpush1.bf16.msra.mxu1 %v10731_v18  ;;  %7952 = vmatprep.subr.bf16.mxu0 %v10736_v46  ;;  %v10787_v1 = vld [vmem:[%s15254_s1 + $0x174c] ss:$16 sps:$4 sm:$0xff]   ;;  %v10782_v11 = vld [vmem:[%s15254_s1 + $0x1548] ss:$16 sps:$4 sm:$0xff]   ;;  %v15431_v10 = vld [vmem:[#allocation30_spill] sm:$0xff] }
 0x355   :  { %8005 = vmatprep.subr.bf16.mxu1 %v10739_v3  ;;  %v10785_v58 = vld [vmem:[%s15254_s1 + $0x1748] ss:$16 sps:$4 sm:$0xff]   ;;  %v10790_v38 = vld [vmem:[%s15254_s1 + $0x152c] ss:$16 sps:$4 sm:$0xff]  }
 0x356   :  { %v10793_v30 = vld [vmem:[%s15254_s1 + $0x172c] ss:$16 sps:$4 sm:$0xff]   ;;  %v10788_v12 = vld [vmem:[%s15254_s1 + $0x1528] ss:$16 sps:$4 sm:$0xff]  }
 0x357   :  { %7953 = vmatpush1.bf16.msra.mxu0 %v10734_v55  ;;  %v10791_v54 = vld [vmem:[%s15254_s1 + $0x1728] ss:$16 sps:$4 sm:$0xff]   ;;  %v10796_v40 = vld [vmem:[%s15254_s1 + $0x150c] ss:$16 sps:$4 sm:$0xff]  }
 0x358   :  { %8006 = vmatpush1.bf16.msra.mxu1 %v10737_v17  ;;  %7954 = vmatprep.subr.bf16.mxu0 %v10742_v16  ;;  %v10799_v24 = vld [vmem:[%s15254_s1 + $0x170c] ss:$16 sps:$4 sm:$0xff]   ;;  %v10794_v57 = vld [vmem:[%s15254_s1 + $0x1508] ss:$16 sps:$4 sm:$0xff]  }
 0x359   :  { %8007 = vmatprep.subr.bf16.mxu1 %v10745_v43  ;;  %v10797_v49 = vld [vmem:[%s15254_s1 + $0x1708] ss:$16 sps:$4 sm:$0xff]   ;;  %v10802_v39 = vld [vmem:[%s15254_s1 + $0x18ec] ss:$16 sps:$4 sm:$0xff]  }
 0x35a   :  { %v10805_v32 = vld [vmem:[%s15254_s1 + $0x1aec] ss:$16 sps:$4 sm:$0xff]   ;;  %v10800_v47 = vld [vmem:[%s15254_s1 + $0x18e8] ss:$16 sps:$4 sm:$0xff]  }
 0x35b   :  { %7955 = vmatpush1.bf16.msra.mxu0 %v10740_v19  ;;  %v10803_v59 = vld [vmem:[%s15254_s1 + $0x1ae8] ss:$16 sps:$4 sm:$0xff]   ;;  %v10808_v37 = vld [vmem:[%s15254_s1 + $0x18cc] ss:$16 sps:$4 sm:$0xff]  }
 0x35c   :  { %8008 = vmatpush1.bf16.msra.mxu1 %v10743_v41  ;;  %7956 = vmatprep.subr.bf16.mxu0 %v10748_v36  ;;  %v10811_v6 = vld [vmem:[%s15254_s1 + $0x1acc] ss:$16 sps:$4 sm:$0xff]   ;;  %v10806_v18 = vld [vmem:[%s15254_s1 + $0x18c8] ss:$16 sps:$4 sm:$0xff]   ;;  %v15433_v41 = vld [vmem:[#allocation32_spill] sm:$0xff] }
 0x35d   :  { %8009 = vmatprep.subr.bf16.mxu1 %v10751_v62  ;;  %v15428_v33 = vld [vmem:[#allocation27_spill] sm:$0xff]  ;;  %v15430_v3 = vld [vmem:[#allocation29_spill] sm:$0xff] }
 0x35e   :  { %v10809_v26 = vld [vmem:[%s15254_s1 + $0x1ac8] ss:$16 sps:$4 sm:$0xff]   ;;  %v10814_v8 = vld [vmem:[%s15254_s1 + $0x18ac] ss:$16 sps:$4 sm:$0xff]  }
 0x35f   :  { %7957 = vmatpush1.bf16.msra.mxu0 %v10746_v0  ;;  %v10817_v46 = vld [vmem:[%s15254_s1 + $0x1aac] ss:$16 sps:$4 sm:$0xff]   ;;  %v10812_v55 = vld [vmem:[%s15254_s1 + $0x18a8] ss:$16 sps:$4 sm:$0xff]  }
 0x360   :  { %8010 = vmatpush1.bf16.msra.mxu1 %v10749_v44  ;;  %7958 = vmatprep.subr.bf16.mxu0 %v10754_v42  ;;  %v10815_v17 = vld [vmem:[%s15254_s1 + $0x1aa8] ss:$16 sps:$4 sm:$0xff]   ;;  %v10820_v16 = vld [vmem:[%s15254_s1 + $0x188c] ss:$16 sps:$4 sm:$0xff]  }
 0x361   :  { %8011 = vmatprep.subr.bf16.mxu1 %v10757_v48  ;;  %v10823_v43 = vld [vmem:[%s15254_s1 + $0x1a8c] ss:$16 sps:$4 sm:$0xff]   ;;  %v10818_v36 = vld [vmem:[%s15254_s1 + $0x1888] ss:$16 sps:$4 sm:$0xff]   ;;  %v15435_v48 = vld [vmem:[#allocation34_spill] sm:$0xff] }
 0x362   :  { %v15432_v19 = vld [vmem:[#allocation31_spill] sm:$0xff]  ;;  %v15434_v42 = vld [vmem:[#allocation33_spill] sm:$0xff] }
 0x363   :  { %7959 = vmatpush2.bf16.msra.mxu0 %v10752_v2  ;;  %v10821_v62 = vld [vmem:[%s15254_s1 + $0x1a88] ss:$16 sps:$4 sm:$0xff]   ;;  %v10826_v0 = vld [vmem:[%s15254_s1 + $0x186c] ss:$16 sps:$4 sm:$0xff]  }
 0x364   :  { %8012 = vmatpush2.bf16.msra.mxu1 %v10755_v53  ;;  %7960 = vmatprep.subr.bf16.mxu0 %v10760_v7  ;;  %v10829_v44 = vld [vmem:[%s15254_s1 + $0x1a6c] ss:$16 sps:$4 sm:$0xff]   ;;  %v10824_v2 = vld [vmem:[%s15254_s1 + $0x1868] ss:$16 sps:$4 sm:$0xff]  }
 0x365   :  { %8013 = vmatprep.subr.bf16.mxu1 %v10763_v51  ;;  %v10827_v53 = vld [vmem:[%s15254_s1 + $0x1a68] ss:$16 sps:$4 sm:$0xff]   ;;  %v10832_v7 = vld [vmem:[%s15254_s1 + $0x184c] ss:$16 sps:$4 sm:$0xff]  }
 0x366   :  { %v10835_v51 = vld [vmem:[%s15254_s1 + $0x1a4c] ss:$16 sps:$4 sm:$0xff]  }
 0x367   :  { %7961 = vmatpush2.bf16.msra.mxu0 %v10758_v23  ;;  %v10830_v23 = vld [vmem:[%s15254_s1 + $0x1848] ss:$16 sps:$4 sm:$0xff]  }
 0x368   :  { %8014 = vmatpush2.bf16.msra.mxu1 %v10761_v56  ;;  %7962 = vmatprep.subr.bf16.mxu0 %v10766_v60  ;;  %v10833_v56 = vld [vmem:[%s15254_s1 + $0x1a48] ss:$16 sps:$4 sm:$0xff]   ;;  %v10838_v60 = vld [vmem:[%s15254_s1 + $0x182c] ss:$16 sps:$4 sm:$0xff]  }
 0x369   :  { %8015 = vmatprep.subr.bf16.mxu1 %v10769_v15  ;;  %v10841_v15 = vld [vmem:[%s15254_s1 + $0x1a2c] ss:$16 sps:$4 sm:$0xff]  }
 0x36b   :  { %7963 = vmatpush2.bf16.msra.mxu0 %v10764_v13  ;;  %v10836_v13 = vld [vmem:[%s15254_s1 + $0x1828] ss:$16 sps:$4 sm:$0xff]  }
 0x36c   :  { %8016 = vmatpush2.bf16.msra.mxu1 %v10767_v50  ;;  %7964 = vmatprep.subr.bf16.mxu0 %v10772_v31  ;;  %v10839_v50 = vld [vmem:[%s15254_s1 + $0x1a28] ss:$16 sps:$4 sm:$0xff]   ;;  %v10844_v31 = vld [vmem:[%s15254_s1 + $0x180c] ss:$16 sps:$4 sm:$0xff]  }
 0x36d   :  { %8017 = vmatprep.subr.bf16.mxu1 %v10775_v14  ;;  %v10847_v14 = vld [vmem:[%s15254_s1 + $0x1a0c] ss:$16 sps:$4 sm:$0xff]  }
 0x36f   :  { %7965 = vmatpush2.bf16.msra.mxu0 %v10770_v61  ;;  %v10842_v61 = vld [vmem:[%s15254_s1 + $0x1808] ss:$16 sps:$4 sm:$0xff]  }
 0x370   :  { %8018 = vmatpush2.bf16.msra.mxu1 %v10773_v4  ;;  %7966 = vmatprep.subr.bf16.mxu0 %v10778_v27  ;;  %v10845_v4 = vld [vmem:[%s15254_s1 + $0x1a08] ss:$16 sps:$4 sm:$0xff]   ;;  %v10850_v27 = vld [vmem:[%s15254_s1 + $0x19ec] ss:$16 sps:$4 sm:$0xff]  }
 0x371   :  { %8019 = vmatprep.subr.bf16.mxu1 %v10781_v21  ;;  %v10853_v21 = vld [vmem:[%s15254_s1 + $0x1bec] ss:$16 sps:$4 sm:$0xff]  }
 0x373   :  { %7967 = vmatpush2.bf16.msra.mxu0 %v10776_v20  ;;  %v10848_v20 = vld [vmem:[%s15254_s1 + $0x19e8] ss:$16 sps:$4 sm:$0xff]  }
 0x374   :  { %8020 = vmatpush2.bf16.msra.mxu1 %v10779_v28  ;;  %7968 = vmatprep.subr.bf16.mxu0 %v10784_v5  ;;  %v10851_v28 = vld [vmem:[%s15254_s1 + $0x1be8] ss:$16 sps:$4 sm:$0xff]   ;;  %v10856_v5 = vld [vmem:[%s15254_s1 + $0x19cc] ss:$16 sps:$4 sm:$0xff]  }
 0x375   :  { %8021 = vmatprep.subr.bf16.mxu1 %v10787_v1  ;;  %v10859_v1 = vld [vmem:[%s15254_s1 + $0x1bcc] ss:$16 sps:$4 sm:$0xff]  }
 0x377   :  { %7969 = vmatpush2.bf16.msra.mxu0 %v10782_v11  ;;  %v10854_v11 = vld [vmem:[%s15254_s1 + $0x19c8] ss:$16 sps:$4 sm:$0xff]  }
 0x378   :  { %8022 = vmatpush2.bf16.msra.mxu1 %v10785_v58  ;;  %7970 = vmatprep.subr.bf16.mxu0 %v10790_v38  ;;  %v10857_v58 = vld [vmem:[%s15254_s1 + $0x1bc8] ss:$16 sps:$4 sm:$0xff]   ;;  %v10862_v38 = vld [vmem:[%s15254_s1 + $0x19ac] ss:$16 sps:$4 sm:$0xff]  }
 0x379   :  { %8023 = vmatprep.subr.bf16.mxu1 %v10793_v30  ;;  %v10865_v30 = vld [vmem:[%s15254_s1 + $0x1bac] ss:$16 sps:$4 sm:$0xff]  }
 0x37b   :  { %7971 = vmatpush2.bf16.msra.mxu0 %v10788_v12  ;;  %v10860_v12 = vld [vmem:[%s15254_s1 + $0x19a8] ss:$16 sps:$4 sm:$0xff]  }
 0x37c   :  { %8024 = vmatpush2.bf16.msra.mxu1 %v10791_v54  ;;  %7972 = vmatprep.subr.bf16.mxu0 %v10796_v40  ;;  %v10863_v54 = vld [vmem:[%s15254_s1 + $0x1ba8] ss:$16 sps:$4 sm:$0xff]   ;;  %v10868_v40 = vld [vmem:[%s15254_s1 + $0x198c] ss:$16 sps:$4 sm:$0xff]  }
 0x37d   :  { %8025 = vmatprep.subr.bf16.mxu1 %v10799_v24  ;;  %v10871_v24 = vld [vmem:[%s15254_s1 + $0x1b8c] ss:$16 sps:$4 sm:$0xff]  }
 0x37f   :  { %7973 = vmatpush2.bf16.msra.mxu0 %v10794_v57  ;;  %v10866_v57 = vld [vmem:[%s15254_s1 + $0x1988] ss:$16 sps:$4 sm:$0xff]  }
 0x380   :  { %8026 = vmatpush2.bf16.msra.mxu1 %v10797_v49  ;;  %8048 = vmatprep.subr.bf16.mxu0 %v10802_v39  ;;  %v10869_v49 = vld [vmem:[%s15254_s1 + $0x1b88] ss:$16 sps:$4 sm:$0xff]   ;;  %v10874_v39 = vld [vmem:[%s15254_s1 + $0x196c] ss:$16 sps:$4 sm:$0xff]  }
 0x381   :  { %8101 = vmatprep.subr.bf16.mxu1 %v10805_v32  ;;  %v10877_v32 = vld [vmem:[%s15254_s1 + $0x1b6c] ss:$16 sps:$4 sm:$0xff]  }
 0x382   :  { %7975 = vmatmul.mubr.bf16.vlgmr.msra.gmra.mxu0 %v15428_v33  ;;  %v10878_v33 = vld [vmem:[%s15254_s1 + $0x1948] ss:$16 sps:$4 sm:$0xff]  }
 0x383   :  { %8028 = vmatmul.mubr.bf16.vlgmr.msra.gmra.mxu1 %v15429_v25  ;;  %8049 = vmatpush1.bf16.msra.mxu0 %v10800_v47  ;;  %v10872_v47 = vld [vmem:[%s15254_s1 + $0x1968] ss:$16 sps:$4 sm:$0xff]  }
 0x384   :  { %8102 = vmatpush1.bf16.msra.mxu1 %v10803_v59  ;;  %8050 = vmatprep.subr.bf16.mxu0 %v10808_v37  ;;  %v10875_v59 = vld [vmem:[%s15254_s1 + $0x1b68] ss:$16 sps:$4 sm:$0xff]   ;;  %v10880_v37 = vld [vmem:[%s15254_s1 + $0x194c] ss:$16 sps:$4 sm:$0xff]  }
 0x385   :  { %8103 = vmatprep.subr.bf16.mxu1 %v10811_v6  ;;  %7984 = vmatprep.mubr.bf16.mxu0 %v15430_v3  ;;  %v10883_v6 = vld [vmem:[%s15254_s1 + $0x1b4c] ss:$16 sps:$4 sm:$0xff]   ;;  %v10881_v25 = vld [vmem:[%s15254_s1 + $0x1b48] ss:$16 sps:$4 sm:$0xff]  }
 0x386   :  { %8037 = vmatprep.mubr.bf16.mxu1 %v15431_v10  ;;  %v10892_v3 = vld [vmem:[%s15254_s1 + $0x190c] ss:$16 sps:$4 sm:$0xff]  }
 0x387   :  { %8051 = vmatpush1.bf16.msra.mxu0 %v10806_v18  ;;  %v10886_v18 = vld [vmem:[%s15254_s1 + $0x192c] ss:$16 sps:$4 sm:$0xff]  }
 0x388   :  { %8104 = vmatpush1.bf16.msra.mxu1 %v10809_v26  ;;  %8052 = vmatprep.subr.bf16.mxu0 %v10814_v8  ;;  %v10889_v26 = vld [vmem:[%s15254_s1 + $0x1b2c] ss:$16 sps:$4 sm:$0xff]   ;;  %v10884_v8 = vld [vmem:[%s15254_s1 + $0x1928] ss:$16 sps:$4 sm:$0xff]  }
 0x389   :  { %8105 = vmatprep.subr.bf16.mxu1 %v10817_v46  ;;  %v10887_v46 = vld [vmem:[%s15254_s1 + $0x1b28] ss:$16 sps:$4 sm:$0xff]   ;;  %v10895_v10 = vld [vmem:[%s15254_s1 + $0x1b0c] ss:$16 sps:$4 sm:$0xff]  }
 0x38a   :  { %7985 = vmatmul.mubr.bf16.gmra.mxu0 %v15432_v19  ;;  %v10896_v19 = vld [vmem:[%s15254_s1 + $0x1ce8] ss:$16 sps:$4 sm:$0xff]  }
 0x38b   :  { %8038 = vmatmul.mubr.bf16.gmra.mxu1 %v15433_v41  ;;  %8053 = vmatpush1.bf16.msra.mxu0 %v10812_v55  ;;  %v10890_v55 = vld [vmem:[%s15254_s1 + $0x1908] ss:$16 sps:$4 sm:$0xff]  }
 0x38c   :  { %8106 = vmatpush1.bf16.msra.mxu1 %v10815_v17  ;;  %8054 = vmatprep.subr.bf16.mxu0 %v10820_v16  ;;  %v10893_v17 = vld [vmem:[%s15254_s1 + $0x1b08] ss:$16 sps:$4 sm:$0xff]   ;;  %v10898_v16 = vld [vmem:[%s15254_s1 + $0x1cec] ss:$16 sps:$4 sm:$0xff]  }
 0x38d   :  { %8107 = vmatprep.subr.bf16.mxu1 %v10823_v43  ;;  %8080 = vmatprep.mubr.bf16.mxu0 %v15434_v42  ;;  %v10901_v43 = vld [vmem:[%s15254_s1 + $0x1eec] ss:$16 sps:$4 sm:$0xff]   ;;  %v10899_v41 = vld [vmem:[%s15254_s1 + $0x1ee8] ss:$16 sps:$4 sm:$0xff]  }
 0x38e   :  { %8133 = vmatprep.mubr.bf16.mxu1 %v15435_v48  ;;  %v10902_v42 = vld [vmem:[%s15254_s1 + $0x1cc8] ss:$16 sps:$4 sm:$0xff]  }
 0x38f   :  { %8055 = vmatpush1.bf16.msra.mxu0 %v10818_v36  ;;  %v10904_v36 = vld [vmem:[%s15254_s1 + $0x1ccc] ss:$16 sps:$4 sm:$0xff]   ;;  %v10905_v48 = vld [vmem:[%s15254_s1 + $0x1ec8] ss:$16 sps:$4 sm:$0xff]  }
 0x390   :  { %8108 = vmatpush1.bf16.msra.mxu1 %v10821_v62  ;;  %8056 = vmatprep.subr.bf16.mxu0 %v10826_v0  ;;  %v10907_v62 = vld [vmem:[%s15254_s1 + $0x1ecc] ss:$16 sps:$4 sm:$0xff]  }
 0x391   :  { %8109 = vmatprep.subr.bf16.mxu1 %v10829_v44  ;;  %v15436_v0 = vld [vmem:[#allocation35_spill] sm:$0xff]  ;;  %v15437_v44 = vld [vmem:[#allocation36_spill] sm:$0xff] }
 0x393   :  { %8057 = vmatpush1.bf16.msra.mxu0 %v10824_v2  ;;  %v10910_v2 = vld [vmem:[%s15254_s1 + $0x1cac] ss:$16 sps:$4 sm:$0xff]  }
 0x394   :  { %8110 = vmatpush1.bf16.msra.mxu1 %v10827_v53  ;;  %8058 = vmatprep.subr.bf16.mxu0 %v10832_v7  ;;  %v10913_v53 = vld [vmem:[%s15254_s1 + $0x1eac] ss:$16 sps:$4 sm:$0xff]  }
 0x395   :  { %8111 = vmatprep.subr.bf16.mxu1 %v10835_v51  ;;  %v15438_v7 = vld [vmem:[#allocation37_spill] sm:$0xff]  ;;  %v15439_v51 = vld [vmem:[#allocation38_spill] sm:$0xff] }
 0x397   :  { %8059 = vmatpush1.bf16.msra.mxu0 %v10830_v23  ;;  %v10908_v23 = vld [vmem:[%s15254_s1 + $0x1ca8] ss:$16 sps:$4 sm:$0xff]  }
 0x398   :  { %8112 = vmatpush1.bf16.msra.mxu1 %v10833_v56  ;;  %8060 = vmatprep.subr.bf16.mxu0 %v10838_v60  ;;  %v10911_v56 = vld [vmem:[%s15254_s1 + $0x1ea8] ss:$16 sps:$4 sm:$0xff]   ;;  %v10916_v60 = vld [vmem:[%s15254_s1 + $0x1c8c] ss:$16 sps:$4 sm:$0xff]  }
 0x399   :  { %8113 = vmatprep.subr.bf16.mxu1 %v10841_v15  ;;  %v10919_v15 = vld [vmem:[%s15254_s1 + $0x1e8c] ss:$16 sps:$4 sm:$0xff]  }
 0x39b   :  { %8061 = vmatpush1.bf16.msra.mxu0 %v10836_v13  ;;  %v15440_v13 = vld [vmem:[#allocation39_spill] sm:$0xff] }
 0x39c   :  { %8114 = vmatpush1.bf16.msra.mxu1 %v10839_v50  ;;  %8062 = vmatprep.subr.bf16.mxu0 %v10844_v31  ;;  %v15441_v50 = vld [vmem:[#allocation40_spill] sm:$0xff]  ;;  %v10914_v31 = vld [vmem:[%s15254_s1 + $0x1c88] ss:$16 sps:$4 sm:$0xff]  }
 0x39d   :  { %8115 = vmatprep.subr.bf16.mxu1 %v10847_v14  ;;  %v10917_v14 = vld [vmem:[%s15254_s1 + $0x1e88] ss:$16 sps:$4 sm:$0xff]  }
 0x39f   :  { %8063 = vmatpush1.bf16.msra.mxu0 %v10842_v61  ;;  %v10922_v61 = vld [vmem:[%s15254_s1 + $0x1c6c] ss:$16 sps:$4 sm:$0xff]  }
 0x3a0   :  { %8116 = vmatpush1.bf16.msra.mxu1 %v10845_v4  ;;  %8064 = vmatprep.subr.bf16.mxu0 %v10850_v27  ;;  %v10925_v4 = vld [vmem:[%s15254_s1 + $0x1e6c] ss:$16 sps:$4 sm:$0xff]  }
 0x3a1   :  { %8117 = vmatprep.subr.bf16.mxu1 %v10853_v21  ;;  %v15442_v27 = vld [vmem:[#allocation41_spill] sm:$0xff]  ;;  %v15443_v21 = vld [vmem:[#allocation42_spill] sm:$0xff] }
 0x3a3   :  { %8065 = vmatpush2.bf16.msra.mxu0 %v10848_v20  ;;  %v10920_v20 = vld [vmem:[%s15254_s1 + $0x1c68] ss:$16 sps:$4 sm:$0xff]  }
 0x3a4   :  { %8118 = vmatpush2.bf16.msra.mxu1 %v10851_v28  ;;  %8066 = vmatprep.subr.bf16.mxu0 %v10856_v5  ;;  %v10923_v28 = vld [vmem:[%s15254_s1 + $0x1e68] ss:$16 sps:$4 sm:$0xff]   ;;  %v10928_v5 = vld [vmem:[%s15254_s1 + $0x1c4c] ss:$16 sps:$4 sm:$0xff]  }
 0x3a5   :  { %8119 = vmatprep.subr.bf16.mxu1 %v10859_v1  ;;  %v10931_v1 = vld [vmem:[%s15254_s1 + $0x1e4c] ss:$16 sps:$4 sm:$0xff]  }
 0x3a7   :  { %8067 = vmatpush2.bf16.msra.mxu0 %v10854_v11  ;;  %v10926_v11 = vld [vmem:[%s15254_s1 + $0x1c48] ss:$16 sps:$4 sm:$0xff]  }
 0x3a8   :  { %8120 = vmatpush2.bf16.msra.mxu1 %v10857_v58  ;;  %8068 = vmatprep.subr.bf16.mxu0 %v10862_v38  ;;  %v10929_v58 = vld [vmem:[%s15254_s1 + $0x1e48] ss:$16 sps:$4 sm:$0xff]   ;;  %v10934_v38 = vld [vmem:[%s15254_s1 + $0x1c2c] ss:$16 sps:$4 sm:$0xff]  }
 0x3a9   :  { %8121 = vmatprep.subr.bf16.mxu1 %v10865_v30  ;;  %v10937_v30 = vld [vmem:[%s15254_s1 + $0x1e2c] ss:$16 sps:$4 sm:$0xff]  }
 0x3ab   :  { %8069 = vmatpush2.bf16.msra.mxu0 %v10860_v12  ;;  %v10932_v12 = vld [vmem:[%s15254_s1 + $0x1c28] ss:$16 sps:$4 sm:$0xff]  }
 0x3ac   :  { %8122 = vmatpush2.bf16.msra.mxu1 %v10863_v54  ;;  %8070 = vmatprep.subr.bf16.mxu0 %v10868_v40  ;;  %v10935_v54 = vld [vmem:[%s15254_s1 + $0x1e28] ss:$16 sps:$4 sm:$0xff]   ;;  %v10940_v40 = vld [vmem:[%s15254_s1 + $0x1c0c] ss:$16 sps:$4 sm:$0xff]  }
 0x3ad   :  { %8123 = vmatprep.subr.bf16.mxu1 %v10871_v24  ;;  %v10943_v24 = vld [vmem:[%s15254_s1 + $0x1e0c] ss:$16 sps:$4 sm:$0xff]  }
 0x3af   :  { %8071 = vmatpush2.bf16.msra.mxu0 %v10866_v57  ;;  %v10938_v57 = vld [vmem:[%s15254_s1 + $0x1c08] ss:$16 sps:$4 sm:$0xff]  }
 0x3b0   :  { %8124 = vmatpush2.bf16.msra.mxu1 %v10869_v49  ;;  %8072 = vmatprep.subr.bf16.mxu0 %v10874_v39  ;;  %v10941_v49 = vld [vmem:[%s15254_s1 + $0x1e08] ss:$16 sps:$4 sm:$0xff]   ;;  %v10946_v39 = vld [vmem:[%s15254_s1 + $0x1dec] ss:$16 sps:$4 sm:$0xff]  }
 0x3b1   :  { %8125 = vmatprep.subr.bf16.mxu1 %v10877_v32  ;;  %v10949_v32 = vld [vmem:[%s15254_s1 + $0x1fec] ss:$16 sps:$4 sm:$0xff]  }
 0x3b3   :  { %8073 = vmatpush2.bf16.msra.mxu0 %v10872_v47  ;;  %v10944_v47 = vld [vmem:[%s15254_s1 + $0x1de8] ss:$16 sps:$4 sm:$0xff]  }
 0x3b4   :  { %8126 = vmatpush2.bf16.msra.mxu1 %v10875_v59  ;;  %8074 = vmatprep.subr.bf16.mxu0 %v10880_v37  ;;  %v10947_v59 = vld [vmem:[%s15254_s1 + $0x1fe8] ss:$16 sps:$4 sm:$0xff]   ;;  %v10952_v37 = vld [vmem:[%s15254_s1 + $0x1dcc] ss:$16 sps:$4 sm:$0xff]  }
 0x3b5   :  { %8127 = vmatprep.subr.bf16.mxu1 %v10883_v6  ;;  %v10955_v6 = vld [vmem:[%s15254_s1 + $0x1fcc] ss:$16 sps:$4 sm:$0xff]  }
 0x3b7   :  { %8075 = vmatpush2.bf16.msra.mxu0 %v10878_v33  ;;  %v10950_v33 = vld [vmem:[%s15254_s1 + $0x1dc8] ss:$16 sps:$4 sm:$0xff]  }
 0x3b8   :  { %8128 = vmatpush2.bf16.msra.mxu1 %v10881_v25  ;;  %8076 = vmatprep.subr.bf16.mxu0 %v10886_v18  ;;  %v10953_v25 = vld [vmem:[%s15254_s1 + $0x1fc8] ss:$16 sps:$4 sm:$0xff]   ;;  %v10958_v18 = vld [vmem:[%s15254_s1 + $0x1dac] ss:$16 sps:$4 sm:$0xff]  }
 0x3b9   :  { %8129 = vmatprep.subr.bf16.mxu1 %v10889_v26  ;;  %v10961_v26 = vld [vmem:[%s15254_s1 + $0x1fac] ss:$16 sps:$4 sm:$0xff]  }
 0x3bb   :  { %8077 = vmatpush2.bf16.msra.mxu0 %v10884_v8  ;;  %v10956_v8 = vld [vmem:[%s15254_s1 + $0x1da8] ss:$16 sps:$4 sm:$0xff]  }
 0x3bc   :  { %8130 = vmatpush2.bf16.msra.mxu1 %v10887_v46  ;;  %8078 = vmatprep.subr.bf16.mxu0 %v10892_v3  ;;  %v10959_v46 = vld [vmem:[%s15254_s1 + $0x1fa8] ss:$16 sps:$4 sm:$0xff]   ;;  %v10964_v3 = vld [vmem:[%s15254_s1 + $0x1d8c] ss:$16 sps:$4 sm:$0xff]  }
 0x3bd   :  { %8131 = vmatprep.subr.bf16.mxu1 %v10895_v10  ;;  %v10967_v10 = vld [vmem:[%s15254_s1 + $0x1f8c] ss:$16 sps:$4 sm:$0xff]  }
 0x3bf   :  { %8079 = vmatpush2.bf16.msra.mxu0 %v10890_v55  ;;  %v10962_v55 = vld [vmem:[%s15254_s1 + $0x1d88] ss:$16 sps:$4 sm:$0xff]  }
 0x3c0   :  { %8132 = vmatpush2.bf16.msra.mxu1 %v10893_v17  ;;  %8154 = vmatprep.subr.bf16.mxu0 %v10898_v16  ;;  %v10965_v17 = vld [vmem:[%s15254_s1 + $0x1f88] ss:$16 sps:$4 sm:$0xff]   ;;  %v10970_v16 = vld [vmem:[%s15254_s1 + $0x1d6c] ss:$16 sps:$4 sm:$0xff]  }
 0x3c1   :  { %8207 = vmatprep.subr.bf16.mxu1 %v10901_v43  ;;  %v10973_v43 = vld [vmem:[%s15254_s1 + $0x1f6c] ss:$16 sps:$4 sm:$0xff]  }
 0x3c2   :  { %8081 = vmatmul.mubr.bf16.vlgmr.msra.gmra.mxu0 %v15436_v0  ;;  %v10974_v0 = vld [vmem:[%s15254_s1 + $0x1d48] ss:$16 sps:$4 sm:$0xff]  }
 0x3c3   :  { %8134 = vmatmul.mubr.bf16.vlgmr.msra.gmra.mxu1 %v15437_v44  ;;  %8155 = vmatpush1.bf16.msra.mxu0 %v10896_v19  ;;  %v10968_v19 = vld [vmem:[%s15254_s1 + $0x1d68] ss:$16 sps:$4 sm:$0xff]  }
 0x3c4   :  { %8208 = vmatpush1.bf16.msra.mxu1 %v10899_v41  ;;  %8156 = vmatprep.subr.bf16.mxu0 %v10904_v36  ;;  %v10971_v41 = vld [vmem:[%s15254_s1 + $0x1f68] ss:$16 sps:$4 sm:$0xff]   ;;  %v10976_v36 = vld [vmem:[%s15254_s1 + $0x1d4c] ss:$16 sps:$4 sm:$0xff]  }
 0x3c5   :  { %8209 = vmatprep.subr.bf16.mxu1 %v10907_v62  ;;  %8090 = vmatprep.mubr.bf16.mxu0 %v15438_v7  ;;  %v10979_v62 = vld [vmem:[%s15254_s1 + $0x1f4c] ss:$16 sps:$4 sm:$0xff]   ;;  %v10977_v44 = vld [vmem:[%s15254_s1 + $0x1f48] ss:$16 sps:$4 sm:$0xff]  }
 0x3c6   :  { %8143 = vmatprep.mubr.bf16.mxu1 %v15439_v51  ;;  %v10988_v7 = vld [vmem:[%s15254_s1 + $0x1d0c] ss:$16 sps:$4 sm:$0xff]  }
 0x3c7   :  { %8157 = vmatpush1.bf16.msra.mxu0 %v10902_v42  ;;  %v10982_v42 = vld [vmem:[%s15254_s1 + $0x1d2c] ss:$16 sps:$4 sm:$0xff]  }
 0x3c8   :  { %8210 = vmatpush1.bf16.msra.mxu1 %v10905_v48  ;;  %8158 = vmatprep.subr.bf16.mxu0 %v10910_v2  ;;  %v10985_v48 = vld [vmem:[%s15254_s1 + $0x1f2c] ss:$16 sps:$4 sm:$0xff]   ;;  %v10980_v2 = vld [vmem:[%s15254_s1 + $0x1d28] ss:$16 sps:$4 sm:$0xff]  }
 0x3c9   :  { %8211 = vmatprep.subr.bf16.mxu1 %v10913_v53  ;;  %v10983_v53 = vld [vmem:[%s15254_s1 + $0x1f28] ss:$16 sps:$4 sm:$0xff]   ;;  %v10991_v51 = vld [vmem:[%s15254_s1 + $0x1f0c] ss:$16 sps:$4 sm:$0xff]  }
 0x3ca   :  { %8091 = vmatmul.mubr.bf16.gmra.mxu0 %v15440_v13  ;;  %v15446_v13 = vld [vmem:[#allocation45_spill] sm:$0xff] }
 0x3cb   :  { %8144 = vmatmul.mubr.bf16.gmra.mxu1 %v15441_v50  ;;  %8159 = vmatpush1.bf16.msra.mxu0 %v10908_v23  ;;  %v10986_v23 = vld [vmem:[%s15254_s1 + $0x1d08] ss:$16 sps:$4 sm:$0xff]   ;;  %v15447_v50 = vld [vmem:[#allocation46_spill] sm:$0xff] }
 0x3cc   :  { %8212 = vmatpush1.bf16.msra.mxu1 %v10911_v56  ;;  %8160 = vmatprep.subr.bf16.mxu0 %v10916_v60  ;;  %v10989_v56 = vld [vmem:[%s15254_s1 + $0x1f08] ss:$16 sps:$4 sm:$0xff]  }
 0x3cd   :  { %8213 = vmatprep.subr.bf16.mxu1 %v10919_v15  ;;  %8186 = vmatprep.mubr.bf16.mxu0 %v15442_v27  ;;  %v15444_v60 = vld [vmem:[#allocation43_spill] sm:$0xff]  ;;  %v15445_v15 = vld [vmem:[#allocation44_spill] sm:$0xff] }
 0x3ce   :  { %8239 = vmatprep.mubr.bf16.mxu1 %v15443_v21  ;;  %v15036_v21 = vpop.f32.mrf.mxu1 }
 0x3cf   :  { %8161 = vmatpush1.bf16.msra.mxu0 %v10914_v31  ;;  %v15448_v31 = vld [vmem:[#allocation47_spill] sm:$0xff] }
 0x3d0   :  { %8214 = vmatpush1.bf16.msra.mxu1 %v10917_v14  ;;  %8162 = vmatprep.subr.bf16.mxu0 %v10922_v61  ;;  %v15449_v14 = vld [vmem:[#allocation48_spill] sm:$0xff]  ;;  %v15030_v61 = vpop.f32.mrf.mxu0 }
 0x3d1   :  { %8215 = vmatprep.subr.bf16.mxu1 %v10925_v4 }
 0x3d2   :  { %v15032_v4 = vpop.f32.mrf.mxu0 }
 0x3d3   :  { %8163 = vmatpush1.bf16.msra.mxu0 %v10920_v20 }
 0x3d4   :  { %8216 = vmatpush1.bf16.msra.mxu1 %v10923_v28  ;;  %8164 = vmatprep.subr.bf16.mxu0 %v10928_v5  ;;  %v15034_v27 = vpop.f32.mrf.mxu0  ;;  %v15040_v28 = vpop.f32.mrf.mxu1 }
 0x3d5   :  { %8217 = vmatprep.subr.bf16.mxu1 %v10931_v1 }
 0x3d6   :  { %v15038_v20 = vpop.f32.mrf.mxu0  ;;  %v15044_v1 = vpop.f32.mrf.mxu1 }
 0x3d7   :  { %8165 = vmatpush1.bf16.msra.mxu0 %v10926_v11 }
 0x3d8   :  { %8218 = vmatpush1.bf16.msra.mxu1 %v10929_v58  ;;  %8166 = vmatprep.subr.bf16.mxu0 %v10934_v38  ;;  %v15042_v5 = vpop.f32.mrf.mxu0  ;;  %v15048_v58 = vpop.f32.mrf.mxu1 }
 0x3d9   :  { %8219 = vmatprep.subr.bf16.mxu1 %v10937_v30 }
 0x3da   :  { %v15046_v11 = vpop.f32.mrf.mxu0  ;;  %v15050_v38 = vpop.f32.mrf.mxu1 }
 0x3db   :  { %8167 = vmatpush1.bf16.msra.mxu0 %v10932_v12 }
 0x3dc   :  { %8220 = vmatpush1.bf16.msra.mxu1 %v10935_v54  ;;  %8168 = vmatprep.subr.bf16.mxu0 %v10940_v40  ;;  %v15052_v30 = vpop.f32.mrf.mxu0  ;;  %v15054_v12 = vpop.f32.mrf.mxu1 }
 0x3dd   :  { %8221 = vmatprep.subr.bf16.mxu1 %v10943_v24 }
 0x3de   :  { %v15056_v54 = vpop.f32.mrf.mxu0  ;;  %v15058_v24 = vpop.f32.mrf.mxu1 }
 0x3df   :  { %8169 = vmatpush1.bf16.msra.mxu0 %v10938_v57 }
 0x3e0   :  { %8222 = vmatpush1.bf16.msra.mxu1 %v10941_v49  ;;  %8170 = vmatprep.subr.bf16.mxu0 %v10946_v39  ;;  %v7764_v40 = vpop.f32.mrf.mxu0  ;;  %v15060_v49 = vpop.f32.mrf.mxu1 }
 0x3e1   :  { %8223 = vmatprep.subr.bf16.mxu1 %v10949_v32 }
 0x3e2   :  { %v7766_v57 = vpop.f32.mrf.mxu0  ;;  %v15062_v39 = vpop.f32.mrf.mxu1 }
 0x3e3   :  { %8171 = vmatpush2.bf16.msra.mxu0 %v10944_v47 }
 0x3e4   :  { %8224 = vmatpush2.bf16.msra.mxu1 %v10947_v59  ;;  %8172 = vmatprep.subr.bf16.mxu0 %v10952_v37  ;;  %v15064_v32 = vpop.f32.mrf.mxu0  ;;  %v15066_v47 = vpop.f32.mrf.mxu1 }
 0x3e5   :  { %8225 = vmatprep.subr.bf16.mxu1 %v10955_v6 }
 0x3e6   :  { %v15068_v59 = vpop.f32.mrf.mxu0  ;;  %v15070_v37 = vpop.f32.mrf.mxu1 }
 0x3e7   :  { %8173 = vmatpush2.bf16.msra.mxu0 %v10950_v33 }
 0x3e8   :  { %8226 = vmatpush2.bf16.msra.mxu1 %v10953_v25  ;;  %8174 = vmatprep.subr.bf16.mxu0 %v10958_v18  ;;  %v15072_v6 = vpop.f32.mrf.mxu0  ;;  %v15074_v33 = vpop.f32.mrf.mxu1 }
 0x3e9   :  { %8227 = vmatprep.subr.bf16.mxu1 %v10961_v26 }
 0x3ea   :  { %v15076_v25 = vpop.f32.mrf.mxu0  ;;  %v15078_v18 = vpop.f32.mrf.mxu1 }
 0x3eb   :  { %8175 = vmatpush2.bf16.msra.mxu0 %v10956_v8 }
 0x3ec   :  { %8228 = vmatpush2.bf16.msra.mxu1 %v10959_v46  ;;  %8176 = vmatprep.subr.bf16.mxu0 %v10964_v3  ;;  %v15080_v26 = vpop.f32.mrf.mxu0  ;;  %v15082_v8 = vpop.f32.mrf.mxu1 }
 0x3ed   :  { %8229 = vmatprep.subr.bf16.mxu1 %v10967_v10 }
 0x3ee   :  { %v15084_v46 = vpop.f32.mrf.mxu0  ;;  %v15086_v3 = vpop.f32.mrf.mxu1 }
 0x3ef   :  { %8177 = vmatpush2.bf16.msra.mxu0 %v10962_v55 }
 0x3f0   :  { %8230 = vmatpush2.bf16.msra.mxu1 %v10965_v17  ;;  %8178 = vmatprep.subr.bf16.mxu0 %v10970_v16  ;;  %v15088_v55 = vpop.f32.mrf.mxu1 }
 0x3f1   :  { %8231 = vmatprep.subr.bf16.mxu1 %v10973_v43 }
 0x3f3   :  { %8179 = vmatpush2.bf16.msra.mxu0 %v10968_v19 }
 0x3f4   :  { %8232 = vmatpush2.bf16.msra.mxu1 %v10971_v41  ;;  %8180 = vmatprep.subr.bf16.mxu0 %v10976_v36 }
 0x3f5   :  { %8233 = vmatprep.subr.bf16.mxu1 %v10979_v62 }
 0x3f7   :  { %8181 = vmatpush2.bf16.msra.mxu0 %v10974_v0 }
 0x3f8   :  { %8234 = vmatpush2.bf16.msra.mxu1 %v10977_v44  ;;  %8182 = vmatprep.subr.bf16.mxu0 %v10982_v42 }
 0x3f9   :  { %8235 = vmatprep.subr.bf16.mxu1 %v10985_v48 }
 0x3fb   :  { %8183 = vmatpush2.bf16.msra.mxu0 %v10980_v2 }
 0x3fc   :  { %8236 = vmatpush2.bf16.msra.mxu1 %v10983_v53  ;;  %8184 = vmatprep.subr.bf16.mxu0 %v10988_v7 }
 0x3fd   :  { %8237 = vmatprep.subr.bf16.mxu1 %v10991_v51 }
 0x3ff   :  { %8185 = vmatpush2.bf16.msra.mxu0 %v10986_v23 }
 0x400   :  { %8238 = vmatpush2.bf16.msra.mxu1 %v10989_v56 }
 0x402   :  { %8187 = vmatmul.mubr.bf16.vlgmr.msra.gmra.mxu0 %v15444_v60  ;;  %v7870_v10 = vpop.f32.mrf.mxu0 }
 0x403   :  { %8240 = vmatmul.mubr.bf16.vlgmr.msra.gmra.mxu1 %v15445_v15  ;;  %8196 = vmatprep.mubr.bf16.mxu0 %v15446_v13  ;;  %v15090_v16 = vpop.f32.mrf.mxu1 }
 0x404   :  { %8249 = vmatprep.mubr.bf16.mxu1 %v15447_v50  ;;  %v7872_v17 = vpop.f32.mrf.mxu0 }
 0x405   :  { %v15094_v19 = vpop.f32.mrf.mxu1 }
 0x406   :  { %v15092_v43 = vpop.f32.mrf.mxu0 }
 0x407   :  { %v15098_v36 = vpop.f32.mrf.mxu1 }
 0x408   :  { %v15096_v41 = vpop.f32.mrf.mxu0 }
 0x409   :  { %v15102_v0 = vpop.f32.mrf.mxu1 }
 0x40a   :  { %8197 = vmatmul.mubr.bf16.gmra.mxu0 %v15448_v31  ;;  %v15100_v62 = vpop.f32.mrf.mxu0 }
 0x40b   :  { %8250 = vmatmul.mubr.bf16.gmra.mxu1 %v15449_v14  ;;  %v15106_v42 = vpop.f32.mrf.mxu1 }
 0x40c   :  { %v15104_v44 = vpop.f32.mrf.mxu0  ;;  %15451 = vst [vmem:[#allocation54_spill] sm:$0xff] %v15106_v42 }
 0x40d   :  { %15450 = vst [vmem:[#allocation53_spill] sm:$0xff] %v15104_v44  ;;  %v15110_v2 = vpop.f32.mrf.mxu1 }
 0x40e   :  { %v15108_v48 = vpop.f32.mrf.mxu0  ;;  %15453 = vst [vmem:[#allocation50_spill] sm:$0xff] %v15110_v2 }
 0x40f   :  { %15452 = vst [vmem:[#allocation49_spill] sm:$0xff] %v15108_v48  ;;  %v15114_v7 = vpop.f32.mrf.mxu1 }
 0x410   :  { %v15112_v53 = vpop.f32.mrf.mxu0  ;;  %15455 = vst [vmem:[#allocation55_spill] sm:$0xff] %v15114_v7 }
 0x411   :  { %15454 = vst [vmem:[#allocation56_spill] sm:$0xff] %v15112_v53  ;;  %v15116_v23 = vpop.f32.mrf.mxu1 }
 0x412   :  { %15456 = vst [vmem:[#allocation51_spill] sm:$0xff] %v15116_v23 }
 0x442   :  { %v7976_v51 = vpop.f32.mrf.mxu0 }
 0x443   :  { %v15118_v56 = vpop.f32.mrf.mxu1 }
 0x444   :  { %v15120_v60 = vpop.f32.mrf.mxu0 }
 0x445   :  { %v15122_v15 = vpop.f32.mrf.mxu1 }
 0x446   :  { %15457 = vst [vmem:[#allocation58_spill] sm:$0xff] %v15122_v15  ;;  %v15124_v13 = vpop.f32.mrf.mxu0 }
 0x447   :  { %v15126_v50 = vpop.f32.mrf.mxu1 }
 0x448   :  { %15458 = vst [vmem:[#allocation57_spill] sm:$0xff] %v15126_v50  ;;  %v15128_v31 = vpop.f32.mrf.mxu0 }
 0x449   :  { %v15130_v14 = vpop.f32.mrf.mxu1 }
 0x44a   :  { %15459 = vst [vmem:[#allocation52_spill] sm:$0xff] %v15130_v14  ;;  %v15132_v2 = vpop.f32.mrf.mxu0  ;;  %v7659_v14 = vadd.f32 %v15030_v61, %v14433_v34  ;;  %v7669_v61 = vadd.f32 %v15042_v5, %v14474_v63  ;;  %v7673_v63 = vadd.f32 %v15052_v30, %v14494_v45 }
 0x44b   :  { %15460 = vst [vmem:[#allocation59_spill] sm:$0xff] %v15132_v2  ;;  %v15134_v7 = vpop.f32.mrf.mxu1 }
 0x44c   :  { %15461 = vst [vmem:[#allocation60_spill] sm:$0xff] %v15134_v7  ;;  %v15136_v53 = vpop.f32.mrf.mxu0  ;;  %v7661_v7 = vadd.f32 %v15032_v4, %v14438_v29  ;;  %v7726_v45 = vadd.f32 %v15058_v24, %v7673_v63 }
 0x44d   :  { %15462 = vst [vmem:[#allocation61_spill] sm:$0xff] %v15136_v53  ;;  %v15138_v23 = vpop.f32.mrf.mxu1 }
 0x44e   :  { %15463 = vst [vmem:[#allocation66_spill] sm:$0xff] %v15138_v23  ;;  %v15140_v48 = vpop.f32.mrf.mxu0  ;;  %v7712_v23 = vadd.f32 %v15036_v21, %v7659_v14  ;;  %v15471_v14 = vld [vmem:[#allocation49_spill] sm:$0xff] }
 0x44f   :  { %15464 = vst [vmem:[#allocation64_spill] sm:$0xff] %v15140_v48  ;;  %v15142_v42 = vpop.f32.mrf.mxu1  ;;  %v7665_v48 = vadd.f32 %v15038_v20, %v14458_v35  ;;  %v7671_v35 = vadd.f32 %v15046_v11, %v14479_v9  ;;  %v7722_v20 = vadd.f32 %v15050_v38, %v7669_v61  ;;  %v15472_v61 = vld [vmem:[#allocation58_spill] sm:$0xff] }
 0x450   :  { %15465 = vst [vmem:[#allocation62_spill] sm:$0xff] %v15142_v42  ;;  %v15144_v15 = vpop.f32.mrf.mxu0  ;;  %v7663_v42 = vadd.f32 %v15034_v27, %v14453_v22  ;;  %v7765_v34 = vadd.f32 %v7764_v40, %v7712_v23 }
 0x451   :  { %15466 = vst [vmem:[#allocation68_spill] sm:$0xff] %v15144_v15  ;;  %v15146_v44 = vpop.f32.mrf.mxu1  ;;  %v7718_v22 = vadd.f32 %v15048_v58, %v7665_v48  ;;  %v7675_v58 = vadd.f32 %v15056_v54, %v14496_v52  ;;  %v7724_v38 = vadd.f32 %v15054_v12, %v7671_v35 }
 0x452   :  { %15467 = vst [vmem:[#allocation65_spill] sm:$0xff] %v15146_v44  ;;  %v7714_v44 = vadd.f32 %v15040_v28, %v7661_v7  ;;  %v7716_v29 = vadd.f32 %v15044_v1, %v7663_v42  ;;  %v7818_v27 = vadd.f32 %v15062_v39, %v7765_v34  ;;  %v7775_v39 = vadd.f32 %v15072_v6, %v7722_v20  ;;  %v15477_v20 = vld [vmem:[#allocation55_spill] sm:$0xff] }
 0x453   :  { %v7771_v40 = vadd.f32 %v15068_v59, %v7718_v22  ;;  %v7728_v54 = vadd.f32 %v15060_v49, %v7675_v58  ;;  %v7777_v6 = vadd.f32 %v15076_v25, %v7724_v38  ;;  %v15475_v22 = vld [vmem:[#allocation57_spill] sm:$0xff] }
 0x454   :  { %v7767_v4 = vadd.f32 %v7766_v57, %v7714_v44  ;;  %v7769_v28 = vadd.f32 %v15064_v32, %v7716_v29  ;;  %v7871_v57 = vadd.f32 %v7870_v10, %v7818_v27  ;;  %v7779_v10 = vadd.f32 %v15080_v26, %v7726_v45  ;;  %v15473_v29 = vld [vmem:[#allocation56_spill] sm:$0xff]  ;;  %v15481_v38 = vld [vmem:[#allocation61_spill] sm:$0xff] }
 0x455   :  { %v7781_v42 = vadd.f32 %v15084_v46, %v7728_v54 }
 0x456   :  { %v7820_v1 = vadd.f32 %v15066_v47, %v7767_v4  ;;  %v7822_v9 = vadd.f32 %v15070_v37, %v7769_v28  ;;  %v7824_v47 = vadd.f32 %v15074_v33, %v7771_v40  ;;  %v7924_v59 = vadd.f32 %v15090_v16, %v7871_v57  ;;  %v15474_v4 = vld [vmem:[#allocation59_spill] sm:$0xff]  ;;  %v15476_v28 = vld [vmem:[#allocation50_spill] sm:$0xff]  ;;  %v15478_v57 = vld [vmem:[#allocation52_spill] sm:$0xff] }
 0x457   :  { %v7828_v37 = vadd.f32 %v15078_v18, %v7775_v39  ;;  %v7830_v18 = vadd.f32 %v15082_v8, %v7777_v6  ;;  %v7832_v26 = vadd.f32 %v15086_v3, %v7779_v10  ;;  %v7834_v46 = vadd.f32 %v15088_v55, %v7781_v42 }
 0x458   :  { %v7873_v11 = vadd.f32 %v7872_v17, %v7820_v1  ;;  %v7875_v52 = vadd.f32 %v15092_v43, %v7822_v9  ;;  %v7877_v24 = vadd.f32 %v15096_v41, %v7824_v47  ;;  %v7977_v17 = vadd.f32 %v7976_v51, %v7924_v59  ;;  %v15470_v51 = vld [vmem:[#allocation54_spill] sm:$0xff]  ;;  %v15480_v9 = vld [vmem:[#allocation51_spill] sm:$0xff]  ;;  %v15482_v47 = vld [vmem:[#allocation60_spill] sm:$0xff] }
 0x459   :  { %v7881_v33 = vadd.f32 %v15100_v62, %v7828_v37  ;;  %v15469_v62 = vld [vmem:[#allocation53_spill] sm:$0xff] }
 0x45a   :  { %v7926_v12 = vadd.f32 %v15094_v19, %v7873_v11  ;;  %v7928_v49 = vadd.f32 %v15098_v36, %v7875_v52  ;;  %v7930_v43 = vadd.f32 %v15102_v0, %v7877_v24  ;;  %v8030_v19 = vadd.f32 %v15118_v56, %v7977_v17  ;;  %v15483_v52 = vld [vmem:[#allocation64_spill] sm:$0xff] }
 0x45b   :  { %v7883_v7 = vadd.f32 %v15469_v62, %v7830_v18  ;;  %v7934_v23 = vadd.f32 %v15470_v51, %v7881_v33  ;;  %v7885_v36 = vadd.f32 %v15471_v14, %v7832_v26  ;;  %v7887_v56 = vadd.f32 %v15473_v29, %v7834_v46  ;;  %v15484_v24 = vld [vmem:[#allocation68_spill] sm:$0xff]  ;;  %v15485_v26 = vld [vmem:[#allocation66_spill] sm:$0xff] }
 0x45c   :  { %v7979_v25 = vadd.f32 %v15120_v60, %v7926_v12  ;;  %v7981_v41 = vadd.f32 %v15124_v13, %v7928_v49  ;;  %v7983_v3 = vadd.f32 %v15128_v31, %v7930_v43 }
 0x45d   :  { %v7987_v13 = vadd.f32 %v15474_v4, %v7934_v23  ;;  %v7936_v35 = vadd.f32 %v15476_v28, %v7883_v7  ;;  %v7938_v63 = vadd.f32 %v15477_v20, %v7885_v36  ;;  %v7940_v11 = vadd.f32 %v15480_v9, %v7887_v56  ;;  %v15487_v23 = vld [vmem:[#allocation65_spill] sm:$0xff] }
 0x45e   :  { %v8032_v8 = vadd.f32 %v15472_v61, %v7979_v25  ;;  %v8034_v55 = vadd.f32 %v15475_v22, %v7981_v41  ;;  %v8036_v58 = vadd.f32 %v15478_v57, %v7983_v3 }
 0x45f   :  { %v7989_v45 = vadd.f32 %v15481_v38, %v7936_v35  ;;  %v8040_v59 = vadd.f32 %v15482_v47, %v7987_v13  ;;  %v7993_v17 = vadd.f32 %v15484_v24, %v7940_v11 }
 0x461   :  { %v8042_v43 = vadd.f32 %v15485_v26, %v7989_v45  ;;  %v8046_v14 = vadd.f32 %v15487_v23, %v7993_v17 }
 0x482   :  { %v15148_v50 = vpop.f32.mrf.mxu0 }
 0x483   :  { %v15152_v2 = vpop.f32.mrf.mxu1  ;;  %v8083_v0 = vadd.f32 %v15148_v50, %v8030_v19  ;;  %v15486_v19 = vld [vmem:[#allocation62_spill] sm:$0xff] }
 0x484   :  { %15468 = vst [vmem:[#allocation63_spill] sm:$0xff] %v15152_v2  ;;  %v15156_v53 = vpop.f32.mrf.mxu0 }
 0x485   :  { %v15161_v15 = vpop.f32.mrf.mxu1  ;;  %v8085_v27 = vadd.f32 %v15156_v53, %v8032_v8  ;;  %v7991_v53 = vadd.f32 %v15483_v52, %v7938_v63 }
 0x486   :  { %v15168_v2 = vpop.f32.mrf.mxu0 }
 0x487   :  { %v15171_v21 = vpop.f32.mrf.mxu1  ;;  %v8087_v50 = vadd.f32 %v15168_v2, %v8034_v55  ;;  %v8138_v37 = vadd.f32 %v15161_v15, %v8085_v27  ;;  %v8044_v41 = vadd.f32 %v15486_v19, %v7991_v53 }
 0x488   :  { %v8088_v5 = vpop.f32.mrf.mxu0 }
 0x489   :  { %v15186_v32 = vpop.f32.mrf.mxu1  ;;  %v8089_v10 = vadd.f32 %v8088_v5, %v8036_v58  ;;  %v8140_v2 = vadd.f32 %v15171_v21, %v8087_v50 }
 0x48a   :  { %v8092_v30 = vpop.f32.mrf.mxu0 }
 0x48b   :  { %v15191_v44 = vpop.f32.mrf.mxu1  ;;  %v15479_v39 = vld [vmem:[#allocation63_spill] sm:$0xff]  ;;  %v8093_v42 = vadd.f32 %v8092_v30, %v8040_v59  ;;  %v8142_v7 = vadd.f32 %v15186_v32, %v8089_v10 }
 0x48c   :  { %v8094_v16 = vpop.f32.mrf.mxu0  ;;  %v8136_v31 = vadd.f32 %v15479_v39, %v8083_v0 }
 0x48d   :  { %v15204_v48 = vpop.f32.mrf.mxu1  ;;  %v8095_v30 = vadd.f32 %v8094_v16, %v8042_v43  ;;  %v8146_v36 = vadd.f32 %v15191_v44, %v8093_v42 }
 0x48e   :  { %v8096_v34 = vpop.f32.mrf.mxu0 }
 0x48f   :  { %v8149_v60 = vpop.f32.mrf.mxu1  ;;  %v8097_v8 = vadd.f32 %v8096_v34, %v8044_v41  ;;  %v8148_v35 = vadd.f32 %v15204_v48, %v8095_v30 }
 0x490   :  { %v8098_v1 = vpop.f32.mrf.mxu0 }
 0x491   :  { %v8151_v40 = vpop.f32.mrf.mxu1  ;;  %v8099_v56 = vadd.f32 %v8098_v1, %v8046_v14  ;;  %v8150_v63 = vadd.f32 %v8149_v60, %v8097_v8 }
 0x493   :  { %v8152_v50 = vadd.f32 %v8151_v40, %v8099_v56 }
 0x4c2   :  { %v8188_v54 = vpop.f32.mrf.mxu0 }
 0x4c3   :  { %v8241_v6 = vpop.f32.mrf.mxu1  ;;  %v8189_v12 = vadd.f32 %v8188_v54, %v8136_v31 }
 0x4c4   :  { %v8190_v33 = vpop.f32.mrf.mxu0 }
 0x4c5   :  { %v8243_v49 = vpop.f32.mrf.mxu1  ;;  %v8242_v25 = vadd.f32 %v8241_v6, %v8189_v12  ;;  %v8191_v18 = vadd.f32 %v8190_v33, %v8138_v37 }
 0x4c6   :  { %v8192_v46 = vpop.f32.mrf.mxu0 }
 0x4c7   :  { %v8245_v62 = vpop.f32.mrf.mxu1  ;;  %v8262_v15 = vmul.f32 0.2, %v8242_v25  ;;  %v8244_v5 = vadd.f32 %v8243_v49, %v8191_v18  ;;  %v8193_v51 = vadd.f32 %v8192_v46, %v8140_v2 }
 0x4c8   :  { %v8194_v61 = vpop.f32.mrf.mxu0 }
 0x4c9   :  { %v8247_v21 = vpop.f32.mrf.mxu1  ;;  %v8263_v3 = vmul.f32 0.2, %v8244_v5  ;;  %v8246_v0 = vadd.f32 %v8245_v62, %v8193_v51  ;;  %v8195_v29 = vadd.f32 %v8194_v61, %v8142_v7  ;;  %v8278_v4 = vmax.f32 %v8242_v25, %v8262_v15 }
 0x4ca   :  { %v8198_v13 = vpop.f32.mrf.mxu0 }
 0x4cb   :  { %v8251_v22 = vpop.f32.mrf.mxu1  ;;  %v8279_v55 = vmax.f32 %v8244_v5, %v8263_v3  ;;  %v8266_v32 = vmul.f32 0.2, %v8246_v0  ;;  %v8248_v27 = vadd.f32 %v8247_v21, %v8195_v29  ;;  %v8199_v28 = vadd.f32 %v8198_v13, %v8146_v36 }
 0x4cc   :  { %v8200_v20 = vpop.f32.mrf.mxu0 }
 0x4cd   :  { %v8253_v16 = vpop.f32.mrf.mxu1  ;;  %v9449_v44 = vpack.c.bf16 %v8279_v55, %v8278_v4  ;;  %v8267_v57 = vmul.f32 0.2, %v8248_v27  ;;  %v8252_v58 = vadd.f32 %v8251_v22, %v8199_v28  ;;  %v8201_v34 = vadd.f32 %v8200_v20, %v8148_v35 }
 0x4ce   :  { %v8202_v39 = vpop.f32.mrf.mxu0  ;;  %v8282_v1 = vmax.f32 %v8246_v0, %v8266_v32 }
 0x4cf   :  { %v8255_v31 = vpop.f32.mrf.mxu1  ;;  %8341 = vst [vmem:[%s15257_s3 + $0x8] sm:$0xff] %v9449_v44  ;;  %v8283_v9 = vmax.f32 %v8248_v27, %v8267_v57  ;;  %v8203_v11 = vadd.f32 %v8202_v39, %v8150_v63  ;;  %v8270_v38 = vmul.f32 0.2, %v8252_v58  ;;  %v8254_v45 = vadd.f32 %v8253_v16, %v8201_v34 }
 0x4d0   :  { %v8204_v48 = vpop.f32.mrf.mxu0 }
 0x4d1   :  { %v9451_v47 = vpack.c.bf16 %v8283_v9, %v8282_v1  ;;  %v8256_v59 = vadd.f32 %v8255_v31, %v8203_v11  ;;  %v8205_v60 = vadd.f32 %v8204_v48, %v8152_v50  ;;  %v8271_v52 = vmul.f32 0.2, %v8254_v45  ;;  %v8257_v53 = vpop.f32.mrf.mxu1 }
 0x4d2   :  { %v8286_v6 = vmax.f32 %v8252_v58, %v8270_v38 }
 0x4d3   :  { %8343 = vst [vmem:[%s15257_s3 + $0x18] sm:$0xff] %v9451_v47  ;;  %v8274_v40 = vmul.f32 0.2, %v8256_v59  ;;  %v8258_v54 = vadd.f32 %v8257_v53, %v8205_v60  ;;  %v8287_v37 = vmax.f32 %v8254_v45, %v8271_v52 }
 0x4d5   :  { %v8275_v10 = vmul.f32 0.2, %v8258_v54  ;;  %v9453_v12 = vpack.c.bf16 %v8287_v37, %v8286_v6  ;;  %v8290_v24 = vmax.f32 %v8256_v59, %v8274_v40 }
 0x4d7   :  { %v8291_v17 = vmax.f32 %v8258_v54, %v8275_v10  ;;  %8345 = vst [vmem:[%s15257_s3 + $0x28] sm:$0xff] %v9453_v12 }
 0x4d9   :  { %v9455_v42 = vpack.c.bf16 %v8291_v17, %v8290_v24 }
 0x4db   :  { %8347 = vst [vmem:[%s15257_s3 + $0x38] sm:$0xff] %v9455_v42 }

</bundles_post_ra>
